<compile_context>
chip_gen: v7x
topology: tpu7x:2x2x1
jax: 0.10.0
libtpu: 0.0.40
codegen_flags: <defaults>
</compile_context>

<pallas_src>
import functools
import math

import jax
import jax.numpy as jnp
from jax import lax
from jax.experimental import pallas as pl
from jax.experimental.pallas import tpu as pltpu


_INV_SQRT2 = 1.0 / math.sqrt(2.0)


# ----------------------------- small math helpers ---------------------------

def _gelu(x):
    # exact (erf-based) GELU, matching torch.nn.GELU() default
    return 0.5 * x * (1.0 + lax.erf(x * _INV_SQRT2))


def _layernorm(x, gamma, beta, eps=1e-5):
    mu = jnp.mean(x, axis=-1, keepdims=True)
    xc = x - mu
    var = jnp.mean(xc * xc, axis=-1, keepdims=True)
    return xc * lax.rsqrt(var + eps) * gamma + beta


def _round_up(x, m):
    return ((x + m - 1) // m) * m


def _bf16(x):
    return jnp.asarray(x, jnp.bfloat16)


def _pick_tm(M, tm):
    """Row tile: multiple of 8, prefer an exact divisor of M (no padded rows,
    balanced grid for the v7x megacore split), as large as requested."""
    tm = int(max(8, min(int(tm), _round_up(M, 8))))
    tm = _round_up(tm, 8)
    if M % tm:
        for cand in range(tm, 7, -8):
            if M % cand == 0:
                return cand
    return tm


def gather_nodes(nodes, neighbor_idx):
    # nodes [B, L, C], neighbor_idx [B, L, K] -> [B, L, K, C]   (reference only)
    B, L, C = nodes.shape
    flat = neighbor_idx.reshape(B, -1)
    g = jnp.take_along_axis(nodes, flat[..., None], axis=1)
    return g.reshape(B, L, -1, C)


# ------------------------------- Pallas kernels ------------------------------

def _message_mlp(hv_b, he_b, hnb_b, w_s, w_en, b1, w2, b2, w3, b3, K):
    """W3(gelu(W2(gelu(W1([hv | he | hnb]))))) without materializing the concat
    in HBM.

    hv_b : (tm, H)    bf16  - self features, shared by the K neighbors of a row
    he_b : (tm*K, dE) bf16
    hnb_b: (tm*K, H)  bf16
    w_en : (dE+H, H)  bf16  - fused [edge ; neighbor] row-blocks of W1
    Returns the (tm*K, H) float32 message.
    """
    tm, H = hv_b.shape
    self_part = jnp.dot(hv_b, w_s, preferred_element_type=jnp.float32)     # (tm, H)
    # single 256-deep contraction instead of two 128-deep matmuls + f32 add
    x_in = jnp.concatenate([he_b, hnb_b], axis=-1)                         # (tm*K, dE+H)
    x = jnp.dot(x_in, w_en, preferred_element_type=jnp.float32) + b1       # (tm*K, H)
    # add the self term on the (tm, K, H) view (no broadcast_to materialization)
    x = x.reshape(tm, K, H) + self_part[:, None, :]
    h = _gelu(x).reshape(tm * K, H)
    h = _gelu(jnp.dot(h.astype(jnp.bfloat16), w2,
                      preferred_element_type=jnp.float32) + b2)
    return jnp.dot(h.astype(jnp.bfloat16), w3,
                   preferred_element_type=jnp.float32) + b3


def _node_kernel(hv_ref, he_ref, hnb_ref, matt_ref, mv_ref,
                 w1s_ref, w1en_ref, b1_ref,
                 w2_ref, b2_ref, w3_ref, b3_ref,
                 g1_ref, be1_ref,
                 win_ref, bin_ref, wout_ref, bout_ref,
                 g2_ref, be2_ref,
                 out_ref, *, K):
    """Node update: message MLP -> masked K-sum -> LN1 -> FFN -> LN2 -> mask.
    W3/b3 arrive pre-scaled by 1/scale."""
    tm, H = hv_ref.shape
    hv = hv_ref[...].astype(jnp.float32)

    msg = _message_mlp(hv_ref[...].astype(jnp.bfloat16),
                       he_ref[...].astype(jnp.bfloat16),
                       hnb_ref[...],                       # already bf16
                       w1s_ref[...], w1en_ref[...], b1_ref[...],
                       w2_ref[...], b2_ref[...], w3_ref[...], b3_ref[...], K)

    # mask_attend applied on the (tm, K, H) view, then K-sum (scale is folded
    # into W3/b3 already)
    msg = msg.reshape(tm, K, H) * matt_ref[...][:, :, None]
    dh = jnp.sum(msg, axis=1)                                # (tm, H)

    hv1 = _layernorm(hv + dh, g1_ref[...], be1_ref[...])

    # PositionWiseFeedForward
    ff = _gelu(jnp.dot(hv1.astype(jnp.bfloat16), win_ref[...],
                       preferred_element_type=jnp.float32) + bin_ref[...])
    ff = jnp.dot(ff.astype(jnp.bfloat16), wout_ref[...],
                 preferred_element_type=jnp.float32) + bout_ref[...]
    hv2 = _layernorm(hv1 + ff, g2_ref[...], be2_ref[...])
    hv2 = hv2 * mv_ref[...]                                  # mask_V (tm, 1)
    out_ref[...] = hv2.astype(out_ref.dtype)


def _edge_kernel(hv_ref, he_ref, hnb_ref,
                 w11s_ref, w11en_ref, b11_ref,
                 w12_ref, b12_ref, w13_ref, b13_ref,
                 g3_ref, be3_ref,
                 out_ref, *, K):
    """Edge update: message MLP on updated nodes -> residual (f32) -> LN3."""
    he = he_ref[...]
    msg = _message_mlp(hv_ref[...].astype(jnp.bfloat16),
                       he.astype(jnp.bfloat16),
                       hnb_ref[...],                        # already bf16
                       w11s_ref[...], w11en_ref[...], b11_ref[...],
                       w12_ref[...], b12_ref[...], w13_ref[...], b13_ref[...], K)
    out = _layernorm(he.astype(jnp.float32) + msg, g3_ref[...], be3_ref[...])
    out_ref[...] = out.astype(out_ref.dtype)


# --------------------------------- wrapper -----------------------------------

def _vmem_bytes_estimate(tm, K, H, dE, he_itemsize, out_itemsize):
    f32, bf16 = 4, 2
    stream = (tm * H * f32                     # h_V block
              + tm * K * dE * he_itemsize      # h_E block
              + tm * K * H * bf16              # neighbor block
              + tm * K * f32 + tm * f32        # masks
              + tm * K * H * out_itemsize)     # largest output block (edge kernel)
    weights = ((H + dE + H) * H + 2 * H * H + 8 * H * H) * bf16 + 16 * H * f32
    temps = (tm * K * (dE + H) * bf16          # in-kernel lane concat
             + 4 * tm * K * H * f32            # message-MLP intermediates
             + 4 * tm * H * f32)               # FFN intermediates
    return 2 * stream + 2 * weights + temps + (2 << 20)


def enc_layer_pallas(params, h_V, h_E, E_idx, mask_V=None, mask_attend=None,
                     scale=30.0, tm=128, vmem_limit_bytes=None):
    """EncLayer forward. h_V [B,L,H], h_E [B,L,K,dE], E_idx [B,L,K] int32."""
    B, L, H = h_V.shape
    K = E_idx.shape[-1]
    dE = h_E.shape[-1]
    M = B * L
    f32 = jnp.float32

    if mask_V is None:
        mask_V = jnp.ones((B, L), f32)
    if mask_attend is None:
        mask_attend = jnp.ones((B, L, K), f32)

    tm = _pick_tm(M, tm)
    M_pad = _round_up(M, tm)
    grid = (M_pad // tm,)

    if vmem_limit_bytes is None:
        est = _vmem_bytes_estimate(tm, K, H, dE,
                                   jnp.dtype(h_E.dtype).itemsize,
                                   jnp.dtype(h_E.dtype).itemsize)
        vmem_limit_bytes = int(min(max(2 * est, 32 << 20), 64 << 20))

    def pad_rows(x, rows):
        pad = rows - x.shape[0]
        return x if pad == 0 else jnp.pad(x, ((0, pad), (0, 0)))

    # keep caller dtypes on the big streams (a bf16 caller halves the DMA)
    hV_flat = h_V.reshape(M, H)
    hE_flat = h_E.reshape(M * K, dE)
    matt_flat = mask_attend.reshape(M, K).astype(f32)
    mV_flat = mask_V.reshape(M, 1).astype(f32)

    # global (batch-offset) neighbor row indices into the flat [M, H] node table
    offs = (jnp.arange(B, dtype=E_idx.dtype) * L)[:, None, None]
    nbr_idx = (E_idx + offs).reshape(M * K)

    hV_p = pad_rows(hV_flat, M_pad)
    hE_p = pad_rows(hE_flat, M_pad * K)
    matt_p = pad_rows(matt_flat, M_pad)
    mV_p = pad_rows(mV_flat, M_pad)

    # Linear weights stored [in, out]; split the first message layer into a
    # self row-block and a fused [edge ; neighbor] row-block so the concat
    # never hits HBM and the heavy matmul is a single (dE+H)-deep contraction.
    def split_fused(w):
        w = jnp.asarray(w)
        return _bf16(w[:H]), _bf16(w[H:])

    def wb(name):
        w, b = params[name]
        return _bf16(w), jnp.asarray(b, f32).reshape(1, -1)

    def ln(name):
        g, b = params[name]
        return jnp.asarray(g, f32).reshape(1, -1), jnp.asarray(b, f32).reshape(1, -1)

    compiler_params = pltpu.CompilerParams(
        dimension_semantics=("parallel",),
        vmem_limit_bytes=vmem_limit_bytes)

    def rowspec(block):
        return pl.BlockSpec(block, lambda i: (i, 0))

    def fullspec(x):
        # constant blocks (index map always (0,0)); Pallas skips re-fetching
        # unchanged blocks across grid steps.
        return pl.BlockSpec(x.shape, lambda i: (0, 0))

    # ---------------- kernel A: node update ----------------
    w1s, w1en = split_fused(params['W1'][0])
    b1 = jnp.asarray(params['W1'][1], f32).reshape(1, -1)
    w2, b2 = wb('W2')
    # fold 1/scale into W3/b3 (removes an in-kernel VPU pass over (tm, H))
    w3s = _bf16(jnp.asarray(params['W3'][0], f32) * (1.0 / scale))
    b3s = jnp.asarray(params['W3'][1], f32).reshape(1, -1) * (1.0 / scale)
    g1, be1 = ln('norm1')
    win, bin_ = wb('Win')
    wout, bout = wb('Wout')
    g2, be2 = ln('norm2')

    # neighbor gather stays in XLA but directly in bf16 (no f32 intermediate,
    # no separate convert pass).  TODO(synk): in-kernel gather on a resident
    # VMEM node table once dynamic row-gather lowering is guaranteed.
    hnb1 = jnp.take(hV_flat.astype(jnp.bfloat16), nbr_idx, axis=0)   # (M*K, H) bf16
    hnb1_p = pad_rows(hnb1, M_pad * K)

    weights_a = [w1s, w1en, b1, w2, b2, w3s, b3s, g1, be1,
                 win, bin_, wout, bout, g2, be2]

    node_out = pl.pallas_call(
        functools.partial(_node_kernel, K=K),
        out_shape=jax.ShapeDtypeStruct((M_pad, H), h_V.dtype),
        grid=grid,
        in_specs=[rowspec((tm, H)),          # h_V
                  rowspec((tm * K, dE)),     # h_E
                  rowspec((tm * K, H)),      # gathered neighbor nodes (bf16)
                  rowspec((tm, K)),          # mask_attend
                  rowspec((tm, 1))]          # mask_V
                 + [fullspec(w) for w in weights_a],
        out_specs=rowspec((tm, H)),
        compiler_params=compiler_params,
    )(hV_p, hE_p, hnb1_p, matt_p, mV_p, *weights_a)

    hV_new = node_out[:M]                                    # (M, H)

    # ---------------- kernel B: edge update ----------------
    w11s, w11en = split_fused(params['W11'][0])
    b11 = jnp.asarray(params['W11'][1], f32).reshape(1, -1)
    w12, b12 = wb('W12')
    w13, b13 = wb('W13')
    g3, be3 = ln('norm3')

    # gather from the *updated* (masked) nodes; padded rows are never indexed
    hnb2 = jnp.take(node_out.astype(jnp.bfloat16), nbr_idx, axis=0)  # (M*K, H) bf16
    hnb2_p = pad_rows(hnb2, M_pad * K)

    weights_b = [w11s, w11en, b11, w12, b12, w13, b13, g3, be3]

    edge_out = pl.pallas_call(
        functools.partial(_edge_kernel, K=K),
        out_shape=jax.ShapeDtypeStruct((M_pad * K, H), h_E.dtype),
        grid=grid,
        in_specs=[rowspec((tm, H)),          # updated h_V
                  rowspec((tm * K, dE)),     # h_E (f32 residual path)
                  rowspec((tm * K, H))]      # gathered updated neighbors (bf16)
                 + [fullspec(w) for w in weights_b],
        out_specs=rowspec((tm * K, H)),
        compiler_params=compiler_params,
    )(node_out, hE_p, hnb2_p, *weights_b)

    h_E_new = edge_out[:M * K].reshape(B, L, K, H)
    return hV_new.reshape(B, L, H), h_E_new


# ------------------------------ pure-JAX reference ---------------------------

def enc_layer_ref(params, h_V, h_E, E_idx, mask_V, mask_attend, scale=30.0):
    B, L, H = h_V.shape
    K = E_idx.shape[-1]

    def lin(p, x):
        w, b = p
        return x @ w + b

    def concat_ev(hv):
        return jnp.concatenate(
            [jnp.broadcast_to(hv[:, :, None, :], (B, L, K, H)),
             h_E, gather_nodes(hv, E_idx)], axis=-1)

    hev = concat_ev(h_V)
    h = lin(params['W3'], _gelu(lin(params['W2'], _gelu(lin(params['W1'], hev)))))
    h = h * mask_attend[..., None]
    dh = jnp.sum(h, axis=-2) / scale
    hv = _layernorm(h_V + dh, *params['norm1'])
    ff = lin(params['Wout'], _gelu(lin(params['Win'], hv)))
    hv = _layernorm(hv + ff, *params['norm2'])
    hv = hv * mask_V[..., None]

    hev = concat_ev(hv)
    h = lin(params['W13'], _gelu(lin(params['W12'], _gelu(lin(params['W11'], hev)))))
    he = _layernorm(h_E + h, *params['norm3'])
    return hv, he


# --------------------------------- params ------------------------------------

def init_params(key, num_hidden, num_in):
    C = num_hidden + num_in
    ks = jax.random.split(key, 8)

    def lin(k, fin, fout):
        kw, kb = jax.random.split(k)
        w = jax.random.normal(kw, (fin, fout), jnp.float32) * (1.0 / math.sqrt(fin))
        b = jax.random.normal(kb, (1, fout), jnp.float32) * 0.02
        return w, b

    H = num_hidden
    ln = lambda: (jnp.ones((1, H), jnp.float32), jnp.zeros((1, H), jnp.float32))
    return {
        'W1': lin(ks[0], C, H), 'W2': lin(ks[1], H, H), 'W3': lin(ks[2], H, H),
        'W11': lin(ks[3], C, H), 'W12': lin(ks[4], H, H), 'W13': lin(ks[5], H, H),
        'Win': lin(ks[6], H, 4 * H), 'Wout': lin(ks[7], 4 * H, H),
        'norm1': ln(), 'norm2': ln(), 'norm3': ln(),
    }


# ----------------------------------- main -------------------------------------

if __name__ == "__main__":
    # num_hidden = 128 (ProteinMPNN default width), num_in = 2*H, K = 8 neighbors.
    # M = B*L = 144: the tm auto-picker chooses tm=72 -> grid=(2,), zero padded
    # rows, and an even grid that balances a v7x megacore split.
    B, L, K, H = 2, 72, 8, 128
    key = jax.random.PRNGKey(0)
    k1, k2, k3, k4, k5, kp = jax.random.split(key, 6)

    h_V = jax.random.normal(k1, (B, L, H), jnp.float32)
    h_E = jax.random.normal(k2, (B, L, K, H), jnp.float32)
    E_idx = jax.random.randint(k3, (B, L, K), 0, L, jnp.int32)
    mask_V = (jax.random.uniform(k4, (B, L)) < 0.85).astype(jnp.float32)
    mask_attend = (jax.random.uniform(k5, (B, L, K)) < 0.85).astype(jnp.float32)

    params = init_params(kp, H, 2 * H)

    fwd = jax.jit(functools.partial(enc_layer_pallas, scale=30.0))
    hV_out, hE_out = fwd(params, h_V, h_E, E_idx, mask_V, mask_attend)
    jax.block_until_ready((hV_out, hE_out))

    hV_ref, hE_ref = enc_layer_ref(params, h_V, h_E, E_idx, mask_V, mask_attend)

    assert hV_out.shape == (B, L, H) and hE_out.shape == (B, L, K, H)
    # bf16 MXU inputs with f32 accumulation -> slightly relaxed tolerance.
    assert jnp.allclose(hV_out, hV_ref, rtol=3e-2, atol=3e-2)
    assert jnp.allclose(hE_out, hE_ref, rtol=3e-2, atol=3e-2)

    print("KERNEL_OK")
</pallas_src>

<mosaic_0001>
module attributes {stable_mosaic.version = 11 : i64} {
  func.func @_node_kernel(%arg0: i32, %arg1: memref<72x128xf32, #tpu.memory_space<vmem>>, %arg2: memref<576x128xf32, #tpu.memory_space<vmem>>, %arg3: memref<576x128xbf16, #tpu.memory_space<vmem>>, %arg4: memref<72x8xf32, #tpu.memory_space<vmem>>, %arg5: memref<72x1xf32, #tpu.memory_space<vmem>>, %arg6: memref<128x128xbf16, #tpu.memory_space<vmem>>, %arg7: memref<256x128xbf16, #tpu.memory_space<vmem>>, %arg8: memref<1x128xf32, #tpu.memory_space<vmem>>, %arg9: memref<128x128xbf16, #tpu.memory_space<vmem>>, %arg10: memref<1x128xf32, #tpu.memory_space<vmem>>, %arg11: memref<128x128xbf16, #tpu.memory_space<vmem>>, %arg12: memref<1x128xf32, #tpu.memory_space<vmem>>, %arg13: memref<1x128xf32, #tpu.memory_space<vmem>>, %arg14: memref<1x128xf32, #tpu.memory_space<vmem>>, %arg15: memref<128x512xbf16, #tpu.memory_space<vmem>>, %arg16: memref<1x512xf32, #tpu.memory_space<vmem>>, %arg17: memref<512x128xbf16, #tpu.memory_space<vmem>>, %arg18: memref<1x128xf32, #tpu.memory_space<vmem>>, %arg19: memref<1x128xf32, #tpu.memory_space<vmem>>, %arg20: memref<1x128xf32, #tpu.memory_space<vmem>>, %arg21: memref<72x128xf32, #tpu.memory_space<vmem>>) attributes {dimension_semantics = [#tpu.dimension_semantics<parallel>], iteration_bounds = array<i64: 2>, scalar_prefetch = 0 : i64, scratch_operands = 0 : i64, tpu.core_type = #tpu.core_type<tc>, window_params = [{transform_indices = @transform_0, window_bounds = array<i64: 72, 128>}, {transform_indices = @transform_1, window_bounds = array<i64: 576, 128>}, {transform_indices = @transform_2, window_bounds = array<i64: 576, 128>}, {transform_indices = @transform_3, window_bounds = array<i64: 72, 8>}, {transform_indices = @transform_4, window_bounds = array<i64: 72, 1>}, {pipeline_mode = #tpu.pipeline_mode<synchronous>, transform_indices = @transform_5, window_bounds = array<i64: 128, 128>}, {pipeline_mode = #tpu.pipeline_mode<synchronous>, transform_indices = @transform_6, window_bounds = array<i64: 256, 128>}, {pipeline_mode = #tpu.pipeline_mode<synchronous>, transform_indices = @transform_7, window_bounds = array<i64: 1, 128>}, {pipeline_mode = #tpu.pipeline_mode<synchronous>, transform_indices = @transform_8, window_bounds = array<i64: 128, 128>}, {pipeline_mode = #tpu.pipeline_mode<synchronous>, transform_indices = @transform_9, window_bounds = array<i64: 1, 128>}, {pipeline_mode = #tpu.pipeline_mode<synchronous>, transform_indices = @transform_10, window_bounds = array<i64: 128, 128>}, {pipeline_mode = #tpu.pipeline_mode<synchronous>, transform_indices = @transform_11, window_bounds = array<i64: 1, 128>}, {pipeline_mode = #tpu.pipeline_mode<synchronous>, transform_indices = @transform_12, window_bounds = array<i64: 1, 128>}, {pipeline_mode = #tpu.pipeline_mode<synchronous>, transform_indices = @transform_13, window_bounds = array<i64: 1, 128>}, {pipeline_mode = #tpu.pipeline_mode<synchronous>, transform_indices = @transform_14, window_bounds = array<i64: 128, 512>}, {pipeline_mode = #tpu.pipeline_mode<synchronous>, transform_indices = @transform_15, window_bounds = array<i64: 1, 512>}, {pipeline_mode = #tpu.pipeline_mode<synchronous>, transform_indices = @transform_16, window_bounds = array<i64: 512, 128>}, {pipeline_mode = #tpu.pipeline_mode<synchronous>, transform_indices = @transform_17, window_bounds = array<i64: 1, 128>}, {pipeline_mode = #tpu.pipeline_mode<synchronous>, transform_indices = @transform_18, window_bounds = array<i64: 1, 128>}, {pipeline_mode = #tpu.pipeline_mode<synchronous>, transform_indices = @transform_19, window_bounds = array<i64: 1, 128>}, {transform_indices = @transform_20, window_bounds = array<i64: 72, 128>}]} {
    %c0 = arith.constant 0 : index
    %c0_0 = arith.constant 0 : index
    %0 = vector.load %arg1[%c0, %c0_0] : memref<72x128xf32, #tpu.memory_space<vmem>>, vector<72x128xf32>
    %c0_1 = arith.constant 0 : index
    %c0_2 = arith.constant 0 : index
    %1 = vector.load %arg1[%c0_1, %c0_2] : memref<72x128xf32, #tpu.memory_space<vmem>>, vector<72x128xf32>
    %2 = arith.truncf %1 : vector<72x128xf32> to vector<72x128xbf16>
    %c0_3 = arith.constant 0 : index
    %c0_4 = arith.constant 0 : index
    %3 = vector.load %arg2[%c0_3, %c0_4] : memref<576x128xf32, #tpu.memory_space<vmem>>, vector<576x128xf32>
    %4 = arith.truncf %3 : vector<576x128xf32> to vector<576x128xbf16>
    %c0_5 = arith.constant 0 : index
    %c0_6 = arith.constant 0 : index
    %5 = vector.load %arg3[%c0_5, %c0_6] : memref<576x128xbf16, #tpu.memory_space<vmem>>, vector<576x128xbf16>
    %c0_7 = arith.constant 0 : index
    %c0_8 = arith.constant 0 : index
    %6 = vector.load %arg6[%c0_7, %c0_8] : memref<128x128xbf16, #tpu.memory_space<vmem>>, vector<128x128xbf16>
    %c0_9 = arith.constant 0 : index
    %c0_10 = arith.constant 0 : index
    %7 = vector.load %arg7[%c0_9, %c0_10] : memref<256x128xbf16, #tpu.memory_space<vmem>>, vector<256x128xbf16>
    %c0_11 = arith.constant 0 : index
    %c0_12 = arith.constant 0 : index
    %8 = vector.load %arg8[%c0_11, %c0_12] : memref<1x128xf32, #tpu.memory_space<vmem>>, vector<1x128xf32>
    %c0_13 = arith.constant 0 : index
    %c0_14 = arith.constant 0 : index
    %9 = vector.load %arg9[%c0_13, %c0_14] : memref<128x128xbf16, #tpu.memory_space<vmem>>, vector<128x128xbf16>
    %c0_15 = arith.constant 0 : index
    %c0_16 = arith.constant 0 : index
    %10 = vector.load %arg10[%c0_15, %c0_16] : memref<1x128xf32, #tpu.memory_space<vmem>>, vector<1x128xf32>
    %c0_17 = arith.constant 0 : index
    %c0_18 = arith.constant 0 : index
    %11 = vector.load %arg11[%c0_17, %c0_18] : memref<128x128xbf16, #tpu.memory_space<vmem>>, vector<128x128xbf16>
    %c0_19 = arith.constant 0 : index
    %c0_20 = arith.constant 0 : index
    %12 = vector.load %arg12[%c0_19, %c0_20] : memref<1x128xf32, #tpu.memory_space<vmem>>, vector<1x128xf32>
    %cst = arith.constant dense<0.000000e+00> : vector<72x128xf32>
    %13 = tpu.matmul %2, %6, %cst {dimension_numbers = #tpu.dot_dimension_numbers<[1], [0], [0], [1], [0, 0, 1, 1], [], []>} : vector<72x128xbf16>, vector<128x128xbf16>, vector<72x128xf32> -> vector<72x128xf32>
    %14 = tpu.concatenate %4, %5 in 1 : vector<576x128xbf16>, vector<576x128xbf16> -> vector<576x256xbf16>
    %cst_21 = arith.constant dense<0.000000e+00> : vector<576x128xf32>
    %15 = tpu.matmul %14, %7, %cst_21 {dimension_numbers = #tpu.dot_dimension_numbers<[1], [0], [0], [1], [0, 0, 1, 1], [], []>} : vector<576x256xbf16>, vector<256x128xbf16>, vector<576x128xf32> -> vector<576x128xf32>
    %16 = vector.broadcast %8 : vector<1x128xf32> to vector<576x128xf32>
    %17 = arith.addf %15, %16 : vector<576x128xf32>
    %18 = vector.shape_cast %17 : vector<576x128xf32> to vector<72x8x128xf32>
    %19 = vector.shape_cast %13 : vector<72x128xf32> to vector<72x1x128xf32>
    %20 = vector.broadcast %19 : vector<72x1x128xf32> to vector<72x8x128xf32>
    %21 = arith.addf %18, %20 : vector<72x8x128xf32>
    %cst_22 = arith.constant 5.000000e-01 : f32
    %22 = vector.broadcast %cst_22 : f32 to vector<72x8x128xf32>
    %23 = arith.mulf %22, %21 : vector<72x8x128xf32>
    %cst_23 = arith.constant 0.707106769 : f32
    %24 = vector.broadcast %cst_23 : f32 to vector<72x8x128xf32>
    %25 = arith.mulf %21, %24 : vector<72x8x128xf32>
    %26 = math.erf %25 : vector<72x8x128xf32>
    %cst_24 = arith.constant 1.000000e+00 : f32
    %27 = vector.broadcast %cst_24 : f32 to vector<72x8x128xf32>
    %28 = arith.addf %27, %26 : vector<72x8x128xf32>
    %29 = arith.mulf %23, %28 : vector<72x8x128xf32>
    %30 = vector.shape_cast %29 : vector<72x8x128xf32> to vector<576x128xf32>
    %31 = arith.truncf %30 : vector<576x128xf32> to vector<576x128xbf16>
    %cst_25 = arith.constant dense<0.000000e+00> : vector<576x128xf32>
    %32 = tpu.matmul %31, %9, %cst_25 {dimension_numbers = #tpu.dot_dimension_numbers<[1], [0], [0], [1], [0, 0, 1, 1], [], []>} : vector<576x128xbf16>, vector<128x128xbf16>, vector<576x128xf32> -> vector<576x128xf32>
    %33 = vector.broadcast %10 : vector<1x128xf32> to vector<576x128xf32>
    %34 = arith.addf %32, %33 : vector<576x128xf32>
    %cst_26 = arith.constant 5.000000e-01 : f32
    %35 = vector.broadcast %cst_26 : f32 to vector<576x128xf32>
    %36 = arith.mulf %35, %34 : vector<576x128xf32>
    %cst_27 = arith.constant 0.707106769 : f32
    %37 = vector.broadcast %cst_27 : f32 to vector<576x128xf32>
    %38 = arith.mulf %34, %37 : vector<576x128xf32>
    %39 = math.erf %38 : vector<576x128xf32>
    %cst_28 = arith.constant 1.000000e+00 : f32
    %40 = vector.broadcast %cst_28 : f32 to vector<576x128xf32>
    %41 = arith.addf %40, %39 : vector<576x128xf32>
    %42 = arith.mulf %36, %41 : vector<576x128xf32>
    %43 = arith.truncf %42 : vector<576x128xf32> to vector<576x128xbf16>
    %cst_29 = arith.constant dense<0.000000e+00> : vector<576x128xf32>
    %44 = tpu.matmul %43, %11, %cst_29 {dimension_numbers = #tpu.dot_dimension_numbers<[1], [0], [0], [1], [0, 0, 1, 1], [], []>} : vector<576x128xbf16>, vector<128x128xbf16>, vector<576x128xf32> -> vector<576x128xf32>
    %45 = vector.broadcast %12 : vector<1x128xf32> to vector<576x128xf32>
    %46 = arith.addf %44, %45 : vector<576x128xf32>
    %47 = vector.shape_cast %46 : vector<576x128xf32> to vector<72x8x128xf32>
    %c0_30 = arith.constant 0 : index
    %c0_31 = arith.constant 0 : index
    %48 = vector.load %arg4[%c0_30, %c0_31] : memref<72x8xf32, #tpu.memory_space<vmem>>, vector<72x8xf32>
    %49 = vector.shape_cast %48 : vector<72x8xf32> to vector<72x8x1xf32>
    %50 = vector.broadcast %49 : vector<72x8x1xf32> to vector<72x8x128xf32>
    %51 = arith.mulf %47, %50 : vector<72x8x128xf32>
    %cst_32 = arith.constant dense<0.000000e+00> : vector<72x128xf32>
    %52 = vector.multi_reduction <add>, %51, %cst_32 [1] : vector<72x8x128xf32> to vector<72x128xf32>
    %53 = arith.addf %0, %52 : vector<72x128xf32>
    %c0_33 = arith.constant 0 : index
    %c0_34 = arith.constant 0 : index
    %54 = vector.load %arg13[%c0_33, %c0_34] : memref<1x128xf32, #tpu.memory_space<vmem>>, vector<1x128xf32>
    %c0_35 = arith.constant 0 : index
    %c0_36 = arith.constant 0 : index
    %55 = vector.load %arg14[%c0_35, %c0_36] : memref<1x128xf32, #tpu.memory_space<vmem>>, vector<1x128xf32>
    %cst_37 = arith.constant dense<0.000000e+00> : vector<72xf32>
    %56 = vector.multi_reduction <add>, %53, %cst_37 [1] : vector<72x128xf32> to vector<72xf32>
    %57 = vector.shape_cast %56 : vector<72xf32> to vector<72x1xf32>
    %cst_38 = arith.constant 1.280000e+02 : f32
    %58 = vector.broadcast %cst_38 : f32 to vector<72x1xf32>
    %59 = arith.divf %57, %58 : vector<72x1xf32>
    %60 = vector.broadcast %59 : vector<72x1xf32> to vector<72x128xf32>
    %61 = arith.subf %53, %60 : vector<72x128xf32>
    %62 = arith.mulf %61, %61 : vector<72x128xf32>
    %cst_39 = arith.constant dense<0.000000e+00> : vector<72xf32>
    %63 = vector.multi_reduction <add>, %62, %cst_39 [1] : vector<72x128xf32> to vector<72xf32>
    %64 = vector.shape_cast %63 : vector<72xf32> to vector<72x1xf32>
    %cst_40 = arith.constant 1.280000e+02 : f32
    %65 = vector.broadcast %cst_40 : f32 to vector<72x1xf32>
    %66 = arith.divf %64, %65 : vector<72x1xf32>
    %cst_41 = arith.constant 9.99999974E-6 : f32
    %67 = vector.broadcast %cst_41 : f32 to vector<72x1xf32>
    %68 = arith.addf %66, %67 : vector<72x1xf32>
    %69 = math.rsqrt %68 : vector<72x1xf32>
    %70 = vector.broadcast %69 : vector<72x1xf32> to vector<72x128xf32>
    %71 = arith.mulf %61, %70 : vector<72x128xf32>
    %72 = vector.broadcast %54 : vector<1x128xf32> to vector<72x128xf32>
    %73 = arith.mulf %71, %72 : vector<72x128xf32>
    %74 = vector.broadcast %55 : vector<1x128xf32> to vector<72x128xf32>
    %75 = arith.addf %73, %74 : vector<72x128xf32>
    %76 = arith.truncf %75 : vector<72x128xf32> to vector<72x128xbf16>
    %c0_42 = arith.constant 0 : index
    %c0_43 = arith.constant 0 : index
    %77 = vector.load %arg15[%c0_42, %c0_43] : memref<128x512xbf16, #tpu.memory_space<vmem>>, vector<128x512xbf16>
    %cst_44 = arith.constant dense<0.000000e+00> : vector<72x512xf32>
    %78 = tpu.matmul %76, %77, %cst_44 {dimension_numbers = #tpu.dot_dimension_numbers<[1], [0], [0], [1], [0, 0, 1, 1], [], []>} : vector<72x128xbf16>, vector<128x512xbf16>, vector<72x512xf32> -> vector<72x512xf32>
    %c0_45 = arith.constant 0 : index
    %c0_46 = arith.constant 0 : index
    %79 = vector.load %arg16[%c0_45, %c0_46] : memref<1x512xf32, #tpu.memory_space<vmem>>, vector<1x512xf32>
    %80 = vector.broadcast %79 : vector<1x512xf32> to vector<72x512xf32>
    %81 = arith.addf %78, %80 : vector<72x512xf32>
    %cst_47 = arith.constant 5.000000e-01 : f32
    %82 = vector.broadcast %cst_47 : f32 to vector<72x512xf32>
    %83 = arith.mulf %82, %81 : vector<72x512xf32>
    %cst_48 = arith.constant 0.707106769 : f32
    %84 = vector.broadcast %cst_48 : f32 to vector<72x512xf32>
    %85 = arith.mulf %81, %84 : vector<72x512xf32>
    %86 = math.erf %85 : vector<72x512xf32>
    %cst_49 = arith.constant 1.000000e+00 : f32
    %87 = vector.broadcast %cst_49 : f32 to vector<72x512xf32>
    %88 = arith.addf %87, %86 : vector<72x512xf32>
    %89 = arith.mulf %83, %88 : vector<72x512xf32>
    %90 = arith.truncf %89 : vector<72x512xf32> to vector<72x512xbf16>
    %c0_50 = arith.constant 0 : index
    %c0_51 = arith.constant 0 : index
    %91 = vector.load %arg17[%c0_50, %c0_51] : memref<512x128xbf16, #tpu.memory_space<vmem>>, vector<512x128xbf16>
    %cst_52 = arith.constant dense<0.000000e+00> : vector<72x128xf32>
    %92 = tpu.matmul %90, %91, %cst_52 {dimension_numbers = #tpu.dot_dimension_numbers<[1], [0], [0], [1], [0, 0, 1, 1], [], []>} : vector<72x512xbf16>, vector<512x128xbf16>, vector<72x128xf32> -> vector<72x128xf32>
    %c0_53 = arith.constant 0 : index
    %c0_54 = arith.constant 0 : index
    %93 = vector.load %arg18[%c0_53, %c0_54] : memref<1x128xf32, #tpu.memory_space<vmem>>, vector<1x128xf32>
    %94 = vector.broadcast %93 : vector<1x128xf32> to vector<72x128xf32>
    %95 = arith.addf %92, %94 : vector<72x128xf32>
    %96 = arith.addf %75, %95 : vector<72x128xf32>
    %c0_55 = arith.constant 0 : index
    %c0_56 = arith.constant 0 : index
    %97 = vector.load %arg19[%c0_55, %c0_56] : memref<1x128xf32, #tpu.memory_space<vmem>>, vector<1x128xf32>
    %c0_57 = arith.constant 0 : index
    %c0_58 = arith.constant 0 : index
    %98 = vector.load %arg20[%c0_57, %c0_58] : memref<1x128xf32, #tpu.memory_space<vmem>>, vector<1x128xf32>
    %cst_59 = arith.constant dense<0.000000e+00> : vector<72xf32>
    %99 = vector.multi_reduction <add>, %96, %cst_59 [1] : vector<72x128xf32> to vector<72xf32>
    %100 = vector.shape_cast %99 : vector<72xf32> to vector<72x1xf32>
    %cst_60 = arith.constant 1.280000e+02 : f32
    %101 = vector.broadcast %cst_60 : f32 to vector<72x1xf32>
    %102 = arith.divf %100, %101 : vector<72x1xf32>
    %103 = vector.broadcast %102 : vector<72x1xf32> to vector<72x128xf32>
    %104 = arith.subf %96, %103 : vector<72x128xf32>
    %105 = arith.mulf %104, %104 : vector<72x128xf32>
    %cst_61 = arith.constant dense<0.000000e+00> : vector<72xf32>
    %106 = vector.multi_reduction <add>, %105, %cst_61 [1] : vector<72x128xf32> to vector<72xf32>
    %107 = vector.shape_cast %106 : vector<72xf32> to vector<72x1xf32>
    %cst_62 = arith.constant 1.280000e+02 : f32
    %108 = vector.broadcast %cst_62 : f32 to vector<72x1xf32>
    %109 = arith.divf %107, %108 : vector<72x1xf32>
    %cst_63 = arith.constant 9.99999974E-6 : f32
    %110 = vector.broadcast %cst_63 : f32 to vector<72x1xf32>
    %111 = arith.addf %109, %110 : vector<72x1xf32>
    %112 = math.rsqrt %111 : vector<72x1xf32>
    %113 = vector.broadcast %112 : vector<72x1xf32> to vector<72x128xf32>
    %114 = arith.mulf %104, %113 : vector<72x128xf32>
    %115 = vector.broadcast %97 : vector<1x128xf32> to vector<72x128xf32>
    %116 = arith.mulf %114, %115 : vector<72x128xf32>
    %117 = vector.broadcast %98 : vector<1x128xf32> to vector<72x128xf32>
    %118 = arith.addf %116, %117 : vector<72x128xf32>
    %c0_64 = arith.constant 0 : index
    %c0_65 = arith.constant 0 : index
    %119 = vector.load %arg5[%c0_64, %c0_65] : memref<72x1xf32, #tpu.memory_space<vmem>>, vector<72x1xf32>
    %120 = vector.broadcast %119 : vector<72x1xf32> to vector<72x128xf32>
    %121 = arith.mulf %118, %120 : vector<72x128xf32>
    %c0_66 = arith.constant 0 : index
    %c0_67 = arith.constant 0 : index
    %122 = vector.load %arg21[%c0_66, %c0_67] : memref<72x128xf32, #tpu.memory_space<vmem>>, vector<72x128xf32>
    tpu.vector_store %arg21[%c0_66, %c0_67], %121 {strides = array<i32>} : memref<72x128xf32, #tpu.memory_space<vmem>>, vector<72x128xf32>,
    return
  }
  func.func @transform_0(%arg0: i32) -> (i32, i32) {
    %c0_i32 = arith.constant 0 : i32
    %c0_i32_0 = arith.constant 0 : i32
    return %arg0, %c0_i32 : i32, i32
  }
  func.func @transform_1(%arg0: i32) -> (i32, i32) {
    %c0_i32 = arith.constant 0 : i32
    %c0_i32_0 = arith.constant 0 : i32
    return %arg0, %c0_i32 : i32, i32
  }
  func.func @transform_2(%arg0: i32) -> (i32, i32) {
    %c0_i32 = arith.constant 0 : i32
    %c0_i32_0 = arith.constant 0 : i32
    return %arg0, %c0_i32 : i32, i32
  }
  func.func @transform_3(%arg0: i32) -> (i32, i32) {
    %c0_i32 = arith.constant 0 : i32
    %c0_i32_0 = arith.constant 0 : i32
    return %arg0, %c0_i32 : i32, i32
  }
  func.func @transform_4(%arg0: i32) -> (i32, i32) {
    %c0_i32 = arith.constant 0 : i32
    %c0_i32_0 = arith.constant 0 : i32
    return %arg0, %c0_i32 : i32, i32
  }
  func.func @transform_5(%arg0: i32) -> (i32, i32) {
    %c0_i32 = arith.constant 0 : i32
    %c0_i32_0 = arith.constant 0 : i32
    %c0_i32_1 = arith.constant 0 : i32
    return %c0_i32, %c0_i32_0 : i32, i32
  }
  func.func @transform_6(%arg0: i32) -> (i32, i32) {
    %c0_i32 = arith.constant 0 : i32
    %c0_i32_0 = arith.constant 0 : i32
    %c0_i32_1 = arith.constant 0 : i32
    return %c0_i32, %c0_i32_0 : i32, i32
  }
  func.func @transform_7(%arg0: i32) -> (i32, i32) {
    %c0_i32 = arith.constant 0 : i32
    %c0_i32_0 = arith.constant 0 : i32
    %c0_i32_1 = arith.constant 0 : i32
    return %c0_i32, %c0_i32_0 : i32, i32
  }
  func.func @transform_8(%arg0: i32) -> (i32, i32) {
    %c0_i32 = arith.constant 0 : i32
    %c0_i32_0 = arith.constant 0 : i32
    %c0_i32_1 = arith.constant 0 : i32
    return %c0_i32, %c0_i32_0 : i32, i32
  }
  func.func @transform_9(%arg0: i32) -> (i32, i32) {
    %c0_i32 = arith.constant 0 : i32
    %c0_i32_0 = arith.constant 0 : i32
    %c0_i32_1 = arith.constant 0 : i32
    return %c0_i32, %c0_i32_0 : i32, i32
  }
  func.func @transform_10(%arg0: i32) -> (i32, i32) {
    %c0_i32 = arith.constant 0 : i32
    %c0_i32_0 = arith.constant 0 : i32
    %c0_i32_1 = arith.constant 0 : i32
    return %c0_i32, %c0_i32_0 : i32, i32
  }
  func.func @transform_11(%arg0: i32) -> (i32, i32) {
    %c0_i32 = arith.constant 0 : i32
    %c0_i32_0 = arith.constant 0 : i32
    %c0_i32_1 = arith.constant 0 : i32
    return %c0_i32, %c0_i32_0 : i32, i32
  }
  func.func @transform_12(%arg0: i32) -> (i32, i32) {
    %c0_i32 = arith.constant 0 : i32
    %c0_i32_0 = arith.constant 0 : i32
    %c0_i32_1 = arith.constant 0 : i32
    return %c0_i32, %c0_i32_0 : i32, i32
  }
  func.func @transform_13(%arg0: i32) -> (i32, i32) {
    %c0_i32 = arith.constant 0 : i32
    %c0_i32_0 = arith.constant 0 : i32
    %c0_i32_1 = arith.constant 0 : i32
    return %c0_i32, %c0_i32_0 : i32, i32
  }
  func.func @transform_14(%arg0: i32) -> (i32, i32) {
    %c0_i32 = arith.constant 0 : i32
    %c0_i32_0 = arith.constant 0 : i32
    %c0_i32_1 = arith.constant 0 : i32
    return %c0_i32, %c0_i32_0 : i32, i32
  }
  func.func @transform_15(%arg0: i32) -> (i32, i32) {
    %c0_i32 = arith.constant 0 : i32
    %c0_i32_0 = arith.constant 0 : i32
    %c0_i32_1 = arith.constant 0 : i32
    return %c0_i32, %c0_i32_0 : i32, i32
  }
  func.func @transform_16(%arg0: i32) -> (i32, i32) {
    %c0_i32 = arith.constant 0 : i32
    %c0_i32_0 = arith.constant 0 : i32
    %c0_i32_1 = arith.constant 0 : i32
    return %c0_i32, %c0_i32_0 : i32, i32
  }
  func.func @transform_17(%arg0: i32) -> (i32, i32) {
    %c0_i32 = arith.constant 0 : i32
    %c0_i32_0 = arith.constant 0 : i32
    %c0_i32_1 = arith.constant 0 : i32
    return %c0_i32, %c0_i32_0 : i32, i32
  }
  func.func @transform_18(%arg0: i32) -> (i32, i32) {
    %c0_i32 = arith.constant 0 : i32
    %c0_i32_0 = arith.constant 0 : i32
    %c0_i32_1 = arith.constant 0 : i32
    return %c0_i32, %c0_i32_0 : i32, i32
  }
  func.func @transform_19(%arg0: i32) -> (i32, i32) {
    %c0_i32 = arith.constant 0 : i32
    %c0_i32_0 = arith.constant 0 : i32
    %c0_i32_1 = arith.constant 0 : i32
    return %c0_i32, %c0_i32_0 : i32, i32
  }
  func.func @transform_20(%arg0: i32) -> (i32, i32) {
    %c0_i32 = arith.constant 0 : i32
    %c0_i32_0 = arith.constant 0 : i32
    return %arg0, %c0_i32 : i32, i32
  }
}

module attributes {stable_mosaic.version = 11 : i64} {
  func.func @_edge_kernel(%arg0: i32, %arg1: memref<72x128xf32, #tpu.memory_space<vmem>>, %arg2: memref<576x128xf32, #tpu.memory_space<vmem>>, %arg3: memref<576x128xbf16, #tpu.memory_space<vmem>>, %arg4: memref<128x128xbf16, #tpu.memory_space<vmem>>, %arg5: memref<256x128xbf16, #tpu.memory_space<vmem>>, %arg6: memref<1x128xf32, #tpu.memory_space<vmem>>, %arg7: memref<128x128xbf16, #tpu.memory_space<vmem>>, %arg8: memref<1x128xf32, #tpu.memory_space<vmem>>, %arg9: memref<128x128xbf16, #tpu.memory_space<vmem>>, %arg10: memref<1x128xf32, #tpu.memory_space<vmem>>, %arg11: memref<1x128xf32, #tpu.memory_space<vmem>>, %arg12: memref<1x128xf32, #tpu.memory_space<vmem>>, %arg13: memref<576x128xf32, #tpu.memory_space<vmem>>) attributes {dimension_semantics = [#tpu.dimension_semantics<parallel>], iteration_bounds = array<i64: 2>, scalar_prefetch = 0 : i64, scratch_operands = 0 : i64, tpu.core_type = #tpu.core_type<tc>, window_params = [{transform_indices = @transform_0, window_bounds = array<i64: 72, 128>}, {transform_indices = @transform_1, window_bounds = array<i64: 576, 128>}, {transform_indices = @transform_2, window_bounds = array<i64: 576, 128>}, {pipeline_mode = #tpu.pipeline_mode<synchronous>, transform_indices = @transform_3, window_bounds = array<i64: 128, 128>}, {pipeline_mode = #tpu.pipeline_mode<synchronous>, transform_indices = @transform_4, window_bounds = array<i64: 256, 128>}, {pipeline_mode = #tpu.pipeline_mode<synchronous>, transform_indices = @transform_5, window_bounds = array<i64: 1, 128>}, {pipeline_mode = #tpu.pipeline_mode<synchronous>, transform_indices = @transform_6, window_bounds = array<i64: 128, 128>}, {pipeline_mode = #tpu.pipeline_mode<synchronous>, transform_indices = @transform_7, window_bounds = array<i64: 1, 128>}, {pipeline_mode = #tpu.pipeline_mode<synchronous>, transform_indices = @transform_8, window_bounds = array<i64: 128, 128>}, {pipeline_mode = #tpu.pipeline_mode<synchronous>, transform_indices = @transform_9, window_bounds = array<i64: 1, 128>}, {pipeline_mode = #tpu.pipeline_mode<synchronous>, transform_indices = @transform_10, window_bounds = array<i64: 1, 128>}, {pipeline_mode = #tpu.pipeline_mode<synchronous>, transform_indices = @transform_11, window_bounds = array<i64: 1, 128>}, {transform_indices = @transform_12, window_bounds = array<i64: 576, 128>}]} {
    %c0 = arith.constant 0 : index
    %c0_0 = arith.constant 0 : index
    %0 = vector.load %arg2[%c0, %c0_0] : memref<576x128xf32, #tpu.memory_space<vmem>>, vector<576x128xf32>
    %c0_1 = arith.constant 0 : index
    %c0_2 = arith.constant 0 : index
    %1 = vector.load %arg1[%c0_1, %c0_2] : memref<72x128xf32, #tpu.memory_space<vmem>>, vector<72x128xf32>
    %2 = arith.truncf %1 : vector<72x128xf32> to vector<72x128xbf16>
    %3 = arith.truncf %0 : vector<576x128xf32> to vector<576x128xbf16>
    %c0_3 = arith.constant 0 : index
    %c0_4 = arith.constant 0 : index
    %4 = vector.load %arg3[%c0_3, %c0_4] : memref<576x128xbf16, #tpu.memory_space<vmem>>, vector<576x128xbf16>
    %c0_5 = arith.constant 0 : index
    %c0_6 = arith.constant 0 : index
    %5 = vector.load %arg4[%c0_5, %c0_6] : memref<128x128xbf16, #tpu.memory_space<vmem>>, vector<128x128xbf16>
    %c0_7 = arith.constant 0 : index
    %c0_8 = arith.constant 0 : index
    %6 = vector.load %arg5[%c0_7, %c0_8] : memref<256x128xbf16, #tpu.memory_space<vmem>>, vector<256x128xbf16>
    %c0_9 = arith.constant 0 : index
    %c0_10 = arith.constant 0 : index
    %7 = vector.load %arg6[%c0_9, %c0_10] : memref<1x128xf32, #tpu.memory_space<vmem>>, vector<1x128xf32>
    %c0_11 = arith.constant 0 : index
    %c0_12 = arith.constant 0 : index
    %8 = vector.load %arg7[%c0_11, %c0_12] : memref<128x128xbf16, #tpu.memory_space<vmem>>, vector<128x128xbf16>
    %c0_13 = arith.constant 0 : index
    %c0_14 = arith.constant 0 : index
    %9 = vector.load %arg8[%c0_13, %c0_14] : memref<1x128xf32, #tpu.memory_space<vmem>>, vector<1x128xf32>
    %c0_15 = arith.constant 0 : index
    %c0_16 = arith.constant 0 : index
    %10 = vector.load %arg9[%c0_15, %c0_16] : memref<128x128xbf16, #tpu.memory_space<vmem>>, vector<128x128xbf16>
    %c0_17 = arith.constant 0 : index
    %c0_18 = arith.constant 0 : index
    %11 = vector.load %arg10[%c0_17, %c0_18] : memref<1x128xf32, #tpu.memory_space<vmem>>, vector<1x128xf32>
    %cst = arith.constant dense<0.000000e+00> : vector<72x128xf32>
    %12 = tpu.matmul %2, %5, %cst {dimension_numbers = #tpu.dot_dimension_numbers<[1], [0], [0], [1], [0, 0, 1, 1], [], []>} : vector<72x128xbf16>, vector<128x128xbf16>, vector<72x128xf32> -> vector<72x128xf32>
    %13 = tpu.concatenate %3, %4 in 1 : vector<576x128xbf16>, vector<576x128xbf16> -> vector<576x256xbf16>
    %cst_19 = arith.constant dense<0.000000e+00> : vector<576x128xf32>
    %14 = tpu.matmul %13, %6, %cst_19 {dimension_numbers = #tpu.dot_dimension_numbers<[1], [0], [0], [1], [0, 0, 1, 1], [], []>} : vector<576x256xbf16>, vector<256x128xbf16>, vector<576x128xf32> -> vector<576x128xf32>
    %15 = vector.broadcast %7 : vector<1x128xf32> to vector<576x128xf32>
    %16 = arith.addf %14, %15 : vector<576x128xf32>
    %17 = vector.shape_cast %16 : vector<576x128xf32> to vector<72x8x128xf32>
    %18 = vector.shape_cast %12 : vector<72x128xf32> to vector<72x1x128xf32>
    %19 = vector.broadcast %18 : vector<72x1x128xf32> to vector<72x8x128xf32>
    %20 = arith.addf %17, %19 : vector<72x8x128xf32>
    %cst_20 = arith.constant 5.000000e-01 : f32
    %21 = vector.broadcast %cst_20 : f32 to vector<72x8x128xf32>
    %22 = arith.mulf %21, %20 : vector<72x8x128xf32>
    %cst_21 = arith.constant 0.707106769 : f32
    %23 = vector.broadcast %cst_21 : f32 to vector<72x8x128xf32>
    %24 = arith.mulf %20, %23 : vector<72x8x128xf32>
    %25 = math.erf %24 : vector<72x8x128xf32>
    %cst_22 = arith.constant 1.000000e+00 : f32
    %26 = vector.broadcast %cst_22 : f32 to vector<72x8x128xf32>
    %27 = arith.addf %26, %25 : vector<72x8x128xf32>
    %28 = arith.mulf %22, %27 : vector<72x8x128xf32>
    %29 = vector.shape_cast %28 : vector<72x8x128xf32> to vector<576x128xf32>
    %30 = arith.truncf %29 : vector<576x128xf32> to vector<576x128xbf16>
    %cst_23 = arith.constant dense<0.000000e+00> : vector<576x128xf32>
    %31 = tpu.matmul %30, %8, %cst_23 {dimension_numbers = #tpu.dot_dimension_numbers<[1], [0], [0], [1], [0, 0, 1, 1], [], []>} : vector<576x128xbf16>, vector<128x128xbf16>, vector<576x128xf32> -> vector<576x128xf32>
    %32 = vector.broadcast %9 : vector<1x128xf32> to vector<576x128xf32>
    %33 = arith.addf %31, %32 : vector<576x128xf32>
    %cst_24 = arith.constant 5.000000e-01 : f32
    %34 = vector.broadcast %cst_24 : f32 to vector<576x128xf32>
    %35 = arith.mulf %34, %33 : vector<576x128xf32>
    %cst_25 = arith.constant 0.707106769 : f32
    %36 = vector.broadcast %cst_25 : f32 to vector<576x128xf32>
    %37 = arith.mulf %33, %36 : vector<576x128xf32>
    %38 = math.erf %37 : vector<576x128xf32>
    %cst_26 = arith.constant 1.000000e+00 : f32
    %39 = vector.broadcast %cst_26 : f32 to vector<576x128xf32>
    %40 = arith.addf %39, %38 : vector<576x128xf32>
    %41 = arith.mulf %35, %40 : vector<576x128xf32>
    %42 = arith.truncf %41 : vector<576x128xf32> to vector<576x128xbf16>
    %cst_27 = arith.constant dense<0.000000e+00> : vector<576x128xf32>
    %43 = tpu.matmul %42, %10, %cst_27 {dimension_numbers = #tpu.dot_dimension_numbers<[1], [0], [0], [1], [0, 0, 1, 1], [], []>} : vector<576x128xbf16>, vector<128x128xbf16>, vector<576x128xf32> -> vector<576x128xf32>
    %44 = vector.broadcast %11 : vector<1x128xf32> to vector<576x128xf32>
    %45 = arith.addf %43, %44 : vector<576x128xf32>
    %46 = arith.addf %0, %45 : vector<576x128xf32>
    %c0_28 = arith.constant 0 : index
    %c0_29 = arith.constant 0 : index
    %47 = vector.load %arg11[%c0_28, %c0_29] : memref<1x128xf32, #tpu.memory_space<vmem>>, vector<1x128xf32>
    %c0_30 = arith.constant 0 : index
    %c0_31 = arith.constant 0 : index
    %48 = vector.load %arg12[%c0_30, %c0_31] : memref<1x128xf32, #tpu.memory_space<vmem>>, vector<1x128xf32>
    %cst_32 = arith.constant dense<0.000000e+00> : vector<576xf32>
    %49 = vector.multi_reduction <add>, %46, %cst_32 [1] : vector<576x128xf32> to vector<576xf32>
    %50 = vector.shape_cast %49 : vector<576xf32> to vector<576x1xf32>
    %cst_33 = arith.constant 1.280000e+02 : f32
    %51 = vector.broadcast %cst_33 : f32 to vector<576x1xf32>
    %52 = arith.divf %50, %51 : vector<576x1xf32>
    %53 = vector.broadcast %52 : vector<576x1xf32> to vector<576x128xf32>
    %54 = arith.subf %46, %53 : vector<576x128xf32>
    %55 = arith.mulf %54, %54 : vector<576x128xf32>
    %cst_34 = arith.constant dense<0.000000e+00> : vector<576xf32>
    %56 = vector.multi_reduction <add>, %55, %cst_34 [1] : vector<576x128xf32> to vector<576xf32>
    %57 = vector.shape_cast %56 : vector<576xf32> to vector<576x1xf32>
    %cst_35 = arith.constant 1.280000e+02 : f32
    %58 = vector.broadcast %cst_35 : f32 to vector<576x1xf32>
    %59 = arith.divf %57, %58 : vector<576x1xf32>
    %cst_36 = arith.constant 9.99999974E-6 : f32
    %60 = vector.broadcast %cst_36 : f32 to vector<576x1xf32>
    %61 = arith.addf %59, %60 : vector<576x1xf32>
    %62 = math.rsqrt %61 : vector<576x1xf32>
    %63 = vector.broadcast %62 : vector<576x1xf32> to vector<576x128xf32>
    %64 = arith.mulf %54, %63 : vector<576x128xf32>
    %65 = vector.broadcast %47 : vector<1x128xf32> to vector<576x128xf32>
    %66 = arith.mulf %64, %65 : vector<576x128xf32>
    %67 = vector.broadcast %48 : vector<1x128xf32> to vector<576x128xf32>
    %68 = arith.addf %66, %67 : vector<576x128xf32>
    %c0_37 = arith.constant 0 : index
    %c0_38 = arith.constant 0 : index
    %69 = vector.load %arg13[%c0_37, %c0_38] : memref<576x128xf32, #tpu.memory_space<vmem>>, vector<576x128xf32>
    tpu.vector_store %arg13[%c0_37, %c0_38], %68 {strides = array<i32>} : memref<576x128xf32, #tpu.memory_space<vmem>>, vector<576x128xf32>,
    return
  }
  func.func @transform_0(%arg0: i32) -> (i32, i32) {
    %c0_i32 = arith.constant 0 : i32
    %c0_i32_0 = arith.constant 0 : i32
    return %arg0, %c0_i32 : i32, i32
  }
  func.func @transform_1(%arg0: i32) -> (i32, i32) {
    %c0_i32 = arith.constant 0 : i32
    %c0_i32_0 = arith.constant 0 : i32
    return %arg0, %c0_i32 : i32, i32
  }
  func.func @transform_2(%arg0: i32) -> (i32, i32) {
    %c0_i32 = arith.constant 0 : i32
    %c0_i32_0 = arith.constant 0 : i32
    return %arg0, %c0_i32 : i32, i32
  }
  func.func @transform_3(%arg0: i32) -> (i32, i32) {
    %c0_i32 = arith.constant 0 : i32
    %c0_i32_0 = arith.constant 0 : i32
    %c0_i32_1 = arith.constant 0 : i32
    return %c0_i32, %c0_i32_0 : i32, i32
  }
  func.func @transform_4(%arg0: i32) -> (i32, i32) {
    %c0_i32 = arith.constant 0 : i32
    %c0_i32_0 = arith.constant 0 : i32
    %c0_i32_1 = arith.constant 0 : i32
    return %c0_i32, %c0_i32_0 : i32, i32
  }
  func.func @transform_5(%arg0: i32) -> (i32, i32) {
    %c0_i32 = arith.constant 0 : i32
    %c0_i32_0 = arith.constant 0 : i32
    %c0_i32_1 = arith.constant 0 : i32
    return %c0_i32, %c0_i32_0 : i32, i32
  }
  func.func @transform_6(%arg0: i32) -> (i32, i32) {
    %c0_i32 = arith.constant 0 : i32
    %c0_i32_0 = arith.constant 0 : i32
    %c0_i32_1 = arith.constant 0 : i32
    return %c0_i32, %c0_i32_0 : i32, i32
  }
  func.func @transform_7(%arg0: i32) -> (i32, i32) {
    %c0_i32 = arith.constant 0 : i32
    %c0_i32_0 = arith.constant 0 : i32
    %c0_i32_1 = arith.constant 0 : i32
    return %c0_i32, %c0_i32_0 : i32, i32
  }
  func.func @transform_8(%arg0: i32) -> (i32, i32) {
    %c0_i32 = arith.constant 0 : i32
    %c0_i32_0 = arith.constant 0 : i32
    %c0_i32_1 = arith.constant 0 : i32
    return %c0_i32, %c0_i32_0 : i32, i32
  }
  func.func @transform_9(%arg0: i32) -> (i32, i32) {
    %c0_i32 = arith.constant 0 : i32
    %c0_i32_0 = arith.constant 0 : i32
    %c0_i32_1 = arith.constant 0 : i32
    return %c0_i32, %c0_i32_0 : i32, i32
  }
  func.func @transform_10(%arg0: i32) -> (i32, i32) {
    %c0_i32 = arith.constant 0 : i32
    %c0_i32_0 = arith.constant 0 : i32
    %c0_i32_1 = arith.constant 0 : i32
    return %c0_i32, %c0_i32_0 : i32, i32
  }
  func.func @transform_11(%arg0: i32) -> (i32, i32) {
    %c0_i32 = arith.constant 0 : i32
    %c0_i32_0 = arith.constant 0 : i32
    %c0_i32_1 = arith.constant 0 : i32
    return %c0_i32, %c0_i32_0 : i32, i32
  }
  func.func @transform_12(%arg0: i32) -> (i32, i32) {
    %c0_i32 = arith.constant 0 : i32
    %c0_i32_0 = arith.constant 0 : i32
    return %arg0, %c0_i32 : i32, i32
  }
}

</mosaic_0001>

<bundles_post_ra>
// kernel: enc_layer_pallas.3
= control target key start
LH: loop header
LB: loop body
LE: loop exit
PB: predicated region body
PF: predicated region fallthrough
CT: control target
= control target key end

     0   :  { %s8260_s0 = inlined_call_operand.vmem [shape: f32[144,128], index: 0, kind: input, shape index: {}]   ;;  %s8261_s1 = inlined_call_operand.vmem [shape: f32[1152,128], index: 1, kind: input, shape index: {}]   ;;  %s8262_s2 = inlined_call_operand.vmem [shape: bf16[1152,128], index: 2, kind: input, shape index: {}]   ;;  %s8263_s3 = inlined_call_operand.vmem [shape: bf16[128,128], index: 3, kind: input, shape index: {}]   ;;  %s8264_s4 = inlined_call_operand.vmem [shape: bf16[256,128], index: 4, kind: input, shape index: {}]   ;;  %s8265_s5 = inlined_call_operand.vmem [shape: f32[1,128], index: 5, kind: input, shape index: {}]   ;;  %s8266_s6 = inlined_call_operand.vmem [shape: bf16[128,128], index: 6, kind: input, shape index: {}]   ;;  %s8267_s7 = inlined_call_operand.vmem [shape: f32[1,128], index: 7, kind: input, shape index: {}]   ;;  %s8268_s8 = inlined_call_operand.vmem [shape: bf16[128,128], index: 8, kind: input, shape index: {}]   ;;  %s8269_s9 = inlined_call_operand.vmem [shape: f32[1,128], index: 9, kind: input, shape index: {}]   ;;  %s8270_s10 = inlined_call_operand.vmem [shape: f32[1,128], index: 10, kind: input, shape index: {}]   ;;  %s8271_s11 = inlined_call_operand.vmem [shape: f32[1,128], index: 11, kind: input, shape index: {}]   ;;  %s8272_s12 = inlined_call_operand.hbm [shape: f32[1152,128], index: 12, kind: output, shape index: {}]  }
   0x1   :  { %8305 = sst [smem:[#allocation35_spill]] %s8260_s0 }
   0x2   :  { %8306 = sst [smem:[#allocation36_spill]] %s8262_s2 }
   0x3   :  { %17 = vsyncpa [#allocation3], 0 }
   0x4   :  { %19 = vsyncpa [#allocation3 + $0x1], 0  ;;  %s6287_s21 = smov 0   ;;  %s6289_s22 = smov 0  }
   0x5   :  { %s6291_s23 = smov 0   ;;  %s6293_s24 = smov 0  }
   0x6 LB: > { %8307 = sst [smem:[#allocation5_spill]] %s6209_s23  ;;  %s6308_s25 = sadd.s32 4294967295, %s6213_s24   ;;  %s6213_s24 = sphi %s6293_s24, %s8379_s24   ;;  %s6209_s23 = sphi %s6291_s23, %s8376_s23   ;;  %s6205_s22 = sphi %s6289_s22, %s8378_s22   ;;  %s6201_s21 = sphi %s6287_s21, %s8377_s21  }
   0x7   : > { %s5115_s26 = sadd.s32 4294967294, %s6213_s24   ;;  %s6312_s27 = sadd.s32 1, %s6213_s24  }
   0x8   : > { %s299_s28 = sadd.s32 1, %s6209_s23  ;;  %s296_s29 = ssub.s32 %s6213_s24, %s6312_s27 }
   0x9   : > { %p309_p0 = scmp.ne.s32.totalorder %s6209_s23, %s6205_s22  ;;  %p297_p1 = scmp.eq.s32.totalorder %s296_s29, 0 }
   0xa   : > { %p310_p2 = scmp.eq.s32.totalorder %s6308_s25, 1  ;;  %p315_p3 = scmp.ne.s32.totalorder %s6205_s22, %s6201_s21 }
   0xb   : > { %p316_p4 = scmp.eq.s32.totalorder %s5115_s26, 1  ;;  %p5118_p7 = scmp.ge.s32.totalorder %s6213_s24, 1 }
   0xc   : > { %s6323_s30 = scalar_select %p297_p1, %s6209_s23, %s299_s28  }
   0xd   : > { %p6325_p5 = por %p310_p2, %p309_p0  ;;  %p6329_p6 = por %p316_p4, %p315_p3 }
   0xe   : > { %8308 = sst [smem:[#allocation6_spill]] %s6323_s30  ;;  %p388_p8 = scmp.lt.s32.totalorder %s6213_s24, 3 }
  0x10   : > { %p389_p9 = pnand %p5118_p7, %p388_p8 }
  0x12   : > { %392 = sbr.rel (%p389_p9) target bundleno = 1422 (0x58e), region = 68 }
  0x19   : > { %v5566_v0 = vld [vmem:[%s8264_s4] sm:$0xff]   ;;  %v6215_v1 = vmov 0   ;;  %v5567_v2 = vld [vmem:[%s8264_s4 + $0x8] sm:$0xff]   ;;  %v6216_v3 = vmov 0.0   ;;  %vm6217_vm0 = vmmov 0   ;;  %v5568_v4 = vld [vmem:[%s8264_s4 + $0x10] sm:$0xff]  }
  0x1a   : > { %1175 = vmatprep.subr.bf16.mxu1 %v6215_v1  ;;  %5308 = vmatprep.subr.bf16.mxu0 %v6216_v3  ;;  %v5573_v5 = vld [vmem:[%s8263_s3] sm:$0xff]   ;;  %s446_s29 = smul.u32 72, %s6308_s25  ;;  %v5575_v6 = vld [vmem:[%s8263_s3 + $0x8] sm:$0xff]   ;;  %v5569_v7 = vld [vmem:[%s8264_s4 + $0x18] sm:$0xff]   ;;  %s8311_s2 = sld [smem:[#allocation36_spill]] }
  0x1b   : > { %1176 = vmatpush1.bf16.msra.mxu1 %v5566_v0  ;;  %5324 = vmatprep.mubr.msk.bf16.mxu0 %vm6217_vm0, %v6216_v3  ;;  %v5577_v8 = vld [vmem:[%s8263_s3 + $0x10] sm:$0xff]   ;;  %s440_s26 = smul.u32 9, %s6308_s25  ;;  %v5570_v9 = vld [vmem:[%s8264_s4 + $0x20] sm:$0xff]   ;;  %v5579_v10 = vld [vmem:[%s8263_s3 + $0x18] sm:$0xff]   ;;  %s8312_s0 = sld [smem:[#allocation35_spill]] }
  0x1c   : > { %1177 = vmatprep.subr.bf16.mxu1 %v6215_v1  ;;  %5309 = vmatpush3.bf16.msra.mxu0 %v5573_v5  ;;  %p447_p10 = scmp.lt.s32.totalorder %s446_s29, 143  ;;  %v5571_v11 = vld [vmem:[%s8264_s4 + $0x28] sm:$0xff]   ;;  %v5581_v12 = vld [vmem:[%s8263_s3 + $0x20] sm:$0xff]   ;;  %v5572_v13 = vld [vmem:[%s8264_s4 + $0x30] sm:$0xff]   ;;  %s5206_s19 = smul.u32 9216, %s6308_s25 }
  0x1d   : > { %5310 = vmatprep.subr.bf16.mxu0 %v6216_v3  ;;  %p441_p11 = scmp.lt.s32.totalorder %s440_s26, 17  ;;  %v5583_v14 = vld [vmem:[%s8263_s3 + $0x28] sm:$0xff]   ;;  %v5574_v16 = vld [vmem:[%s8264_s4 + $0x38] sm:$0xff]   ;;  %v5585_v17 = vld [vmem:[%s8263_s3 + $0x30] sm:$0xff]  }
  0x1e   : > { %s8381_s29 = smov (!%p447_p10, %s446_s29), 143  ;;  %v5576_v18 = vld [vmem:[%s8264_s4 + $0x40] sm:$0xff]   ;;  %v5587_v19 = vld [vmem:[%s8263_s3 + $0x38] sm:$0xff]   ;;  %v5578_v22 = vld [vmem:[%s8264_s4 + $0x48] sm:$0xff]  }
  0x1f   : > { %1178 = vmatpush1.bf16.msra.mxu1 %v5567_v2  ;;  %s5121_s20 = sshll.u32 %s8381_s29, 2  ;;  %s8383_s26 = smov (!%p441_p11, %s440_s26), 17  ;;  %v5580_v24 = vld [vmem:[%s8264_s4 + $0x50] sm:$0xff]   ;;  %v5582_v27 = vld [vmem:[%s8264_s4 + $0x58] sm:$0xff]   ;;  %v5584_v29 = vld [vmem:[%s8264_s4 + $0x60] sm:$0xff]  }
  0x20   : > { %1179 = vmatprep.subr.bf16.mxu1 %v6215_v1  ;;  %5311 = vmatpush3.bf16.msra.mxu0 %v5575_v6  ;;  %s6392_s30 = scalar_lea.vmem %s8311_s2, %s5121_s20  ;;  %s5119_s17 = sshll.u32 %s8383_s26, 3  ;;  %v5586_v30 = vld [vmem:[%s8264_s4 + $0x68] sm:$0xff]   ;;  %v5588_v31 = vld [vmem:[%s8264_s4 + $0x70] sm:$0xff]   ;;  %v5589_v32 = vld [vmem:[%s8264_s4 + $0x78] sm:$0xff]  }
  0x21   : > { %5312 = vmatprep.subr.bf16.mxu0 %v6216_v3  ;;  %v5590_v15 = vld [vmem:[%s6392_s30] sm:$0xff]   ;;  %s6410_s28 = scalar_lea.vmem %s8312_s0, %s5119_s17  ;;  %s5120_s20 = sshll.u32 %s8381_s29, 3  ;;  %v5591_v38 = vld [vmem:[%s6392_s30 + $0x8] sm:$0xff]   ;;  %v5592_v42 = vld [vmem:[%s6392_s30 + $0x10] sm:$0xff]  }
  0x22   : > { %1207 = vmatprep.mubr.bf16.mxu1 %v5590_v15  ;;  %v532_v20 = vld [vmem:[%s6410_s28] sm:$0xff]  ;;  %v533_v21 = vld [vmem:[%s6410_s28 + $0x8] sm:$0xff]  ;;  %v534_v25 = vld [vmem:[%s6410_s28 + $0x10] sm:$0xff]  ;;  %s6457_s15 = scalar_lea.vmem %s8261_s1, %s5120_s20  ;;  %s6219_s26 = smov [#allocation2]  }
  0x23   : > { %1180 = vmatpush1.bf16.msra.mxu1 %v5568_v4  ;;  %v541_v23 = vpack.c.bf16 %v533_v21, %v532_v20  ;;  %v535_v26 = vld [vmem:[%s6410_s28 + $0x18] sm:$0xff]  ;;  %v536_v33 = vld [vmem:[%s6410_s28 + $0x20] sm:$0xff]  ;;  %v537_v34 = vld [vmem:[%s6410_s28 + $0x28] sm:$0xff]  ;;  %s6155_s20 = sshll.u32 %s6219_s26, 4  ;;  %s6156_s20 = int_to_ptr.vmem [resolvable:$false] %s6155_s20 }
  0x24   : > { %1181 = vmatprep.subr.bf16.mxu1 %v6215_v1  ;;  %5313 = vmatpush3.bf16.msra.mxu0 %v5577_v8  ;;  %v542_v28 = vpack.c.bf16 %v535_v26, %v534_v25  ;;  %v460_v35 = vld [vmem:[%s6457_s15] sm:$0xff]  ;;  %v461_v36 = vld [vmem:[%s6457_s15 + $0x8] sm:$0xff]  ;;  %v543_v37 = vpack.c.bf16 %v537_v34, %v536_v33  ;;  %v462_v40 = vld [vmem:[%s6457_s15 + $0x10] sm:$0xff]  ;;  %s6157_s18 = scalar_lea.vmem %s6156_s20, 18432 }
  0x25   : > { %5314 = vmatprep.subr.bf16.mxu0 %v6216_v3  ;;  %v546_v39 = vpack.c.bf16 %v461_v36, %v460_v35  ;;  %v463_v41 = vld [vmem:[%s6457_s15 + $0x18] sm:$0xff]  ;;  %v464_v44 = vld [vmem:[%s6457_s15 + $0x20] sm:$0xff]  ;;  %v465_v45 = vld [vmem:[%s6457_s15 + $0x28] sm:$0xff] }
  0x26   : > { %v547_v43 = vpack.c.bf16 %v463_v41, %v462_v40  ;;  %v5593_v46 = vld [vmem:[%s6392_s30 + $0x18] sm:$0xff]   ;;  %v548_v47 = vpack.c.bf16 %v465_v45, %v464_v44  ;;  %v466_v48 = vld [vmem:[%s6457_s15 + $0x30] sm:$0xff]  ;;  %v5594_v51 = vld [vmem:[%s6392_s30 + $0x20] sm:$0xff]  }
  0x27   : > { %1182 = vmatpush1.bf16.msra.mxu1 %v5569_v7  ;;  %v467_v49 = vld [vmem:[%s6457_s15 + $0x38] sm:$0xff]  ;;  %v468_v52 = vld [vmem:[%s6457_s15 + $0x40] sm:$0xff]  ;;  %v469_v53 = vld [vmem:[%s6457_s15 + $0x48] sm:$0xff] }
  0x28   : > { %1183 = vmatprep.subr.bf16.mxu1 %v6215_v1  ;;  %5315 = vmatpush3.bf16.msra.mxu0 %v5579_v10  ;;  %v549_v50 = vpack.c.bf16 %v467_v49, %v466_v48  ;;  %v550_v54 = vpack.c.bf16 %v469_v53, %v468_v52  ;;  %v5595_v55 = vld [vmem:[%s6392_s30 + $0x28] sm:$0xff]   ;;  %v470_v56 = vld [vmem:[%s6457_s15 + $0x50] sm:$0xff]  ;;  %v471_v57 = vld [vmem:[%s6457_s15 + $0x58] sm:$0xff] }
  0x29   : > { %5316 = vmatprep.subr.bf16.mxu0 %v6216_v3  ;;  %v551_v58 = vpack.c.bf16 %v471_v57, %v470_v56  ;;  %v5596_v59 = vld [vmem:[%s6392_s30 + $0x30] sm:$0xff]   ;;  %v472_v60 = vld [vmem:[%s6457_s15 + $0x60] sm:$0xff]  ;;  %v473_v61 = vld [vmem:[%s6457_s15 + $0x68] sm:$0xff] }
  0x2a   : > { %v552_v62 = vpack.c.bf16 %v473_v61, %v472_v60  ;;  %v5597_v63 = vld [vmem:[%s6392_s30 + $0x38] sm:$0xff]   ;;  %v474_v0 = vld [vmem:[%s6457_s15 + $0x70] sm:$0xff]  ;;  %v5598_v4 = vld [vmem:[%s6392_s30 + $0x40] sm:$0xff]  }
  0x2b   : > { %1184 = vmatpush1.bf16.msra.mxu1 %v5570_v9  ;;  %v538_v5 = vld [vmem:[%s6410_s28 + $0x30] sm:$0xff]  ;;  %v539_v6 = vld [vmem:[%s6410_s28 + $0x38] sm:$0xff]  ;;  %v476_v7 = vld [vmem:[%s6457_s15 + $0x80] sm:$0xff] }
  0x2c   : > { %1185 = vmatprep.subr.bf16.mxu1 %v6215_v1  ;;  %5317 = vmatpush3.bf16.msra.mxu0 %v5581_v12  ;;  %v477_v8 = vld [vmem:[%s6457_s15 + $0x88] sm:$0xff]  ;;  %v544_v9 = vpack.c.bf16 %v539_v6, %v538_v5  ;;  %v478_v12 = vld [vmem:[%s6457_s15 + $0x90] sm:$0xff]  ;;  %v483_v20 = vld [vmem:[%s6457_s15 + $0xb8] sm:$0xff] }
  0x2d   : > { %5318 = vmatprep.subr.bf16.mxu0 %v6216_v3  ;;  %v554_v10 = vpack.c.bf16 %v477_v8, %v476_v7  ;;  %v5600_v15 = vld [vmem:[%s6392_s30 + $0x50] sm:$0xff]   ;;  %v5617_v21 = vld [vmem:[%s8266_s6] sm:$0xff]   ;;  %v485_v26 = vld [vmem:[%s6457_s15 + $0xc8] sm:$0xff] }
  0x2e   : > { %v484_v25 = vld [vmem:[%s6457_s15 + $0xc0] sm:$0xff]  ;;  %v5604_v35 = vld [vmem:[%s6392_s30 + $0x70] sm:$0xff]   ;;  %v5625_v36 = vld [vmem:[%s8266_s6 + $0x28] sm:$0xff]  }
  0x2f   : > { %1186 = vmatpush1.bf16.msra.mxu1 %v5571_v11  ;;  %v5599_v11 = vld [vmem:[%s6392_s30 + $0x48] sm:$0xff]   ;;  %v5623_v33 = vld [vmem:[%s8266_s6 + $0x20] sm:$0xff]   ;;  %v5626_v41 = vld [vmem:[%s8266_s6 + $0x30] sm:$0xff]  }
  0x30   : > { %1187 = vmatprep.subr.bf16.mxu1 %v6215_v1  ;;  %5319 = vmatpush3.bf16.msra.mxu0 %v5583_v14  ;;  %v5628_v44 = vld [vmem:[%s8266_s6 + $0x38] sm:$0xff]   ;;  %v490_v45 = vld [vmem:[%s6457_s15 + $0xf0] sm:$0xff]  ;;  %v5606_v48 = vld [vmem:[%s6392_s30 + $0x80] sm:$0xff]  }
  0x31   : > { %5320 = vmatprep.subr.bf16.mxu0 %v6216_v3  ;;  %v492_v49 = vld [vmem:[%s6457_s15 + $0x100] sm:$0xff]  ;;  %v5607_v52 = vld [vmem:[%s6392_s30 + $0x88] sm:$0xff]   ;;  %v494_v53 = vld [vmem:[%s6457_s15 + $0x110] sm:$0xff] }
  0x32   : > { %v5608_v56 = vld [vmem:[%s6392_s30 + $0x90] sm:$0xff]   ;;  %v496_v57 = vld [vmem:[%s6457_s15 + $0x120] sm:$0xff]  ;;  %v5609_v60 = vld [vmem:[%s6392_s30 + $0x98] sm:$0xff]  }
  0x33   : > { %1188 = vmatpush1.bf16.msra.mxu1 %v5572_v13  ;;  %v479_v13 = vld [vmem:[%s6457_s15 + $0x98] sm:$0xff]  ;;  %v498_v61 = vld [vmem:[%s6457_s15 + $0x130] sm:$0xff]  ;;  %v5611_v5 = vld [vmem:[%s6392_s30 + $0xa8] sm:$0xff]  }
  0x34   : > { %1189 = vmatprep.subr.bf16.mxu1 %v6215_v1  ;;  %5321 = vmatpush3.bf16.msra.mxu0 %v5585_v17  ;;  %v555_v14 = vpack.c.bf16 %v479_v13, %v478_v12  ;;  %v481_v17 = vld [vmem:[%s6457_s15 + $0xa8] sm:$0xff]  ;;  %v502_v6 = vld [vmem:[%s6457_s15 + $0x150] sm:$0xff]  ;;  %v503_v7 = vld [vmem:[%s6457_s15 + $0x158] sm:$0xff] }
  0x35   : > { %5322 = vmatprep.subr.bf16.mxu0 %v6216_v3  ;;  %v567_v8 = vpack.c.bf16 %v503_v7, %v502_v6  ;;  %v5613_v13 = vld [vmem:[%s6392_s30 + $0xb8] sm:$0xff]   ;;  %v516_v7 = vld [vmem:[%s6457_s15 + $0x1c0] sm:$0xff] }
  0x37   : > { %1190 = vmatpush1.bf16.msra.mxu1 %v5574_v16  ;;  %v480_v16 = vld [vmem:[%s6457_s15 + $0xa0] sm:$0xff] }
  0x38   : > { %1191 = vmatprep.subr.bf16.mxu1 %v6215_v1  ;;  %5323 = vmatpush3.bf16.msra.mxu0 %v5587_v19  ;;  %v5601_v19 = vld [vmem:[%s6392_s30 + $0x58] sm:$0xff]  }
  0x39   : > { %5344 = vmatprep.subr.bf16.mxu0 %v5617_v21 }
  0x3b   : > { %1192 = vmatpush1.bf16.msra.mxu1 %v5576_v18  ;;  %5325 = vmatmul.mubr.bf16.vlgmr.msra.gmra.mrb[0].mxu0 %v541_v23  ;;  %v556_v18 = vpack.c.bf16 %v481_v17, %v480_v16  ;;  %v5602_v23 = vld [vmem:[%s6392_s30 + $0x60] sm:$0xff]  }
  0x3c   : > { %1193 = vmatprep.subr.bf16.mxu1 %v6215_v1  ;;  %5328 = vmatprep.mubr.msk.bf16.mxu0 %vm6217_vm0, %v6216_v3  ;;  %v5614_v17 = vld [vmem:[%s6392_s30 + $0xc0] sm:$0xff]  }
  0x3d   : > { %5345 = vmatpush3.bf16.msra.mxu0 %v5617_v21 }
  0x3f   : > { %1194 = vmatpush1.bf16.msra.mxu1 %v5578_v22 }
  0x40   : > { %1195 = vmatprep.subr.bf16.mxu1 %v6215_v1 }
  0x43   : > { %1196 = vmatpush1.bf16.msra.mxu1 %v5580_v24  ;;  %5329 = vmatmul.mubr.bf16.gmra.mrb[4].mxu0 %v542_v28  ;;  %v5619_v24 = vld [vmem:[%s8266_s6 + $0x8] sm:$0xff]   ;;  %v558_v28 = vpack.c.bf16 %v485_v26, %v484_v25 }
  0x44   : > { %1197 = vmatprep.subr.bf16.mxu1 %v6215_v1  ;;  %5332 = vmatprep.mubr.msk.bf16.mxu0 %vm6217_vm0, %v6216_v3  ;;  %v5615_v26 = vld [vmem:[%s6392_s30 + $0xc8] sm:$0xff]  }
  0x45   : > { %5346 = vmatprep.subr.bf16.mxu0 %v5619_v24 }
  0x46   : > { %5347 = vmatpush3.bf16.msra.mxu0 %v5619_v24  ;;  %v1509_v24 = vlaneseq }
  0x47   : > { %1198 = vmatpush1.bf16.msra.mxu1 %v5582_v27  ;;  %v5620_v27 = vld [vmem:[%s8266_s6 + $0x10] sm:$0xff]  }
  0x48   : > { %1199 = vmatprep.subr.bf16.mxu1 %v6215_v1  ;;  %5348 = vmatprep.subr.bf16.mxu0 %v5620_v27 }
  0x4a   : > { %5349 = vmatpush3.bf16.msra.mxu0 %v5620_v27 }
  0x4b   : > { %1200 = vmatpush1.bf16.msra.mxu1 %v5584_v29  ;;  %5333 = vmatmul.mubr.bf16.gmra.mrb[8].mxu0 %v543_v37  ;;  %v5603_v29 = vld [vmem:[%s6392_s30 + $0x68] sm:$0xff]   ;;  %v488_v37 = vld [vmem:[%s6457_s15 + $0xe0] sm:$0xff] }
  0x4c   : > { %1201 = vmatprep.subr.bf16.mxu1 %v6215_v1  ;;  %5336 = vmatprep.mubr.msk.bf16.mxu0 %vm6217_vm0, %v6216_v3 }
  0x4f   : > { %1202 = vmatpush1.bf16.msra.mxu1 %v5586_v30  ;;  %v5622_v30 = vld [vmem:[%s8266_s6 + $0x18] sm:$0xff]  }
  0x50   : > { %1203 = vmatprep.subr.bf16.mxu1 %v6215_v1  ;;  %5350 = vmatprep.subr.bf16.mxu0 %v5622_v30 }
  0x51   : > { %5351 = vmatpush3.bf16.msra.mxu0 %v5622_v30  ;;  %v510_v30 = vld [vmem:[%s6457_s15 + $0x190] sm:$0xff] }
  0x52   : > { %5352 = vmatprep.subr.bf16.mxu0 %v5623_v33 }
  0x53   : > { %1204 = vmatpush1.bf16.msra.mxu1 %v5588_v31  ;;  %5337 = vmatmul.mubr.bf16.gmra.mrb[12].mxu0 %v544_v9  ;;  %v486_v31 = vld [vmem:[%s6457_s15 + $0xd0] sm:$0xff] }
  0x54   : > { %1205 = vmatprep.subr.bf16.mxu1 %v6215_v1  ;;  %v475_v1 = vld [vmem:[%s6457_s15 + $0x78] sm:$0xff]  ;;  %5340 = vmatprep.mubr.msk.bf16.mxu0 %vm6217_vm0, %v6216_v3  ;;  %v482_v3 = vld [vmem:[%s6457_s15 + $0xb0] sm:$0xff] }
  0x55   : > { %v553_v2 = vpack.c.bf16 %v475_v1, %v474_v0  ;;  %v557_v22 = vpack.c.bf16 %v483_v20, %v482_v3  ;;  %5353 = vmatpush3.bf16.msra.mxu0 %v5623_v33  ;;  %v5610_v0 = vld [vmem:[%s6392_s30 + $0xa0] sm:$0xff]   ;;  %v5612_v9 = vld [vmem:[%s6392_s30 + $0xb0] sm:$0xff]  }
  0x56   : > { %5354 = vmatprep.subr.bf16.mxu0 %v5625_v36  ;;  %v500_v1 = vld [vmem:[%s6457_s15 + $0x140] sm:$0xff] }
  0x57   : > { %1206 = vmatpush1.bf16.msra.mxu1 %v5589_v32  ;;  %v487_v32 = vld [vmem:[%s6457_s15 + $0xd8] sm:$0xff] }
  0x58   : > { %v559_v34 = vpack.c.bf16 %v487_v32, %v486_v31  ;;  %v511_v31 = vld [vmem:[%s6457_s15 + $0x198] sm:$0xff] }
  0x59   : > { %5355 = vmatpush3.bf16.msra.mxu0 %v5625_v36 }
  0x5a   : > { %1208 = vmatmul.mubr.bf16.vlgmr.msra.gmra.mrb[0].mxu1 %v546_v39  ;;  %v540_v39 = vld [vmem:[%s6410_s28 + $0x40] sm:$0xff]  ;;  %5356 = vmatprep.subr.bf16.mxu0 %v5626_v41 }
  0x5b   : > { %1215 = vmatprep.mubr.bf16.mxu1 %v5591_v38  ;;  %v489_v38 = vld [vmem:[%s6457_s15 + $0xe8] sm:$0xff]  ;;  %v545_v40 = vpack.c.bf16 %v540_v39, %v540_v39 }
  0x5d   : > { %5341 = vmatmul.mubr.bf16.gmra.mrb[16].mxu0 %v545_v40  ;;  %v512_v40 = vld [vmem:[%s6457_s15 + $0x1a0] sm:$0xff] }
  0x5e   : > { %5357 = vmatpush3.bf16.msra.mxu0 %v5626_v41  ;;  %v513_v41 = vld [vmem:[%s6457_s15 + $0x1a8] sm:$0xff] }
  0x5f   : > { %5358 = vmatprep.subr.bf16.mxu0 %v5628_v44 }
  0x62   : > { %1216 = vmatmul.mubr.bf16.gmra.mrb[4].mxu1 %v547_v43  ;;  %v5605_v43 = vld [vmem:[%s6392_s30 + $0x78] sm:$0xff]   ;;  %5359 = vmatpush3.bf16.msra.mxu0 %v5628_v44 }
  0x63   : > { %1223 = vmatprep.mubr.bf16.mxu1 %v5592_v42  ;;  %v560_v42 = vpack.c.bf16 %v489_v38, %v488_v37  ;;  %v5616_v37 = vld [vmem:[%s6392_s30 + $0xd0] sm:$0xff]   ;;  %v5618_v44 = vld [vmem:[%s6392_s30 + $0xd8] sm:$0xff]  }
  0x6a   : > { %1224 = vmatmul.mubr.bf16.gmra.mrb[8].mxu1 %v548_v47 }
  0x6b   : > { %1231 = vmatprep.mubr.bf16.mxu1 %v5593_v46  ;;  %v491_v46 = vld [vmem:[%s6457_s15 + $0xf8] sm:$0xff] }
  0x6c   : > { %v561_v47 = vpack.c.bf16 %v491_v46, %v490_v45 }
  0x72   : > { %1232 = vmatmul.mubr.bf16.gmra.mrb[12].mxu1 %v549_v50  ;;  %v493_v50 = vld [vmem:[%s6457_s15 + $0x108] sm:$0xff] }
  0x73   : > { %1239 = vmatprep.mubr.bf16.mxu1 %v5594_v51  ;;  %v562_v51 = vpack.c.bf16 %v493_v50, %v492_v49  ;;  %v6595_v50 = vld [vmem:[%s8265_s5] ss:$0 sm:$0xff] }
  0x7a   : > { %1240 = vmatmul.mubr.bf16.gmra.mrb[16].mxu1 %v550_v54  ;;  %v495_v54 = vld [vmem:[%s6457_s15 + $0x118] sm:$0xff] }
  0x7b   : > { %1247 = vmatprep.mubr.bf16.mxu1 %v5595_v55  ;;  %v563_v55 = vpack.c.bf16 %v495_v54, %v494_v53 }
  0x82   : > { %1248 = vmatmul.mubr.bf16.gmra.mrb[20].mxu1 %v551_v58  ;;  %v497_v58 = vld [vmem:[%s6457_s15 + $0x128] sm:$0xff] }
  0x83   : > { %1255 = vmatprep.mubr.bf16.mxu1 %v5596_v59  ;;  %v564_v59 = vpack.c.bf16 %v497_v58, %v496_v57 }
  0x8a   : > { %1256 = vmatmul.mubr.bf16.gmra.mrb[24].mxu1 %v552_v62  ;;  %v499_v62 = vld [vmem:[%s6457_s15 + $0x138] sm:$0xff] }
  0x8b   : > { %1263 = vmatprep.mubr.bf16.mxu1 %v5597_v63  ;;  %v565_v63 = vpack.c.bf16 %v499_v62, %v498_v61  ;;  %v5621_v61 = vld [vmem:[%s6392_s30 + $0xe0] sm:$0xff]  }
  0x92   : > { %1264 = vmatmul.mubr.bf16.gmra.mrb[28].mxu1 %v553_v2  ;;  %v501_v2 = vld [vmem:[%s6457_s15 + $0x148] sm:$0xff] }
  0x93   : > { %1271 = vmatprep.mubr.bf16.mxu1 %v5598_v4  ;;  %v566_v4 = vpack.c.bf16 %v501_v2, %v500_v1 }
  0x9a   : > { %1272 = vmatmul.mubr.bf16.gmra.mrb[32].mxu1 %v554_v10  ;;  %v504_v10 = vld [vmem:[%s6457_s15 + $0x160] sm:$0xff] }
  0x9b   : > { %1279 = vmatprep.mubr.bf16.mxu1 %v5599_v11  ;;  %v505_v11 = vld [vmem:[%s6457_s15 + $0x168] sm:$0xff] }
  0x9c   : > { %v568_v12 = vpack.c.bf16 %v505_v11, %v504_v10 }
  0xa2   : > { %1280 = vmatmul.mubr.bf16.gmra.mrb[36].mxu1 %v555_v14  ;;  %v506_v14 = vld [vmem:[%s6457_s15 + $0x170] sm:$0xff] }
  0xa3   : > { %1287 = vmatprep.mubr.bf16.mxu1 %v5600_v15  ;;  %v507_v15 = vld [vmem:[%s6457_s15 + $0x178] sm:$0xff] }
  0xa4   : > { %v569_v16 = vpack.c.bf16 %v507_v15, %v506_v14 }
  0xaa   : > { %1288 = vmatmul.mubr.bf16.gmra.mrb[40].mxu1 %v556_v18  ;;  %v508_v18 = vld [vmem:[%s6457_s15 + $0x180] sm:$0xff] }
  0xab   : > { %1295 = vmatprep.mubr.bf16.mxu1 %v5601_v19  ;;  %v509_v19 = vld [vmem:[%s6457_s15 + $0x188] sm:$0xff] }
  0xac   : > { %v570_v21 = vpack.c.bf16 %v509_v19, %v508_v18  ;;  %v5624_v18 = vld [vmem:[%s6392_s30 + $0xe8] sm:$0xff]  }
  0xb2   : > { %1296 = vmatmul.mubr.bf16.gmra.mrb[44].mxu1 %v557_v22  ;;  %v6218_v22 = vmov 1966171168  }
  0xb3   : > { %1303 = vmatprep.mubr.bf16.mxu1 %v5602_v23  ;;  %v1507_v23 = vunpack.c.l.s4 %v6218_v22 }
  0xba   : > { %1304 = vmatmul.mubr.bf16.gmra.mrb[48].mxu1 %v558_v28  ;;  %v1508_v28 = vunpack.c.0.s8 %v1507_v23 }
  0xbb   : > { %1311 = vmatprep.mubr.bf16.mxu1 %v5603_v29  ;;  %v1510_v29 = vshrl.u32 %v1509_v24, 7 }
  0xbd   : > { %v6587_v46 = vsub.s32 0, %v1510_v29 }
  0xc2   : > { %1312 = vmatmul.mubr.bf16.gmra.mrb[52].mxu1 %v559_v34  ;;  %v571_v34 = vpack.c.bf16 %v511_v31, %v510_v30 }
  0xc3   : > { %1319 = vmatprep.mubr.bf16.mxu1 %v5604_v35  ;;  %v6577_v35 = vsub.s32 %v1508_v28, %v1510_v29 }
  0xca   : > { %1320 = vmatmul.mubr.bf16.gmra.mrb[56].mxu1 %v560_v42 }
  0xcb   : > { %1327 = vmatprep.mubr.bf16.mxu1 %v5605_v43  ;;  %v572_v43 = vpack.c.bf16 %v513_v41, %v512_v40  ;;  %v5627_v41 = vld [vmem:[%s6392_s30 + $0xf0] sm:$0xff]  }
  0xd2   : > { %1328 = vmatmul.mubr.bf16.gmra.mrb[60].mxu1 %v561_v47 }
  0xd3   : > { %1335 = vmatprep.mubr.bf16.mxu1 %v5606_v48 }
  0xda   : > { %1336 = vmatmul.mubr.bf16.gmra.mrb[64].mxu1 %v562_v51  ;;  %v514_v51 = vld [vmem:[%s6457_s15 + $0x1b0] sm:$0xff] }
  0xdb   : > { %1343 = vmatprep.mubr.bf16.mxu1 %v5607_v52  ;;  %v515_v52 = vld [vmem:[%s6457_s15 + $0x1b8] sm:$0xff] }
  0xe2   : > { %1344 = vmatmul.mubr.bf16.gmra.mrb[68].mxu1 %v563_v55 }
  0xe3   : > { %1351 = vmatprep.mubr.bf16.mxu1 %v5608_v56 }
  0xea   : > { %1352 = vmatmul.mubr.bf16.gmra.mrb[72].mxu1 %v564_v59  ;;  %v573_v59 = vpack.c.bf16 %v515_v52, %v514_v51 }
  0xeb   : > { %1359 = vmatprep.mubr.bf16.mxu1 %v5609_v60 }
  0xf2   : > { %1360 = vmatmul.mubr.bf16.gmra.mrb[76].mxu1 %v565_v63 }
  0xf3   : > { %1367 = vmatprep.mubr.bf16.mxu1 %v5610_v0 }
  0xfa   : > { %1368 = vmatmul.mubr.bf16.gmra.mrb[80].mxu1 %v566_v4 }
  0xfb   : > { %1375 = vmatprep.mubr.bf16.mxu1 %v5611_v5 }
 0x102   : > { %1376 = vmatmul.mubr.bf16.gmra.mrb[84].mxu1 %v567_v8  ;;  %v517_v8 = vld [vmem:[%s6457_s15 + $0x1c8] sm:$0xff] }
 0x103   : > { %1383 = vmatprep.mubr.bf16.mxu1 %v5612_v9 }
 0x10a   : > { %1384 = vmatmul.mubr.bf16.gmra.mrb[88].mxu1 %v568_v12  ;;  %v574_v12 = vpack.c.bf16 %v517_v8, %v516_v7 }
 0x10b   : > { %1391 = vmatprep.mubr.bf16.mxu1 %v5613_v13 }
 0x10e   : > { %v819_v3 = vpop.f32.mrb[0].mxu0 }
 0x10f   : > { %v5326_v20 = vpop.f32.mrb[1].mxu0  ;;  %v1512_v39 = vrot.slane %v819_v3, %v6577_v35  ;;  %v1505_v55 = vcombine.high %v819_v3, %v819_v3 }
 0x110   : > { %v6570_v25 = vpop.f32.mrb[2].mxu0 }
 0x111   : > { %v5327_v27 = vpop.f32.mrb[3].mxu0  ;;  %v1520_v42 = vcombine.high %v1512_v39, %v1512_v39  ;;  %v1528_v45 = vrot.slane %v1512_v39, %v6577_v35  ;;  %v1519_v2 = vrot.slane %v1505_v55, %v6577_v35 }
 0x112   : > { %1392 = vmatmul.mubr.bf16.gmra.mrb[92].mxu1 %v569_v16  ;;  %v519_v27 = vld [vmem:[%s6457_s15 + $0x1d8] sm:$0xff] }
 0x113   : > { %1399 = vmatprep.mubr.bf16.mxu1 %v5614_v17  ;;  %v1542_v48 = vrot.slane %v1520_v42, %v6577_v35  ;;  %v1949_v53 = vrot.slane %v1528_v45, %v6587_v46  ;;  %v1550_v62 = vcombine.high %v1528_v45, %v1528_v45  ;;  %v1521_v13 = vcombine.high %v1519_v2, %v1519_v2 }
 0x114   : > { %v1535_v19 = vrot.slane %v1519_v2, %v6577_v35 }
 0x115   : > { %v1953_v58 = vrot.slane %v1542_v48, %v6587_v46  ;;  %v1552_v6 = vcombine.high %v1542_v48, %v1542_v48  ;;  %v1957_v10 = vrot.slane %v1550_v62, %v6587_v46  ;;  %v1549_v24 = vrot.slane %v1521_v13, %v6577_v35 }
 0x116   : > { %v6575_v32 = vpop.f32.mrb[4].mxu0  ;;  %v1965_v29 = vrot.slane %v1535_v19, %v6587_v46  ;;  %v1551_v48 = vcombine.high %v1535_v19, %v1535_v19 }
 0x117   : > { %v5330_v33 = vpop.f32.mrb[5].mxu0  ;;  %v1961_v16 = vrot.slane %v1552_v6, %v6587_v46  ;;  %v1553_v55 = vcombine.high %v1549_v24, %v1549_v24 }
 0x118   : > { %v6579_v36 = vpop.f32.mrb[6].mxu0  ;;  %v1973_v62 = vrot.slane %v1551_v48, %v6587_v46 }
 0x119   : > { %v5331_v38 = vpop.f32.mrb[7].mxu0  ;;  %v1977_v6 = vrot.slane %v1553_v55, %v6587_v46 }
 0x11a   : > { %1400 = vmatmul.mubr.bf16.gmra.mrb[96].mxu1 %v570_v21 }
 0x11b   : > { %1407 = vmatprep.mubr.bf16.mxu1 %v5615_v26  ;;  %v518_v26 = vld [vmem:[%s6457_s15 + $0x1d0] sm:$0xff] }
 0x11c   : > { %v575_v38 = vpack.c.bf16 %v519_v27, %v518_v26  ;;  %v523_v26 = vld [vmem:[%s6457_s15 + $0x1f8] sm:$0xff] }
 0x11e   : > { %v6589_v47 = vpop.f32.mrb[8].mxu0 }
 0x11f   : > { %v5334_v49 = vpop.f32.mrb[9].mxu0 }
 0x120   : > { %v6639_v19 = vpop.f32.mrb[10].mxu0 }
 0x121   : > { %v5335_v27 = vpop.f32.mrb[11].mxu0 }
 0x122   : > { %1408 = vmatmul.mubr.bf16.gmra.mrb[100].mxu1 %v571_v34 }
 0x123   : > { %1415 = vmatprep.mubr.bf16.mxu1 %v5616_v37  ;;  %v1969_v37 = vrot.slane %v1549_v24, %v6587_v46  ;;  %v522_v24 = vld [vmem:[%s6457_s15 + $0x1f0] sm:$0xff] }
 0x12a   : > { %1416 = vmatmul.mubr.bf16.gmra.mrb[104].mxu1 %v572_v43 }
 0x12b   : > { %1423 = vmatprep.mubr.bf16.mxu1 %v5618_v44 }
 0x12d   : > { %v1209_v54 = vpop.f32.mrb[0].mxu1 }
 0x12e   : > { %v1210_v56 = vadd.f32 %v6595_v50, %v1209_v54  ;;  %v1211_v57 = vpop.f32.mrb[1].mxu1 }
 0x12f   : > { %v1212_v60 = vpop.f32.mrb[2].mxu1  ;;  %v520_v57 = vld [vmem:[%s6457_s15 + $0x1e0] sm:$0xff] }
 0x130   : > { %v2306_v63 = vadd.f32 %v1949_v53, %v1210_v56  ;;  %v1213_v0 = vadd.f32 %v6595_v50, %v1212_v60  ;;  %v1214_v1 = vpop.f32.mrb[3].mxu1  ;;  %v1561_v56 = vrot.slane %v6570_v25, %v6577_v35 }
 0x132   : > { %v2450_v4 = vmul.f32 0.70710677, %v2306_v63  ;;  %v2307_v5 = vadd.f32 %v1953_v58, %v1213_v0  ;;  %1424 = vmatmul.mubr.bf16.gmra.mrb[108].mxu1 %v573_v59  ;;  %v2378_v49 = vmul.f32 0.5, %v2306_v63  ;;  %v521_v58 = vld [vmem:[%s6457_s15 + $0x1e8] sm:$0xff]  ;;  %v1569_v7 = vcombine.high %v1561_v56, %v1561_v56 }
 0x133   : > { %1431 = vmatprep.mubr.bf16.mxu1 %v5621_v61  ;;  %v576_v1 = vpack.c.bf16 %v521_v58, %v520_v57 }
 0x134   : > { %5642 = verf.f32 %v2450_v4  ;;  %v2451_v9 = vmul.f32 0.70710677, %v2307_v5  ;;  %v2379_v51 = vmul.f32 0.5, %v2307_v5 }
 0x135   : > { %v1217_v11 = vpop.f32.mrb[4].mxu1 }
 0x136   : > { %5644 = verf.f32 %v2451_v9  ;;  %v1218_v14 = vadd.f32 %v6595_v50, %v1217_v11  ;;  %v1219_v15 = vpop.f32.mrb[5].mxu1 }
 0x137   : > { %v1220_v17 = vpop.f32.mrb[6].mxu1  ;;  %v1577_v15 = vrot.slane %v1561_v56, %v6577_v35 }
 0x138   : > { %v2308_v3 = vadd.f32 %v1957_v10, %v1218_v14  ;;  %v1221_v20 = vadd.f32 %v6595_v50, %v1220_v17  ;;  %v1222_v21 = vpop.f32.mrb[7].mxu1  ;;  %v5629_v10 = vld [vmem:[%s6392_s30 + $0xf8] sm:$0xff]  }
 0x139   : > { %v1599_v48 = vcombine.high %v1577_v15, %v1577_v15 }
 0x13a   : > { %v2452_v22 = vmul.f32 0.70710677, %v2308_v3  ;;  %v2309_v23 = vadd.f32 %v1961_v16, %v1221_v20  ;;  %1432 = vmatmul.mubr.bf16.gmra.mrb[112].mxu1 %v574_v12  ;;  %v2380_v16 = vmul.f32 0.5, %v2308_v3 }
 0x13b   : > { %1439 = vmatprep.mubr.bf16.mxu1 %v5624_v18 }
 0x13c   : > { %5646 = verf.f32 %v2452_v22  ;;  %v2453_v28 = vmul.f32 0.70710677, %v2309_v23  ;;  %v2381_v17 = vmul.f32 0.5, %v2309_v23  ;;  %v1591_v22 = vrot.slane %v1569_v7, %v6577_v35 }
 0x13d   : > { %v1225_v30 = vpop.f32.mrb[8].mxu1  ;;  %v1981_v23 = vrot.slane %v1577_v15, %v6587_v46 }
 0x13e   : > { %v5643_v31 = vpop.eup %5642  ;;  %5648 = verf.f32 %v2453_v28  ;;  %v1226_v33 = vadd.f32 %v6595_v50, %v1225_v30  ;;  %v1227_v34 = vpop.f32.mrb[9].mxu1 }
 0x13f   : > { %v2594_v39 = vadd.f32 1.0, %v5643_v31  ;;  %v1228_v40 = vpop.f32.mrb[10].mxu1 }
 0x140   : > { %v5645_v42 = vpop.eup %5644  ;;  %v6620_v43 = vadd.f32 %v1965_v29, %v1226_v33  ;;  %v1229_v44 = vadd.f32 %v6595_v50, %v1228_v40  ;;  %v1230_v45 = vpop.f32.mrb[11].mxu1  ;;  %v577_v33 = vpack.c.bf16 %v523_v26, %v522_v24  ;;  %v1985_v40 = vrot.slane %v1591_v22, %v6587_v46 }
 0x141   : > { %v2595_v52 = vadd.f32 1.0, %v5645_v42  ;;  %v2666_v59 = vmul.f32 %v2594_v39, %v2378_v49 }
 0x142   : > { %v2454_v53 = vmul.f32 0.70710677, %v6620_v43  ;;  %v6624_v54 = vadd.f32 %v1969_v37, %v1229_v44  ;;  %1440 = vmatmul.mubr.bf16.gmra.mrb[116].mxu1 %v575_v38  ;;  %v1554_v37 = vcombine.high %v6570_v25, %v6570_v25  ;;  %v5630_v44 = vld [vmem:[%s6392_s30 + $0x100] sm:$0xff]   ;;  %v2382_v25 = vmul.f32 0.5, %v6620_v43 }
 0x143   : > { %v2667_v60 = vmul.f32 %v2595_v52, %v2379_v51  ;;  %1447 = vmatprep.mubr.bf16.mxu1 %v5627_v41  ;;  %v1989_v43 = vrot.slane %v1599_v48, %v6587_v46 }
 0x144   : > { %5650 = verf.f32 %v2454_v53  ;;  %v2455_v61 = vmul.f32 0.70710677, %v6624_v54  ;;  %v2383_v53 = vmul.f32 0.5, %v6624_v54  ;;  %v1568_v56 = vrot.slane %v1554_v37, %v6577_v35 }
 0x145   : > { %v1233_v63 = vpop.f32.mrb[12].mxu1  ;;  %v2738_v0 = vpack.c.bf16 %v2667_v60, %v2666_v59  ;;  %v1601_v59 = vcombine.high %v1591_v22, %v1591_v22  ;;  %v524_v60 = vld [vmem:[%s6457_s15 + $0x200] sm:$0xff] }
 0x146   : > { %v5647_v2 = vpop.eup %5646  ;;  %5652 = verf.f32 %v2455_v61  ;;  %v1234_v4 = vadd.f32 %v6595_v50, %v1233_v63  ;;  %v1235_v5 = vpop.f32.mrb[13].mxu1  ;;  %v525_v61 = vld [vmem:[%s6457_s15 + $0x208] sm:$0xff] }
 0x147   : > { %v2596_v8 = vadd.f32 1.0, %v5647_v2  ;;  %v1236_v9 = vpop.f32.mrb[14].mxu1  ;;  %5360 = vmatprep.mubr.bf16.mxu0 %v2738_v0  ;;  %v578_v2 = vpack.c.bf16 %v525_v61, %v524_v60  ;;  %v1570_v5 = vcombine.high %v1568_v56, %v1568_v56  ;;  %v528_v60 = vld [vmem:[%s6457_s15 + $0x220] sm:$0xff]  ;;  %v529_v61 = vld [vmem:[%s6457_s15 + $0x228] sm:$0xff] }
 0x148   : > { %v5649_v11 = vpop.eup %5648  ;;  %v6635_v12 = vadd.f32 %v1973_v62, %v1234_v4  ;;  %v1237_v13 = vadd.f32 %v6595_v50, %v1236_v9  ;;  %v1238_v14 = vpop.f32.mrb[15].mxu1 }
 0x149   : > { %v2597_v18 = vadd.f32 1.0, %v5649_v11  ;;  %v2668_v28 = vmul.f32 %v2596_v8, %v2380_v16  ;;  %v1993_v8 = vrot.slane %v1601_v59, %v6587_v46  ;;  %v5631_v11 = vld [vmem:[%s6392_s30 + $0x108] sm:$0xff]   ;;  %v1584_v14 = vrot.slane %v1568_v56, %v6577_v35 }
 0x14a   : > { %v2456_v20 = vmul.f32 0.70710677, %v6635_v12  ;;  %v6642_v21 = vadd.f32 %v1977_v6, %v1237_v13  ;;  %1448 = vmatmul.mubr.bf16.gmra.mrb[120].mxu1 %v576_v1  ;;  %v1598_v27 = vrot.slane %v1570_v5, %v6577_v35  ;;  %v1610_v59 = vrot.slane %v6575_v32, %v6577_v35 }
 0x14b   : > { %v2669_v29 = vmul.f32 %v2597_v18, %v2381_v17  ;;  %1455 = vmatprep.mubr.bf16.mxu1 %v5629_v10  ;;  %v2384_v18 = vmul.f32 0.5, %v6635_v12  ;;  %v1997_v12 = vrot.slane %v1584_v14, %v6587_v46 }
 0x14c   : > { %5654 = verf.f32 %v2456_v20  ;;  %v2457_v3 = vmul.f32 0.70710677, %v6642_v21  ;;  %v2385_v20 = vmul.f32 0.5, %v6642_v21 }
 0x14d   : > { %v2739_v30 = vpack.c.bf16 %v2669_v29, %v2668_v28  ;;  %v1241_v31 = vpop.f32.mrb[16].mxu1 }
 0x14e   : > { %v5651_v34 = vpop.eup %5650  ;;  %5656 = verf.f32 %v2457_v3  ;;  %v1242_v38 = vadd.f32 %v6595_v50, %v1241_v31  ;;  %v1243_v39 = vpop.f32.mrb[17].mxu1  ;;  %v526_v3 = vld [vmem:[%s6457_s15 + $0x210] sm:$0xff] }
 0x14f   : > { %v2598_v41 = vadd.f32 1.0, %v5651_v34  ;;  %v1244_v42 = vpop.f32.mrb[18].mxu1  ;;  %5361 = vmatmul.mubr.bf16.vlgmr.msra.gmra.mrb[20].mxu0 %v2739_v30 }
 0x150   : > { %v5653_v45 = vpop.eup %5652  ;;  %v6654_v49 = vadd.f32 %v1981_v23, %v1242_v38  ;;  %v1245_v51 = vadd.f32 %v6595_v50, %v1244_v42  ;;  %v1246_v52 = vpop.f32.mrb[19].mxu1  ;;  %v527_v23 = vld [vmem:[%s6457_s15 + $0x218] sm:$0xff]  ;;  %v2001_v38 = vrot.slane %v1598_v27, %v6587_v46  ;;  %v5632_v42 = vld [vmem:[%s6392_s30 + $0x110] sm:$0xff]  }
 0x151   : > { %v2599_v55 = vadd.f32 1.0, %v5653_v45  ;;  %v2670_v62 = vmul.f32 %v2598_v41, %v2382_v25  ;;  %v579_v39 = vpack.c.bf16 %v527_v23, %v526_v3  ;;  %v530_v23 = vld [vmem:[%s6457_s15 + $0x230] sm:$0xff] }
 0x152   : > { %v2458_v57 = vmul.f32 0.70710677, %v6654_v49  ;;  %v2315_v58 = vadd.f32 %v1985_v40, %v1245_v51  ;;  %1456 = vmatmul.mubr.bf16.gmra.mrb[124].mxu1 %v577_v33  ;;  %v2386_v52 = vmul.f32 0.5, %v6654_v49 }
 0x153   : > { %v2671_v63 = vmul.f32 %v2599_v55, %v2383_v53  ;;  %1463 = vmatprep.mubr.bf16.mxu1 %v5630_v44 }
 0x154   : > { %5658 = verf.f32 %v2458_v57  ;;  %v2459_v0 = vmul.f32 0.70710677, %v2315_v58  ;;  %v2387_v25 = vmul.f32 0.5, %v2315_v58  ;;  %v1600_v57 = vcombine.high %v1584_v14, %v1584_v14 }
 0x155   : > { %v1249_v1 = vpop.f32.mrb[20].mxu1  ;;  %v2740_v54 = vpack.c.bf16 %v2671_v63, %v2670_v62  ;;  %v1602_v58 = vcombine.high %v1598_v27, %v1598_v27  ;;  %v6709_v27 = vpop.f32.mrb[12].mxu0 }
 0x156   : > { %v5655_v4 = vpop.eup %5654  ;;  %5660 = verf.f32 %v2459_v0  ;;  %v1250_v6 = vadd.f32 %v6595_v50, %v1249_v1  ;;  %v1251_v7 = vpop.f32.mrb[21].mxu1  ;;  %v580_v1 = vpack.c.bf16 %v529_v61, %v528_v60 }
 0x157   : > { %v2600_v9 = vadd.f32 1.0, %v5655_v4  ;;  %v1252_v10 = vpop.f32.mrb[22].mxu1  ;;  %5364 = vmatprep.mubr.bf16.mxu0 %v2740_v54  ;;  %v2005_v4 = vrot.slane %v1600_v57, %v6587_v46 }
 0x158   : > { %v5657_v13 = vpop.eup %5656  ;;  %v6668_v15 = vadd.f32 %v1989_v43, %v1250_v6  ;;  %v1253_v16 = vadd.f32 %v6595_v50, %v1252_v10  ;;  %v1254_v17 = vpop.f32.mrb[23].mxu1  ;;  %v1618_v6 = vcombine.high %v1610_v59, %v1610_v59  ;;  %v5634_v10 = vld [vmem:[%s8268_s8] sm:$0xff]  }
 0x159   : > { %v2601_v22 = vadd.f32 1.0, %v5657_v13  ;;  %v2672_v28 = vmul.f32 %v2600_v9, %v2384_v18  ;;  %v5633_v9 = vld [vmem:[%s6392_s30 + $0x118] sm:$0xff]   ;;  %v1626_v18 = vrot.slane %v1610_v59, %v6577_v35  ;;  %5432 = vmatprep.subr.bf16.mxu0 %v5634_v10 }
 0x15a   : > { %v2460_v24 = vmul.f32 0.70710677, %v6668_v15  ;;  %v6674_v26 = vadd.f32 %v1993_v8, %v1253_v16  ;;  %1464 = vmatmul.mubr.bf16.gmra.mrb[128].mxu1 %v578_v2  ;;  %v2009_v16 = vrot.slane %v1602_v58, %v6587_v46  ;;  %v1640_v3 = vrot.slane %v1618_v6, %v6577_v35  ;;  %5433 = vmatpush3.bf16.msra.mxu0 %v5634_v10 }
 0x15b   : > { %v2673_v29 = vmul.f32 %v2601_v22, %v2385_v20  ;;  %1471 = vmatprep.mubr.bf16.mxu1 %v5631_v11  ;;  %v2388_v20 = vmul.f32 0.5, %v6668_v15 }
 0x15c   : > { %5662 = verf.f32 %v2460_v24  ;;  %v2461_v30 = vmul.f32 0.70710677, %v6674_v26  ;;  %v2389_v22 = vmul.f32 0.5, %v6674_v26  ;;  %v2013_v26 = vrot.slane %v1626_v18, %v6587_v46 }
 0x15d   : > { %v1257_v21 = vpop.f32.mrb[24].mxu1  ;;  %v2741_v31 = vpack.c.bf16 %v2673_v29, %v2672_v28 }
 0x15e   : > { %v5659_v33 = vpop.eup %5658  ;;  %5664 = verf.f32 %v2461_v30  ;;  %v1258_v34 = vadd.f32 %v6595_v50, %v1257_v21  ;;  %v1259_v37 = vpop.f32.mrb[25].mxu1  ;;  %v531_v30 = vld [vmem:[%s6457_s15 + $0x238] sm:$0xff] }
 0x15f   : > { %v2602_v40 = vadd.f32 1.0, %v5659_v33  ;;  %v1260_v41 = vpop.f32.mrb[26].mxu1  ;;  %5365 = vmatmul.mubr.bf16.gmra.mrb[24].mxu0 %v2741_v31  ;;  %v581_v37 = vpack.c.bf16 %v531_v30, %v530_v23 }
 0x160   : > { %v5661_v44 = vpop.eup %5660  ;;  %v6684_v45 = vadd.f32 %v1997_v12, %v1258_v34  ;;  %v1261_v48 = vadd.f32 %v6595_v50, %v1260_v41  ;;  %v1262_v51 = vpop.f32.mrb[27].mxu1 }
 0x161   : > { %v2603_v53 = vadd.f32 1.0, %v5661_v44  ;;  %v2674_v62 = vmul.f32 %v2602_v40, %v2386_v52  ;;  %v5338_v12 = vpop.f32.mrb[13].mxu0  ;;  %v1648_v52 = vcombine.high %v1626_v18, %v1626_v18 }
 0x162   : > { %v2462_v55 = vmul.f32 0.70710677, %v6684_v45  ;;  %v6689_v56 = vadd.f32 %v2001_v38, %v1261_v48  ;;  %1472 = vmatmul.mubr.bf16.gmra.mrb[132].mxu1 %v579_v39  ;;  %v1603_v39 = vcombine.high %v6575_v32, %v6575_v32  ;;  %v2390_v57 = vmul.f32 0.5, %v6684_v45 }
 0x163   : > { %v2675_v63 = vmul.f32 %v2603_v53, %v2387_v25  ;;  %1479 = vmatprep.mubr.bf16.mxu1 %v5632_v42  ;;  %v2017_v42 = vrot.slane %v1640_v3, %v6587_v46 }
 0x164   : > { %5666 = verf.f32 %v2462_v55  ;;  %v2463_v49 = vmul.f32 0.70710677, %v6689_v56  ;;  %v2391_v59 = vmul.f32 0.5, %v6689_v56  ;;  %v1617_v60 = vrot.slane %v1603_v39, %v6577_v35 }
 0x165   : > { %v1265_v0 = vpop.f32.mrb[28].mxu1  ;;  %v2742_v43 = vpack.c.bf16 %v2675_v63, %v2674_v62  ;;  %v1650_v63 = vcombine.high %v1640_v3, %v1640_v3 }
 0x166   : > { %v5663_v54 = vpop.eup %5662  ;;  %5668 = verf.f32 %v2463_v49  ;;  %v1266_v2 = vadd.f32 %v6595_v50, %v1265_v0  ;;  %v1267_v5 = vpop.f32.mrb[29].mxu1 }
 0x167   : > { %v2604_v7 = vadd.f32 1.0, %v5663_v54  ;;  %v1268_v8 = vpop.f32.mrb[30].mxu1  ;;  %5368 = vmatprep.mubr.bf16.mxu0 %v2742_v43  ;;  %v6727_v0 = vpop.f32.mrb[14].mxu0 }
 0x168   : > { %v5665_v11 = vpop.eup %5664  ;;  %v6702_v13 = vadd.f32 %v2005_v4, %v1266_v2  ;;  %v1269_v14 = vadd.f32 %v6595_v50, %v1268_v8  ;;  %v1270_v17 = vpop.f32.mrb[31].mxu1  ;;  %v1619_v4 = vcombine.high %v1617_v60, %v1617_v60 }
 0x169   : > { %v2605_v24 = vadd.f32 1.0, %v5665_v11  ;;  %v2676_v21 = vmul.f32 %v2604_v7, %v2388_v20  ;;  %v5339_v54 = vpop.f32.mrb[15].mxu0  ;;  %v2025_v7 = vrot.slane %v1650_v63, %v6587_v46  ;;  %v1633_v11 = vrot.slane %v1617_v60, %v6577_v35 }
 0x16a   : > { %v2464_v28 = vmul.f32 0.70710677, %v6702_v13  ;;  %v2321_v29 = vadd.f32 %v2009_v16, %v1269_v14  ;;  %1480 = vmatmul.mubr.bf16.gmra.mrb[136].mxu1 %v580_v1  ;;  %v2021_v1 = vrot.slane %v1648_v52, %v6587_v46  ;;  %v2392_v18 = vmul.f32 0.5, %v6702_v13 }
 0x16b   : > { %v2677_v31 = vmul.f32 %v2605_v24, %v2389_v22  ;;  %1487 = vmatprep.mubr.bf16.mxu1 %v5633_v9  ;;  %v5635_v24 = vld [vmem:[%s8268_s8 + $0x8] sm:$0xff]   ;;  %v1647_v23 = vrot.slane %v1619_v4, %v6577_v35 }
 0x16c   : > { %5670 = verf.f32 %v2464_v28  ;;  %v2465_v15 = vmul.f32 0.70710677, %v2321_v29  ;;  %v2393_v20 = vmul.f32 0.5, %v2321_v29  ;;  %5434 = vmatprep.subr.bf16.mxu0 %v5635_v24 }
 0x16d   : > { %v1273_v33 = vpop.f32.mrb[32].mxu1  ;;  %v2743_v34 = vpack.c.bf16 %v2677_v31, %v2676_v21  ;;  %v2029_v31 = vrot.slane %v1633_v11, %v6587_v46  ;;  %5435 = vmatpush3.bf16.msra.mxu0 %v5635_v24 }
 0x16e   : > { %v5667_v38 = vpop.eup %5666  ;;  %5672 = verf.f32 %v2465_v15  ;;  %v1274_v40 = vadd.f32 %v6595_v50, %v1273_v33  ;;  %v1275_v41 = vpop.f32.mrb[33].mxu1 }
 0x16f   : > { %v2606_v44 = vadd.f32 1.0, %v5667_v38  ;;  %v1276_v48 = vpop.f32.mrb[34].mxu1  ;;  %5369 = vmatmul.mubr.bf16.gmra.mrb[28].mxu0 %v2743_v34  ;;  %v2033_v34 = vrot.slane %v1647_v23, %v6587_v46 }
 0x170   : > { %v5669_v51 = vpop.eup %5668  ;;  %v6720_v25 = vadd.f32 %v2013_v26, %v1274_v40  ;;  %v1277_v53 = vadd.f32 %v6595_v50, %v1276_v48  ;;  %v1278_v55 = vpop.f32.mrb[35].mxu1 }
 0x171   : > { %v2607_v32 = vadd.f32 1.0, %v5669_v51  ;;  %v2678_v49 = vmul.f32 %v2606_v44, %v2390_v57  ;;  %v1649_v44 = vcombine.high %v1633_v11, %v1633_v11  ;;  %v1651_v57 = vcombine.high %v1647_v23, %v1647_v23  ;;  %v5636_v11 = vld [vmem:[%s8268_s8 + $0x10] sm:$0xff]  }
 0x172   : > { %v2466_v61 = vmul.f32 0.70710677, %v6720_v25  ;;  %v2323_v62 = vadd.f32 %v2017_v42, %v1277_v53  ;;  %1488 = vmatmul.mubr.bf16.gmra.mrb[140].mxu1 %v581_v37  ;;  %v2394_v48 = vmul.f32 0.5, %v6720_v25  ;;  %5436 = vmatprep.subr.bf16.mxu0 %v5636_v11 }
 0x173   : > { %v2679_v58 = vmul.f32 %v2607_v32, %v2391_v59  ;;  %v1659_v59 = vrot.slane %v6579_v36, %v6577_v35  ;;  %v2037_v63 = vrot.slane %v1649_v44, %v6587_v46  ;;  %5437 = vmatpush3.bf16.msra.mxu0 %v5636_v11 }
 0x174   : > { %5674 = verf.f32 %v2466_v61  ;;  %v2467_v43 = vmul.f32 0.70710677, %v2323_v62  ;;  %v2395_v51 = vmul.f32 0.5, %v2323_v62 }
 0x175   : > { %v1281_v45 = vpop.f32.mrb[36].mxu1  ;;  %v2744_v2 = vpack.c.bf16 %v2679_v58, %v2678_v49  ;;  %v1667_v54 = vcombine.high %v1659_v59, %v1659_v59 }
 0x176   : > { %v5671_v56 = vpop.eup %5670  ;;  %5676 = verf.f32 %v2467_v43  ;;  %v1282_v5 = vadd.f32 %v6595_v50, %v1281_v45  ;;  %v1283_v6 = vpop.f32.mrb[37].mxu1 }
 0x177   : > { %v2608_v8 = vadd.f32 1.0, %v5671_v56  ;;  %v1284_v9 = vpop.f32.mrb[38].mxu1  ;;  %5372 = vmatprep.mubr.bf16.mxu0 %v2744_v2 }
 0x178   : > { %v5673_v10 = vpop.eup %5672  ;;  %v2324_v14 = vadd.f32 %v2021_v1, %v1282_v5  ;;  %v1285_v16 = vadd.f32 %v6595_v50, %v1284_v9  ;;  %v1286_v17 = vpop.f32.mrb[39].mxu1  ;;  %v2041_v1 = vrot.slane %v1651_v57, %v6587_v46 }
 0x179   : > { %v2609_v22 = vadd.f32 1.0, %v5673_v10  ;;  %v2680_v30 = vmul.f32 %v2608_v8, %v2392_v18  ;;  %v1689_v18 = vrot.slane %v1667_v54, %v6577_v35 }
 0x17a   : > { %v2468_v28 = vmul.f32 0.70710677, %v2324_v14  ;;  %v2325_v3 = vadd.f32 %v2025_v7, %v1285_v16  ;;  %v1675_v7 = vrot.slane %v1659_v59, %v6577_v35  ;;  %v2396_v8 = vmul.f32 0.5, %v2324_v14 }
 0x17b   : > { %v2681_v12 = vmul.f32 %v2609_v22, %v2393_v20  ;;  %v1699_v57 = vcombine.high %v1689_v18, %v1689_v18 }
 0x17c   : > { %5678 = verf.f32 %v2468_v28  ;;  %v2469_v21 = vmul.f32 0.70710677, %v2325_v3  ;;  %v2397_v9 = vmul.f32 0.5, %v2325_v3  ;;  %v2045_v28 = vrot.slane %v1675_v7, %v6587_v46 }
 0x17d   : > { %v1289_v15 = vpop.f32.mrb[40].mxu1  ;;  %v2745_v13 = vpack.c.bf16 %v2681_v12, %v2680_v30 }
 0x17e   : > { %v5675_v29 = vpop.eup %5674  ;;  %5680 = verf.f32 %v2469_v21  ;;  %v1290_v26 = vadd.f32 %v6595_v50, %v1289_v15  ;;  %v1291_v33 = vpop.f32.mrb[41].mxu1  ;;  %v2049_v21 = vrot.slane %v1689_v18, %v6587_v46 }
 0x17f   : > { %v2610_v37 = vadd.f32 1.0, %v5675_v29  ;;  %v1292_v38 = vpop.f32.mrb[42].mxu1  ;;  %5373 = vmatmul.mubr.bf16.gmra.mrb[32].mxu0 %v2745_v13  ;;  %v1652_v29 = vcombine.high %v6579_v36, %v6579_v36 }
 0x180   : > { %v5677_v39 = vpop.eup %5676  ;;  %v2326_v40 = vadd.f32 %v2029_v31, %v1290_v26  ;;  %v1293_v41 = vadd.f32 %v6595_v50, %v1292_v38  ;;  %v1294_v42 = vpop.f32.mrb[43].mxu1 }
 0x181   : > { %v2611_v52 = vadd.f32 1.0, %v5677_v39  ;;  %v2682_v32 = vmul.f32 %v2610_v37, %v2394_v48 }
 0x182   : > { %v2470_v53 = vmul.f32 0.70710677, %v2326_v40  ;;  %v2327_v55 = vadd.f32 %v2033_v34, %v1293_v41  ;;  %v2398_v37 = vmul.f32 0.5, %v2326_v40  ;;  %v1697_v41 = vcombine.high %v1675_v7, %v1675_v7 }
 0x183   : > { %v2683_v60 = vmul.f32 %v2611_v52, %v2395_v51  ;;  %v1666_v52 = vrot.slane %v1652_v29, %v6577_v35 }
 0x184   : > { %5682 = verf.f32 %v2470_v53  ;;  %v2471_v61 = vmul.f32 0.70710677, %v2327_v55  ;;  %v2399_v38 = vmul.f32 0.5, %v2327_v55  ;;  %v2053_v40 = vrot.slane %v1697_v41, %v6587_v46 }
 0x185   : > { %v1297_v49 = vpop.f32.mrb[44].mxu1  ;;  %v2746_v58 = vpack.c.bf16 %v2683_v60, %v2682_v32  ;;  %v1708_v41 = vrot.slane %v6589_v47, %v6577_v35 }
 0x186   : > { %v5679_v43 = vpop.eup %5678  ;;  %5684 = verf.f32 %v2471_v61  ;;  %v1298_v25 = vadd.f32 %v6595_v50, %v1297_v49  ;;  %v1299_v62 = vpop.f32.mrb[45].mxu1 }
 0x187   : > { %v2612_v45 = vadd.f32 1.0, %v5679_v43  ;;  %v1300_v2 = vpop.f32.mrb[46].mxu1  ;;  %5376 = vmatprep.mubr.bf16.mxu0 %v2746_v58  ;;  %v1668_v58 = vcombine.high %v1666_v52, %v1666_v52  ;;  %v2057_v62 = vrot.slane %v1699_v57, %v6587_v46 }
 0x188   : > { %v5681_v56 = vpop.eup %5680  ;;  %v2328_v4 = vadd.f32 %v2037_v63, %v1298_v25  ;;  %v1301_v5 = vadd.f32 %v6595_v50, %v1300_v2  ;;  %v1302_v6 = vpop.f32.mrb[47].mxu1 }
 0x189   : > { %v2613_v10 = vadd.f32 1.0, %v5681_v56  ;;  %v2684_v20 = vmul.f32 %v2612_v45, %v2396_v8  ;;  %v5637_v56 = vld [vmem:[%s8268_s8 + $0x18] sm:$0xff]   ;;  %v1696_v11 = vrot.slane %v1668_v58, %v6577_v35 }
 0x18a   : > { %v2472_v16 = vmul.f32 0.70710677, %v2328_v4  ;;  %v2329_v17 = vadd.f32 %v2041_v1, %v1301_v5  ;;  %v2400_v54 = vmul.f32 0.5, %v2328_v4  ;;  %v1682_v5 = vrot.slane %v1666_v52, %v6577_v35  ;;  %5438 = vmatprep.subr.bf16.mxu0 %v5637_v56 }
 0x18b   : > { %v2685_v22 = vmul.f32 %v2613_v10, %v2397_v9  ;;  %5439 = vmatpush3.bf16.msra.mxu0 %v5637_v56  ;;  %v1700_v52 = vcombine.high %v1696_v11, %v1696_v11 }
 0x18c   : > { %5686 = verf.f32 %v2472_v16  ;;  %v2473_v24 = vmul.f32 0.70710677, %v2329_v17  ;;  %v2401_v45 = vmul.f32 0.5, %v2329_v17 }
 0x18d   : > { %v1305_v23 = vpop.f32.mrb[48].mxu1  ;;  %v2747_v14 = vpack.c.bf16 %v2685_v22, %v2684_v20  ;;  %v2061_v20 = vrot.slane %v1682_v5, %v6587_v46 }
 0x18e   : > { %v5683_v3 = vpop.eup %5682  ;;  %5688 = verf.f32 %v2473_v24  ;;  %v1306_v30 = vadd.f32 %v6595_v50, %v1305_v23  ;;  %v1307_v12 = vpop.f32.mrb[49].mxu1 }
 0x18f   : > { %v2614_v31 = vadd.f32 1.0, %v5683_v3  ;;  %v1308_v15 = vpop.f32.mrb[50].mxu1  ;;  %5377 = vmatmul.mubr.bf16.gmra.mrb[36].mxu0 %v2747_v14  ;;  %v6776_v24 = vpop.f32.mrb[16].mxu0 }
 0x190   : > { %v5685_v13 = vpop.eup %5684  ;;  %v2330_v26 = vadd.f32 %v2045_v28, %v1306_v30  ;;  %v1309_v33 = vadd.f32 %v6595_v50, %v1308_v15  ;;  %v1310_v34 = vpop.f32.mrb[51].mxu1 }
 0x191   : > { %v2615_v39 = vadd.f32 1.0, %v5685_v13  ;;  %v2686_v48 = vmul.f32 %v2614_v31, %v2398_v37  ;;  %v5342_v14 = vpop.f32.mrb[17].mxu0 }
 0x192   : > { %v2474_v42 = vmul.f32 0.70710677, %v2330_v26  ;;  %v2331_v44 = vadd.f32 %v2049_v21, %v1309_v33  ;;  %v2065_v21 = vrot.slane %v1696_v11, %v6587_v46  ;;  %v854_v15 = vpop.f32.mrb[18].mxu0  ;;  %v2402_v13 = vmul.f32 0.5, %v2330_v26 }
 0x193   : > { %v2687_v51 = vmul.f32 %v2615_v39, %v2399_v38  ;;  %v5343_v34 = vpop.f32.mrb[19].mxu0  ;;  %v1698_v39 = vcombine.high %v1682_v5, %v1682_v5 }
 0x194   : > { %5690 = verf.f32 %v2474_v42  ;;  %v2475_v53 = vmul.f32 0.70710677, %v2331_v44  ;;  %v2403_v29 = vmul.f32 0.5, %v2331_v44 }
 0x195   : > { %v1313_v59 = vpop.f32.mrb[52].mxu1  ;;  %v2748_v32 = vpack.c.bf16 %v2687_v51, %v2686_v48  ;;  %v2069_v44 = vrot.slane %v1698_v39, %v6587_v46 }
 0x196   : > { %v5687_v36 = vpop.eup %5686  ;;  %5692 = verf.f32 %v2475_v53  ;;  %v1314_v60 = vadd.f32 %v6595_v50, %v1313_v59  ;;  %v1315_v55 = vpop.f32.mrb[53].mxu1 }
 0x197   : > { %v2616_v61 = vadd.f32 1.0, %v5687_v36  ;;  %v1316_v63 = vpop.f32.mrb[54].mxu1  ;;  %5380 = vmatprep.mubr.bf16.mxu0 %v2748_v32  ;;  %v1716_v36 = vcombine.high %v1708_v41, %v1708_v41 }
 0x198   : > { %v5689_v49 = vpop.eup %5688  ;;  %v6764_v43 = vadd.f32 %v2053_v40, %v1314_v60  ;;  %v1317_v25 = vadd.f32 %v6595_v50, %v1316_v63  ;;  %v1318_v1 = vpop.f32.mrb[55].mxu1 }
 0x199   : > { %v2617_v2 = vadd.f32 1.0, %v5689_v49  ;;  %v2688_v8 = vmul.f32 %v2616_v61, %v2400_v54  ;;  %v2073_v49 = vrot.slane %v1700_v52, %v6587_v46  ;;  %v1738_v56 = vrot.slane %v1716_v36, %v6577_v35 }
 0x19a   : > { %v2476_v6 = vmul.f32 0.70710677, %v6764_v43  ;;  %v2333_v7 = vadd.f32 %v2057_v62, %v1317_v25  ;;  %v1724_v25 = vrot.slane %v1708_v41, %v6577_v35  ;;  %v2404_v62 = vmul.f32 0.5, %v6764_v43 }
 0x19b   : > { %v2689_v9 = vmul.f32 %v2617_v2, %v2401_v45  ;;  %v1701_v43 = vcombine.high %v6589_v47, %v6589_v47 }
 0x19c   : > { %5694 = verf.f32 %v2476_v6  ;;  %v2477_v10 = vmul.f32 0.70710677, %v2333_v7  ;;  %v2405_v1 = vmul.f32 0.5, %v2333_v7 }
 0x19d   : > { %v1321_v4 = vpop.f32.mrb[56].mxu1  ;;  %v2749_v16 = vpack.c.bf16 %v2689_v9, %v2688_v8  ;;  %v2077_v9 = vrot.slane %v1724_v25, %v6587_v46  ;;  %v1715_v15 = vrot.slane %v1701_v43, %v6577_v35 }
 0x19e   : > { %v5691_v17 = vpop.eup %5690  ;;  %5696 = verf.f32 %v2477_v10  ;;  %v1322_v18 = vadd.f32 %v6595_v50, %v1321_v4  ;;  %v1323_v22 = vpop.f32.mrb[57].mxu1 }
 0x19f   : > { %v2618_v28 = vadd.f32 1.0, %v5691_v17  ;;  %v1324_v23 = vpop.f32.mrb[58].mxu1  ;;  %5381 = vmatmul.mubr.bf16.gmra.mrb[40].mxu0 %v2749_v16  ;;  %v2081_v17 = vrot.slane %v1738_v56, %v6587_v46  ;;  %v5638_v22 = vld [vmem:[%s8268_s8 + $0x20] sm:$0xff]  }
 0x1a0   : > { %v5693_v3 = vpop.eup %5692  ;;  %v2334_v30 = vadd.f32 %v2061_v20, %v1322_v18  ;;  %v1325_v12 = vadd.f32 %v6595_v50, %v1324_v23  ;;  %v1326_v31 = vpop.f32.mrb[59].mxu1  ;;  %v1746_v23 = vcombine.high %v1724_v25, %v1724_v25  ;;  %5440 = vmatprep.subr.bf16.mxu0 %v5638_v22 }
 0x1a1   : > { %v2619_v33 = vadd.f32 1.0, %v5693_v3  ;;  %v2690_v42 = vmul.f32 %v2618_v28, %v2402_v13  ;;  %5441 = vmatpush3.bf16.msra.mxu0 %v5638_v22 }
 0x1a2   : > { %v2478_v37 = vmul.f32 0.70710677, %v2334_v30  ;;  %v2335_v38 = vadd.f32 %v2065_v21, %v1325_v12  ;;  %v2406_v21 = vmul.f32 0.5, %v2334_v30  ;;  %v2085_v41 = vrot.slane %v1746_v23, %v6587_v46  ;;  %v6806_v30 = vld [vmem:[%s8265_s5] ss:$0 sm:$0xff] }
 0x1a3   : > { %v2691_v48 = vmul.f32 %v2619_v33, %v2403_v29  ;;  %v1748_v33 = vcombine.high %v1738_v56, %v1738_v56 }
 0x1a4   : > { %5698 = verf.f32 %v2478_v37  ;;  %v2479_v51 = vmul.f32 0.70710677, %v2335_v38  ;;  %v2407_v47 = vmul.f32 0.5, %v2335_v38 }
 0x1a5   : > { %v1329_v53 = vpop.f32.mrb[60].mxu1  ;;  %v2750_v57 = vpack.c.bf16 %v2691_v48, %v2690_v42 }
 0x1a6   : > { %v5695_v59 = vpop.eup %5694  ;;  %5700 = verf.f32 %v2479_v51  ;;  %v1330_v26 = vadd.f32 %v6595_v50, %v1329_v53  ;;  %v1331_v32 = vpop.f32.mrb[61].mxu1  ;;  %v1717_v51 = vcombine.high %v1715_v15, %v1715_v15  ;;  %v2089_v53 = vrot.slane %v1748_v33, %v6587_v46 }
 0x1a7   : > { %v2620_v60 = vadd.f32 1.0, %v5695_v59  ;;  %v1332_v40 = vpop.f32.mrb[62].mxu1  ;;  %5384 = vmatprep.mubr.bf16.mxu0 %v2750_v57 }
 0x1a8   : > { %v5697_v55 = vpop.eup %5696  ;;  %v6784_v61 = vadd.f32 %v2069_v44, %v1330_v26  ;;  %v1333_v63 = vadd.f32 %v6595_v50, %v1332_v40  ;;  %v1334_v58 = vpop.f32.mrb[63].mxu1  ;;  %v1731_v44 = vrot.slane %v1715_v15, %v6577_v35  ;;  %v1745_v25 = vrot.slane %v1717_v51, %v6577_v35 }
 0x1a9   : > { %v2621_v54 = vadd.f32 1.0, %v5697_v55  ;;  %v2692_v5 = vmul.f32 %v2620_v60, %v2404_v62 }
 0x1aa   : > { %v2480_v45 = vmul.f32 0.70710677, %v6784_v61  ;;  %v2337_v2 = vadd.f32 %v2073_v49, %v1333_v63  ;;  %v2408_v40 = vmul.f32 0.5, %v6784_v61  ;;  %v2097_v61 = vrot.slane %v1745_v25, %v6587_v46 }
 0x1ab   : > { %v2693_v6 = vmul.f32 %v2621_v54, %v2405_v1  ;;  %v1749_v23 = vcombine.high %v1745_v25, %v1745_v25 }
 0x1ac   : > { %5702 = verf.f32 %v2480_v45  ;;  %v2481_v8 = vmul.f32 0.70710677, %v2337_v2  ;;  %v2409_v55 = vmul.f32 0.5, %v2337_v2  ;;  %v2093_v45 = vrot.slane %v1731_v44, %v6587_v46 }
 0x1ad   : > { %v1337_v10 = vpop.f32.mrb[64].mxu1  ;;  %v2751_v11 = vpack.c.bf16 %v2693_v6, %v2692_v5 }
 0x1ae   : > { %v5699_v4 = vpop.eup %5698  ;;  %5704 = verf.f32 %v2481_v8  ;;  %v1338_v7 = vadd.f32 %v6595_v50, %v1337_v10  ;;  %v1339_v16 = vpop.f32.mrb[65].mxu1 }
 0x1af   : > { %v2622_v18 = vadd.f32 1.0, %v5699_v4  ;;  %v1340_v20 = vpop.f32.mrb[66].mxu1  ;;  %5385 = vmatmul.mubr.bf16.gmra.mrb[44].mxu0 %v2751_v11  ;;  %v1747_v16 = vcombine.high %v1731_v44, %v1731_v44 }
 0x1b0   : > { %v5701_v28 = vpop.eup %5700  ;;  %v2338_v14 = vadd.f32 %v2077_v9, %v1338_v7  ;;  %v1341_v3 = vadd.f32 %v6595_v50, %v1340_v20  ;;  %v1342_v12 = vpop.f32.mrb[67].mxu1 }
 0x1b1   : > { %v2623_v31 = vadd.f32 1.0, %v5701_v28  ;;  %v2694_v34 = vmul.f32 %v2622_v18, %v2406_v21  ;;  %v5639_v12 = vld [vmem:[%s8268_s8 + $0x28] sm:$0xff]   ;;  %v2101_v15 = vrot.slane %v1747_v16, %v6587_v46 }
 0x1b2   : > { %v2482_v13 = vmul.f32 0.70710677, %v2338_v14  ;;  %v2339_v29 = vadd.f32 %v2081_v17, %v1341_v3  ;;  %v2410_v17 = vmul.f32 0.5, %v2338_v14  ;;  %v1757_v3 = vrot.slane %v6639_v19, %v6577_v35  ;;  %5442 = vmatprep.subr.bf16.mxu0 %v5639_v12 }
 0x1b3   : > { %v2695_v37 = vmul.f32 %v2623_v31, %v2407_v47  ;;  %5443 = vmatpush3.bf16.msra.mxu0 %v5639_v12 }
 0x1b4   : > { %5706 = verf.f32 %v2482_v13  ;;  %v2483_v39 = vmul.f32 0.70710677, %v2339_v29  ;;  %v2411_v18 = vmul.f32 0.5, %v2339_v29 }
 0x1b5   : > { %v1345_v42 = vpop.f32.mrb[68].mxu1  ;;  %v2752_v48 = vpack.c.bf16 %v2695_v37, %v2694_v34  ;;  %v2105_v37 = vrot.slane %v1749_v23, %v6587_v46 }
 0x1b6   : > { %v5703_v50 = vpop.eup %5702  ;;  %5708 = verf.f32 %v2483_v39  ;;  %v1346_v38 = vadd.f32 %v6806_v30, %v1345_v42  ;;  %v1347_v52 = vpop.f32.mrb[69].mxu1  ;;  %v1765_v39 = vcombine.high %v1757_v3, %v1757_v3 }
 0x1b7   : > { %v2624_v57 = vadd.f32 1.0, %v5703_v50  ;;  %v1348_v59 = vpop.f32.mrb[70].mxu1  ;;  %5388 = vmatprep.mubr.bf16.mxu0 %v2752_v48  ;;  %v1773_v52 = vrot.slane %v1757_v3, %v6577_v35 }
 0x1b8   : > { %v5705_v26 = vpop.eup %5704  ;;  %v2340_v32 = vadd.f32 %v2085_v41, %v1346_v38  ;;  %v1349_v36 = vadd.f32 %v6806_v30, %v1348_v59  ;;  %v1350_v60 = vpop.f32.mrb[71].mxu1 }
 0x1b9   : > { %v2625_v63 = vadd.f32 1.0, %v5705_v26  ;;  %v2696_v62 = vmul.f32 %v2624_v57, %v2408_v40 }
 0x1ba   : > { %v2484_v49 = vmul.f32 0.70710677, %v2340_v32  ;;  %v2341_v58 = vadd.f32 %v2089_v53, %v1349_v36  ;;  %v2412_v53 = vmul.f32 0.5, %v2340_v32  ;;  %v1787_v36 = vrot.slane %v1765_v39, %v6577_v35 }
 0x1bb   : > { %v2697_v1 = vmul.f32 %v2625_v63, %v2409_v55  ;;  %v2109_v63 = vrot.slane %v1773_v52, %v6587_v46 }
 0x1bc   : > { %5710 = verf.f32 %v2484_v49  ;;  %v2485_v54 = vmul.f32 0.70710677, %v2341_v58  ;;  %v2413_v57 = vmul.f32 0.5, %v2341_v58  ;;  %v2113_v32 = vrot.slane %v1787_v36, %v6587_v46 }
 0x1bd   : > { %v1353_v56 = vpop.f32.mrb[72].mxu1  ;;  %v2753_v5 = vpack.c.bf16 %v2697_v1, %v2696_v62  ;;  %v1797_v16 = vcombine.high %v1787_v36, %v1787_v36 }
 0x1be   : > { %v5707_v6 = vpop.eup %5706  ;;  %5712 = verf.f32 %v2485_v54  ;;  %v1354_v8 = vadd.f32 %v6806_v30, %v1353_v56  ;;  %v1355_v9 = vpop.f32.mrb[73].mxu1 }
 0x1bf   : > { %v2626_v2 = vadd.f32 1.0, %v5707_v6  ;;  %v1356_v10 = vpop.f32.mrb[74].mxu1  ;;  %5389 = vmatmul.mubr.bf16.gmra.mrb[48].mxu0 %v2753_v5  ;;  %v1750_v5 = vcombine.high %v6639_v19, %v6639_v19  ;;  %v1795_v6 = vcombine.high %v1773_v52, %v1773_v52  ;;  %v5640_v19 = vld [vmem:[%s8268_s8 + $0x30] sm:$0xff]  }
 0x1c0   : > { %v5709_v11 = vpop.eup %5708  ;;  %v2342_v4 = vadd.f32 %v2093_v45, %v1354_v8  ;;  %v1357_v43 = vadd.f32 %v6806_v30, %v1356_v10  ;;  %v1358_v7 = vpop.f32.mrb[75].mxu1  ;;  %5444 = vmatprep.subr.bf16.mxu0 %v5640_v19 }
 0x1c1   : > { %v2627_v20 = vadd.f32 1.0, %v5709_v11  ;;  %v2698_v21 = vmul.f32 %v2626_v2, %v2410_v17  ;;  %v2117_v23 = vrot.slane %v1795_v6, %v6587_v46  ;;  %5445 = vmatpush3.bf16.msra.mxu0 %v5640_v19  ;;  %v1806_v6 = vrot.slane %v6709_v27, %v6577_v35 }
 0x1c2   : > { %v2486_v22 = vmul.f32 0.70710677, %v2342_v4  ;;  %v2343_v28 = vadd.f32 %v2097_v61, %v1357_v43  ;;  %v2414_v2 = vmul.f32 0.5, %v2342_v4 }
 0x1c3   : > { %v2699_v47 = vmul.f32 %v2627_v20, %v2411_v18  ;;  %v1764_v20 = vrot.slane %v1750_v5, %v6577_v35 }
 0x1c4   : > { %5714 = verf.f32 %v2486_v22  ;;  %v2487_v31 = vmul.f32 0.70710677, %v2343_v28  ;;  %v2415_v10 = vmul.f32 0.5, %v2343_v28 }
 0x1c5   : > { %v1361_v14 = vpop.f32.mrb[76].mxu1  ;;  %v2754_v13 = vpack.c.bf16 %v2699_v47, %v2698_v21  ;;  %v2121_v47 = vrot.slane %v1797_v16, %v6587_v46 }
 0x1c6   : > { %v5711_v29 = vpop.eup %5710  ;;  %5716 = verf.f32 %v2487_v31  ;;  %v1362_v33 = vadd.f32 %v6806_v30, %v1361_v14  ;;  %v1363_v34 = vpop.f32.mrb[77].mxu1 }
 0x1c7   : > { %v2628_v41 = vadd.f32 1.0, %v5711_v29  ;;  %v1364_v42 = vpop.f32.mrb[78].mxu1  ;;  %5392 = vmatprep.mubr.bf16.mxu0 %v2754_v13  ;;  %v1766_v13 = vcombine.high %v1764_v20, %v1764_v20 }
 0x1c8   : > { %v5713_v48 = vpop.eup %5712  ;;  %v2344_v50 = vadd.f32 %v2101_v15, %v1362_v33  ;;  %v1365_v51 = vadd.f32 %v6806_v30, %v1364_v42  ;;  %v1366_v38 = vpop.f32.mrb[79].mxu1  ;;  %v1780_v42 = vrot.slane %v1764_v20, %v6577_v35  ;;  %v5641_v20 = vld [vmem:[%s8268_s8 + $0x38] sm:$0xff]  }
 0x1c9   : > { %v2629_v59 = vadd.f32 1.0, %v5713_v48  ;;  %v2700_v60 = vmul.f32 %v2628_v41, %v2412_v53  ;;  %5446 = vmatprep.subr.bf16.mxu0 %v5641_v20 }
 0x1ca   : > { %v2488_v26 = vmul.f32 0.70710677, %v2344_v50  ;;  %v2345_v44 = vadd.f32 %v2105_v37, %v1365_v51  ;;  %v2416_v37 = vmul.f32 0.5, %v2344_v50  ;;  %v2125_v50 = vrot.slane %v1780_v42, %v6587_v46  ;;  %5447 = vmatpush3.bf16.msra.mxu0 %v5641_v20 }
 0x1cb   : > { %v2701_v40 = vmul.f32 %v2629_v59, %v2413_v57  ;;  %v1794_v57 = vrot.slane %v1766_v13, %v6577_v35  ;;  %v1796_v5 = vcombine.high %v1780_v42, %v1780_v42 }
 0x1cc   : > { %5718 = verf.f32 %v2488_v26  ;;  %v2489_v55 = vmul.f32 0.70710677, %v2345_v44  ;;  %v2417_v39 = vmul.f32 0.5, %v2345_v44 }
 0x1cd   : > { %v1369_v49 = vpop.f32.mrb[80].mxu1  ;;  %v2755_v25 = vpack.c.bf16 %v2701_v40, %v2700_v60 }
 0x1ce   : > { %v5715_v62 = vpop.eup %5714  ;;  %5720 = verf.f32 %v2489_v55  ;;  %v1370_v1 = vadd.f32 %v6806_v30, %v1369_v49  ;;  %v1371_v54 = vpop.f32.mrb[81].mxu1 }
 0x1cf   : > { %v2630_v58 = vadd.f32 1.0, %v5715_v62  ;;  %v1372_v45 = vpop.f32.mrb[82].mxu1  ;;  %5393 = vmatmul.mubr.bf16.gmra.mrb[52].mxu0 %v2755_v25  ;;  %v2129_v62 = vrot.slane %v1794_v57, %v6587_v46 }
 0x1d0   : > { %v5717_v56 = vpop.eup %5716  ;;  %v2346_v8 = vadd.f32 %v2109_v63, %v1370_v1  ;;  %v1373_v9 = vadd.f32 %v6806_v30, %v1372_v45  ;;  %v1374_v61 = vpop.f32.mrb[83].mxu1 }
 0x1d1   : > { %v2631_v11 = vadd.f32 1.0, %v5717_v56  ;;  %v2702_v17 = vmul.f32 %v2630_v58, %v2414_v2 }
 0x1d2   : > { %v2490_v43 = vmul.f32 0.70710677, %v2346_v8  ;;  %v2347_v7 = vadd.f32 %v2113_v32, %v1373_v9  ;;  %v2418_v54 = vmul.f32 0.5, %v2346_v8  ;;  %v2133_v8 = vrot.slane %v1796_v5, %v6587_v46 }
 0x1d3   : > { %v2703_v18 = vmul.f32 %v2631_v11, %v2415_v10  ;;  %v1798_v10 = vcombine.high %v1794_v57, %v1794_v57 }
 0x1d4   : > { %5722 = verf.f32 %v2490_v43  ;;  %v2491_v22 = vmul.f32 0.70710677, %v2347_v7  ;;  %v2419_v32 = vmul.f32 0.5, %v2347_v7 }
 0x1d5   : > { %v1377_v3 = vpop.f32.mrb[84].mxu1  ;;  %v2756_v12 = vpack.c.bf16 %v2703_v18, %v2702_v17  ;;  %v1814_v18 = vcombine.high %v1806_v6, %v1806_v6 }
 0x1d6   : > { %v5719_v4 = vpop.eup %5718  ;;  %5724 = verf.f32 %v2491_v22  ;;  %v1378_v28 = vadd.f32 %v6806_v30, %v1377_v3  ;;  %v1379_v21 = vpop.f32.mrb[85].mxu1 }
 0x1d7   : > { %v2632_v31 = vadd.f32 1.0, %v5719_v4  ;;  %v1380_v15 = vpop.f32.mrb[86].mxu1  ;;  %5396 = vmatprep.mubr.bf16.mxu0 %v2756_v12  ;;  %v2137_v4 = vrot.slane %v1798_v10, %v6587_v46  ;;  %v1822_v21 = vrot.slane %v1806_v6, %v6577_v35 }
 0x1d8   : > { %v5721_v14 = vpop.eup %5720  ;;  %v2348_v29 = vadd.f32 %v2117_v23, %v1378_v28  ;;  %v1381_v33 = vadd.f32 %v6806_v30, %v1380_v15  ;;  %v1382_v34 = vpop.f32.mrb[87].mxu1 }
 0x1d9   : > { %v2633_v41 = vadd.f32 1.0, %v5721_v14  ;;  %v2704_v38 = vmul.f32 %v2632_v31, %v2416_v37 }
 0x1da   : > { %v2492_v48 = vmul.f32 0.70710677, %v2348_v29  ;;  %v2349_v51 = vadd.f32 %v2121_v47, %v1381_v33  ;;  %v2420_v47 = vmul.f32 0.5, %v2348_v29  ;;  %v1836_v33 = vrot.slane %v1814_v18, %v6577_v35 }
 0x1db   : > { %v2705_v52 = vmul.f32 %v2633_v41, %v2417_v39  ;;  %v2141_v41 = vrot.slane %v1822_v21, %v6587_v46 }
 0x1dc   : > { %5726 = verf.f32 %v2492_v48  ;;  %v2493_v53 = vmul.f32 0.70710677, %v2349_v51  ;;  %v2421_v31 = vmul.f32 0.5, %v2349_v51  ;;  %v2145_v51 = vrot.slane %v1836_v33, %v6587_v46 }
 0x1dd   : > { %v1385_v59 = vpop.f32.mrb[88].mxu1  ;;  %v2757_v26 = vpack.c.bf16 %v2705_v52, %v2704_v38 }
 0x1de   : > { %v5723_v36 = vpop.eup %5722  ;;  %5728 = verf.f32 %v2493_v53  ;;  %v1386_v60 = vadd.f32 %v6806_v30, %v1385_v59  ;;  %v1387_v44 = vpop.f32.mrb[89].mxu1 }
 0x1df   : > { %v2634_v40 = vadd.f32 1.0, %v5723_v36  ;;  %v1388_v55 = vpop.f32.mrb[90].mxu1  ;;  %5397 = vmatmul.mubr.bf16.gmra.mrb[56].mxu0 %v2757_v26  ;;  %v1799_v26 = vcombine.high %v6709_v27, %v6709_v27  ;;  %v1844_v36 = vcombine.high %v1822_v21, %v1822_v21 }
 0x1e0   : > { %v5725_v63 = vpop.eup %5724  ;;  %v2350_v49 = vadd.f32 %v2125_v50, %v1386_v60  ;;  %v1389_v25 = vadd.f32 %v6806_v30, %v1388_v55  ;;  %v1390_v1 = vpop.f32.mrb[91].mxu1 }
 0x1e1   : > { %v2635_v58 = vadd.f32 1.0, %v5725_v63  ;;  %v2706_v9 = vmul.f32 %v2634_v40, %v2418_v54  ;;  %v1846_v1 = vcombine.high %v1836_v33, %v1836_v33  ;;  %v2149_v5 = vrot.slane %v1844_v36, %v6587_v46 }
 0x1e2   : > { %v2494_v45 = vmul.f32 0.70710677, %v2350_v49  ;;  %v2351_v56 = vadd.f32 %v2129_v62, %v1389_v25  ;;  %v2422_v40 = vmul.f32 0.5, %v2350_v49  ;;  %v1855_v36 = vrot.slane %v6727_v0, %v6577_v35 }
 0x1e3   : > { %v2707_v61 = vmul.f32 %v2635_v58, %v2419_v32  ;;  %v1813_v58 = vrot.slane %v1799_v26, %v6577_v35 }
 0x1e4   : > { %5730 = verf.f32 %v2494_v45  ;;  %v2495_v2 = vmul.f32 0.70710677, %v2351_v56  ;;  %v2423_v55 = vmul.f32 0.5, %v2351_v56  ;;  %v2153_v56 = vrot.slane %v1846_v1, %v6587_v46 }
 0x1e5   : > { %v1393_v11 = vpop.f32.mrb[92].mxu1  ;;  %v2758_v43 = vpack.c.bf16 %v2707_v61, %v2706_v9 }
 0x1e6   : > { %v5727_v16 = vpop.eup %5726  ;;  %5732 = verf.f32 %v2495_v2  ;;  %v1394_v17 = vadd.f32 %v6806_v30, %v1393_v11  ;;  %v1395_v7 = vpop.f32.mrb[93].mxu1 }
 0x1e7   : > { %v2636_v22 = vadd.f32 1.0, %v5727_v16  ;;  %v1396_v23 = vpop.f32.mrb[94].mxu1  ;;  %5400 = vmatprep.mubr.bf16.mxu0 %v2758_v43  ;;  %v1815_v43 = vcombine.high %v1813_v58, %v1813_v58 }
 0x1e8   : > { %v5729_v19 = vpop.eup %5728  ;;  %v2352_v3 = vadd.f32 %v2133_v8, %v1394_v17  ;;  %v1397_v12 = vadd.f32 %v6806_v30, %v1396_v23  ;;  %v1398_v28 = vpop.f32.mrb[95].mxu1 }
 0x1e9   : > { %v2637_v15 = vadd.f32 1.0, %v5729_v19  ;;  %v2708_v34 = vmul.f32 %v2636_v22, %v2420_v47  ;;  %v1829_v22 = vrot.slane %v1813_v58, %v6577_v35  ;;  %v1843_v21 = vrot.slane %v1815_v43, %v6577_v35 }
 0x1ea   : > { %v2496_v14 = vmul.f32 0.70710677, %v2352_v3  ;;  %v2353_v13 = vadd.f32 %v2137_v4, %v1397_v12  ;;  %v2424_v7 = vmul.f32 0.5, %v2352_v3  ;;  %v1863_v58 = vcombine.high %v1855_v36, %v1855_v36 }
 0x1eb   : > { %v2709_v37 = vmul.f32 %v2637_v15, %v2421_v31  ;;  %v2157_v3 = vrot.slane %v1829_v22, %v6587_v46 }
 0x1ec   : > { %5734 = verf.f32 %v2496_v14  ;;  %v2497_v39 = vmul.f32 0.70710677, %v2353_v13  ;;  %v2425_v18 = vmul.f32 0.5, %v2353_v13 }
 0x1ed   : > { %v1401_v42 = vpop.f32.mrb[96].mxu1  ;;  %v2759_v48 = vpack.c.bf16 %v2709_v37, %v2708_v34 }
 0x1ee   : > { %v5731_v38 = vpop.eup %5730  ;;  %5736 = verf.f32 %v2497_v39  ;;  %v1402_v52 = vadd.f32 %v6806_v30, %v1401_v42  ;;  %v1403_v29 = vpop.f32.mrb[97].mxu1  ;;  %v2161_v42 = vrot.slane %v1843_v21, %v6587_v46 }
 0x1ef   : > { %v2638_v53 = vadd.f32 1.0, %v5731_v38  ;;  %v1404_v57 = vpop.f32.mrb[98].mxu1  ;;  %5401 = vmatmul.mubr.bf16.gmra.mrb[60].mxu0 %v2759_v48 }
 0x1f0   : > { %v5733_v59 = vpop.eup %5732  ;;  %v2354_v60 = vadd.f32 %v2141_v41, %v1402_v52  ;;  %v1405_v50 = vadd.f32 %v6806_v30, %v1404_v57  ;;  %v1406_v44 = vpop.f32.mrb[99].mxu1  ;;  %v1845_v57 = vcombine.high %v1829_v22, %v1829_v22 }
 0x1f1   : > { %v2639_v63 = vadd.f32 1.0, %v5733_v59  ;;  %v2710_v54 = vmul.f32 %v2638_v53, %v2422_v40  ;;  %v1847_v44 = vcombine.high %v1843_v21, %v1843_v21 }
 0x1f2   : > { %v2498_v25 = vmul.f32 0.70710677, %v2354_v60  ;;  %v2355_v62 = vadd.f32 %v2145_v51, %v1405_v50  ;;  %v2426_v38 = vmul.f32 0.5, %v2354_v60  ;;  %v2165_v60 = vrot.slane %v1845_v57, %v6587_v46 }
 0x1f3   : > { %v2711_v32 = vmul.f32 %v2639_v63, %v2423_v55 }
 0x1f4   : > { %5738 = verf.f32 %v2498_v25  ;;  %v2499_v45 = vmul.f32 0.70710677, %v2355_v62  ;;  %v2427_v52 = vmul.f32 0.5, %v2355_v62 }
 0x1f5   : > { %v1409_v27 = vpop.f32.mrb[100].mxu1  ;;  %v2760_v6 = vpack.c.bf16 %v2711_v32, %v2710_v54 }
 0x1f6   : > { %v5735_v9 = vpop.eup %5734  ;;  %5740 = verf.f32 %v2499_v45  ;;  %v1410_v61 = vadd.f32 %v6806_v30, %v1409_v27  ;;  %v1411_v49 = vpop.f32.mrb[101].mxu1  ;;  %v2169_v27 = vrot.slane %v1847_v44, %v6587_v46 }
 0x1f7   : > { %v2640_v2 = vadd.f32 1.0, %v5735_v9  ;;  %v1412_v10 = vpop.f32.mrb[102].mxu1  ;;  %5404 = vmatprep.mubr.bf16.mxu0 %v2760_v6 }
 0x1f8   : > { %v5737_v11 = vpop.eup %5736  ;;  %v2356_v16 = vadd.f32 %v2149_v5, %v1410_v61  ;;  %v1413_v17 = vadd.f32 %v6806_v30, %v1412_v10  ;;  %v1414_v8 = vpop.f32.mrb[103].mxu1 }
 0x1f9   : > { %v2641_v20 = vadd.f32 1.0, %v5737_v11  ;;  %v2712_v12 = vmul.f32 %v2640_v2, %v2424_v7 }
 0x1fa   : > { %v2500_v23 = vmul.f32 0.70710677, %v2356_v16  ;;  %v2357_v19 = vadd.f32 %v2153_v56, %v1413_v17  ;;  %v2428_v9 = vmul.f32 0.5, %v2356_v16  ;;  %v1871_v56 = vrot.slane %v1855_v36, %v6577_v35 }
 0x1fb   : > { %v2713_v4 = vmul.f32 %v2641_v20, %v2425_v18  ;;  %v1885_v17 = vrot.slane %v1863_v58, %v6577_v35 }
 0x1fc   : > { %5742 = verf.f32 %v2500_v23  ;;  %v2501_v28 = vmul.f32 0.70710677, %v2357_v19  ;;  %v2429_v61 = vmul.f32 0.5, %v2357_v19  ;;  %v2173_v16 = vrot.slane %v1871_v56, %v6587_v46 }
 0x1fd   : > { %v1417_v47 = vpop.f32.mrb[104].mxu1  ;;  %v2761_v31 = vpack.c.bf16 %v2713_v4, %v2712_v12 }
 0x1fe   : > { %v5739_v15 = vpop.eup %5738  ;;  %5744 = verf.f32 %v2501_v28  ;;  %v1418_v14 = vadd.f32 %v6806_v30, %v1417_v47  ;;  %v1419_v13 = vpop.f32.mrb[105].mxu1  ;;  %v1848_v28 = vcombine.high %v6727_v0, %v6727_v0 }
 0x1ff   : > { %v2642_v33 = vadd.f32 1.0, %v5739_v15  ;;  %v1420_v34 = vpop.f32.mrb[106].mxu1  ;;  %5405 = vmatmul.mubr.bf16.gmra.mrb[64].mxu0 %v2761_v31  ;;  %v2177_v31 = vrot.slane %v1885_v17, %v6587_v46 }
 0x200   : > { %v5741_v37 = vpop.eup %5740  ;;  %v2358_v39 = vadd.f32 %v2157_v3, %v1418_v14  ;;  %v1421_v41 = vadd.f32 %v6806_v30, %v1420_v34  ;;  %v1422_v48 = vpop.f32.mrb[107].mxu1 }
 0x201   : > { %v2643_v29 = vadd.f32 1.0, %v5741_v37  ;;  %v2714_v59 = vmul.f32 %v2642_v33, %v2426_v38  ;;  %v1893_v33 = vcombine.high %v1871_v56, %v1871_v56  ;;  %v1862_v48 = vrot.slane %v1848_v28, %v6577_v35 }
 0x202   : > { %v2502_v51 = vmul.f32 0.70710677, %v2358_v39  ;;  %v2359_v53 = vadd.f32 %v2161_v42, %v1421_v41  ;;  %v2430_v14 = vmul.f32 0.5, %v2358_v39 }
 0x203   : > { %v2715_v26 = vmul.f32 %v2643_v29, %v2427_v52  ;;  %v1895_v52 = vcombine.high %v1885_v17, %v1885_v17  ;;  %v2181_v39 = vrot.slane %v1893_v33, %v6587_v46 }
 0x204   : > { %5746 = verf.f32 %v2502_v51  ;;  %v2503_v50 = vmul.f32 0.70710677, %v2359_v53  ;;  %v2431_v3 = vmul.f32 0.5, %v2359_v53 }
 0x205   : > { %v1425_v40 = vpop.f32.mrb[108].mxu1  ;;  %v2762_v55 = vpack.c.bf16 %v2715_v26, %v2714_v59 }
 0x206   : > { %v5743_v63 = vpop.eup %5742  ;;  %5748 = verf.f32 %v2503_v50  ;;  %v1426_v25 = vadd.f32 %v6806_v30, %v1425_v40  ;;  %v1427_v62 = vpop.f32.mrb[109].mxu1  ;;  %v1864_v50 = vcombine.high %v1862_v48, %v1862_v48 }
 0x207   : > { %v2644_v1 = vadd.f32 1.0, %v5743_v63  ;;  %v1428_v54 = vpop.f32.mrb[110].mxu1  ;;  %5408 = vmatprep.mubr.bf16.mxu0 %v2762_v55  ;;  %v2185_v55 = vrot.slane %v1895_v52, %v6587_v46 }
 0x208   : > { %v5745_v32 = vpop.eup %5744  ;;  %v2360_v45 = vadd.f32 %v2165_v60, %v1426_v25  ;;  %v1429_v5 = vadd.f32 %v6806_v30, %v1428_v54  ;;  %v1430_v6 = vpop.f32.mrb[111].mxu1 }
 0x209   : > { %v2645_v49 = vadd.f32 1.0, %v5745_v32  ;;  %v2716_v11 = vmul.f32 %v2644_v1, %v2428_v9  ;;  %v1878_v1 = vrot.slane %v1862_v48, %v6577_v35  ;;  %v1892_v6 = vrot.slane %v1864_v50, %v6577_v35 }
 0x20a   : > { %v2504_v2 = vmul.f32 0.70710677, %v2360_v45  ;;  %v2361_v10 = vadd.f32 %v2169_v27, %v1429_v5  ;;  %v2432_v25 = vmul.f32 0.5, %v2360_v45 }
 0x20b   : > { %v2717_v43 = vmul.f32 %v2645_v49, %v2429_v61  ;;  %v2189_v56 = vrot.slane %v1878_v1, %v6587_v46 }
 0x20c   : > { %5750 = verf.f32 %v2504_v2  ;;  %v2505_v8 = vmul.f32 0.70710677, %v2361_v10  ;;  %v2433_v60 = vmul.f32 0.5, %v2361_v10  ;;  %v1894_v10 = vcombine.high %v1878_v1, %v1878_v1 }
 0x20d   : > { %v1433_v7 = vpop.f32.mrb[112].mxu1  ;;  %v2763_v18 = vpack.c.bf16 %v2717_v43, %v2716_v11 }
 0x20e   : > { %v5747_v20 = vpop.eup %5746  ;;  %5752 = verf.f32 %v2505_v8  ;;  %v1434_v22 = vadd.f32 %v6806_v30, %v1433_v7  ;;  %v1435_v23 = vpop.f32.mrb[113].mxu1 }
 0x20f   : > { %v2646_v19 = vadd.f32 1.0, %v5747_v20  ;;  %v1436_v12 = vpop.f32.mrb[114].mxu1  ;;  %5409 = vmatmul.mubr.bf16.gmra.mrb[68].mxu0 %v2763_v18  ;;  %v2193_v18 = vrot.slane %v1892_v6, %v6587_v46 }
 0x210   : > { %v5749_v4 = vpop.eup %5748  ;;  %v2362_v21 = vadd.f32 %v2173_v16, %v1434_v22  ;;  %v1437_v47 = vadd.f32 %v6806_v30, %v1436_v12  ;;  %v1438_v15 = vpop.f32.mrb[115].mxu1  ;;  %v6913_v22 = vld [vmem:[%s8267_s7] ss:$0 sm:$0xff]  ;;  %v1896_v16 = vcombine.high %v1892_v6, %v1892_v6 }
 0x211   : > { %v2647_v13 = vadd.f32 1.0, %v5749_v4  ;;  %v2718_v41 = vmul.f32 %v2646_v19, %v2430_v14  ;;  %v1904_v4 = vrot.slane %v6776_v24, %v6577_v35  ;;  %v2197_v15 = vrot.slane %v1894_v10, %v6587_v46 }
 0x212   : > { %v2506_v34 = vmul.f32 0.70710677, %v2362_v21  ;;  %v2363_v37 = vadd.f32 %v2177_v31, %v1437_v47  ;;  %v2434_v23 = vmul.f32 0.5, %v2362_v21  ;;  %v1897_v14 = vcombine.high %v6776_v24, %v6776_v24 }
 0x213   : > { %v2719_v42 = vmul.f32 %v2647_v13, %v2431_v3  ;;  %v1912_v48 = vcombine.high %v1904_v4, %v1904_v4 }
 0x214   : > { %5754 = verf.f32 %v2506_v34  ;;  %v2507_v38 = vmul.f32 0.70710677, %v2363_v37  ;;  %v2435_v19 = vmul.f32 0.5, %v2363_v37 }
 0x215   : > { %v1441_v0 = vpop.f32.mrb[116].mxu1  ;;  %v2764_v29 = vpack.c.bf16 %v2719_v42, %v2718_v41  ;;  %v2201_v42 = vrot.slane %v1896_v16, %v6587_v46 }
 0x216   : > { %v5751_v51 = vpop.eup %5750  ;;  %5756 = verf.f32 %v2507_v38  ;;  %v1442_v57 = vadd.f32 %v6806_v30, %v1441_v0  ;;  %v1443_v53 = vpop.f32.mrb[117].mxu1 }
 0x217   : > { %v2648_v59 = vadd.f32 1.0, %v5751_v51  ;;  %v1444_v26 = vpop.f32.mrb[118].mxu1  ;;  %5412 = vmatprep.mubr.bf16.mxu0 %v2764_v29 }
 0x218   : > { %v5753_v36 = vpop.eup %5752  ;;  %v6894_v44 = vadd.f32 %v2181_v39, %v1442_v57  ;;  %v1445_v40 = vadd.f32 %v6806_v30, %v1444_v26  ;;  %v1446_v63 = vpop.f32.mrb[119].mxu1  ;;  %v1920_v57 = vrot.slane %v1904_v4, %v6577_v35 }
 0x219   : > { %v2649_v62 = vadd.f32 1.0, %v5753_v36  ;;  %v2720_v58 = vmul.f32 %v2648_v59, %v2432_v25  ;;  %v1911_v36 = vrot.slane %v1897_v14, %v6577_v35 }
 0x21a   : > { %v2508_v54 = vmul.f32 0.70710677, %v6894_v44  ;;  %v6900_v32 = vadd.f32 %v2185_v55, %v1445_v40  ;;  %v2436_v1 = vmul.f32 0.5, %v6894_v44 }
 0x21b   : > { %v2721_v5 = vmul.f32 %v2649_v62, %v2433_v60  ;;  %v1913_v10 = vcombine.high %v1911_v36, %v1911_v36 }
 0x21c   : > { %5758 = verf.f32 %v2508_v54  ;;  %v2509_v27 = vmul.f32 0.70710677, %v6900_v32  ;;  %v2437_v54 = vmul.f32 0.5, %v6900_v32 }
 0x21d   : > { %v1449_v9 = vpop.f32.mrb[120].mxu1  ;;  %v2765_v61 = vpack.c.bf16 %v2721_v5, %v2720_v58  ;;  %v1934_v5 = vrot.slane %v1912_v48, %v6577_v35 }
 0x21e   : > { %v5755_v49 = vpop.eup %5754  ;;  %5760 = verf.f32 %v2509_v27  ;;  %v1450_v45 = vadd.f32 %v6806_v30, %v1449_v9  ;;  %v1451_v2 = vpop.f32.mrb[121].mxu1  ;;  %v1942_v9 = vcombine.high %v1920_v57, %v1920_v57 }
 0x21f   : > { %v2650_v11 = vadd.f32 1.0, %v5755_v49  ;;  %v1452_v43 = vpop.f32.mrb[122].mxu1  ;;  %5413 = vmatmul.mubr.bf16.gmra.mrb[72].mxu0 %v2765_v61  ;;  %v1944_v2 = vcombine.high %v1934_v5, %v1934_v5 }
 0x220   : > { %v5757_v17 = vpop.eup %5756  ;;  %v6906_v8 = vadd.f32 %v2189_v56, %v1450_v45  ;;  %v1453_v7 = vadd.f32 %v6806_v30, %v1452_v43  ;;  %v1454_v20 = vpop.f32.mrb[123].mxu1  ;;  %v2205_v56 = vrot.slane %v1920_v57, %v6587_v46 }
 0x221   : > { %v2651_v12 = vadd.f32 1.0, %v5757_v17  ;;  %v2722_v21 = vmul.f32 %v2650_v11, %v2434_v23  ;;  %v6952_v20 = vrot.slane %v1911_v36, %v6577_v35  ;;  %v2213_v23 = vrot.slane %v1942_v9, %v6587_v46 }
 0x222   : > { %v2510_v28 = vmul.f32 0.70710677, %v6906_v8  ;;  %v6918_v47 = vadd.f32 %v2193_v18, %v1453_v7  ;;  %v5362_v31 = vpop.f32.mrb[20].mxu0  ;;  %v2209_v18 = vrot.slane %v1934_v5, %v6587_v46 }
 0x223   : > { %v6924_v3 = vadd.f32 %v5362_v31, %v6913_v22  ;;  %v2862_v13 = vpop.f32.mrb[21].mxu0  ;;  %v2723_v33 = vmul.f32 %v2651_v12, %v2435_v19 }
 0x224   : > { %5762 = verf.f32 %v2510_v28  ;;  %v2511_v34 = vmul.f32 0.70710677, %v6918_v47  ;;  %v6928_v37 = vadd.f32 %v6913_v22, %v2862_v13  ;;  %v5363_v41 = vpop.f32.mrb[22].mxu0  ;;  %v2438_v13 = vmul.f32 0.5, %v6906_v8 }
 0x225   : > { %v3223_v38 = vmul.f32 0.70710677, %v6924_v3  ;;  %v6933_v24 = vadd.f32 %v5363_v41, %v6913_v22  ;;  %v1457_v52 = vpop.f32.mrb[124].mxu1  ;;  %v2865_v0 = vpop.f32.mrb[23].mxu0  ;;  %v2766_v29 = vpack.c.bf16 %v2723_v33, %v2722_v21  ;;  %v2439_v21 = vmul.f32 0.5, %v6918_v47 }
 0x226   : > { %v5759_v51 = vpop.eup %5758  ;;  %5764 = verf.f32 %v2511_v34  ;;  %v3221_v39 = vmul.f32 0.70710677, %v6928_v37  ;;  %v1458_v53 = vadd.f32 %v6806_v30, %v1457_v52  ;;  %v1459_v59 = vpop.f32.mrb[125].mxu1  ;;  %v6941_v25 = vadd.f32 %v6913_v22, %v2865_v0 }
 0x227   : > { %v2652_v26 = vadd.f32 1.0, %v5759_v51  ;;  %5766 = verf.f32 %v3223_v38  ;;  %v3224_v50 = vmul.f32 0.70710677, %v6933_v24  ;;  %v1460_v40 = vpop.f32.mrb[126].mxu1  ;;  %5416 = vmatprep.mubr.bf16.mxu0 %v2766_v29  ;;  %v6964_v34 = vrot.slane %v1913_v10, %v6577_v35 }
 0x228   : > { %v5761_v55 = vpop.eup %5760  ;;  %5768 = verf.f32 %v3221_v39  ;;  %v2368_v63 = vadd.f32 %v2197_v15, %v1458_v53  ;;  %v1461_v60 = vadd.f32 %v6806_v30, %v1460_v40  ;;  %v1462_v62 = vpop.f32.mrb[127].mxu1  ;;  %v3222_v6 = vmul.f32 0.70710677, %v6941_v25 }
 0x229   : > { %v2653_v58 = vadd.f32 1.0, %v5761_v55  ;;  %5770 = verf.f32 %v3224_v50  ;;  %v2724_v49 = vmul.f32 %v2652_v26, %v2436_v1  ;;  %v6959_v15 = vrot.slane %v1944_v2, %v6587_v46 }
 0x22a   : > { %v2512_v27 = vmul.f32 0.70710677, %v2368_v63  ;;  %v2369_v61 = vadd.f32 %v2201_v42, %v1461_v60  ;;  %v3151_v42 = vmul.f32 0.5, %v6924_v3  ;;  %v3149_v51 = vmul.f32 0.5, %v6928_v37 }
 0x22b   : > { %v2725_v45 = vmul.f32 %v2653_v58, %v2437_v54  ;;  %v3152_v8 = vmul.f32 0.5, %v6933_v24  ;;  %v2440_v59 = vmul.f32 0.5, %v2368_v63  ;;  %v3150_v5 = vmul.f32 0.5, %v6941_v25 }
 0x22c   : > { %5772 = verf.f32 %v2512_v27  ;;  %v2513_v44 = vmul.f32 0.70710677, %v2369_v61  ;;  %v2441_v27 = vmul.f32 0.5, %v2369_v61 }
 0x22d   : > { %5774 = verf.f32 %v3222_v6  ;;  %v1465_v11 = vpop.f32.mrb[128].mxu1  ;;  %v2767_v32 = vpack.c.bf16 %v2725_v45, %v2724_v49 }
 0x22e   : > { %v5763_v43 = vpop.eup %5762  ;;  %v1466_v17 = vadd.f32 %v6806_v30, %v1465_v11  ;;  %v1467_v7 = vpop.f32.mrb[129].mxu1  ;;  %5776 = verf.f32 %v2513_v44 }
 0x22f   : > { %v1468_v16 = vpop.f32.mrb[130].mxu1  ;;  %5417 = vmatmul.mubr.bf16.gmra.mrb[76].mxu0 %v2767_v32  ;;  %v2654_v12 = vadd.f32 1.0, %v5763_v43 }
 0x230   : > { %v5765_v19 = vpop.eup %5764  ;;  %v6955_v4 = vadd.f32 %v2205_v56, %v1466_v17  ;;  %v1469_v28 = vadd.f32 %v6806_v30, %v1468_v16  ;;  %v1470_v31 = vpop.f32.mrb[131].mxu1 }
 0x231   : > { %v5767_v14 = vpop.eup %5766  ;;  %v2655_v33 = vadd.f32 1.0, %v5765_v19  ;;  %v2726_v26 = vmul.f32 %v2654_v12, %v2438_v13  ;;  %v2221_v19 = vrot.slane %v6952_v20, %v6587_v46  ;;  %v1943_v13 = vcombine.high %v6952_v20, %v6952_v20 }
 0x232   : > { %v5769_v41 = vpop.eup %5768  ;;  %v3367_v48 = vadd.f32 1.0, %v5767_v14  ;;  %v2514_v38 = vmul.f32 0.70710677, %v6955_v4  ;;  %v6968_v52 = vadd.f32 %v2209_v18, %v1469_v28  ;;  %v5366_v0 = vpop.f32.mrb[24].mxu0 }
 0x233   : > { %v5771_v29 = vpop.eup %5770  ;;  %v6973_v47 = vadd.f32 %v5366_v0, %v6913_v22  ;;  %v2878_v57 = vpop.f32.mrb[25].mxu0  ;;  %v2727_v35 = vmul.f32 %v2655_v33, %v2439_v21  ;;  %v3365_v39 = vadd.f32 1.0, %v5769_v41  ;;  %v7016_v21 = vld [vmem:[%s8265_s5] ss:$0 sm:$0xff] }
 0x234   : > { %v3368_v53 = vadd.f32 1.0, %v5771_v29  ;;  %v5367_v3 = vpop.f32.mrb[26].mxu0  ;;  %v6975_v36 = vmul.f32 %v3367_v48, %v3151_v42  ;;  %5778 = verf.f32 %v2514_v38  ;;  %v2515_v50 = vmul.f32 0.70710677, %v6968_v52 }
 0x235   : > { %v3227_v40 = vmul.f32 0.70710677, %v6973_v47  ;;  %v1473_v37 = vpop.f32.mrb[132].mxu1  ;;  %v6982_v60 = vadd.f32 %v6913_v22, %v2878_v57  ;;  %v6985_v62 = vadd.f32 %v5367_v3, %v6913_v22  ;;  %v2881_v1 = vpop.f32.mrb[27].mxu0  ;;  %v2768_v49 = vpack.c.bf16 %v2727_v35, %v2726_v26 }
 0x236   : > { %v5773_v55 = vpop.eup %5772  ;;  %v6979_v24 = vmul.f32 %v3368_v53, %v3152_v8  ;;  %v1474_v63 = vadd.f32 %v6806_v30, %v1473_v37  ;;  %v1475_v54 = vpop.f32.mrb[133].mxu1  ;;  %v6990_v6 = vadd.f32 %v6913_v22, %v2881_v1  ;;  %v6996_v61 = vmul.f32 %v3365_v39, %v3149_v51 }
 0x237   : > { %v5775_v58 = vpop.eup %5774  ;;  %v1476_v9 = vpop.f32.mrb[134].mxu1  ;;  %v2656_v56 = vadd.f32 1.0, %v5773_v55  ;;  %5780 = verf.f32 %v3227_v40  ;;  %v3225_v11 = vmul.f32 0.70710677, %v6982_v60  ;;  %v3228_v32 = vmul.f32 0.70710677, %v6985_v62  ;;  %5420 = vmatprep.mubr.bf16.mxu0 %v2768_v49 }
 0x238   : > { %v3510_v45 = vpack.c.bf16 %v6979_v24, %v6975_v36  ;;  %v3366_v2 = vadd.f32 1.0, %v5775_v58  ;;  %v1478_v10 = vpop.f32.mrb[135].mxu1  ;;  %v5777_v44 = vpop.eup %5776  ;;  %5782 = verf.f32 %v2515_v50  ;;  %v2372_v25 = vadd.f32 %v2213_v23, %v1474_v63 }
 0x239   : > { %v2657_v17 = vadd.f32 1.0, %v5777_v44  ;;  %v3226_v7 = vmul.f32 0.70710677, %v6990_v6  ;;  %5784 = verf.f32 %v3225_v11  ;;  %v1477_v16 = vadd.f32 %v6806_v30, %v1476_v9 }
 0x23a   : > { %v6998_v43 = vmul.f32 %v3366_v2, %v3150_v5  ;;  %v2516_v18 = vmul.f32 0.70710677, %v2372_v25  ;;  %5786 = verf.f32 %v3228_v32  ;;  %v2728_v12 = vmul.f32 %v2656_v56, %v2440_v59 }
 0x23b   : > { %v2729_v28 = vmul.f32 %v2657_v17, %v2441_v27  ;;  %v7007_v31 = vadd.f32 %v6959_v15, %v1477_v16  ;;  %v1945_v30 = vcombine.high %v6964_v34, %v6964_v34  ;;  %v2225_v15 = vrot.slane %v6964_v34, %v6587_v46 }
 0x23c   : > { %v3509_v23 = vpack.c.bf16 %v6998_v43, %v6996_v61  ;;  %5788 = verf.f32 %v2516_v18  ;;  %v2229_v8 = vrot.slane %v1943_v13, %v6587_v46  ;;  %v2442_v39 = vmul.f32 0.5, %v6955_v4 }
 0x23d   : > { %v1481_v14 = vpop.f32.mrb[136].mxu1  ;;  %5790 = verf.f32 %v3226_v7  ;;  %v2769_v42 = vpack.c.bf16 %v2729_v28, %v2728_v12  ;;  %v2517_v38 = vmul.f32 0.70710677, %v7007_v31  ;;  %v2233_v57 = vrot.slane %v1945_v30, %v6587_v46 }
 0x23e   : > { %v1482_v33 = vadd.f32 %v7016_v21, %v1481_v14  ;;  %v1483_v41 = vpop.f32.mrb[137].mxu1  ;;  %v5779_v48 = vpop.eup %5778  ;;  %v2443_v34 = vmul.f32 0.5, %v6968_v52  ;;  %v3155_v40 = vmul.f32 0.5, %v6973_v47  ;;  %v3153_v37 = vmul.f32 0.5, %v6982_v60 }
 0x23f   : > { %v1484_v20 = vpop.f32.mrb[138].mxu1  ;;  %5421 = vmatmul.mubr.bf16.gmra.mrb[80].mxu0 %v2769_v42  ;;  %5792 = verf.f32 %v2517_v38  ;;  %v2658_v50 = vadd.f32 1.0, %v5779_v48  ;;  %v3156_v58 = vmul.f32 0.5, %v6985_v62  ;;  %v3154_v5 = vmul.f32 0.5, %v6990_v6 }
 0x240   : > { %v7022_v0 = vadd.f32 %v2221_v19, %v1482_v33  ;;  %v1485_v29 = vadd.f32 %v7016_v21, %v1484_v20  ;;  %v1486_v51 = vpop.f32.mrb[139].mxu1  ;;  %v2444_v2 = vmul.f32 0.5, %v2372_v25 }
 0x241   : > { %v5781_v35 = vpop.eup %5780  ;;  %v2730_v19 = vmul.f32 %v2658_v50, %v2442_v39 }
 0x242   : > { %v2518_v53 = vmul.f32 0.70710677, %v7022_v0  ;;  %v7030_v59 = vadd.f32 %v2225_v15, %v1485_v29  ;;  %v5370_v3 = vpop.f32.mrb[28].mxu0  ;;  %v5783_v26 = vpop.eup %5782  ;;  %v3371_v63 = vadd.f32 1.0, %v5781_v35  ;;  %v2445_v29 = vmul.f32 0.5, %v7007_v31 }
 0x243   : > { %v7035_v55 = vadd.f32 %v5370_v3, %v6913_v22  ;;  %v2894_v46 = vpop.f32.mrb[29].mxu0  ;;  %v5785_v54 = vpop.eup %5784  ;;  %v2659_v56 = vadd.f32 1.0, %v5783_v26 }
 0x244   : > { %5794 = verf.f32 %v2518_v53  ;;  %v2519_v4 = vmul.f32 0.70710677, %v7030_v59  ;;  %v7039_v52 = vadd.f32 %v6913_v22, %v2894_v46  ;;  %v5371_v1 = vpop.f32.mrb[30].mxu0  ;;  %v5787_v49 = vpop.eup %5786  ;;  %v3369_v32 = vadd.f32 1.0, %v5785_v54 }
 0x245   : > { %v3231_v47 = vmul.f32 0.70710677, %v7035_v55  ;;  %v7045_v60 = vadd.f32 %v5371_v1, %v6913_v22  ;;  %v1489_v27 = vpop.f32.mrb[140].mxu1  ;;  %v2897_v9 = vpop.f32.mrb[31].mxu0  ;;  %v3372_v17 = vadd.f32 1.0, %v5787_v49  ;;  %v7049_v18 = vmul.f32 %v3371_v63, %v3155_v40 }
 0x246   : > { %5796 = verf.f32 %v2519_v4  ;;  %v3229_v10 = vmul.f32 0.70710677, %v7039_v52  ;;  %v1491_v44 = vpop.f32.mrb[141].mxu1  ;;  %v5789_v11 = vpop.eup %5788  ;;  %v1490_v16 = vadd.f32 %v7016_v21, %v1489_v27  ;;  %v2898_v14 = vadd.f32 %v6913_v22, %v2897_v9 }
 0x247   : > { %5798 = verf.f32 %v3231_v47  ;;  %v3232_v62 = vmul.f32 0.70710677, %v7045_v60  ;;  %v1492_v6 = vpop.f32.mrb[142].mxu1  ;;  %v5791_v7 = vpop.eup %5790  ;;  %v7052_v25 = vmul.f32 %v3372_v17, %v3156_v58  ;;  %v2660_v13 = vadd.f32 1.0, %v5789_v11 }
 0x248   : > { %5800 = verf.f32 %v3229_v10  ;;  %v1494_v12 = vpop.f32.mrb[143].mxu1  ;;  %v3370_v28 = vadd.f32 1.0, %v5791_v7  ;;  %v7055_v30 = vadd.f32 %v2229_v8, %v1490_v16  ;;  %v1493_v33 = vadd.f32 %v7016_v21, %v1492_v6 }
 0x249   : > { %5802 = verf.f32 %v3232_v62  ;;  %v2731_v41 = vmul.f32 %v2659_v56, %v2443_v34  ;;  %v5793_v15 = vpop.eup %5792  ;;  %v7058_v42 = vmul.f32 %v3369_v32, %v3153_v37  ;;  %v3230_v38 = vmul.f32 0.70710677, %v2898_v14 }
 0x24a   : > { %v7060_v48 = vmul.f32 %v3370_v28, %v3154_v5  ;;  %v3512_v20 = vpack.c.bf16 %v7052_v25, %v7049_v18  ;;  %v2661_v51 = vadd.f32 1.0, %v5793_v15  ;;  %v2520_v35 = vmul.f32 0.70710677, %v7055_v30 }
 0x24b   : > { %v2377_v39 = vadd.f32 %v2233_v57, %v1493_v33  ;;  %5804 = verf.f32 %v3230_v38  ;;  %v2770_v8 = vpack.c.bf16 %v2731_v41, %v2730_v19  ;;  %v2732_v3 = vmul.f32 %v2660_v13, %v2444_v2 }
 0x24c   : > { %v3511_v21 = vpack.c.bf16 %v7060_v48, %v7058_v42  ;;  %5806 = verf.f32 %v2520_v35  ;;  %v2733_v26 = vmul.f32 %v2661_v51, %v2445_v29  ;;  %v2447_v46 = vmul.f32 0.5, %v7030_v59 }
 0x24d   : > { %v2521_v53 = vmul.f32 0.70710677, %v2377_v39  ;;  %5424 = vmatprep.mubr.bf16.mxu0 %v2770_v8  ;;  %v2446_v54 = vmul.f32 0.5, %v7022_v0  ;;  %v3159_v9 = vmul.f32 0.5, %v7035_v55  ;;  %v3160_v49 = vmul.f32 0.5, %v7045_v60 }
 0x24e   : > { %v5795_v34 = vpop.eup %5794  ;;  %v2771_v40 = vpack.c.bf16 %v2733_v26, %v2732_v3  ;;  %v3157_v10 = vmul.f32 0.5, %v7039_v52  ;;  %v3158_v28 = vmul.f32 0.5, %v2898_v14  ;;  %v2448_v51 = vmul.f32 0.5, %v7055_v30 }
 0x24f   : > { %5808 = verf.f32 %v2521_v53  ;;  %v2662_v31 = vadd.f32 1.0, %v5795_v34  ;;  %v2449_v35 = vmul.f32 0.5, %v2377_v39 }
 0x250   : > { %v5797_v50 = vpop.eup %5796  ;;  %5425 = vmatmul.mubr.bf16.gmra.mrb[84].mxu0 %v2771_v40 }
 0x251   : > { %v5799_v37 = vpop.eup %5798  ;;  %v2663_v63 = vadd.f32 1.0, %v5797_v50  ;;  %v2734_v0 = vmul.f32 %v2662_v31, %v2446_v54 }
 0x252   : > { %v5801_v57 = vpop.eup %5800  ;;  %v5374_v4 = vpop.f32.mrb[32].mxu0  ;;  %v3375_v58 = vadd.f32 1.0, %v5799_v37 }
 0x253   : > { %v5803_v1 = vpop.eup %5802  ;;  %v2919_v5 = vadd.f32 %v5374_v4, %v6913_v22  ;;  %v2910_v47 = vpop.f32.mrb[33].mxu0  ;;  %v2735_v27 = vmul.f32 %v2663_v63, %v2447_v46  ;;  %v3373_v17 = vadd.f32 1.0, %v5801_v57 }
 0x254   : > { %v3376_v56 = vadd.f32 1.0, %v5803_v1  ;;  %v2911_v2 = vadd.f32 %v6913_v22, %v2910_v47  ;;  %v5375_v59 = vpop.f32.mrb[34].mxu0  ;;  %v7079_v16 = vmul.f32 %v3375_v58, %v3159_v9 }
 0x255   : > { %v3235_v44 = vmul.f32 0.70710677, %v2919_v5  ;;  %v2922_v11 = vadd.f32 %v5375_v59, %v6913_v22  ;;  %v2913_v32 = vpop.f32.mrb[35].mxu0  ;;  %v5805_v55 = vpop.eup %5804  ;;  %v2772_v19 = vpack.c.bf16 %v2735_v27, %v2734_v0  ;;  %v3445_v38 = vmul.f32 %v3373_v17, %v3157_v10 }
 0x256   : > { %v7076_v62 = vmul.f32 %v3376_v56, %v3160_v49  ;;  %v3233_v6 = vmul.f32 0.70710677, %v2911_v2  ;;  %v2914_v7 = vadd.f32 %v6913_v22, %v2913_v32  ;;  %v5807_v12 = vpop.eup %5806  ;;  %v3374_v52 = vadd.f32 1.0, %v5805_v55 }
 0x257   : > { %5810 = verf.f32 %v3235_v44  ;;  %v3236_v60 = vmul.f32 0.70710677, %v2922_v11  ;;  %v2664_v33 = vadd.f32 1.0, %v5807_v12  ;;  %5428 = vmatprep.mubr.bf16.mxu0 %v2772_v19  ;;  %v3163_v57 = vmul.f32 0.5, %v2919_v5 }
 0x258   : > { %5812 = verf.f32 %v3233_v6  ;;  %v3234_v13 = vmul.f32 0.70710677, %v2914_v7  ;;  %v3514_v41 = vpack.c.bf16 %v7076_v62, %v7079_v16  ;;  %v3446_v29 = vmul.f32 %v3374_v52, %v3158_v28 }
 0x259   : > { %5814 = verf.f32 %v3236_v60  ;;  %v5809_v15 = vpop.eup %5808  ;;  %v2736_v53 = vmul.f32 %v2664_v33, %v2448_v51  ;;  %v3164_v4 = vmul.f32 0.5, %v2922_v11  ;;  %v3161_v47 = vmul.f32 0.5, %v2911_v2 }
 0x25a   : > { %5816 = verf.f32 %v3234_v13  ;;  %v2665_v8 = vadd.f32 1.0, %v5809_v15  ;;  %v3513_v34 = vpack.c.bf16 %v3446_v29, %v3445_v38  ;;  %v3162_v27 = vmul.f32 0.5, %v2914_v7 }
 0x25c   : > { %v2737_v14 = vmul.f32 %v2665_v8, %v2449_v35 }
 0x25e   : > { %v2773_v3 = vpack.c.bf16 %v2737_v14, %v2736_v53 }
 0x260   : > { %5429 = vmatmul.mubr.bf16.gmra.mrb[88].mxu0 %v2773_v3 }
 0x261   : > { %v5811_v26 = vpop.eup %5810  ;;  %5448 = vmatprep.mubr.bf16.mxu0 %v3509_v23 }
 0x262   : > { %v5813_v50 = vpop.eup %5812  ;;  %v3379_v40 = vadd.f32 1.0, %v5811_v26  ;;  %v5378_v37 = vpop.f32.mrb[36].mxu0 }
 0x263   : > { %v5815_v31 = vpop.eup %5814  ;;  %v3377_v46 = vadd.f32 1.0, %v5813_v50  ;;  %v2935_v63 = vadd.f32 %v5378_v37, %v6913_v22  ;;  %v2926_v30 = vpop.f32.mrb[37].mxu0 }
 0x264   : > { %v5817_v39 = vpop.eup %5816  ;;  %v3380_v1 = vadd.f32 1.0, %v5815_v31  ;;  %v2927_v54 = vadd.f32 %v6913_v22, %v2926_v30  ;;  %v5379_v58 = vpop.f32.mrb[38].mxu0  ;;  %v3451_v61 = vmul.f32 %v3379_v40, %v3163_v57 }
 0x265   : > { %v3378_v9 = vadd.f32 1.0, %v5817_v39  ;;  %v3239_v49 = vmul.f32 0.70710677, %v2935_v63  ;;  %v2929_v56 = vpop.f32.mrb[39].mxu0  ;;  %v2938_v59 = vadd.f32 %v5379_v58, %v6913_v22  ;;  %v3449_v10 = vmul.f32 %v3377_v46, %v3161_v47 }
 0x266   : > { %v3452_v43 = vmul.f32 %v3380_v1, %v3164_v4  ;;  %v3237_v23 = vmul.f32 0.70710677, %v2927_v54  ;;  %v2930_v5 = vadd.f32 %v6913_v22, %v2929_v56 }
 0x267   : > { %v3450_v44 = vmul.f32 %v3378_v9, %v3162_v27  ;;  %5818 = verf.f32 %v3239_v49  ;;  %v3240_v11 = vmul.f32 0.70710677, %v2938_v59  ;;  %v3168_v28 = vmul.f32 0.5, %v2938_v59 }
 0x268   : > { %5820 = verf.f32 %v3237_v23  ;;  %v3516_v32 = vpack.c.bf16 %v3452_v43, %v3451_v61  ;;  %v3238_v0 = vmul.f32 0.70710677, %v2930_v5  ;;  %5449 = vmatmul.mubr.bf16.vlgmr.msra.gmra.mrb[92].mxu0 %v3510_v45  ;;  %v3167_v45 = vmul.f32 0.5, %v2935_v63 }
 0x269   : > { %v3515_v2 = vpack.c.bf16 %v3450_v44, %v3449_v10  ;;  %5822 = verf.f32 %v3240_v11  ;;  %5452 = vmatprep.mubr.bf16.mxu0 %v3511_v21  ;;  %v3165_v21 = vmul.f32 0.5, %v2927_v54  ;;  %v3166_v25 = vmul.f32 0.5, %v2930_v5 }
 0x26a   : > { %5824 = verf.f32 %v3238_v0 }
 0x270   : > { %5453 = vmatmul.mubr.bf16.gmra.mrb[96].mxu0 %v3512_v20 }
 0x271   : > { %v5819_v17 = vpop.eup %5818  ;;  %5456 = vmatprep.mubr.bf16.mxu0 %v3513_v34 }
 0x272   : > { %v5821_v6 = vpop.eup %5820  ;;  %v5382_v7 = vpop.f32.mrb[40].mxu0  ;;  %v3383_v55 = vadd.f32 1.0, %v5819_v17 }
 0x273   : > { %v2951_v60 = vadd.f32 %v5382_v7, %v6913_v22  ;;  %v2942_v36 = vpop.f32.mrb[41].mxu0  ;;  %v5823_v24 = vpop.eup %5822  ;;  %v3381_v19 = vadd.f32 1.0, %v5821_v6 }
 0x274   : > { %v2943_v12 = vadd.f32 %v6913_v22, %v2942_v36  ;;  %v5383_v42 = vpop.f32.mrb[42].mxu0  ;;  %v5825_v48 = vpop.eup %5824  ;;  %v3384_v52 = vadd.f32 1.0, %v5823_v24  ;;  %v3455_v38 = vmul.f32 %v3383_v55, %v3167_v45 }
 0x275   : > { %v3243_v13 = vmul.f32 0.70710677, %v2951_v60  ;;  %v2945_v18 = vpop.f32.mrb[43].mxu0  ;;  %v3382_v20 = vadd.f32 1.0, %v5825_v48  ;;  %v2954_v15 = vadd.f32 %v5383_v42, %v6913_v22  ;;  %v3453_v35 = vmul.f32 %v3381_v19, %v3165_v21 }
 0x276   : > { %v3241_v33 = vmul.f32 0.70710677, %v2943_v12  ;;  %v3456_v29 = vmul.f32 %v3384_v52, %v3168_v28  ;;  %v2946_v51 = vadd.f32 %v6913_v22, %v2945_v18  ;;  %v3171_v30 = vmul.f32 0.5, %v2951_v60 }
 0x277   : > { %5826 = verf.f32 %v3243_v13  ;;  %v3454_v8 = vmul.f32 %v3382_v20, %v3166_v25  ;;  %v3244_v34 = vmul.f32 0.70710677, %v2954_v15  ;;  %v3169_v57 = vmul.f32 0.5, %v2943_v12 }
 0x278   : > { %5828 = verf.f32 %v3241_v33  ;;  %v3242_v53 = vmul.f32 0.70710677, %v2946_v51  ;;  %5457 = vmatmul.mubr.bf16.gmra.mrb[100].mxu0 %v3514_v41  ;;  %v3518_v14 = vpack.c.bf16 %v3456_v29, %v3455_v38  ;;  %v3172_v4 = vmul.f32 0.5, %v2954_v15 }
 0x279   : > { %5830 = verf.f32 %v3244_v34  ;;  %5460 = vmatprep.mubr.bf16.mxu0 %v3515_v2  ;;  %v3517_v3 = vpack.c.bf16 %v3454_v8, %v3453_v35  ;;  %v3170_v47 = vmul.f32 0.5, %v2946_v51 }
 0x27a   : > { %5832 = verf.f32 %v3242_v53 }
 0x280   : > { %5461 = vmatmul.mubr.bf16.gmra.mrb[104].mxu0 %v3516_v32 }
 0x281   : > { %v5827_v26 = vpop.eup %5826  ;;  %5464 = vmatprep.mubr.bf16.mxu0 %v3517_v3 }
 0x282   : > { %v5829_v50 = vpop.eup %5828  ;;  %v5386_v40 = vpop.f32.mrb[44].mxu0  ;;  %v3387_v37 = vadd.f32 1.0, %v5827_v26 }
 0x283   : > { %v2967_v31 = vadd.f32 %v5386_v40, %v6913_v22  ;;  %v2958_v46 = vpop.f32.mrb[45].mxu0  ;;  %v5831_v63 = vpop.eup %5830  ;;  %v3385_v39 = vadd.f32 1.0, %v5829_v50 }
 0x284   : > { %v2959_v62 = vadd.f32 %v6913_v22, %v2958_v46  ;;  %v5387_v16 = vpop.f32.mrb[46].mxu0  ;;  %v5833_v41 = vpop.eup %5832  ;;  %v3388_v1 = vadd.f32 1.0, %v5831_v63  ;;  %v3459_v56 = vmul.f32 %v3387_v37, %v3171_v30 }
 0x285   : > { %v3247_v54 = vmul.f32 0.70710677, %v2967_v31  ;;  %v2961_v58 = vpop.f32.mrb[47].mxu0  ;;  %v3386_v27 = vadd.f32 1.0, %v5833_v41  ;;  %v2970_v49 = vadd.f32 %v5387_v16, %v6913_v22  ;;  %v3457_v23 = vmul.f32 %v3385_v39, %v3169_v57 }
 0x286   : > { %v3245_v9 = vmul.f32 0.70710677, %v2959_v62  ;;  %v3460_v61 = vmul.f32 %v3388_v1, %v3172_v4  ;;  %v2962_v43 = vadd.f32 %v6913_v22, %v2961_v58  ;;  %v3175_v60 = vmul.f32 0.5, %v2967_v31 }
 0x287   : > { %5834 = verf.f32 %v3247_v54  ;;  %v3458_v59 = vmul.f32 %v3386_v27, %v3170_v47  ;;  %v3248_v10 = vmul.f32 0.70710677, %v2970_v49  ;;  %v3173_v12 = vmul.f32 0.5, %v2959_v62 }
 0x288   : > { %5836 = verf.f32 %v3245_v9  ;;  %v3246_v44 = vmul.f32 0.70710677, %v2962_v43  ;;  %5465 = vmatmul.mubr.bf16.gmra.mrb[108].mxu0 %v3518_v14  ;;  %v3520_v5 = vpack.c.bf16 %v3460_v61, %v3459_v56  ;;  %v3176_v42 = vmul.f32 0.5, %v2970_v49 }
 0x289   : > { %5838 = verf.f32 %v3248_v10  ;;  %v3519_v11 = vpack.c.bf16 %v3458_v59, %v3457_v23  ;;  %v3174_v52 = vmul.f32 0.5, %v2962_v43 }
 0x28a   : > { %5840 = verf.f32 %v3246_v44 }
 0x28b   : > { %5468 = vmatprep.mubr.bf16.mxu0 %v3519_v11 }
 0x290   : > { %5469 = vmatmul.mubr.bf16.gmra.mrb[112].mxu0 %v3520_v5 }
 0x291   : > { %v5835_v32 = vpop.eup %5834 }
 0x292   : > { %v5837_v0 = vpop.eup %5836  ;;  %v5390_v2 = vpop.f32.mrb[48].mxu0  ;;  %v3391_v17 = vadd.f32 1.0, %v5835_v32 }
 0x293   : > { %v2983_v6 = vadd.f32 %v5390_v2, %v6913_v22  ;;  %v2974_v7 = vpop.f32.mrb[49].mxu0  ;;  %v5839_v55 = vpop.eup %5838  ;;  %v3389_v36 = vadd.f32 1.0, %v5837_v0 }
 0x294   : > { %v2975_v24 = vadd.f32 %v6913_v22, %v2974_v7  ;;  %v5391_v45 = vpop.f32.mrb[50].mxu0  ;;  %v5841_v19 = vpop.eup %5840  ;;  %v3392_v48 = vadd.f32 1.0, %v5839_v55  ;;  %v3463_v20 = vmul.f32 %v3391_v17, %v3175_v60 }
 0x295   : > { %v3251_v21 = vmul.f32 0.70710677, %v2983_v6  ;;  %v2977_v28 = vpop.f32.mrb[51].mxu0  ;;  %v3390_v13 = vadd.f32 1.0, %v5841_v19  ;;  %v2986_v25 = vadd.f32 %v5391_v45, %v6913_v22  ;;  %v3461_v38 = vmul.f32 %v3389_v36, %v3173_v12 }
 0x296   : > { %v3249_v18 = vmul.f32 0.70710677, %v2975_v24  ;;  %v3464_v33 = vmul.f32 %v3392_v48, %v3176_v42  ;;  %v2978_v15 = vadd.f32 %v6913_v22, %v2977_v28  ;;  %v3179_v31 = vmul.f32 0.5, %v2983_v6 }
 0x297   : > { %5842 = verf.f32 %v3251_v21  ;;  %v3462_v29 = vmul.f32 %v3390_v13, %v3174_v52  ;;  %v3252_v51 = vmul.f32 0.70710677, %v2986_v25  ;;  %v3177_v62 = vmul.f32 0.5, %v2975_v24 }
 0x298   : > { %5844 = verf.f32 %v3249_v18  ;;  %v3250_v35 = vmul.f32 0.70710677, %v2978_v15  ;;  %v3522_v8 = vpack.c.bf16 %v3464_v33, %v3463_v20  ;;  %v3180_v16 = vmul.f32 0.5, %v2986_v25 }
 0x299   : > { %5846 = verf.f32 %v3252_v51  ;;  %v3521_v34 = vpack.c.bf16 %v3462_v29, %v3461_v38  ;;  %v3178_v1 = vmul.f32 0.5, %v2978_v15 }
 0x29a   : > { %5848 = verf.f32 %v3250_v35 }
 0x29b   : > { %5472 = vmatprep.mubr.bf16.mxu0 %v3521_v34 }
 0x29c   : > { %5473 = vmatmul.mubr.bf16.gmra.mrb[116].mxu0 %v3522_v8 }
 0x2a1   : > { %v5843_v53 = vpop.eup %5842 }
 0x2a2   : > { %v5845_v14 = vpop.eup %5844  ;;  %v5394_v3 = vpop.f32.mrb[52].mxu0  ;;  %v3395_v26 = vadd.f32 1.0, %v5843_v53 }
 0x2a3   : > { %v2999_v50 = vadd.f32 %v5394_v3, %v6913_v22  ;;  %v2990_v40 = vpop.f32.mrb[53].mxu0  ;;  %v5847_v37 = vpop.eup %5846  ;;  %v3393_v46 = vadd.f32 1.0, %v5845_v14 }
 0x2a4   : > { %v2991_v63 = vadd.f32 %v6913_v22, %v2990_v40  ;;  %v5395_v30 = vpop.f32.mrb[54].mxu0  ;;  %v5849_v39 = vpop.eup %5848  ;;  %v3396_v41 = vadd.f32 1.0, %v5847_v37  ;;  %v3467_v27 = vmul.f32 %v3395_v26, %v3179_v31  ;;  %v7127_v37 = vld [vmem:[%s8267_s7] ss:$0 sm:$0xff] }
 0x2a5   : > { %v3255_v57 = vmul.f32 0.70710677, %v2999_v50  ;;  %v2993_v4 = vpop.f32.mrb[55].mxu0  ;;  %v3394_v54 = vadd.f32 1.0, %v5849_v39  ;;  %v3002_v47 = vadd.f32 %v5395_v30, %v6913_v22  ;;  %v3465_v56 = vmul.f32 %v3393_v46, %v3177_v62 }
 0x2a6   : > { %v3253_v58 = vmul.f32 0.70710677, %v2991_v63  ;;  %v3468_v9 = vmul.f32 %v3396_v41, %v3180_v16  ;;  %v2994_v49 = vadd.f32 %v6913_v22, %v2993_v4  ;;  %v3183_v6 = vmul.f32 0.5, %v2999_v50 }
 0x2a7   : > { %5850 = verf.f32 %v3255_v57  ;;  %v3466_v61 = vmul.f32 %v3394_v54, %v3178_v1  ;;  %v3256_v43 = vmul.f32 0.70710677, %v3002_v47  ;;  %v3181_v24 = vmul.f32 0.5, %v2991_v63 }
 0x2a8   : > { %5852 = verf.f32 %v3253_v58  ;;  %v3254_v23 = vmul.f32 0.70710677, %v2994_v49  ;;  %v3524_v59 = vpack.c.bf16 %v3468_v9, %v3467_v27  ;;  %v3184_v45 = vmul.f32 0.5, %v3002_v47 }
 0x2a9   : > { %5854 = verf.f32 %v3256_v43  ;;  %v3523_v10 = vpack.c.bf16 %v3466_v61, %v3465_v56  ;;  %v3182_v48 = vmul.f32 0.5, %v2994_v49 }
 0x2aa   : > { %5856 = verf.f32 %v3254_v23 }
 0x2ab   : > { %5476 = vmatprep.mubr.bf16.mxu0 %v3523_v10 }
 0x2ac   : > { %5477 = vmatmul.mubr.bf16.gmra.mrb[120].mxu0 %v3524_v59 }
 0x2b1   : > { %v5851_v44 = vpop.eup %5850 }
 0x2b2   : > { %v5853_v5 = vpop.eup %5852  ;;  %v5398_v11 = vpop.f32.mrb[56].mxu0  ;;  %v3399_v32 = vadd.f32 1.0, %v5851_v44 }
 0x2b3   : > { %v3015_v0 = vadd.f32 %v5398_v11, %v6913_v22  ;;  %v3006_v2 = vpop.f32.mrb[57].mxu0  ;;  %v5855_v17 = vpop.eup %5854  ;;  %v3397_v7 = vadd.f32 1.0, %v5853_v5 }
 0x2b4   : > { %v3007_v55 = vadd.f32 %v6913_v22, %v3006_v2  ;;  %v5399_v60 = vpop.f32.mrb[58].mxu0  ;;  %v5857_v36 = vpop.eup %5856  ;;  %v3400_v19 = vadd.f32 1.0, %v5855_v17  ;;  %v3471_v13 = vmul.f32 %v3399_v32, %v3183_v6 }
 0x2b5   : > { %v3259_v12 = vmul.f32 0.70710677, %v3015_v0  ;;  %v3009_v42 = vpop.f32.mrb[59].mxu0  ;;  %v3398_v21 = vadd.f32 1.0, %v5857_v36  ;;  %v3018_v52 = vadd.f32 %v5399_v60, %v6913_v22  ;;  %v3469_v20 = vmul.f32 %v3397_v7, %v3181_v24 }
 0x2b6   : > { %v3257_v28 = vmul.f32 0.70710677, %v3007_v55  ;;  %v3472_v18 = vmul.f32 %v3400_v19, %v3184_v45  ;;  %v3010_v25 = vadd.f32 %v6913_v22, %v3009_v42  ;;  %v3187_v50 = vmul.f32 0.5, %v3015_v0 }
 0x2b7   : > { %5858 = verf.f32 %v3259_v12  ;;  %v3470_v33 = vmul.f32 %v3398_v21, %v3182_v48  ;;  %v3260_v15 = vmul.f32 0.70710677, %v3018_v52  ;;  %v3185_v30 = vmul.f32 0.5, %v3007_v55 }
 0x2b8   : > { %5860 = verf.f32 %v3257_v28  ;;  %v3258_v38 = vmul.f32 0.70710677, %v3010_v25  ;;  %v3526_v29 = vpack.c.bf16 %v3472_v18, %v3471_v13  ;;  %v3188_v39 = vmul.f32 0.5, %v3018_v52 }
 0x2b9   : > { %5862 = verf.f32 %v3260_v15  ;;  %v3525_v51 = vpack.c.bf16 %v3470_v33, %v3469_v20  ;;  %v3186_v57 = vmul.f32 0.5, %v3010_v25 }
 0x2ba   : > { %5864 = verf.f32 %v3258_v38 }
 0x2bb   : > { %5480 = vmatprep.mubr.bf16.mxu0 %v3525_v51 }
 0x2bc   : > { %5481 = vmatmul.mubr.bf16.gmra.mrb[124].mxu0 %v3526_v29 }
 0x2c1   : > { %v5859_v35 = vpop.eup %5858 }
 0x2c2   : > { %v5861_v8 = vpop.eup %5860  ;;  %v5402_v34 = vpop.f32.mrb[60].mxu0  ;;  %v3403_v53 = vadd.f32 1.0, %v5859_v35 }
 0x2c3   : > { %v3031_v14 = vadd.f32 %v5402_v34, %v6913_v22  ;;  %v3022_v3 = vpop.f32.mrb[61].mxu0  ;;  %v5863_v26 = vpop.eup %5862  ;;  %v3401_v40 = vadd.f32 1.0, %v5861_v8 }
 0x2c4   : > { %v3023_v31 = vadd.f32 %v7127_v37, %v3022_v3  ;;  %v5403_v46 = vpop.f32.mrb[62].mxu0  ;;  %v5865_v63 = vpop.eup %5864  ;;  %v3404_v62 = vadd.f32 1.0, %v5863_v26  ;;  %v3475_v54 = vmul.f32 %v3403_v53, %v3187_v50 }
 0x2c5   : > { %v3263_v16 = vmul.f32 0.70710677, %v3031_v14  ;;  %v3025_v41 = vpop.f32.mrb[63].mxu0  ;;  %v3402_v22 = vadd.f32 1.0, %v5865_v63  ;;  %v3034_v1 = vadd.f32 %v7127_v37, %v5403_v46  ;;  %v3473_v27 = vmul.f32 %v3401_v40, %v3185_v30 }
 0x2c6   : > { %v3261_v4 = vmul.f32 0.70710677, %v3023_v31  ;;  %v3476_v58 = vmul.f32 %v3404_v62, %v3188_v39  ;;  %v3026_v47 = vadd.f32 %v7127_v37, %v3025_v41  ;;  %v3191_v0 = vmul.f32 0.5, %v3031_v14 }
 0x2c7   : > { %5866 = verf.f32 %v3263_v16  ;;  %v3474_v9 = vmul.f32 %v3402_v22, %v3186_v57  ;;  %v3264_v49 = vmul.f32 0.70710677, %v3034_v1  ;;  %v3189_v55 = vmul.f32 0.5, %v3023_v31 }
 0x2c8   : > { %5868 = verf.f32 %v3261_v4  ;;  %v3262_v56 = vmul.f32 0.70710677, %v3026_v47  ;;  %v3528_v61 = vpack.c.bf16 %v3476_v58, %v3475_v54  ;;  %v3192_v60 = vmul.f32 0.5, %v3034_v1 }
 0x2c9   : > { %5870 = verf.f32 %v3264_v49  ;;  %v3527_v43 = vpack.c.bf16 %v3474_v9, %v3473_v27  ;;  %v3190_v19 = vmul.f32 0.5, %v3026_v47 }
 0x2ca   : > { %5872 = verf.f32 %v3262_v56 }
 0x2cb   : > { %5484 = vmatprep.mubr.bf16.mxu0 %v3527_v43 }
 0x2cc   : > { %5485 = vmatmul.mubr.bf16.gmra.mrb[128].mxu0 %v3528_v61 }
 0x2d1   : > { %v5867_v23 = vpop.eup %5866 }
 0x2d2   : > { %v5869_v59 = vpop.eup %5868  ;;  %v5406_v10 = vpop.f32.mrb[64].mxu0  ;;  %v3407_v44 = vadd.f32 1.0, %v5867_v23 }
 0x2d3   : > { %v3047_v5 = vadd.f32 %v7127_v37, %v5406_v10  ;;  %v3038_v11 = vpop.f32.mrb[65].mxu0  ;;  %v5871_v32 = vpop.eup %5870  ;;  %v3405_v2 = vadd.f32 1.0, %v5869_v59 }
 0x2d4   : > { %v3039_v17 = vadd.f32 %v7127_v37, %v3038_v11  ;;  %v5407_v6 = vpop.f32.mrb[66].mxu0  ;;  %v5873_v7 = vpop.eup %5872  ;;  %v3408_v36 = vadd.f32 1.0, %v5871_v32  ;;  %v3479_v21 = vmul.f32 %v3407_v44, %v3191_v0 }
 0x2d5   : > { %v3267_v24 = vmul.f32 0.70710677, %v3047_v5  ;;  %v3041_v45 = vpop.f32.mrb[67].mxu0  ;;  %v3406_v12 = vadd.f32 1.0, %v5873_v7  ;;  %v3050_v48 = vadd.f32 %v7127_v37, %v5407_v6  ;;  %v3477_v13 = vmul.f32 %v3405_v2, %v3189_v55 }
 0x2d6   : > { %v3265_v42 = vmul.f32 0.70710677, %v3039_v17  ;;  %v3480_v28 = vmul.f32 %v3408_v36, %v3192_v60  ;;  %v3042_v52 = vadd.f32 %v7127_v37, %v3041_v45  ;;  %v3195_v14 = vmul.f32 0.5, %v3047_v5 }
 0x2d7   : > { %5874 = verf.f32 %v3267_v24  ;;  %v3478_v18 = vmul.f32 %v3406_v12, %v3190_v19  ;;  %v3268_v25 = vmul.f32 0.70710677, %v3050_v48  ;;  %v3193_v31 = vmul.f32 0.5, %v3039_v17 }
 0x2d8   : > { %5876 = verf.f32 %v3265_v42  ;;  %v3266_v20 = vmul.f32 0.70710677, %v3042_v52  ;;  %v3530_v33 = vpack.c.bf16 %v3480_v28, %v3479_v21  ;;  %v3196_v46 = vmul.f32 0.5, %v3050_v48 }
 0x2d9   : > { %5878 = verf.f32 %v3268_v25  ;;  %v3529_v15 = vpack.c.bf16 %v3478_v18, %v3477_v13  ;;  %v3194_v62 = vmul.f32 0.5, %v3042_v52 }
 0x2da   : > { %5880 = verf.f32 %v3266_v20 }
 0x2db   : > { %5488 = vmatprep.mubr.bf16.mxu0 %v3529_v15 }
 0x2dc   : > { %5489 = vmatmul.mubr.bf16.gmra.mrb[132].mxu0 %v3530_v33 }
 0x2e1   : > { %v5875_v38 = vpop.eup %5874 }
 0x2e2   : > { %v5877_v29 = vpop.eup %5876  ;;  %v5410_v51 = vpop.f32.mrb[68].mxu0  ;;  %v3411_v35 = vadd.f32 1.0, %v5875_v38 }
 0x2e3   : > { %v3063_v8 = vadd.f32 %v7127_v37, %v5410_v51  ;;  %v3054_v34 = vpop.f32.mrb[69].mxu0  ;;  %v5879_v53 = vpop.eup %5878  ;;  %v3409_v3 = vadd.f32 1.0, %v5877_v29 }
 0x2e4   : > { %v3055_v26 = vadd.f32 %v7127_v37, %v3054_v34  ;;  %v5411_v50 = vpop.f32.mrb[70].mxu0  ;;  %v5881_v40 = vpop.eup %5880  ;;  %v3412_v63 = vadd.f32 1.0, %v5879_v53  ;;  %v3483_v22 = vmul.f32 %v3411_v35, %v3195_v14 }
 0x2e5   : > { %v3271_v30 = vmul.f32 0.70710677, %v3063_v8  ;;  %v3057_v39 = vpop.f32.mrb[71].mxu0  ;;  %v3410_v16 = vadd.f32 1.0, %v5881_v40  ;;  %v3066_v57 = vadd.f32 %v7127_v37, %v5411_v50  ;;  %v3481_v54 = vmul.f32 %v3409_v3, %v3193_v31 }
 0x2e6   : > { %v3269_v41 = vmul.f32 0.70710677, %v3055_v26  ;;  %v3484_v4 = vmul.f32 %v3412_v63, %v3196_v46  ;;  %v3058_v1 = vadd.f32 %v7127_v37, %v3057_v39  ;;  %v3199_v5 = vmul.f32 0.5, %v3063_v8 }
 0x2e7   : > { %5882 = verf.f32 %v3271_v30  ;;  %v3482_v58 = vmul.f32 %v3410_v16, %v3194_v62  ;;  %v3272_v47 = vmul.f32 0.70710677, %v3066_v57  ;;  %v3197_v17 = vmul.f32 0.5, %v3055_v26 }
 0x2e8   : > { %5884 = verf.f32 %v3269_v41  ;;  %v3270_v27 = vmul.f32 0.70710677, %v3058_v1  ;;  %v3532_v9 = vpack.c.bf16 %v3484_v4, %v3483_v22  ;;  %v3200_v6 = vmul.f32 0.5, %v3066_v57 }
 0x2e9   : > { %5886 = verf.f32 %v3272_v47  ;;  %v3531_v49 = vpack.c.bf16 %v3482_v58, %v3481_v54  ;;  %v3198_v36 = vmul.f32 0.5, %v3058_v1 }
 0x2ea   : > { %5888 = verf.f32 %v3270_v27 }
 0x2eb   : > { %5492 = vmatprep.mubr.bf16.mxu0 %v3531_v49 }
 0x2ec   : > { %5493 = vmatmul.mubr.bf16.gmra.mrb[136].mxu0 %v3532_v9 }
 0x2f1   : > { %v5883_v56 = vpop.eup %5882 }
 0x2f2   : > { %v5885_v61 = vpop.eup %5884  ;;  %v5414_v43 = vpop.f32.mrb[72].mxu0  ;;  %v3415_v23 = vadd.f32 1.0, %v5883_v56 }
 0x2f3   : > { %v3079_v59 = vadd.f32 %v7127_v37, %v5414_v43  ;;  %v3070_v10 = vpop.f32.mrb[73].mxu0  ;;  %v5887_v44 = vpop.eup %5886  ;;  %v3413_v11 = vadd.f32 1.0, %v5885_v61 }
 0x2f4   : > { %v3071_v32 = vadd.f32 %v7127_v37, %v3070_v10  ;;  %v5415_v0 = vpop.f32.mrb[74].mxu0  ;;  %v5889_v2 = vpop.eup %5888  ;;  %v3416_v7 = vadd.f32 1.0, %v5887_v44  ;;  %v3487_v12 = vmul.f32 %v3415_v23, %v3199_v5 }
 0x2f5   : > { %v3275_v55 = vmul.f32 0.70710677, %v3079_v59  ;;  %v3073_v60 = vpop.f32.mrb[75].mxu0  ;;  %v3414_v24 = vadd.f32 1.0, %v5889_v2  ;;  %v3082_v19 = vadd.f32 %v7127_v37, %v5415_v0  ;;  %v3485_v21 = vmul.f32 %v3413_v11, %v3197_v17 }
 0x2f6   : > { %v3273_v45 = vmul.f32 0.70710677, %v3071_v32  ;;  %v3488_v42 = vmul.f32 %v3416_v7, %v3200_v6  ;;  %v3074_v48 = vadd.f32 %v7127_v37, %v3073_v60  ;;  %v3203_v8 = vmul.f32 0.5, %v3079_v59 }
 0x2f7   : > { %5890 = verf.f32 %v3275_v55  ;;  %v3486_v28 = vmul.f32 %v3414_v24, %v3198_v36  ;;  %v3276_v52 = vmul.f32 0.70710677, %v3082_v19  ;;  %v3201_v26 = vmul.f32 0.5, %v3071_v32 }
 0x2f8   : > { %5892 = verf.f32 %v3273_v45  ;;  %v3274_v13 = vmul.f32 0.70710677, %v3074_v48  ;;  %v3534_v18 = vpack.c.bf16 %v3488_v42, %v3487_v12  ;;  %v3204_v50 = vmul.f32 0.5, %v3082_v19 }
 0x2f9   : > { %5894 = verf.f32 %v3276_v52  ;;  %v3533_v25 = vpack.c.bf16 %v3486_v28, %v3485_v21  ;;  %v3202_v63 = vmul.f32 0.5, %v3074_v48 }
 0x2fa   : > { %5896 = verf.f32 %v3274_v13 }
 0x2fb   : > { %5496 = vmatprep.mubr.bf16.mxu0 %v3533_v25 }
 0x2fc   : > { %5497 = vmatmul.mubr.bf16.gmra.mrb[140].mxu0 %v3534_v18 }
 0x301   : > { %v5891_v20 = vpop.eup %5890 }
 0x302   : > { %v5893_v33 = vpop.eup %5892  ;;  %v5418_v15 = vpop.f32.mrb[76].mxu0  ;;  %v3419_v38 = vadd.f32 1.0, %v5891_v20 }
 0x303   : > { %v3095_v29 = vadd.f32 %v7127_v37, %v5418_v15  ;;  %v3086_v51 = vpop.f32.mrb[77].mxu0  ;;  %v5895_v35 = vpop.eup %5894  ;;  %v3417_v34 = vadd.f32 1.0, %v5893_v33 }
 0x304   : > { %v3087_v53 = vadd.f32 %v7127_v37, %v3086_v51  ;;  %v5419_v14 = vpop.f32.mrb[78].mxu0  ;;  %v5897_v3 = vpop.eup %5896  ;;  %v3420_v40 = vadd.f32 1.0, %v5895_v35  ;;  %v3491_v16 = vmul.f32 %v3419_v38, %v3203_v8 }
 0x305   : > { %v3279_v31 = vmul.f32 0.70710677, %v3095_v29  ;;  %v3089_v46 = vpop.f32.mrb[79].mxu0  ;;  %v3418_v30 = vadd.f32 1.0, %v5897_v3  ;;  %v3098_v62 = vadd.f32 %v7127_v37, %v5419_v14  ;;  %v3489_v22 = vmul.f32 %v3417_v34, %v3201_v26 }
 0x306   : > { %v3277_v39 = vmul.f32 0.70710677, %v3087_v53  ;;  %v3492_v41 = vmul.f32 %v3420_v40, %v3204_v50  ;;  %v3090_v57 = vadd.f32 %v7127_v37, %v3089_v46  ;;  %v3207_v43 = vmul.f32 0.5, %v3095_v29 }
 0x307   : > { %5898 = verf.f32 %v3279_v31  ;;  %v3490_v4 = vmul.f32 %v3418_v30, %v3202_v63  ;;  %v3280_v1 = vmul.f32 0.70710677, %v3098_v62  ;;  %v3205_v5 = vmul.f32 0.5, %v3087_v53 }
 0x308   : > { %5900 = verf.f32 %v3277_v39  ;;  %v3278_v54 = vmul.f32 0.70710677, %v3090_v57  ;;  %v3536_v58 = vpack.c.bf16 %v3492_v41, %v3491_v16  ;;  %v3208_v11 = vmul.f32 0.5, %v3098_v62 }
 0x309   : > { %5902 = verf.f32 %v3280_v1  ;;  %v3535_v47 = vpack.c.bf16 %v3490_v4, %v3489_v22  ;;  %v3206_v17 = vmul.f32 0.5, %v3090_v57 }
 0x30a   : > { %5904 = verf.f32 %v3278_v54 }
 0x30b   : > { %5500 = vmatprep.mubr.bf16.mxu0 %v3535_v47 }
 0x30c   : > { %5501 = vmatmul.mubr.bf16.gmra.mrb[144].mxu0 %v3536_v58 }
 0x311   : > { %v5899_v27 = vpop.eup %5898 }
 0x312   : > { %v5901_v9 = vpop.eup %5900  ;;  %v3423_v49 = vadd.f32 1.0, %v5899_v27  ;;  %v5422_v56 = vpop.f32.mrb[80].mxu0 }
 0x313   : > { %v5903_v61 = vpop.eup %5902  ;;  %v3421_v23 = vadd.f32 1.0, %v5901_v9  ;;  %v3111_v59 = vadd.f32 %v7127_v37, %v5422_v56  ;;  %v3102_v10 = vpop.f32.mrb[81].mxu0 }
 0x314   : > { %v5905_v44 = vpop.eup %5904  ;;  %v3424_v32 = vadd.f32 1.0, %v5903_v61  ;;  %v3103_v0 = vadd.f32 %v7127_v37, %v3102_v10  ;;  %v5423_v2 = vpop.f32.mrb[82].mxu0  ;;  %v3495_v36 = vmul.f32 %v3423_v49, %v3207_v43 }
 0x315   : > { %v3422_v6 = vadd.f32 1.0, %v5905_v44  ;;  %v3283_v7 = vmul.f32 0.70710677, %v3111_v59  ;;  %v3114_v55 = vadd.f32 %v7127_v37, %v5423_v2  ;;  %v3105_v60 = vpop.f32.mrb[83].mxu0  ;;  %v3493_v12 = vmul.f32 %v3421_v23, %v3205_v5 }
 0x316   : > { %v3496_v24 = vmul.f32 %v3424_v32, %v3208_v11  ;;  %v3281_v45 = vmul.f32 0.70710677, %v3103_v0  ;;  %v3106_v19 = vadd.f32 %v7127_v37, %v3105_v60  ;;  %v3211_v38 = vmul.f32 0.5, %v3111_v59 }
 0x317   : > { %v3494_v42 = vmul.f32 %v3422_v6, %v3206_v17  ;;  %5906 = verf.f32 %v3283_v7  ;;  %v3284_v48 = vmul.f32 0.70710677, %v3114_v55  ;;  %v3212_v29 = vmul.f32 0.5, %v3114_v55 }
 0x318   : > { %5908 = verf.f32 %v3281_v45  ;;  %v3282_v21 = vmul.f32 0.70710677, %v3106_v19  ;;  %v3538_v28 = vpack.c.bf16 %v3496_v24, %v3495_v36  ;;  %v3209_v8 = vmul.f32 0.5, %v3103_v0 }
 0x319   : > { %5910 = verf.f32 %v3284_v48  ;;  %v3537_v52 = vpack.c.bf16 %v3494_v42, %v3493_v12  ;;  %v3210_v34 = vmul.f32 0.5, %v3106_v19  ;;  %v7166_v19 = vld [vmem:[%s8269_s9] ss:$0 sm:$0xff] }
 0x31a   : > { %5912 = verf.f32 %v3282_v21 }
 0x31b   : > { %5504 = vmatprep.mubr.bf16.mxu0 %v3537_v52 }
 0x31c   : > { %5505 = vmatmul.mubr.bf16.gmra.mrb[148].mxu0 %v3538_v28 }
 0x321   : > { %v5907_v13 = vpop.eup %5906 }
 0x322   : > { %v5909_v18 = vpop.eup %5908  ;;  %v3427_v25 = vadd.f32 1.0, %v5907_v13 }
 0x323   : > { %v5911_v20 = vpop.eup %5910  ;;  %v3425_v33 = vadd.f32 1.0, %v5909_v18  ;;  %v5426_v35 = vpop.f32.mrb[84].mxu0 }
 0x324   : > { %v5913_v15 = vpop.eup %5912  ;;  %v3428_v51 = vadd.f32 1.0, %v5911_v20  ;;  %v3127_v14 = vadd.f32 %v7127_v37, %v5426_v35  ;;  %v3118_v3 = vpop.f32.mrb[85].mxu0  ;;  %v3499_v26 = vmul.f32 %v3427_v25, %v3211_v38 }
 0x325   : > { %v3426_v53 = vadd.f32 1.0, %v5913_v15  ;;  %v3119_v40 = vadd.f32 %v7127_v37, %v3118_v3  ;;  %v5427_v31 = vpop.f32.mrb[86].mxu0  ;;  %v3497_v46 = vmul.f32 %v3425_v33, %v3209_v8  ;;  %v6077_v33 = vld [vmem:[%s6457_s15 + $0x10] sm:$0xff]  ;;  %v6079_v8 = vld [vmem:[%s6457_s15 + $0x18] sm:$0xff]  ;;  %v6080_v3 = vld [vmem:[%s6457_s15 + $0x8] sm:$0xff] }
 0x326   : > { %v3500_v50 = vmul.f32 %v3428_v51, %v3212_v29  ;;  %v3287_v30 = vmul.f32 0.70710677, %v3127_v14  ;;  %v3130_v39 = vadd.f32 %v7127_v37, %v5427_v31  ;;  %v3121_v62 = vpop.f32.mrb[87].mxu0  ;;  %v3215_v10 = vmul.f32 0.5, %v3127_v14  ;;  %v6078_v29 = vld [vmem:[%s6457_s15] sm:$0xff] }
 0x327   : > { %v3498_v63 = vmul.f32 %v3426_v53, %v3210_v34  ;;  %v3285_v16 = vmul.f32 0.70710677, %v3119_v40  ;;  %v3122_v41 = vadd.f32 %v7127_v37, %v3121_v62  ;;  %v3213_v0 = vmul.f32 0.5, %v3119_v40 }
 0x328   : > { %v3540_v57 = vpack.c.bf16 %v3500_v50, %v3499_v26  ;;  %5914 = verf.f32 %v3287_v30  ;;  %v3288_v22 = vmul.f32 0.70710677, %v3130_v39  ;;  %v3216_v44 = vmul.f32 0.5, %v3130_v39 }
 0x329   : > { %v3539_v4 = vpack.c.bf16 %v3498_v63, %v3497_v46  ;;  %5916 = verf.f32 %v3285_v16  ;;  %v3286_v1 = vmul.f32 0.70710677, %v3122_v41  ;;  %v3214_v2 = vmul.f32 0.5, %v3122_v41  ;;  %v6081_v41 = vld [vmem:[%s6457_s15 + $0x30] sm:$0xff] }
 0x32a   : > { %5918 = verf.f32 %v3288_v22 }
 0x32b   : > { %5508 = vmatprep.mubr.bf16.mxu0 %v3539_v4  ;;  %5920 = verf.f32 %v3286_v1 }
 0x32c   : > { %5509 = vmatmul.mubr.bf16.gmra.mrb[152].mxu0 %v3540_v57 }
 0x332   : > { %v5915_v54 = vpop.eup %5914 }
 0x333   : > { %v5430_v58 = vpop.f32.mrb[88].mxu0  ;;  %v5917_v47 = vpop.eup %5916  ;;  %v3431_v56 = vadd.f32 1.0, %v5915_v54 }
 0x334   : > { %v3143_v27 = vadd.f32 %v7127_v37, %v5430_v58  ;;  %v3134_v9 = vpop.f32.mrb[89].mxu0  ;;  %v5919_v49 = vpop.eup %5918  ;;  %v3429_v61 = vadd.f32 1.0, %v5917_v47 }
 0x335   : > { %v7158_v43 = vadd.f32 %v7127_v37, %v3134_v9  ;;  %v5431_v23 = vpop.f32.mrb[90].mxu0  ;;  %v5921_v59 = vpop.eup %5920  ;;  %v3432_v5 = vadd.f32 1.0, %v5919_v49  ;;  %v3503_v36 = vmul.f32 %v3431_v56, %v3215_v10 }
 0x336   : > { %v3291_v11 = vmul.f32 0.70710677, %v3143_v27  ;;  %v3137_v32 = vpop.f32.mrb[91].mxu0  ;;  %v3430_v17 = vadd.f32 1.0, %v5921_v59  ;;  %v3146_v55 = vadd.f32 %v7127_v37, %v5431_v23  ;;  %v3501_v24 = vmul.f32 %v3429_v61, %v3213_v0 }
 0x337   : > { %v3289_v6 = vmul.f32 0.70710677, %v7158_v43  ;;  %v3504_v7 = vmul.f32 %v3432_v5, %v3216_v44  ;;  %v3138_v60 = vadd.f32 %v7127_v37, %v3137_v32  ;;  %v3219_v30 = vmul.f32 0.5, %v3143_v27  ;;  %v6082_v27 = vld [vmem:[%s6457_s15 + $0x38] sm:$0xff]  ;;  %v6083_v5 = vld [vmem:[%s6457_s15 + $0x20] sm:$0xff] }
 0x338   : > { %5922 = verf.f32 %v3291_v11  ;;  %v3502_v45 = vmul.f32 %v3430_v17, %v3214_v2  ;;  %v3292_v12 = vmul.f32 0.70710677, %v3146_v55  ;;  %v3217_v4 = vmul.f32 0.5, %v7158_v43  ;;  %v6084_v17 = vld [vmem:[%s6457_s15 + $0x28] sm:$0xff] }
 0x339   : > { %5924 = verf.f32 %v3289_v6  ;;  %v3290_v42 = vmul.f32 0.70710677, %v3138_v60  ;;  %v3542_v28 = vpack.c.bf16 %v3504_v7, %v3503_v36  ;;  %v3220_v1 = vmul.f32 0.5, %v3146_v55  ;;  %v6085_v36 = vld [vmem:[%s6457_s15 + $0x50] sm:$0xff] }
 0x33a   : > { %v3541_v21 = vpack.c.bf16 %v3502_v45, %v3501_v24  ;;  %5926 = verf.f32 %v3292_v12  ;;  %v3218_v47 = vmul.f32 0.5, %v3138_v60 }
 0x33b   : > { %v5450_v48 = vpop.f32.mrb[92].mxu0  ;;  %5928 = verf.f32 %v3290_v42  ;;  %v6086_v42 = vld [vmem:[%s6457_s15 + $0x58] sm:$0xff] }
 0x33c   : > { %v3642_v52 = vadd.f32 %v5450_v48, %v7166_v19  ;;  %v3633_v37 = vpop.f32.mrb[93].mxu0  ;;  %5512 = vmatprep.mubr.bf16.mxu0 %v3541_v21 }
 0x33d   : > { %v3634_v13 = vadd.f32 %v7166_v19, %v3633_v37  ;;  %v5451_v18 = vpop.f32.mrb[94].mxu0  ;;  %5513 = vmatmul.mubr.bf16.gmra.mrb[156].mxu0 %v3542_v28  ;;  %v6087_v28 = vld [vmem:[%s6457_s15 + $0x40] sm:$0xff] }
 0x33e   : > { %v3645_v25 = vadd.f32 %v5451_v18, %v7166_v19  ;;  %v3636_v20 = vpop.f32.mrb[95].mxu0  ;;  %v7172_v15 = vadd.f32 %v6077_v33, %v3642_v52  ;;  %v6088_v18 = vld [vmem:[%s6457_s15 + $0x48] sm:$0xff] }
 0x33f   : > { %v3637_v38 = vadd.f32 %v7166_v19, %v3636_v20  ;;  %v7176_v51 = vadd.f32 %v6078_v29, %v3634_v13  ;;  %v6089_v29 = vld [vmem:[%s6457_s15 + $0x70] sm:$0xff] }
 0x340   : > { %3998 = vadd.xlane.f32.xlu1 %v7172_v15  ;;  %v7181_v34 = vadd.f32 %v6079_v8, %v3645_v25 }
 0x341   : > { %3994 = vadd.xlane.f32.xlu0 %v7176_v51  ;;  %v7184_v26 = vadd.f32 %v6080_v3, %v3637_v38 }
 0x342   : > { %v5923_v35 = vpop.eup %5922 }
 0x343   : > { %v5925_v53 = vpop.eup %5924  ;;  %v5454_v14 = vpop.f32.mrb[96].mxu0  ;;  %v3435_v31 = vadd.f32 1.0, %v5923_v35 }
 0x344   : > { %v3658_v50 = vadd.f32 %v5454_v14, %v7166_v19  ;;  %4000 = vadd.xlane.f32.xlu1 %v7181_v34  ;;  %v3649_v40 = vpop.f32.mrb[97].mxu0  ;;  %v5927_v63 = vpop.eup %5926  ;;  %v3433_v39 = vadd.f32 1.0, %v5925_v53  ;;  %v6090_v14 = vld [vmem:[%s6457_s15 + $0x78] sm:$0xff] }
 0x345   : > { %v5455_v46 = vpop.f32.mrb[98].mxu0  ;;  %3996 = vadd.xlane.f32.xlu0 %v7184_v26  ;;  %v5929_v22 = vpop.eup %5928  ;;  %v3436_v54 = vadd.f32 1.0, %v5927_v63  ;;  %v3650_v58 = vadd.f32 %v7166_v19, %v3649_v40  ;;  %v3507_v61 = vmul.f32 %v3435_v31, %v3219_v30  ;;  %v6091_v40 = vld [vmem:[%s6457_s15 + $0x60] sm:$0xff]  ;;  %v6092_v30 = vld [vmem:[%s6457_s15 + $0x68] sm:$0xff] }
 0x346   : > { %v3661_v62 = vadd.f32 %v5455_v46, %v7166_v19  ;;  %v3652_v16 = vpop.f32.mrb[99].mxu0  ;;  %v7191_v57 = vadd.f32 %v6081_v41, %v3658_v50  ;;  %v3434_v9 = vadd.f32 1.0, %v5929_v22  ;;  %v3505_v59 = vmul.f32 %v3433_v39, %v3217_v4  ;;  %v6093_v22 = vld [vmem:[%s6457_s15 + $0x90] sm:$0xff] }
 0x347   : > { %v3653_v49 = vadd.f32 %v7166_v19, %v3652_v16  ;;  %v3508_v23 = vmul.f32 %v3436_v54, %v3220_v1  ;;  %v7202_v11 = vadd.f32 %v6083_v5, %v3650_v58  ;;  %v6094_v58 = vld [vmem:[%s6457_s15 + $0x98] sm:$0xff] }
 0x348   : > { %v7197_v56 = vadd.f32 %v6082_v27, %v3661_v62  ;;  %v3506_v10 = vmul.f32 %v3434_v9, %v3218_v47 }
 0x349   : > { %4006 = vadd.xlane.f32.xlu0 %v7191_v57  ;;  %v3544_v44 = vpack.c.bf16 %v3508_v23, %v3507_v61  ;;  %v7206_v6 = vadd.f32 %v6084_v17, %v3653_v49  ;;  %v6095_v49 = vld [vmem:[%s6457_s15 + $0x80] sm:$0xff] }
 0x34a   : > { %4008 = vadd.xlane.f32.xlu1 %v7197_v56  ;;  %v3543_v2 = vpack.c.bf16 %v3506_v10, %v3505_v59  ;;  %v6096_v59 = vld [vmem:[%s6457_s15 + $0x88] sm:$0xff] }
 0x34b   : > { %v5458_v43 = vpop.f32.mrb[100].mxu0 }
 0x34c   : > { %v3674_v32 = vadd.f32 %v5458_v43, %v7166_v19  ;;  %v3665_v0 = vpop.f32.mrb[101].mxu0  ;;  %5516 = vmatprep.mubr.bf16.mxu0 %v3543_v2 }
 0x34d   : > { %v5459_v7 = vpop.f32.mrb[102].mxu0  ;;  %4002 = vadd.xlane.f32.xlu0 %v7202_v11  ;;  %v3666_v45 = vadd.f32 %v7166_v19, %v3665_v0  ;;  %5517 = vmatmul.mubr.bf16.gmra.mrb[160].mxu0 %v3544_v44 }
 0x34e   : > { %v3677_v55 = vadd.f32 %v5459_v7, %v7166_v19  ;;  %v3668_v60 = vpop.f32.mrb[103].mxu0  ;;  %4004 = vadd.xlane.f32.xlu1 %v7206_v6  ;;  %v7212_v24 = vadd.f32 %v6085_v36, %v3674_v32  ;;  %v6097_v32 = vld [vmem:[%s6457_s15 + $0xb0] sm:$0xff]  ;;  %v6098_v7 = vld [vmem:[%s6457_s15 + $0xb8] sm:$0xff] }
 0x34f   : > { %v3669_v12 = vadd.f32 %v7166_v19, %v3668_v60  ;;  %v7222_v52 = vadd.f32 %v6087_v28, %v3666_v45  ;;  %v6099_v60 = vld [vmem:[%s6457_s15 + $0xa0] sm:$0xff]  ;;  %v6100_v45 = vld [vmem:[%s6457_s15 + $0xa8] sm:$0xff] }
 0x350   : > { %v7217_v48 = vadd.f32 %v6086_v42, %v3677_v55 }
 0x351   : > { %4014 = vadd.xlane.f32.xlu0 %v7212_v24  ;;  %v7226_v25 = vadd.f32 %v6088_v18, %v3669_v12 }
 0x352   : > { %4016 = vadd.xlane.f32.xlu1 %v7217_v48 }
 0x353   : > { %v5462_v21 = vpop.f32.mrb[104].mxu0 }
 0x354   : > { %v3690_v37 = vadd.f32 %v5462_v21, %v7166_v19  ;;  %v3681_v13 = vpop.f32.mrb[105].mxu0 }
 0x355   : > { %v5463_v20 = vpop.f32.mrb[106].mxu0  ;;  %4010 = vadd.xlane.f32.xlu0 %v7222_v52  ;;  %v3682_v8 = vadd.f32 %v7166_v19, %v3681_v13 }
 0x356   : > { %v3693_v33 = vadd.f32 %v5463_v20, %v7166_v19  ;;  %v3684_v38 = vpop.f32.mrb[107].mxu0  ;;  %4012 = vadd.xlane.f32.xlu1 %v7226_v25  ;;  %v7232_v35 = vadd.f32 %v6089_v29, %v3690_v37 }
 0x357   : > { %v3685_v53 = vadd.f32 %v7166_v19, %v3684_v38  ;;  %v7242_v31 = vadd.f32 %v6091_v40, %v3682_v8  ;;  %v6102_v8 = vld [vmem:[%s6457_s15 + $0xd8] sm:$0xff]  ;;  %v6104_v40 = vld [vmem:[%s6457_s15 + $0xc8] sm:$0xff] }
 0x358   : > { %v7237_v3 = vadd.f32 %v6090_v14, %v3693_v33  ;;  %v6101_v33 = vld [vmem:[%s6457_s15 + $0xd0] sm:$0xff]  ;;  %v6103_v14 = vld [vmem:[%s6457_s15 + $0xc0] sm:$0xff] }
 0x359   : > { %4022 = vadd.xlane.f32.xlu0 %v7232_v35  ;;  %v7246_v39 = vadd.f32 %v6092_v30, %v3685_v53 }
 0x35a   : > { %4024 = vadd.xlane.f32.xlu1 %v7237_v3 }
 0x35b   : > { %v5466_v50 = vpop.f32.mrb[108].mxu0 }
 0x35c   : > { %v3706_v46 = vadd.f32 %v5466_v50, %v7166_v19  ;;  %v3697_v63 = vpop.f32.mrb[109].mxu0 }
 0x35d   : > { %v5467_v62 = vpop.f32.mrb[110].mxu0  ;;  %4018 = vadd.xlane.f32.xlu0 %v7242_v31  ;;  %v3698_v1 = vadd.f32 %v7166_v19, %v3697_v63 }
 0x35e   : > { %v3709_v16 = vadd.f32 %v5467_v62, %v7166_v19  ;;  %v3700_v41 = vpop.f32.mrb[111].mxu0  ;;  %4020 = vadd.xlane.f32.xlu1 %v7246_v39  ;;  %v7252_v4 = vadd.f32 %v6093_v22, %v3706_v46 }
 0x35f   : > { %v3701_v54 = vadd.f32 %v7166_v19, %v3700_v41  ;;  %v7262_v27 = vadd.f32 %v6095_v49, %v3698_v1  ;;  %v6106_v49 = vld [vmem:[%s6457_s15 + $0xf8] sm:$0xff] }
 0x360   : > { %v7257_v47 = vadd.f32 %v6094_v58, %v3709_v16 }
 0x361   : > { %4030 = vadd.xlane.f32.xlu0 %v7252_v4  ;;  %v7266_v10 = vadd.f32 %v6096_v59, %v3701_v54  ;;  %v6105_v54 = vld [vmem:[%s6457_s15 + $0xf0] sm:$0xff] }
 0x362   : > { %4032 = vadd.xlane.f32.xlu1 %v7257_v47 }
 0x363   : > { %v5470_v9 = vpop.f32.mrb[112].mxu0 }
 0x364   : > { %v3722_v61 = vadd.f32 %v5470_v9, %v7166_v19  ;;  %v3713_v23 = vpop.f32.mrb[113].mxu0 }
 0x365   : > { %v5471_v43 = vpop.f32.mrb[114].mxu0  ;;  %4026 = vadd.xlane.f32.xlu0 %v7262_v27  ;;  %v3714_v2 = vadd.f32 %v7166_v19, %v3713_v23  ;;  %v6107_v23 = vld [vmem:[%s6457_s15 + $0xe0] sm:$0xff] }
 0x366   : > { %v3725_v44 = vadd.f32 %v5471_v43, %v7166_v19  ;;  %v3716_v5 = vpop.f32.mrb[115].mxu0  ;;  %4028 = vadd.xlane.f32.xlu1 %v7266_v10  ;;  %v7272_v0 = vadd.f32 %v6097_v32, %v3722_v61  ;;  %v6108_v43 = vld [vmem:[%s6457_s15 + $0xe8] sm:$0xff] }
 0x367   : > { %v3717_v17 = vadd.f32 %v7166_v19, %v3716_v5  ;;  %v7282_v36 = vadd.f32 %v6099_v60, %v3714_v2 }
 0x368   : > { %v7277_v55 = vadd.f32 %v6098_v7, %v3725_v44 }
 0x369   : > { %4038 = vadd.xlane.f32.xlu0 %v7272_v0  ;;  %v7285_v12 = vadd.f32 %v6100_v45, %v3717_v17 }
 0x36a   : > { %4040 = vadd.xlane.f32.xlu1 %v7277_v55 }
 0x36d   : > { %4034 = vadd.xlane.f32.xlu0 %v7282_v36 }
 0x36e   : > { %4036 = vadd.xlane.f32.xlu1 %v7285_v12 }
 0x36f   : > { %v5474_v42 = vpop.f32.mrb[116].mxu0 }
 0x370   : > { %v3738_v21 = vadd.f32 %v5474_v42, %v7166_v19  ;;  %v3729_v28 = vpop.f32.mrb[117].mxu0  ;;  %v6109_v42 = vld [vmem:[%s6457_s15 + $0x110] sm:$0xff] }
 0x371   : > { %v5475_v37 = vpop.f32.mrb[118].mxu0  ;;  %v3730_v13 = vadd.f32 %v7166_v19, %v3729_v28 }
 0x372   : > { %v3741_v18 = vadd.f32 %v5475_v37, %v7166_v19  ;;  %v3732_v20 = vpop.f32.mrb[119].mxu0  ;;  %v7293_v38 = vadd.f32 %v6101_v33, %v3738_v21  ;;  %v6110_v37 = vld [vmem:[%s6457_s15 + $0x118] sm:$0xff]  ;;  %v6112_v33 = vld [vmem:[%s6457_s15 + $0x108] sm:$0xff] }
 0x373   : > { %v3733_v29 = vadd.f32 %v7166_v19, %v3732_v20  ;;  %v7302_v50 = vadd.f32 %v6103_v14, %v3730_v13 }
 0x374   : > { %4046 = vadd.xlane.f32.xlu0 %v7293_v38  ;;  %v7298_v53 = vadd.f32 %v6102_v8, %v3741_v18  ;;  %v6111_v18 = vld [vmem:[%s6457_s15 + $0x100] sm:$0xff] }
 0x375   : > { %v7306_v46 = vadd.f32 %v6104_v40, %v3733_v29 }
 0x376   : > { %4048 = vadd.xlane.f32.xlu1 %v7298_v53 }
 0x378   : > { %4042 = vadd.xlane.f32.xlu0 %v7302_v50 }
 0x37a   : > { %4044 = vadd.xlane.f32.xlu1 %v7306_v46 }
 0x37f   : > { %v5478_v63 = vpop.f32.mrb[120].mxu0 }
 0x380   : > { %v3754_v30 = vadd.f32 %v5478_v63, %v7166_v19  ;;  %v3745_v62 = vpop.f32.mrb[121].mxu0 }
 0x381   : > { %v5479_v16 = vpop.f32.mrb[122].mxu0  ;;  %v3746_v41 = vadd.f32 %v7166_v19, %v3745_v62 }
 0x382   : > { %v3757_v22 = vadd.f32 %v5479_v16, %v7166_v19  ;;  %v3748_v1 = vpop.f32.mrb[123].mxu0  ;;  %v7313_v58 = vadd.f32 %v6105_v54, %v3754_v30  ;;  %v6114_v54 = vld [vmem:[%s6457_s15 + $0x138] sm:$0xff] }
 0x383   : > { %v3749_v9 = vadd.f32 %v7166_v19, %v3748_v1  ;;  %v7322_v59 = vadd.f32 %v6107_v23, %v3746_v41  ;;  %v6113_v41 = vld [vmem:[%s6457_s15 + $0x130] sm:$0xff] }
 0x384   : > { %4054 = vadd.xlane.f32.xlu0 %v7313_v58  ;;  %v7318_v61 = vadd.f32 %v6106_v49, %v3757_v22  ;;  %v6115_v49 = vld [vmem:[%s6457_s15 + $0x120] sm:$0xff] }
 0x385   : > { %v7326_v44 = vadd.f32 %v6108_v43, %v3749_v9  ;;  %v6116_v43 = vld [vmem:[%s6457_s15 + $0x128] sm:$0xff] }
 0x386   : > { %4056 = vadd.xlane.f32.xlu1 %v7318_v61 }
 0x388   : > { %4050 = vadd.xlane.f32.xlu0 %v7322_v59 }
 0x38a   : > { %4052 = vadd.xlane.f32.xlu1 %v7326_v44 }
 0x38f   : > { %v5482_v5 = vpop.f32.mrb[124].mxu0 }
 0x390   : > { %v3770_v32 = vadd.f32 %v5482_v5, %v7166_v19  ;;  %v3761_v2 = vpop.f32.mrb[125].mxu0 }
 0x391   : > { %v5483_v17 = vpop.f32.mrb[126].mxu0  ;;  %v3762_v7 = vadd.f32 %v7166_v19, %v3761_v2 }
 0x392   : > { %v3773_v60 = vadd.f32 %v5483_v17, %v7166_v19  ;;  %v3764_v45 = vpop.f32.mrb[127].mxu0  ;;  %v7333_v21 = vadd.f32 %v6109_v42, %v3770_v32 }
 0x393   : > { %v3765_v28 = vadd.f32 %v7166_v19, %v3764_v45  ;;  %v7342_v20 = vadd.f32 %v6111_v18, %v3762_v7 }
 0x394   : > { %4062 = vadd.xlane.f32.xlu0 %v7333_v21  ;;  %v7338_v13 = vadd.f32 %v6110_v37, %v3773_v60 }
 0x395   : > { %v7346_v29 = vadd.f32 %v6112_v33, %v3765_v28  ;;  %v6117_v28 = vld [vmem:[%s6457_s15 + $0x150] sm:$0xff]  ;;  %v6118_v33 = vld [vmem:[%s6457_s15 + $0x158] sm:$0xff] }
 0x396   : > { %4064 = vadd.xlane.f32.xlu1 %v7338_v13 }
 0x398   : > { %4058 = vadd.xlane.f32.xlu0 %v7342_v20 }
 0x39a   : > { %4060 = vadd.xlane.f32.xlu1 %v7346_v29 }
 0x39f   : > { %v5486_v8 = vpop.f32.mrb[128].mxu0 }
 0x3a0   : > { %v3786_v14 = vadd.f32 %v5486_v8, %v7166_v19  ;;  %v3777_v40 = vpop.f32.mrb[129].mxu0 }
 0x3a1   : > { %v5487_v63 = vpop.f32.mrb[130].mxu0  ;;  %v3778_v30 = vadd.f32 %v7166_v19, %v3777_v40 }
 0x3a2   : > { %v3789_v62 = vadd.f32 %v5487_v63, %v7166_v19  ;;  %v3780_v16 = vpop.f32.mrb[131].mxu0  ;;  %v7353_v22 = vadd.f32 %v6113_v41, %v3786_v14  ;;  %v6119_v14 = vld [vmem:[%s6457_s15 + $0x140] sm:$0xff]  ;;  %v6120_v63 = vld [vmem:[%s6457_s15 + $0x148] sm:$0xff] }
 0x3a3   : > { %v3781_v1 = vadd.f32 %v7166_v19, %v3780_v16  ;;  %v7362_v23 = vadd.f32 %v6115_v49, %v3778_v30 }
 0x3a4   : > { %4070 = vadd.xlane.f32.xlu0 %v7353_v22  ;;  %v7358_v9 = vadd.f32 %v6114_v54, %v3789_v62 }
 0x3a5   : > { %v7366_v5 = vadd.f32 %v6116_v43, %v3781_v1 }
 0x3a6   : > { %4072 = vadd.xlane.f32.xlu1 %v7358_v9 }
 0x3a8   : > { %4066 = vadd.xlane.f32.xlu0 %v7362_v23 }
 0x3aa   : > { %4068 = vadd.xlane.f32.xlu1 %v7366_v5 }
 0x3af   : > { %v5490_v32 = vpop.f32.mrb[132].mxu0 }
 0x3b0   : > { %v3802_v2 = vadd.f32 %v5490_v32, %v7166_v19  ;;  %v3793_v17 = vpop.f32.mrb[133].mxu0  ;;  %v6121_v32 = vld [vmem:[%s6457_s15 + $0x170] sm:$0xff] }
 0x3b1   : > { %v5491_v7 = vpop.f32.mrb[134].mxu0  ;;  %v3794_v60 = vadd.f32 %v7166_v19, %v3793_v17 }
 0x3b2   : > { %v3805_v45 = vadd.f32 %v5491_v7, %v7166_v19  ;;  %v3796_v42 = vpop.f32.mrb[135].mxu0  ;;  %v7373_v37 = vadd.f32 %v6117_v28, %v3802_v2  ;;  %v6122_v7 = vld [vmem:[%s6457_s15 + $0x178] sm:$0xff]  ;;  %v6124_v28 = vld [vmem:[%s6457_s15 + $0x168] sm:$0xff] }
 0x3b3   : > { %v3797_v18 = vadd.f32 %v7166_v19, %v3796_v42  ;;  %v7382_v40 = vadd.f32 %v6119_v14, %v3794_v60 }
 0x3b4   : > { %4078 = vadd.xlane.f32.xlu0 %v7373_v37  ;;  %v7378_v8 = vadd.f32 %v6118_v33, %v3805_v45  ;;  %v6123_v45 = vld [vmem:[%s6457_s15 + $0x160] sm:$0xff] }
 0x3b5   : > { %v7386_v30 = vadd.f32 %v6120_v63, %v3797_v18 }
 0x3b6   : > { %4080 = vadd.xlane.f32.xlu1 %v7378_v8 }
 0x3b8   : > { %4074 = vadd.xlane.f32.xlu0 %v7382_v40 }
 0x3ba   : > { %4076 = vadd.xlane.f32.xlu1 %v7386_v30 }
 0x3bf   : > { %v5494_v62 = vpop.f32.mrb[136].mxu0 }
 0x3c0   : > { %v3818_v16 = vadd.f32 %v5494_v62, %v7166_v19  ;;  %v3809_v41 = vpop.f32.mrb[137].mxu0 }
 0x3c1   : > { %v5495_v1 = vpop.f32.mrb[138].mxu0  ;;  %v3810_v54 = vadd.f32 %v7166_v19, %v3809_v41 }
 0x3c2   : > { %v3821_v49 = vadd.f32 %v5495_v1, %v7166_v19  ;;  %v3812_v43 = vpop.f32.mrb[139].mxu0  ;;  %v7393_v2 = vadd.f32 %v6121_v32, %v3818_v16 }
 0x3c3   : > { %v3813_v17 = vadd.f32 %v7166_v19, %v3812_v43  ;;  %v7402_v42 = vadd.f32 %v6123_v45, %v3810_v54 }
 0x3c4   : > { %4086 = vadd.xlane.f32.xlu0 %v7393_v2  ;;  %v7398_v60 = vadd.f32 %v6122_v7, %v3821_v49 }
 0x3c5   : > { %8313 = vst [vmem:[#allocation7_spill] sm:$0xff] %v7402_v42  ;;  %v7406_v18 = vadd.f32 %v6124_v28, %v3813_v17 }
 0x3c6   : > { %4088 = vadd.xlane.f32.xlu1 %v7398_v60 }
 0x3c7   : > { %8314 = vst [vmem:[#allocation8_spill] sm:$0xff] %v7406_v18 }
 0x3c8   : > { %4082 = vadd.xlane.f32.xlu0 %v7402_v42 }
 0x3ca   : > { %4084 = vadd.xlane.f32.xlu1 %v7406_v18 }
 0x3cd   : > { %v3999_v33 = vpop.xlane.xlu1 %3998 }
 0x3ce   : > { %v4141_v14 = vmul.f32 0.0078125, %v3999_v33  ;;  %v3995_v63 = vpop.xlane.xlu0 %3994 }
 0x3cf   : > { %v5498_v62 = vpop.f32.mrb[140].mxu0  ;;  %v4139_v1 = vmul.f32 0.0078125, %v3995_v63 }
 0x3d0   : > { %v3825_v16 = vpop.f32.mrb[141].mxu0  ;;  %v7410_v41 = vsub.f32 %v7172_v15, %v4141_v14  ;;  %v3834_v43 = vadd.f32 %v5498_v62, %v7166_v19 }
 0x3d1   : > { %v4001_v49 = vpop.xlane.xlu1 %4000  ;;  %v5499_v54 = vpop.f32.mrb[142].mxu0  ;;  %v7419_v15 = vsub.f32 %v7176_v51, %v4139_v1  ;;  %v6126_v1 = vld [vmem:[%s6457_s15 + $0x198] sm:$0xff] }
 0x3d2   : > { %8315 = vst [vmem:[#allocation9_spill] sm:$0xff] %v7410_v41  ;;  %v4142_v32 = vmul.f32 0.0078125, %v4001_v49  ;;  %v3997_v7 = vpop.xlane.xlu0 %3996  ;;  %v3828_v17 = vpop.f32.mrb[143].mxu0  ;;  %v4285_v45 = vmul.f32 %v7410_v41, %v7410_v41  ;;  %v3837_v33 = vadd.f32 %v5499_v54, %v7166_v19  ;;  %v6125_v49 = vld [vmem:[%s6457_s15 + $0x190] sm:$0xff] }
 0x3d3   : > { %8317 = vst [vmem:[#allocation11_spill] sm:$0xff] %v7419_v15  ;;  %v4140_v14 = vmul.f32 0.0078125, %v3997_v7  ;;  %v7425_v18 = vadd.f32 %v6125_v49, %v3834_v43  ;;  %v4283_v54 = vmul.f32 %v7419_v15, %v7419_v15  ;;  %v3829_v43 = vadd.f32 %v7166_v19, %v3828_v17  ;;  %v6128_v17 = vld [vmem:[%s6457_s15 + $0x188] sm:$0xff] }
 0x3d4   : > { %4359 = vadd.xlane.f32.xlu0 %v4285_v45  ;;  %v7416_v28 = vsub.f32 %v7181_v34, %v4142_v32  ;;  %v3826_v34 = vadd.f32 %v7166_v19, %v3825_v16  ;;  %v7430_v45 = vadd.f32 %v6126_v1, %v3837_v33 }
 0x3d5   : > { %v7435_v7 = vsub.f32 %v7184_v26, %v4140_v14 }
 0x3d6   : > { %8316 = vst [vmem:[#allocation10_spill] sm:$0xff] %v7416_v28  ;;  %v4007_v63 = vpop.xlane.xlu0 %4006  ;;  %v4286_v62 = vmul.f32 %v7416_v28, %v7416_v28 }
 0x3d7   : > { %v4009_v42 = vpop.xlane.xlu1 %4008  ;;  %v4145_v32 = vmul.f32 0.0078125, %v4007_v63  ;;  %8318 = vst [vmem:[#allocation12_spill] sm:$0xff] %v7435_v7  ;;  %v6127_v63 = vld [vmem:[%s6457_s15 + $0x180] sm:$0xff]  ;;  %v4284_v33 = vmul.f32 %v7435_v7, %v7435_v7 }
 0x3d8   : > { %4361 = vadd.xlane.f32.xlu1 %v4286_v62  ;;  %4094 = vadd.xlane.f32.xlu0 %v7425_v18  ;;  %v4146_v62 = vmul.f32 0.0078125, %v4009_v42  ;;  %v7440_v28 = vadd.f32 %v6127_v63, %v3826_v34  ;;  %v7449_v42 = vadd.f32 %v6128_v17, %v3829_v43 }
 0x3d9   : > { %v7445_v1 = vsub.f32 %v7191_v57, %v4145_v32 }
 0x3da   : > { %v4003_v51 = vpop.xlane.xlu0 %4002 }
 0x3db   : > { %v4005_v49 = vpop.xlane.xlu1 %4004  ;;  %v4143_v16 = vmul.f32 0.0078125, %v4003_v51  ;;  %v7452_v51 = vsub.f32 %v7197_v56, %v4146_v62  ;;  %v4289_v57 = vmul.f32 %v7445_v1, %v7445_v1 }
 0x3dc   : > { %4096 = vadd.xlane.f32.xlu1 %v7430_v45  ;;  %4355 = vadd.xlane.f32.xlu0 %v4283_v54  ;;  %v4144_v34 = vmul.f32 0.0078125, %v4005_v49 }
 0x3dd   : > { %8319 = vst [vmem:[#allocation13_spill] sm:$0xff] %v7452_v51  ;;  %v7457_v32 = vsub.f32 %v7202_v11, %v4143_v16  ;;  %v4290_v43 = vmul.f32 %v7452_v51, %v7452_v51 }
 0x3de   : > { %v4015_v26 = vpop.xlane.xlu0 %4014  ;;  %v7465_v62 = vsub.f32 %v7206_v6, %v4144_v34 }
 0x3df   : > { %v5502_v14 = vpop.f32.mrb[144].mxu0  ;;  %v4149_v63 = vmul.f32 0.0078125, %v4015_v26  ;;  %8320 = vst [vmem:[#allocation14_spill] sm:$0xff] %v7457_v32  ;;  %v4017_v7 = vpop.xlane.xlu1 %4016  ;;  %v4287_v56 = vmul.f32 %v7457_v32, %v7457_v32 }
 0x3e0   : > { %4090 = vadd.xlane.f32.xlu0 %v7440_v28  ;;  %4357 = vadd.xlane.f32.xlu1 %v4284_v33  ;;  %v3841_v54 = vpop.f32.mrb[145].mxu0  ;;  %v4150_v17 = vmul.f32 0.0078125, %v4017_v7  ;;  %8321 = vst [vmem:[#allocation15_spill] sm:$0xff] %v7465_v62  ;;  %v3850_v11 = vadd.f32 %v5502_v14, %v7166_v19 }
 0x3e1   : > { %v5503_v15 = vpop.f32.mrb[146].mxu0  ;;  %v7468_v49 = vsub.f32 %v7212_v24, %v4149_v63  ;;  %v6129_v63 = vld [vmem:[%s6457_s15 + $0x1b0] sm:$0xff] }
 0x3e2   : > { %v3844_v41 = vpop.f32.mrb[147].mxu0  ;;  %v4011_v33 = vpop.xlane.xlu0 %4010  ;;  %v7476_v32 = vsub.f32 %v7217_v48, %v4150_v17  ;;  %v3853_v24 = vadd.f32 %v5503_v15, %v7166_v19  ;;  %v3842_v17 = vadd.f32 %v7166_v19, %v3841_v54 }
 0x3e3   : > { %8322 = vst [vmem:[#allocation16_spill] sm:$0xff] %v7468_v49  ;;  %v4013_v16 = vpop.xlane.xlu1 %4012  ;;  %v4147_v26 = vmul.f32 0.0078125, %v4011_v33  ;;  %v4293_v7 = vmul.f32 %v7468_v49, %v7468_v49  ;;  %v7482_v33 = vadd.f32 %v6129_v63, %v3850_v11  ;;  %v3845_v54 = vadd.f32 %v7166_v19, %v3844_v41 }
 0x3e4   : > { %4092 = vadd.xlane.f32.xlu1 %v7449_v42  ;;  %4367 = vadd.xlane.f32.xlu0 %v4289_v57  ;;  %v4288_v57 = vmul.f32 %v7465_v62, %v7465_v62  ;;  %8323 = vst [vmem:[#allocation17_spill] sm:$0xff] %v7476_v32  ;;  %v4148_v34 = vmul.f32 0.0078125, %v4013_v16  ;;  %v4294_v14 = vmul.f32 %v7476_v32, %v7476_v32  ;;  %v6130_v32 = vld [vmem:[%s6457_s15 + $0x1b8] sm:$0xff] }
 0x3e5   : > { %v7492_v11 = vadd.f32 %v6130_v32, %v3853_v24  ;;  %v6131_v32 = vld [vmem:[%s6457_s15 + $0x1a0] sm:$0xff] }
 0x3e6   : > { %v4023_v6 = vpop.xlane.xlu0 %4022  ;;  %v7504_v24 = vadd.f32 %v6131_v32, %v3842_v17 }
 0x3e8   : > { %4369 = vadd.xlane.f32.xlu1 %v4290_v43  ;;  %4363 = vadd.xlane.f32.xlu0 %v4287_v56  ;;  %v7485_v43 = vsub.f32 %v7222_v52, %v4147_v26  ;;  %v4025_v56 = vpop.xlane.xlu1 %4024  ;;  %v7497_v26 = vsub.f32 %v7226_v25, %v4148_v34  ;;  %v6132_v25 = vld [vmem:[%s6457_s15 + $0x1a8] sm:$0xff] }
 0x3e9   : > { %v7511_v34 = vadd.f32 %v6132_v25, %v3845_v54 }
 0x3ea   : > { %8324 = vst [vmem:[#allocation18_spill] sm:$0xff] %v7485_v43  ;;  %v4019_v15 = vpop.xlane.xlu0 %4018  ;;  %v4291_v52 = vmul.f32 %v7485_v43, %v7485_v43  ;;  %v4292_v62 = vmul.f32 %v7497_v26, %v7497_v26 }
 0x3ec   : > { %4365 = vadd.xlane.f32.xlu1 %v4288_v57  ;;  %4375 = vadd.xlane.f32.xlu0 %v4293_v7  ;;  %v4153_v57 = vmul.f32 0.0078125, %v4023_v6  ;;  %v4021_v63 = vpop.xlane.xlu1 %4020  ;;  %v4151_v6 = vmul.f32 0.0078125, %v4019_v15 }
 0x3ee   : > { %v7507_v51 = vsub.f32 %v7232_v35, %v4153_v57  ;;  %v4031_v43 = vpop.xlane.xlu0 %4030  ;;  %v7519_v17 = vsub.f32 %v7242_v31, %v4151_v6 }
 0x3ef   : > { %v5506_v49 = vpop.f32.mrb[148].mxu0  ;;  %v4157_v15 = vmul.f32 0.0078125, %v4031_v43 }
 0x3f0   : > { %4377 = vadd.xlane.f32.xlu1 %v4294_v14  ;;  %4102 = vadd.xlane.f32.xlu0 %v7482_v33  ;;  %v3857_v48 = vpop.f32.mrb[149].mxu0  ;;  %v4154_v14 = vmul.f32 0.0078125, %v4025_v56  ;;  %v4152_v56 = vmul.f32 0.0078125, %v4021_v63  ;;  %v4033_v35 = vpop.xlane.xlu1 %4032  ;;  %v3866_v6 = vadd.f32 %v5506_v49, %v7166_v19 }
 0x3f1   : > { %v5507_v16 = vpop.f32.mrb[150].mxu0  ;;  %v4158_v57 = vmul.f32 0.0078125, %v4033_v35  ;;  %v7530_v43 = vsub.f32 %v7252_v4, %v4157_v15 }
 0x3f2   : > { %v7489_v7 = vpop.f32.mrb[151].mxu0  ;;  %v7514_v41 = vsub.f32 %v7237_v3, %v4154_v14  ;;  %v4295_v3 = vmul.f32 %v7519_v17, %v7519_v17  ;;  %v7527_v54 = vsub.f32 %v7246_v39, %v4152_v56  ;;  %v4027_v14 = vpop.xlane.xlu0 %4026  ;;  %v3869_v15 = vadd.f32 %v5507_v16, %v7166_v19  ;;  %v6134_v16 = vld [vmem:[%s6457_s15 + $0x1d8] sm:$0xff] }
 0x3f3   : > { %8326 = vst [vmem:[#allocation20_spill] sm:$0xff] %v7530_v43  ;;  %v4155_v25 = vmul.f32 0.0078125, %v4027_v14  ;;  %v4301_v39 = vmul.f32 %v7530_v43, %v7530_v43  ;;  %v7540_v4 = vsub.f32 %v7257_v47, %v4158_v57  ;;  %v6133_v14 = vld [vmem:[%s6457_s15 + $0x1d0] sm:$0xff]  ;;  %v3858_v47 = vadd.f32 %v7166_v19, %v3857_v48  ;;  %v6135_v48 = vld [vmem:[%s6457_s15 + $0x1c0] sm:$0xff] }
 0x3f4   : > { %4104 = vadd.xlane.f32.xlu1 %v7492_v11  ;;  %4371 = vadd.xlane.f32.xlu0 %v4291_v52  ;;  %v4297_v52 = vmul.f32 %v7507_v51, %v7507_v51  ;;  %8325 = vst [vmem:[#allocation19_spill] sm:$0xff] %v7527_v54  ;;  %v4296_v35 = vmul.f32 %v7527_v54, %v7527_v54  ;;  %v4029_v56 = vpop.xlane.xlu1 %4028 }
 0x3f5   : > { %8327 = vst [vmem:[#allocation21_spill] sm:$0xff] %v7540_v4  ;;  %v7546_v54 = vadd.f32 %v6133_v14, %v3866_v6  ;;  %v7549_v43 = vsub.f32 %v7262_v27, %v4155_v25  ;;  %v3861_v27 = vadd.f32 %v7166_v19, %v7489_v7  ;;  %v7565_v25 = vadd.f32 %v6135_v48, %v3858_v47 }
 0x3f6   : > { %v4039_v49 = vpop.xlane.xlu0 %4038 }
 0x3f7   : > { %8328 = vst [vmem:[#allocation22_spill] sm:$0xff] %v7549_v43 }
 0x3f8   : > { %4373 = vadd.xlane.f32.xlu1 %v4292_v62  ;;  %4098 = vadd.xlane.f32.xlu0 %v7504_v24  ;;  %v4298_v62 = vmul.f32 %v7514_v41, %v7514_v41  ;;  %v4041_v57 = vpop.xlane.xlu1 %4040 }
 0x3fa   : > { %v4035_v14 = vpop.xlane.xlu0 %4034 }
 0x3fc   : > { %4100 = vadd.xlane.f32.xlu1 %v7511_v34  ;;  %4383 = vadd.xlane.f32.xlu0 %v4297_v52 }
 0x3ff   : > { %v5510_v31 = vpop.f32.mrb[152].mxu0 }
 0x400   : > { %4385 = vadd.xlane.f32.xlu1 %v4298_v62  ;;  %4379 = vadd.xlane.f32.xlu0 %v4295_v3  ;;  %v3873_v63 = vpop.f32.mrb[153].mxu0  ;;  %v4156_v62 = vmul.f32 0.0078125, %v4029_v56  ;;  %v4302_v3 = vmul.f32 %v7540_v4, %v7540_v4  ;;  %v4299_v56 = vmul.f32 %v7549_v43, %v7549_v43 }
 0x401   : > { %v5511_v32 = vpop.f32.mrb[154].mxu0  ;;  %v4047_v48 = vpop.xlane.xlu0 %4046 }
 0x402   : > { %v7533_v52 = vpop.f32.mrb[155].mxu0  ;;  %v7559_v6 = vsub.f32 %v7266_v10, %v4156_v62  ;;  %v4037_v10 = vpop.xlane.xlu1 %4036 }
 0x403   : > { %v4160_v7 = vmul.f32 0.0078125, %v4037_v10  ;;  %v3885_v10 = vadd.f32 %v5511_v32, %v7166_v19 }
 0x404   : > { %4381 = vadd.xlane.f32.xlu1 %v4296_v35  ;;  %4391 = vadd.xlane.f32.xlu0 %v4301_v39  ;;  %v4161_v35 = vmul.f32 0.0078125, %v4039_v49  ;;  %v7554_v39 = vadd.f32 %v6134_v16, %v3869_v15  ;;  %v4162_v49 = vmul.f32 0.0078125, %v4041_v57  ;;  %v4159_v15 = vmul.f32 0.0078125, %v4035_v14 }
 0x406   : > { %v7570_v16 = vsub.f32 %v7272_v0, %v4161_v35  ;;  %v7579_v57 = vsub.f32 %v7277_v55, %v4162_v49  ;;  %v7582_v14 = vsub.f32 %v7282_v36, %v4159_v15  ;;  %v7591_v49 = vsub.f32 %v7285_v12, %v4160_v7  ;;  %v4049_v15 = vpop.xlane.xlu1 %4048  ;;  %v6138_v7 = vld [vmem:[%s6457_s15 + $0x1e0] sm:$0xff] }
 0x407   : > { %v3874_v36 = vadd.f32 %v7166_v19, %v3873_v63  ;;  %v3877_v12 = vadd.f32 %v7166_v19, %v7533_v52 }
 0x408   : > { %4393 = vadd.xlane.f32.xlu1 %v4302_v3  ;;  %4110 = vadd.xlane.f32.xlu0 %v7546_v54  ;;  %v4300_v3 = vmul.f32 %v7559_v6, %v7559_v6  ;;  %8329 = vst [vmem:[#allocation23_spill] sm:$0xff] %v7570_v16  ;;  %v4305_v47 = vmul.f32 %v7570_v16, %v7570_v16  ;;  %8330 = vst [vmem:[#allocation24_spill] sm:$0xff] %v7579_v57 }
 0x409   : > { %8331 = vst [vmem:[#allocation25_spill] sm:$0xff] %v7582_v14  ;;  %v4303_v55 = vmul.f32 %v7582_v14, %v7582_v14  ;;  %8332 = vst [vmem:[#allocation26_spill] sm:$0xff] %v7591_v49  ;;  %v4043_v14 = vpop.xlane.xlu0 %4042  ;;  %v7604_v63 = vadd.f32 %v6138_v7, %v3874_v36 }
 0x40a   : > { %v4163_v32 = vmul.f32 0.0078125, %v4043_v14 }
 0x40c   : > { %4112 = vadd.xlane.f32.xlu1 %v7554_v39  ;;  %4387 = vadd.xlane.f32.xlu0 %v4299_v56  ;;  %v6136_v56 = vld [vmem:[%s6457_s15 + $0x1c8] sm:$0xff] }
 0x40d   : > { %v7574_v43 = vadd.f32 %v6136_v56, %v3861_v27  ;;  %v3882_v27 = vadd.f32 %v5510_v31, %v7166_v19  ;;  %v4165_v56 = vmul.f32 0.0078125, %v4047_v48  ;;  %v4304_v31 = vmul.f32 %v7591_v49, %v7591_v49  ;;  %v6139_v48 = vld [vmem:[%s6457_s15 + $0x1f8] sm:$0xff] }
 0x40f   : > { %v7610_v49 = vsub.f32 %v7293_v38, %v4165_v56 }
 0x410   : > { %4389 = vadd.xlane.f32.xlu1 %v4300_v3  ;;  %4106 = vadd.xlane.f32.xlu0 %v7565_v25  ;;  %v5514_v62 = vpop.f32.mrb[156].mxu0  ;;  %v4306_v3 = vmul.f32 %v7579_v57, %v7579_v57 }
 0x411   : > { %v3889_v4 = vpop.f32.mrb[157].mxu0  ;;  %v4309_v36 = vmul.f32 %v7610_v49, %v7610_v49  ;;  %v4055_v56 = vpop.xlane.xlu0 %4054  ;;  %v3898_v7 = vadd.f32 %v5514_v62, %v7166_v19 }
 0x412   : > { %v5515_v0 = vpop.f32.mrb[158].mxu0 }
 0x413   : > { %v3892_v35 = vpop.f32.mrb[159].mxu0 }
 0x414   : > { %4108 = vadd.xlane.f32.xlu1 %v7574_v43  ;;  %4399 = vadd.xlane.f32.xlu0 %v4305_v47  ;;  %v6137_v47 = vld [vmem:[%s6457_s15 + $0x1f0] sm:$0xff] }
 0x415   : > { %v7598_v57 = vadd.f32 %v6137_v47, %v3882_v27  ;;  %v4045_v27 = vpop.xlane.xlu1 %4044 }
 0x416   : > { %v4164_v52 = vmul.f32 0.0078125, %v4045_v27  ;;  %v3890_v27 = vadd.f32 %v7166_v19, %v3889_v4 }
 0x418   : > { %4401 = vadd.xlane.f32.xlu1 %v4306_v3  ;;  %4395 = vadd.xlane.f32.xlu0 %v4303_v55  ;;  %v4166_v3 = vmul.f32 0.0078125, %v4049_v15  ;;  %v7607_v55 = vadd.f32 %v6139_v48, %v3885_v10  ;;  %v7623_v15 = vsub.f32 %v7302_v50, %v4163_v32  ;;  %v4169_v50 = vmul.f32 0.0078125, %v4055_v56 }
 0x419   : > { %v4057_v32 = vpop.xlane.xlu1 %4056  ;;  %v3893_v56 = vadd.f32 %v7166_v19, %v3892_v35 }
 0x41a   : > { %v7620_v14 = vsub.f32 %v7298_v53, %v4166_v3  ;;  %8334 = vst [vmem:[#allocation28_spill] sm:$0xff] %v7623_v15  ;;  %v4307_v53 = vmul.f32 %v7623_v15, %v7623_v15  ;;  %v7632_v3 = vsub.f32 %v7306_v46, %v4164_v52  ;;  %v4051_v15 = vpop.xlane.xlu0 %4050  ;;  %v4170_v46 = vmul.f32 0.0078125, %v4057_v32 }
 0x41b   : > { %v7643_v52 = vsub.f32 %v7313_v58, %v4169_v50  ;;  %v4167_v4 = vmul.f32 0.0078125, %v4051_v15  ;;  %v6144_v15 = vld [vmem:[%s6457_s15 + $0x208] sm:$0xff] }
 0x41c   : > { %4397 = vadd.xlane.f32.xlu1 %v4304_v31  ;;  %4118 = vadd.xlane.f32.xlu0 %v7598_v57  ;;  %v6140_v31 = vld [vmem:[%s6457_s15 + $0x1e8] sm:$0xff]  ;;  %8333 = vst [vmem:[#allocation27_spill] sm:$0xff] %v7620_v14  ;;  %v4310_v48 = vmul.f32 %v7620_v14, %v7620_v14  ;;  %8335 = vst [vmem:[#allocation29_spill] sm:$0xff] %v7632_v3  ;;  %v4308_v62 = vmul.f32 %v7632_v3, %v7632_v3 }
 0x41d   : > { %v7615_v47 = vadd.f32 %v6140_v31, %v3877_v12  ;;  %v3901_v31 = vadd.f32 %v5515_v0, %v7166_v19  ;;  %v4313_v32 = vmul.f32 %v7643_v52, %v7643_v52  ;;  %v7657_v58 = vsub.f32 %v7322_v59, %v4167_v4 }
 0x41e   : > { %v7660_v50 = vadd.f32 %v6144_v15, %v3893_v56 }
 0x41f   : > { %8336 = vst [vmem:[#allocation30_spill] sm:$0xff] %v7657_v58  ;;  %v4311_v4 = vmul.f32 %v7657_v58, %v7657_v58 }
 0x420   : > { %4120 = vadd.xlane.f32.xlu1 %v7607_v55  ;;  %4114 = vadd.xlane.f32.xlu0 %v7604_v63  ;;  %v5518_v16 = vpop.f32.mrb[160].mxu0 }
 0x421   : > { %v3905_v38 = vpop.f32.mrb[161].mxu0 }
 0x422   : > { %v5519_v10 = vpop.f32.mrb[162].mxu0 }
 0x423   : > { %v3908_v12 = vpop.f32.mrb[163].mxu0 }
 0x424   : > { %4116 = vadd.xlane.f32.xlu1 %v7615_v47  ;;  %4407 = vadd.xlane.f32.xlu0 %v4309_v36  ;;  %v6141_v36 = vld [vmem:[%s6457_s15 + $0x210] sm:$0xff] }
 0x425   : > { %v7639_v14 = vadd.f32 %v6141_v36, %v3898_v7  ;;  %v4053_v7 = vpop.xlane.xlu1 %4052 }
 0x426   : > { %v4168_v35 = vmul.f32 0.0078125, %v4053_v7  ;;  %v3917_v7 = vadd.f32 %v5519_v10, %v7166_v19  ;;  %v3909_v10 = vadd.f32 %v7166_v19, %v3908_v12 }
 0x428   : > { %4409 = vadd.xlane.f32.xlu1 %v4310_v48  ;;  %4403 = vadd.xlane.f32.xlu0 %v4307_v53  ;;  %v6142_v48 = vld [vmem:[%s6457_s15 + $0x218] sm:$0xff]  ;;  %v6143_v53 = vld [vmem:[%s6457_s15 + $0x200] sm:$0xff]  ;;  %v7667_v36 = vsub.f32 %v7326_v44, %v4168_v35  ;;  %v3906_v44 = vadd.f32 %v7166_v19, %v3905_v38 }
 0x429   : > { %v7647_v0 = vadd.f32 %v6142_v48, %v3901_v31  ;;  %v7650_v3 = vadd.f32 %v6143_v53, %v3890_v27  ;;  %v7663_v27 = vsub.f32 %v7318_v61, %v4170_v46  ;;  %v4065_v31 = vpop.xlane.xlu1 %4064  ;;  %v3914_v48 = vadd.f32 %v5518_v16, %v7166_v19  ;;  %v6145_v46 = vld [vmem:[%s6457_s15 + $0x230] sm:$0xff] }
 0x42a   : > { %8337 = vst [vmem:[#allocation31_spill] sm:$0xff] %v7667_v36 }
 0x42b   : > { %v4314_v59 = vmul.f32 %v7663_v27, %v7663_v27  ;;  %v7675_v53 = vadd.f32 %v6145_v46, %v3914_v48 }
 0x42c   : > { %4405 = vadd.xlane.f32.xlu1 %v4308_v62  ;;  %4126 = vadd.xlane.f32.xlu0 %v7639_v14  ;;  %v4063_v62 = vpop.xlane.xlu0 %4062 }
 0x42d   : > { %v4173_v61 = vmul.f32 0.0078125, %v4063_v62  ;;  %v4061_v16 = vpop.xlane.xlu1 %4060  ;;  %v4174_v62 = vmul.f32 0.0078125, %v4065_v31  ;;  %v6148_v31 = vld [vmem:[%s6457_s15 + $0x228] sm:$0xff] }
 0x42f   : > { %v7683_v15 = vsub.f32 %v7333_v21, %v4173_v61  ;;  %v4172_v21 = vmul.f32 0.0078125, %v4061_v16 }
 0x430   : > { %4128 = vadd.xlane.f32.xlu1 %v7647_v0  ;;  %4122 = vadd.xlane.f32.xlu0 %v7650_v3  ;;  %v4059_v56 = vpop.xlane.xlu0 %4058 }
 0x431   : > { %v4171_v46 = vmul.f32 0.0078125, %v4059_v56  ;;  %v4317_v19 = vmul.f32 %v7683_v15, %v7683_v15  ;;  %v7707_v56 = vsub.f32 %v7346_v29, %v4172_v21 }
 0x433   : > { %v4073_v58 = vpop.xlane.xlu1 %4072  ;;  %v4316_v29 = vmul.f32 %v7707_v56, %v7707_v56 }
 0x434   : > { %4124 = vadd.xlane.f32.xlu1 %v7660_v50  ;;  %4415 = vadd.xlane.f32.xlu0 %v4313_v32  ;;  %v4312_v32 = vmul.f32 %v7667_v36, %v7667_v36  ;;  %v4071_v35 = vpop.xlane.xlu0 %4070  ;;  %v7698_v36 = vadd.f32 %v6148_v31, %v3909_v10 }
 0x437   : > { %v4069_v12 = vpop.xlane.xlu1 %4068 }
 0x438   : > { %4417 = vadd.xlane.f32.xlu1 %v4314_v59  ;;  %4411 = vadd.xlane.f32.xlu0 %v4311_v4  ;;  %v6146_v59 = vld [vmem:[%s6457_s15 + $0x220] sm:$0xff]  ;;  %v6147_v4 = vld [vmem:[%s6457_s15 + $0x238] sm:$0xff]  ;;  %v4067_v61 = vpop.xlane.xlu0 %4066  ;;  %s437_s15 = sand.u32 1, %s6205_s22  }
 0x439   : > { %v7686_v48 = vadd.f32 %v6146_v59, %v3906_v44  ;;  %v7689_v38 = vadd.f32 %v6147_v4, %v3917_v7  ;;  %v7701_v44 = vsub.f32 %v7342_v20, %v4171_v46  ;;  %v4177_v7 = vmul.f32 0.0078125, %v4071_v35  ;;  %s5520_s0 = smul.u32 576, %s437_s15  ;;  %s8219_s25 = scalar_lea.sflag [#allocation3], %s437_s15 }
 0x43a   : > { %v4175_v59 = vmul.f32 0.0078125, %v4067_v61 }
 0x43b   : > { %v4315_v35 = vmul.f32 %v7701_v44, %v7701_v44  ;;  %s7812_s17 = scalar_lea.vmem [#allocation2], %s5520_s0  ;;  %s8211_s0 = scalar_lea.hbm %s8272_s12, %s5206_s19 }
 0x43c   : > { %4413 = vadd.xlane.f32.xlu1 %v4312_v32  ;;  %4134 = vadd.xlane.f32.xlu0 %v7675_v53  ;;  %v7695_v32 = vsub.f32 %v7338_v13, %v4174_v62  ;;  %v4178_v13 = vmul.f32 0.0078125, %v4073_v58  ;;  %v7710_v62 = vsub.f32 %v7353_v22, %v4177_v7  ;;  %v7722_v58 = vsub.f32 %v7362_v23, %v4175_v59  ;;  %s5029_s23 = sshll.u32 %s7812_s17, 4  ;;  %s8214_s23 = int_to_ptr.vmem [resolvable:$true] %s5029_s23 }
 0x43d   : > { %v4176_v22 = vmul.f32 0.0078125, %v4069_v12  ;;  %s6151_s29 = scalar_lea.vmem %s8214_s23, 9216  ;;  %p6158_p1 = scmp.lt.s32.totalorder %s8214_s23, %s6156_s20 }
 0x43e   : > { %v4318_v20 = vmul.f32 %v7695_v32, %v7695_v32  ;;  %v7717_v10 = vsub.f32 %v7358_v9, %v4178_v13  ;;  %v4321_v21 = vmul.f32 %v7710_v62, %v7710_v62  ;;  %v4319_v12 = vmul.f32 %v7722_v58, %v7722_v58  ;;  %p6152_p12 = scmp.ne.s32.totalorder %s8214_s23, %s6151_s29  ;;  %p6159_p2 = scmp.lt.s32.totalorder %s6157_s18, %s6151_s29 }
 0x43f   : > { %v7729_v9 = vsub.f32 %v7366_v5, %v4176_v22 }
 0x440   : > { %4136 = vadd.xlane.f32.xlu1 %v7689_v38  ;;  %4130 = vadd.xlane.f32.xlu0 %v7686_v48  ;;  %v4322_v7 = vmul.f32 %v7717_v10, %v7717_v10  ;;  %p6153_p13 = pnand %p6152_p12, %p6325_p5  ;;  %p6160_p3 = por %p6159_p2, %p6158_p1 }
 0x441   : > { %v4079_v16 = vpop.xlane.xlu0 %4078 }
 0x442   : > { %v4181_v46 = vmul.f32 0.0078125, %v4079_v16  ;;  %p6154_p0 = pneg %p6153_p13 }
 0x443   : > { %v4081_v4 = vpop.xlane.xlu1 %4080 }
 0x444   : > { %4132 = vadd.xlane.f32.xlu1 %v7698_v36  ;;  %4423 = vadd.xlane.f32.xlu0 %v4317_v19  ;;  %v4182_v31 = vmul.f32 0.0078125, %v4081_v4  ;;  %v7732_v19 = vsub.f32 %v7373_v37, %v4181_v46  ;;  %v4320_v37 = vmul.f32 %v7729_v9, %v7729_v9  ;;  %p6161_p4 = pnand %p6160_p3, %p6154_p0 }
 0x445   : > { %v4075_v61 = vpop.xlane.xlu0 %4074 }
 0x446   : > { %v4179_v23 = vmul.f32 0.0078125, %v4075_v61  ;;  %v7737_v16 = vsub.f32 %v7378_v8, %v4182_v31  ;;  %v4325_v4 = vmul.f32 %v7732_v19, %v7732_v19 }
 0x447   : > { %v4077_v13 = vpop.xlane.xlu1 %4076 }
 0x448   : > { %4425 = vadd.xlane.f32.xlu1 %v4318_v20  ;;  %4419 = vadd.xlane.f32.xlu0 %v4315_v35  ;;  %v4180_v59 = vmul.f32 0.0078125, %v4077_v13  ;;  %v7740_v35 = vsub.f32 %v7382_v40, %v4179_v23  ;;  %v4326_v46 = vmul.f32 %v7737_v16, %v7737_v16  ;;  %v8338_v13 = vld [vmem:[#allocation7_spill] sm:$0xff] }
 0x44a   : > { %v7747_v22 = vsub.f32 %v7386_v30, %v4180_v59  ;;  %v4323_v31 = vmul.f32 %v7740_v35, %v7740_v35 }
 0x44c   : > { %4421 = vadd.xlane.f32.xlu1 %v4316_v29  ;;  %4431 = vadd.xlane.f32.xlu0 %v4321_v21  ;;  %v4324_v23 = vmul.f32 %v7747_v22, %v7747_v22 }
 0x450   : > { %4433 = vadd.xlane.f32.xlu1 %v4322_v7  ;;  %4427 = vadd.xlane.f32.xlu0 %v4319_v12 }
 0x451   : > { %v4087_v20 = vpop.xlane.xlu0 %4086 }
 0x452   : > { %v4185_v5 = vmul.f32 0.0078125, %v4087_v20  ;;  %v8340_v20 = vld [vmem:[#allocation8_spill] sm:$0xff] }
 0x453   : > { %v4089_v29 = vpop.xlane.xlu1 %4088 }
 0x454   : > { %4429 = vadd.xlane.f32.xlu1 %v4320_v37  ;;  %4439 = vadd.xlane.f32.xlu0 %v4325_v4  ;;  %v7752_v40 = vsub.f32 %v7393_v2, %v4185_v5  ;;  %v4186_v21 = vmul.f32 0.0078125, %v4089_v29 }
 0x455   : > { %v4083_v8 = vpop.xlane.xlu0 %4082 }
 0x456   : > { %v4183_v61 = vmul.f32 0.0078125, %v4083_v8  ;;  %v7759_v30 = vsub.f32 %v7398_v60, %v4186_v21  ;;  %v4329_v2 = vmul.f32 %v7752_v40, %v7752_v40 }
 0x457   : > { %v4085_v7 = vpop.xlane.xlu1 %4084 }
 0x458   : > { %4441 = vadd.xlane.f32.xlu1 %v4326_v46  ;;  %4435 = vadd.xlane.f32.xlu0 %v4323_v31  ;;  %v7762_v12 = vsub.f32 %v8338_v13, %v4183_v61  ;;  %v4184_v59 = vmul.f32 0.0078125, %v4085_v7  ;;  %v4330_v37 = vmul.f32 %v7759_v30, %v7759_v30 }
 0x45a   : > { %8339 = vst [vmem:[#allocation7_spill] sm:$0xff] %v7762_v12  ;;  %v7767_v5 = vsub.f32 %v8340_v20, %v4184_v59  ;;  %v4327_v4 = vmul.f32 %v7762_v12, %v7762_v12 }
 0x45c   : > { %4437 = vadd.xlane.f32.xlu1 %v4324_v23  ;;  %4447 = vadd.xlane.f32.xlu0 %v4329_v2  ;;  %8341 = vst [vmem:[#allocation8_spill] sm:$0xff] %v7767_v5  ;;  %v4328_v8 = vmul.f32 %v7767_v5, %v7767_v5 }
 0x460   : > { %4449 = vadd.xlane.f32.xlu1 %v4330_v37  ;;  %4443 = vadd.xlane.f32.xlu0 %v4327_v4 }
 0x461   : > { %v4360_v60 = vpop.xlane.xlu0 %4359 }
 0x462   : > { %v4501_v29 = vmul.f32 0.0078125, %v4360_v60 }
 0x464   : > { %v4573_v46 = vadd.f32 1e-05, %v4501_v29  ;;  %4445 = vadd.xlane.f32.xlu1 %v4328_v8 }
 0x465   : > { %v4362_v21 = vpop.xlane.xlu1 %4361  ;;  %v4095_v61 = vpop.xlane.xlu0 %4094 }
 0x466   : > { %5930 = vrsqrt.f32 %v4573_v46  ;;  %v4502_v31 = vmul.f32 0.0078125, %v4362_v21  ;;  %v4189_v7 = vmul.f32 0.0078125, %v4095_v61 }
 0x468   : > { %v4574_v23 = vadd.f32 1e-05, %v4502_v31  ;;  %v7776_v13 = vsub.f32 %v7425_v18, %v4189_v7  ;;  %v7789_v7 = vld [vmem:[%s8270_s10] ss:$0 sm:$0xff] }
 0x469   : > { %v4097_v59 = vpop.xlane.xlu1 %4096  ;;  %v4356_v2 = vpop.xlane.xlu0 %4355 }
 0x46a   : > { %8342 = vst [vmem:[#allocation32_spill] sm:$0xff] %v7776_v13  ;;  %5932 = vrsqrt.f32 %v4574_v23  ;;  %v4190_v20 = vmul.f32 0.0078125, %v4097_v59  ;;  %v4499_v37 = vmul.f32 0.0078125, %v4356_v2  ;;  %v4333_v4 = vmul.f32 %v7776_v13, %v7776_v13  ;;  %v8345_v59 = vld [vmem:[#allocation9_spill] sm:$0xff] }
 0x46c   : > { %v7781_v60 = vsub.f32 %v7430_v45, %v4190_v20  ;;  %v4571_v29 = vadd.f32 1e-05, %v4499_v37  ;;  %4455 = vadd.xlane.f32.xlu0 %v4333_v4  ;;  %v7800_v4 = vld [vmem:[%s8271_s11] ss:$0 sm:$0xff] }
 0x46d   : > { %v4358_v8 = vpop.xlane.xlu1 %4357  ;;  %v4091_v46 = vpop.xlane.xlu0 %4090 }
 0x46e   : > { %8343 = vst [vmem:[#allocation33_spill] sm:$0xff] %v7781_v60  ;;  %5934 = vrsqrt.f32 %v4571_v29  ;;  %v4500_v18 = vmul.f32 0.0078125, %v4358_v8  ;;  %v4187_v21 = vmul.f32 0.0078125, %v4091_v46  ;;  %v4334_v61 = vmul.f32 %v7781_v60, %v7781_v60 }
 0x470   : > { %v5931_v31 = vpop.eup %5930  ;;  %v4572_v45 = vadd.f32 1e-05, %v4500_v18  ;;  %v7794_v23 = vsub.f32 %v7440_v28, %v4187_v21  ;;  %4457 = vadd.xlane.f32.xlu1 %v4334_v61 }
 0x471   : > { %v4717_v2 = vmul.f32 %v5931_v31, %v8345_v59  ;;  %v4093_v20 = vpop.xlane.xlu1 %4092  ;;  %v4368_v37 = vpop.xlane.xlu0 %4367  ;;  %v8347_v59 = vld [vmem:[#allocation10_spill] sm:$0xff] }
 0x472   : > { %8344 = vst [vmem:[#allocation34_spill] sm:$0xff] %v7794_v23  ;;  %5936 = vrsqrt.f32 %v4572_v45  ;;  %v4188_v29 = vmul.f32 0.0078125, %v4093_v20  ;;  %v4505_v8 = vmul.f32 0.0078125, %v4368_v37  ;;  %v4331_v46 = vmul.f32 %v7794_v23, %v7794_v23 }
 0x473   : > { %v4795_v18 = vmul.f32 %v7789_v7, %v4717_v2 }
 0x474   : > { %v5933_v28 = vpop.eup %5932  ;;  %v7806_v21 = vsub.f32 %v7449_v42, %v4188_v29  ;;  %v4577_v61 = vadd.f32 1e-05, %v4505_v8  ;;  %4451 = vadd.xlane.f32.xlu0 %v4331_v46 }
 0x475   : > { %v4873_v31 = vadd.f32 %v7800_v4, %v4795_v18  ;;  %v4718_v60 = vmul.f32 %v5933_v28, %v8347_v59  ;;  %v4370_v13 = vpop.xlane.xlu1 %4369  ;;  %v4364_v5 = vpop.xlane.xlu0 %4363  ;;  %v8348_v18 = vld [vmem:[#allocation11_spill] sm:$0xff] }
 0x476   : > { %8346 = vst [vmem:[#allocation9_spill] sm:$0xff] %v7806_v21  ;;  %5938 = vrsqrt.f32 %v4577_v61  ;;  %v4506_v45 = vmul.f32 0.0078125, %v4370_v13  ;;  %v4503_v20 = vmul.f32 0.0078125, %v4364_v5  ;;  %v4332_v37 = vmul.f32 %v7806_v21, %v7806_v21 }
 0x477   : > { %4945 = vst [vmem:[%s7812_s17 + $0x10] sm:$0xff] %v4873_v31  ;;  %v4796_v42 = vmul.f32 %v7789_v7, %v4718_v60 }
 0x478   : > { %v5935_v2 = vpop.eup %5934  ;;  %v4578_v29 = vadd.f32 1e-05, %v4506_v45  ;;  %v4575_v8 = vadd.f32 1e-05, %v4503_v20  ;;  %4453 = vadd.xlane.f32.xlu1 %v4332_v37  ;;  %v8349_v20 = vld [vmem:[#allocation12_spill] sm:$0xff] }
 0x479   : > { %v4874_v46 = vadd.f32 %v7800_v4, %v4796_v42  ;;  %v4715_v28 = vmul.f32 %v5935_v2, %v8348_v18  ;;  %v4366_v13 = vpop.xlane.xlu1 %4365  ;;  %v4376_v5 = vpop.xlane.xlu0 %4375 }
 0x47a   : > { %5940 = vrsqrt.f32 %v4578_v29  ;;  %v4504_v61 = vmul.f32 0.0078125, %v4366_v13  ;;  %v4509_v59 = vmul.f32 0.0078125, %v4376_v5 }
 0x47b   : > { %4946 = vst [vmem:[%s7812_s17 + $0x18] sm:$0xff] %v4874_v46  ;;  %v4793_v21 = vmul.f32 %v7789_v7, %v4715_v28  ;;  %5942 = vrsqrt.f32 %v4575_v8 }
 0x47c   : > { %v5937_v31 = vpop.eup %5936  ;;  %v4576_v60 = vadd.f32 1e-05, %v4504_v61  ;;  %v4581_v23 = vadd.f32 1e-05, %v4509_v59 }
 0x47d   : > { %v4871_v45 = vadd.f32 %v7800_v4, %v4793_v21  ;;  %v4716_v37 = vmul.f32 %v5937_v31, %v8349_v20  ;;  %v4378_v42 = vpop.xlane.xlu1 %4377  ;;  %v4103_v12 = vpop.xlane.xlu0 %4102 }
 0x47e   : > { %5944 = vrsqrt.f32 %v4576_v60  ;;  %v4510_v2 = vmul.f32 0.0078125, %v4378_v42  ;;  %v4193_v29 = vmul.f32 0.0078125, %v4103_v12 }
 0x47f   : > { %4943 = vst [vmem:[%s7812_s17] sm:$0xff] %v4871_v45  ;;  %v4794_v18 = vmul.f32 %v7789_v7, %v4716_v37  ;;  %5946 = vrsqrt.f32 %v4581_v23  ;;  %v8350_v37 = vld [vmem:[#allocation13_spill] sm:$0xff] }
 0x480   : > { %v5939_v46 = vpop.eup %5938  ;;  %v4582_v28 = vadd.f32 1e-05, %v4510_v2  ;;  %v7825_v8 = vsub.f32 %v7482_v33, %v4193_v29 }
 0x481   : > { %v4872_v13 = vadd.f32 %v7800_v4, %v4794_v18  ;;  %v4721_v21 = vmul.f32 %v5939_v46, %v7445_v1  ;;  %v4105_v5 = vpop.xlane.xlu1 %4104  ;;  %v4372_v61 = vpop.xlane.xlu0 %4371  ;;  %v8351_v18 = vld [vmem:[#allocation14_spill] sm:$0xff] }
 0x482   : > { %5948 = vrsqrt.f32 %v4582_v28  ;;  %v4194_v59 = vmul.f32 0.0078125, %v4105_v5  ;;  %v4507_v31 = vmul.f32 0.0078125, %v4372_v61  ;;  %v4337_v12 = vmul.f32 %v7825_v8, %v7825_v8 }
 0x483   : > { %4944 = vst [vmem:[%s7812_s17 + $0x8] sm:$0xff] %v4872_v13  ;;  %v4799_v23 = vmul.f32 %v7789_v7, %v4721_v21 }
 0x484   : > { %v5941_v60 = vpop.eup %5940  ;;  %v7834_v33 = vsub.f32 %v7492_v11, %v4194_v59  ;;  %v4579_v45 = vadd.f32 1e-05, %v4507_v31  ;;  %4463 = vadd.xlane.f32.xlu0 %v4337_v12 }
 0x485   : > { %v5943_v20 = vpop.eup %5942  ;;  %v4877_v1 = vadd.f32 %v7800_v4, %v4799_v23  ;;  %v4722_v42 = vmul.f32 %v5941_v60, %v8350_v37  ;;  %v4374_v2 = vpop.xlane.xlu1 %4373  ;;  %v8352_v60 = vld [vmem:[#allocation15_spill] sm:$0xff] }
 0x486   : > { %v4099_v29 = vpop.xlane.xlu0 %4098  ;;  %v4719_v46 = vmul.f32 %v5943_v20, %v8351_v18  ;;  %5950 = vrsqrt.f32 %v4579_v45  ;;  %v4508_v28 = vmul.f32 0.0078125, %v4374_v2  ;;  %v4338_v11 = vmul.f32 %v7834_v33, %v7834_v33 }
 0x487   : > { %v4191_v13 = vmul.f32 0.0078125, %v4099_v29  ;;  %4949 = vst [vmem:[%s7812_s17 + $0x30] sm:$0xff] %v4877_v1  ;;  %v4800_v21 = vmul.f32 %v7789_v7, %v4722_v42  ;;  %v8353_v42 = vld [vmem:[#allocation16_spill] sm:$0xff] }
 0x488   : > { %v5945_v5 = vpop.eup %5944  ;;  %v4797_v61 = vmul.f32 %v7789_v7, %v4719_v46  ;;  %v4580_v59 = vadd.f32 1e-05, %v4508_v28  ;;  %4465 = vadd.xlane.f32.xlu1 %v4338_v11 }
 0x489   : > { %v7845_v31 = vsub.f32 %v7504_v24, %v4191_v13  ;;  %v5947_v12 = vpop.eup %5946  ;;  %v4878_v23 = vadd.f32 %v7800_v4, %v4800_v21  ;;  %v4720_v45 = vmul.f32 %v5945_v5, %v8352_v60  ;;  %v4101_v20 = vpop.xlane.xlu1 %4100  ;;  %v8354_v5 = vld [vmem:[#allocation17_spill] sm:$0xff] }
 0x48a   : > { %v4384_v1 = vpop.xlane.xlu0 %4383  ;;  %v4875_v37 = vadd.f32 %v7800_v4, %v4797_v61  ;;  %v4725_v2 = vmul.f32 %v5947_v12, %v8353_v42  ;;  %5952 = vrsqrt.f32 %v4580_v59  ;;  %v4192_v29 = vmul.f32 0.0078125, %v4101_v20 }
 0x48b   : > { %4950 = vst [vmem:[%s7812_s17 + $0x38] sm:$0xff] %v4878_v23  ;;  %v4798_v18 = vmul.f32 %v7789_v7, %v4720_v45  ;;  %v4513_v24 = vmul.f32 0.0078125, %v4384_v1  ;;  %v4335_v46 = vmul.f32 %v7845_v31, %v7845_v31 }
 0x48c   : > { %v5949_v28 = vpop.eup %5948  ;;  %4947 = vst [vmem:[%s7812_s17 + $0x20] sm:$0xff] %v4875_v37  ;;  %v4803_v13 = vmul.f32 %v7789_v7, %v4725_v2  ;;  %v7858_v21 = vsub.f32 %v7511_v34, %v4192_v29 }
 0x48d   : > { %v4876_v11 = vadd.f32 %v7800_v4, %v4798_v18  ;;  %v4726_v61 = vmul.f32 %v5949_v28, %v8354_v5  ;;  %v4585_v59 = vadd.f32 1e-05, %v4513_v24  ;;  %4459 = vadd.xlane.f32.xlu0 %v4335_v46  ;;  %v4386_v12 = vpop.xlane.xlu1 %4385  ;;  %v8355_v18 = vld [vmem:[#allocation18_spill] sm:$0xff] }
 0x48e   : > { %v4380_v23 = vpop.xlane.xlu0 %4379  ;;  %v4881_v60 = vadd.f32 %v7800_v4, %v4803_v13  ;;  %v4514_v45 = vmul.f32 0.0078125, %v4386_v12  ;;  %v4336_v1 = vmul.f32 %v7858_v21, %v7858_v21 }
 0x48f   : > { %v4511_v20 = vmul.f32 0.0078125, %v4380_v23  ;;  %4948 = vst [vmem:[%s7812_s17 + $0x28] sm:$0xff] %v4876_v11  ;;  %v4804_v34 = vmul.f32 %v7789_v7, %v4726_v61  ;;  %5954 = vrsqrt.f32 %v4585_v59 }
 0x490   : > { %v5951_v37 = vpop.eup %5950  ;;  %4953 = vst [vmem:[%s7812_s17 + $0x50] sm:$0xff] %v4881_v60  ;;  %v4586_v42 = vadd.f32 1e-05, %v4514_v45  ;;  %4461 = vadd.xlane.f32.xlu1 %v4336_v1 }
 0x491   : > { %v4583_v2 = vadd.f32 1e-05, %v4511_v20  ;;  %v4882_v29 = vadd.f32 %v7800_v4, %v4804_v34  ;;  %v4723_v24 = vmul.f32 %v5951_v37, %v8355_v18  ;;  %v4382_v46 = vpop.xlane.xlu1 %4381 }
 0x492   : > { %v4392_v28 = vpop.xlane.xlu0 %4391  ;;  %5956 = vrsqrt.f32 %v4586_v42  ;;  %v4512_v13 = vmul.f32 0.0078125, %v4382_v46 }
 0x493   : > { %v4517_v5 = vmul.f32 0.0078125, %v4392_v28  ;;  %4954 = vst [vmem:[%s7812_s17 + $0x58] sm:$0xff] %v4882_v29  ;;  %v4801_v11 = vmul.f32 %v7789_v7, %v4723_v24  ;;  %5958 = vrsqrt.f32 %v4583_v2 }
 0x494   : > { %v5953_v61 = vpop.eup %5952  ;;  %v4584_v59 = vadd.f32 1e-05, %v4512_v13 }
 0x495   : > { %v4589_v12 = vadd.f32 1e-05, %v4517_v5  ;;  %v4879_v23 = vadd.f32 %v7800_v4, %v4801_v11  ;;  %v4724_v60 = vmul.f32 %v5953_v61, %v7497_v26  ;;  %v4394_v45 = vpop.xlane.xlu1 %4393 }
 0x496   : > { %v4111_v20 = vpop.xlane.xlu0 %4110  ;;  %5960 = vrsqrt.f32 %v4584_v59  ;;  %v4518_v1 = vmul.f32 0.0078125, %v4394_v45 }
 0x497   : > { %v4197_v34 = vmul.f32 0.0078125, %v4111_v20  ;;  %4951 = vst [vmem:[%s7812_s17 + $0x40] sm:$0xff] %v4879_v23  ;;  %v4802_v37 = vmul.f32 %v7789_v7, %v4724_v60  ;;  %5962 = vrsqrt.f32 %v4589_v12 }
 0x498   : > { %v4590_v42 = vadd.f32 1e-05, %v4518_v1 }
 0x499   : > { %v7877_v2 = vsub.f32 %v7546_v54, %v4197_v34  ;;  %v5955_v29 = vpop.eup %5954  ;;  %v4880_v18 = vadd.f32 %v7800_v4, %v4802_v37  ;;  %v4113_v24 = vpop.xlane.xlu1 %4112 }
 0x49a   : > { %v4388_v46 = vpop.xlane.xlu0 %4387  ;;  %v4729_v26 = vmul.f32 %v5955_v29, %v7507_v51  ;;  %5964 = vrsqrt.f32 %v4590_v42  ;;  %v4198_v28 = vmul.f32 0.0078125, %v4113_v24 }
 0x49b   : > { %v4515_v13 = vmul.f32 0.0078125, %v4388_v46  ;;  %4952 = vst [vmem:[%s7812_s17 + $0x48] sm:$0xff] %v4880_v18  ;;  %v4341_v5 = vmul.f32 %v7877_v2, %v7877_v2  ;;  %v8356_v46 = vld [vmem:[#allocation19_spill] sm:$0xff] }
 0x49c   : > { %v5957_v11 = vpop.eup %5956  ;;  %v4807_v61 = vmul.f32 %v7789_v7, %v4729_v26  ;;  %v7886_v54 = vsub.f32 %v7554_v39, %v4198_v28 }
 0x49d   : > { %v4587_v59 = vadd.f32 1e-05, %v4515_v13  ;;  %v5959_v12 = vpop.eup %5958  ;;  %v4730_v23 = vmul.f32 %v5957_v11, %v7514_v41  ;;  %4471 = vadd.xlane.f32.xlu0 %v4341_v5  ;;  %v4390_v51 = vpop.xlane.xlu1 %4389  ;;  %v8357_v11 = vld [vmem:[#allocation20_spill] sm:$0xff] }
 0x49e   : > { %v4107_v60 = vpop.xlane.xlu0 %4106  ;;  %v4885_v45 = vadd.f32 %v7800_v4, %v4807_v61  ;;  %v4727_v20 = vmul.f32 %v5959_v12, %v7519_v17  ;;  %v4516_v1 = vmul.f32 0.0078125, %v4390_v51  ;;  %v4342_v39 = vmul.f32 %v7886_v54, %v7886_v54 }
 0x49f   : > { %5966 = vrsqrt.f32 %v4587_v59  ;;  %v4808_v34 = vmul.f32 %v7789_v7, %v4730_v23  ;;  %v4195_v37 = vmul.f32 0.0078125, %v4107_v60 }
 0x4a0   : > { %v5961_v42 = vpop.eup %5960  ;;  %4957 = vst [vmem:[%s7812_s17 + $0x70] sm:$0xff] %v4885_v45  ;;  %v4805_v41 = vmul.f32 %v7789_v7, %v4727_v20  ;;  %v4588_v29 = vadd.f32 1e-05, %v4516_v1  ;;  %4473 = vadd.xlane.f32.xlu1 %v4342_v39  ;;  %v8358_v1 = vld [vmem:[#allocation21_spill] sm:$0xff] }
 0x4a1   : > { %v5963_v18 = vpop.eup %5962  ;;  %v4886_v24 = vadd.f32 %v7800_v4, %v4808_v34  ;;  %v4728_v17 = vmul.f32 %v5961_v42, %v8356_v46  ;;  %v7899_v26 = vsub.f32 %v7565_v25, %v4195_v37  ;;  %v4109_v28 = vpop.xlane.xlu1 %4108 }
 0x4a2   : > { %v4400_v13 = vpop.xlane.xlu0 %4399  ;;  %v4883_v5 = vadd.f32 %v7800_v4, %v4805_v41  ;;  %v4733_v61 = vmul.f32 %v5963_v18, %v8357_v11  ;;  %5968 = vrsqrt.f32 %v4588_v29  ;;  %v4196_v59 = vmul.f32 0.0078125, %v4109_v28 }
 0x4a3   : > { %4958 = vst [vmem:[%s7812_s17 + $0x78] sm:$0xff] %v4886_v24  ;;  %v4806_v12 = vmul.f32 %v7789_v7, %v4728_v17  ;;  %v4521_v23 = vmul.f32 0.0078125, %v4400_v13  ;;  %v4339_v51 = vmul.f32 %v7899_v26, %v7899_v26 }
 0x4a4   : > { %v5965_v60 = vpop.eup %5964  ;;  %4955 = vst [vmem:[%s7812_s17 + $0x60] sm:$0xff] %v4883_v5  ;;  %v4811_v25 = vmul.f32 %v7789_v7, %v4733_v61  ;;  %v7910_v45 = vsub.f32 %v7574_v43, %v4196_v59  ;;  %v8359_v5 = vld [vmem:[#allocation22_spill] sm:$0xff] }
 0x4a5   : > { %v4884_v20 = vadd.f32 %v7800_v4, %v4806_v12  ;;  %v4734_v34 = vmul.f32 %v5965_v60, %v8358_v1  ;;  %v4593_v37 = vadd.f32 1e-05, %v4521_v23  ;;  %4467 = vadd.xlane.f32.xlu0 %v4339_v51  ;;  %v4402_v39 = vpop.xlane.xlu1 %4401 }
 0x4a6   : > { %v4396_v42 = vpop.xlane.xlu0 %4395  ;;  %v4889_v41 = vadd.f32 %v7800_v4, %v4811_v25  ;;  %v4522_v29 = vmul.f32 0.0078125, %v4402_v39  ;;  %v4340_v24 = vmul.f32 %v7910_v45, %v7910_v45 }
 0x4a7   : > { %v4519_v18 = vmul.f32 0.0078125, %v4396_v42  ;;  %4956 = vst [vmem:[%s7812_s17 + $0x68] sm:$0xff] %v4884_v20  ;;  %v4812_v43 = vmul.f32 %v7789_v7, %v4734_v34  ;;  %5970 = vrsqrt.f32 %v4593_v37 }
 0x4a8   : > { %4961 = vst [vmem:[%s7812_s17 + $0x90] sm:$0xff] %v4889_v41  ;;  %v4594_v17 = vadd.f32 1e-05, %v4522_v29  ;;  %4469 = vadd.xlane.f32.xlu1 %v4340_v24 }
 0x4a9   : > { %v5967_v46 = vpop.eup %5966  ;;  %v4591_v28 = vadd.f32 1e-05, %v4519_v18  ;;  %v4890_v13 = vadd.f32 %v7800_v4, %v4812_v43  ;;  %v4398_v61 = vpop.xlane.xlu1 %4397 }
 0x4aa   : > { %v4731_v11 = vmul.f32 %v5967_v46, %v8359_v5  ;;  %v4119_v59 = vpop.xlane.xlu0 %4118  ;;  %5972 = vrsqrt.f32 %v4594_v17  ;;  %v4520_v12 = vmul.f32 0.0078125, %v4398_v61 }
 0x4ab   : > { %v4201_v23 = vmul.f32 0.0078125, %v4119_v59  ;;  %4962 = vst [vmem:[%s7812_s17 + $0x98] sm:$0xff] %v4890_v13  ;;  %5974 = vrsqrt.f32 %v4591_v28  ;;  %v8360_v28 = vld [vmem:[#allocation23_spill] sm:$0xff] }
 0x4ac   : > { %v4809_v51 = vmul.f32 %v7789_v7, %v4731_v11  ;;  %v5969_v60 = vpop.eup %5968  ;;  %v4592_v25 = vadd.f32 1e-05, %v4520_v12 }
 0x4ad   : > { %v7925_v20 = vsub.f32 %v7598_v57, %v4201_v23  ;;  %v4732_v34 = vmul.f32 %v5969_v60, %v7559_v6  ;;  %v4121_v37 = vpop.xlane.xlu1 %4120  ;;  %v8361_v60 = vld [vmem:[#allocation24_spill] sm:$0xff] }
 0x4ae   : > { %v4887_v1 = vadd.f32 %v7800_v4, %v4809_v51  ;;  %v4115_v39 = vpop.xlane.xlu0 %4114  ;;  %5976 = vrsqrt.f32 %v4592_v25  ;;  %v4202_v42 = vmul.f32 0.0078125, %v4121_v37 }
 0x4af   : > { %v4199_v41 = vmul.f32 0.0078125, %v4115_v39  ;;  %v4345_v29 = vmul.f32 %v7925_v20, %v7925_v20  ;;  %v4810_v18 = vmul.f32 %v7789_v7, %v4732_v34  ;;  %v8362_v39 = vld [vmem:[#allocation25_spill] sm:$0xff] }
 0x4b0   : > { %4959 = vst [vmem:[%s7812_s17 + $0x80] sm:$0xff] %v4887_v1  ;;  %v7934_v24 = vsub.f32 %v7607_v55, %v4202_v42 }
 0x4b1   : > { %v7937_v57 = vsub.f32 %v7604_v63, %v4199_v41  ;;  %4479 = vadd.xlane.f32.xlu0 %v4345_v29  ;;  %v5971_v6 = vpop.eup %5970  ;;  %v4888_v43 = vadd.f32 %v7800_v4, %v4810_v18  ;;  %v4117_v46 = vpop.xlane.xlu1 %4116 }
 0x4b2   : > { %v4408_v17 = vpop.xlane.xlu0 %4407  ;;  %v4737_v13 = vmul.f32 %v5971_v6, %v8360_v28  ;;  %v4200_v5 = vmul.f32 0.0078125, %v4117_v46  ;;  %v4346_v61 = vmul.f32 %v7934_v24, %v7934_v24  ;;  %v8363_v28 = vld [vmem:[#allocation26_spill] sm:$0xff] }
 0x4b3   : > { %v4525_v11 = vmul.f32 0.0078125, %v4408_v17  ;;  %4960 = vst [vmem:[%s7812_s17 + $0x88] sm:$0xff] %v4888_v43  ;;  %v4343_v55 = vmul.f32 %v7937_v57, %v7937_v57 }
 0x4b4   : > { %v5973_v59 = vpop.eup %5972  ;;  %v4815_v63 = vmul.f32 %v7789_v7, %v4737_v13  ;;  %v7948_v12 = vsub.f32 %v7615_v47, %v4200_v5  ;;  %4481 = vadd.xlane.f32.xlu1 %v4346_v61 }
 0x4b5   : > { %v4597_v23 = vadd.f32 1e-05, %v4525_v11  ;;  %v5975_v51 = vpop.eup %5974  ;;  %v4738_v25 = vmul.f32 %v5973_v59, %v8361_v60  ;;  %4475 = vadd.xlane.f32.xlu0 %v4343_v55  ;;  %v4410_v1 = vpop.xlane.xlu1 %4409 }
 0x4b6   : > { %v4404_v34 = vpop.xlane.xlu0 %4403  ;;  %v4893_v37 = vadd.f32 %v7800_v4, %v4815_v63  ;;  %v4735_v42 = vmul.f32 %v5975_v51, %v8362_v39  ;;  %v4526_v41 = vmul.f32 0.0078125, %v4410_v1  ;;  %v4344_v47 = vmul.f32 %v7948_v12, %v7948_v12 }
 0x4b7   : > { %5978 = vrsqrt.f32 %v4597_v23  ;;  %v4816_v29 = vmul.f32 %v7789_v7, %v4738_v25  ;;  %v4523_v18 = vmul.f32 0.0078125, %v4404_v34 }
 0x4b8   : > { %v5977_v6 = vpop.eup %5976  ;;  %4965 = vst [vmem:[%s7812_s17 + $0xb0] sm:$0xff] %v4893_v37  ;;  %v4813_v43 = vmul.f32 %v7789_v7, %v4735_v42  ;;  %v4598_v46 = vadd.f32 1e-05, %v4526_v41  ;;  %4477 = vadd.xlane.f32.xlu1 %v4344_v47 }
 0x4b9   : > { %v4894_v17 = vadd.f32 %v7800_v4, %v4816_v29  ;;  %v4736_v13 = vmul.f32 %v5977_v6, %v8363_v28  ;;  %v4595_v5 = vadd.f32 1e-05, %v4523_v18  ;;  %v4406_v11 = vpop.xlane.xlu1 %4405 }
 0x4ba   : > { %v4127_v61 = vpop.xlane.xlu0 %4126  ;;  %v4891_v55 = vadd.f32 %v7800_v4, %v4813_v43  ;;  %5980 = vrsqrt.f32 %v4598_v46  ;;  %v4524_v59 = vmul.f32 0.0078125, %v4406_v11 }
 0x4bb   : > { %v4205_v63 = vmul.f32 0.0078125, %v4127_v61  ;;  %4966 = vst [vmem:[%s7812_s17 + $0xb8] sm:$0xff] %v4894_v17  ;;  %v4814_v23 = vmul.f32 %v7789_v7, %v4736_v13  ;;  %5982 = vrsqrt.f32 %v4595_v5  ;;  %v8364_v61 = vld [vmem:[#allocation27_spill] sm:$0xff] }
 0x4bc   : > { %4963 = vst [vmem:[%s7812_s17 + $0xa0] sm:$0xff] %v4891_v55  ;;  %v4596_v51 = vadd.f32 1e-05, %v4524_v59 }
 0x4bd   : > { %v7965_v60 = vsub.f32 %v7639_v14, %v4205_v63  ;;  %v4892_v25 = vadd.f32 %v7800_v4, %v4814_v23  ;;  %v4129_v1 = vpop.xlane.xlu1 %4128  ;;  %v8365_v23 = vld [vmem:[#allocation28_spill] sm:$0xff] }
 0x4be   : > { %v4123_v34 = vpop.xlane.xlu0 %4122  ;;  %5984 = vrsqrt.f32 %v4596_v51  ;;  %v4206_v37 = vmul.f32 0.0078125, %v4129_v1 }
 0x4bf   : > { %v4203_v39 = vmul.f32 0.0078125, %v4123_v34  ;;  %v4349_v42 = vmul.f32 %v7965_v60, %v7965_v60  ;;  %4964 = vst [vmem:[%s7812_s17 + $0xa8] sm:$0xff] %v4892_v25 }
 0x4c0   : > { %v7972_v29 = vsub.f32 %v7647_v0, %v4206_v37 }
 0x4c1   : > { %v5979_v41 = vpop.eup %5978  ;;  %v7975_v18 = vsub.f32 %v7650_v3, %v4203_v39  ;;  %4487 = vadd.xlane.f32.xlu0 %v4349_v42  ;;  %v4125_v47 = vpop.xlane.xlu1 %4124 }
 0x4c2   : > { %v4741_v14 = vmul.f32 %v5979_v41, %v7610_v49  ;;  %v4416_v6 = vpop.xlane.xlu0 %4415  ;;  %v4204_v43 = vmul.f32 0.0078125, %v4125_v47  ;;  %v4350_v17 = vmul.f32 %v7972_v29, %v7972_v29  ;;  %v8366_v47 = vld [vmem:[#allocation29_spill] sm:$0xff] }
 0x4c3   : > { %v4529_v46 = vmul.f32 0.0078125, %v4416_v6  ;;  %v4347_v28 = vmul.f32 %v7975_v18, %v7975_v18 }
 0x4c4   : > { %v4819_v0 = vmul.f32 %v7789_v7, %v4741_v14  ;;  %v5981_v13 = vpop.eup %5980  ;;  %v7984_v3 = vsub.f32 %v7660_v50, %v4204_v43  ;;  %4489 = vadd.xlane.f32.xlu1 %v4350_v17 }
 0x4c5   : > { %v4601_v5 = vadd.f32 1e-05, %v4529_v46  ;;  %4483 = vadd.xlane.f32.xlu0 %v4347_v28  ;;  %v5983_v49 = vpop.eup %5982  ;;  %v4742_v55 = vmul.f32 %v5981_v13, %v8364_v61  ;;  %v4418_v59 = vpop.xlane.xlu1 %4417 }
 0x4c6   : > { %v4897_v11 = vadd.f32 %v7800_v4, %v4819_v0  ;;  %v4412_v63 = vpop.xlane.xlu0 %4411  ;;  %v4739_v51 = vmul.f32 %v5983_v49, %v8365_v23  ;;  %v4530_v25 = vmul.f32 0.0078125, %v4418_v59  ;;  %v4348_v34 = vmul.f32 %v7984_v3, %v7984_v3 }
 0x4c7   : > { %5986 = vrsqrt.f32 %v4601_v5  ;;  %v4527_v1 = vmul.f32 0.0078125, %v4412_v63  ;;  %v4820_v50 = vmul.f32 %v7789_v7, %v4742_v55 }
 0x4c8   : > { %4969 = vst [vmem:[%s7812_s17 + $0xd0] sm:$0xff] %v4897_v11  ;;  %v5985_v37 = vpop.eup %5984  ;;  %v4817_v39 = vmul.f32 %v7789_v7, %v4739_v51  ;;  %v4602_v42 = vadd.f32 1e-05, %v4530_v25  ;;  %4485 = vadd.xlane.f32.xlu1 %v4348_v34 }
 0x4c9   : > { %v4599_v41 = vadd.f32 1e-05, %v4527_v1  ;;  %v4898_v14 = vadd.f32 %v7800_v4, %v4820_v50  ;;  %v4740_v6 = vmul.f32 %v5985_v37, %v8366_v47  ;;  %v4414_v43 = vpop.xlane.xlu1 %4413 }
 0x4ca   : > { %v4135_v46 = vpop.xlane.xlu0 %4134  ;;  %v4895_v17 = vadd.f32 %v7800_v4, %v4817_v39  ;;  %5988 = vrsqrt.f32 %v4602_v42  ;;  %v4528_v28 = vmul.f32 0.0078125, %v4414_v43 }
 0x4cb   : > { %4970 = vst [vmem:[%s7812_s17 + $0xd8] sm:$0xff] %v4898_v14  ;;  %v4818_v0 = vmul.f32 %v7789_v7, %v4740_v6  ;;  %5990 = vrsqrt.f32 %v4599_v41  ;;  %v4209_v49 = vmul.f32 0.0078125, %v4135_v46 }
 0x4cc   : > { %4967 = vst [vmem:[%s7812_s17 + $0xc0] sm:$0xff] %v4895_v17  ;;  %v4600_v13 = vadd.f32 1e-05, %v4528_v28  ;;  %v8367_v17 = vld [vmem:[#allocation30_spill] sm:$0xff] }
 0x4cd   : > { %v4896_v5 = vadd.f32 %v7800_v4, %v4818_v0  ;;  %v4137_v11 = vpop.xlane.xlu1 %4136  ;;  %v8007_v51 = vsub.f32 %v7675_v53, %v4209_v49 }
 0x4ce   : > { %v4131_v61 = vpop.xlane.xlu0 %4130  ;;  %5992 = vrsqrt.f32 %v4600_v13  ;;  %v4210_v42 = vmul.f32 0.0078125, %v4137_v11 }
 0x4cf   : > { %v4207_v55 = vmul.f32 0.0078125, %v4131_v61  ;;  %4968 = vst [vmem:[%s7812_s17 + $0xc8] sm:$0xff] %v4896_v5  ;;  %v4353_v46 = vmul.f32 %v8007_v51, %v8007_v51 }
 0x4d0   : > { %v8023_v5 = vsub.f32 %v7689_v38, %v4210_v42 }
 0x4d1   : > { %v5987_v59 = vpop.eup %5986  ;;  %v8003_v63 = vsub.f32 %v7686_v48, %v4207_v55  ;;  %v4133_v25 = vpop.xlane.xlu1 %4132 }
 0x4d2   : > { %v4745_v23 = vmul.f32 %v5987_v59, %v7643_v52  ;;  %v4424_v1 = vpop.xlane.xlu0 %4423  ;;  %v4208_v50 = vmul.f32 0.0078125, %v4133_v25  ;;  %v4354_v42 = vmul.f32 %v8023_v5, %v8023_v5 }
 0x4d3   : > { %v4533_v34 = vmul.f32 0.0078125, %v4424_v1  ;;  %v4351_v37 = vmul.f32 %v8003_v63, %v8003_v63 }
 0x4d4   : > { %v4823_v39 = vmul.f32 %v7789_v7, %v4745_v23  ;;  %v5989_v41 = vpop.eup %5988  ;;  %v8013_v48 = vsub.f32 %v7698_v36, %v4208_v50  ;;  %v8368_v23 = vld [vmem:[#allocation31_spill] sm:$0xff] }
 0x4d5   : > { %v4605_v14 = vadd.f32 1e-05, %v4533_v34  ;;  %4491 = vadd.xlane.f32.xlu0 %v4351_v37  ;;  %v5991_v52 = vpop.eup %5990  ;;  %v4746_v47 = vmul.f32 %v5989_v41, %v7663_v27  ;;  %v4426_v6 = vpop.xlane.xlu1 %4425 }
 0x4d6   : > { %v4901_v53 = vadd.f32 %v7800_v4, %v4823_v39  ;;  %v4420_v43 = vpop.xlane.xlu0 %4419  ;;  %v4743_v28 = vmul.f32 %v5991_v52, %v8367_v17  ;;  %v4534_v0 = vmul.f32 0.0078125, %v4426_v6  ;;  %v4352_v27 = vmul.f32 %v8013_v48, %v8013_v48 }
 0x4d7   : > { %5994 = vrsqrt.f32 %v4605_v14  ;;  %v4531_v13 = vmul.f32 0.0078125, %v4420_v43  ;;  %v4824_v36 = vmul.f32 %v7789_v7, %v4746_v47 }
 0x4d8   : > { %4973 = vst [vmem:[%s7812_s17 + $0xf0] sm:$0xff] %v4901_v53  ;;  %v5993_v49 = vpop.eup %5992  ;;  %v4821_v11 = vmul.f32 %v7789_v7, %v4743_v28  ;;  %v4606_v61 = vadd.f32 1e-05, %v4534_v0  ;;  %4493 = vadd.xlane.f32.xlu1 %v4352_v27 }
 0x4d9   : > { %v4603_v55 = vadd.f32 1e-05, %v4531_v13  ;;  %4495 = vadd.xlane.f32.xlu0 %v4353_v46  ;;  %v4902_v59 = vadd.f32 %v7800_v4, %v4824_v36  ;;  %v4744_v25 = vmul.f32 %v5993_v49, %v8368_v23  ;;  %v4422_v1 = vpop.xlane.xlu1 %4421 }
 0x4da   : > { %v4432_v50 = vpop.xlane.xlu0 %4431  ;;  %v4899_v38 = vadd.f32 %v7800_v4, %v4821_v11  ;;  %5996 = vrsqrt.f32 %v4606_v61  ;;  %v4532_v34 = vmul.f32 0.0078125, %v4422_v1 }
 0x4db   : > { %v4537_v37 = vmul.f32 0.0078125, %v4432_v50  ;;  %4974 = vst [vmem:[%s7812_s17 + $0xf8] sm:$0xff] %v4902_v59  ;;  %v4822_v39 = vmul.f32 %v7789_v7, %v4744_v25  ;;  %5998 = vrsqrt.f32 %v4603_v55 }
 0x4dc   : > { %4971 = vst [vmem:[%s7812_s17 + $0xe0] sm:$0xff] %v4899_v38  ;;  %v4604_v41 = vadd.f32 1e-05, %v4532_v34  ;;  %4497 = vadd.xlane.f32.xlu1 %v4354_v42 }
 0x4dd   : > { %v4609_v14 = vadd.f32 1e-05, %v4537_v37  ;;  %v4900_v52 = vadd.f32 %v7800_v4, %v4822_v39  ;;  %v4434_v53 = vpop.xlane.xlu1 %4433 }
 0x4de   : > { %v4428_v47 = vpop.xlane.xlu0 %4427  ;;  %6000 = vrsqrt.f32 %v4604_v41  ;;  %v4538_v6 = vmul.f32 0.0078125, %v4434_v53 }
 0x4df   : > { %v4535_v43 = vmul.f32 0.0078125, %v4428_v47  ;;  %4972 = vst [vmem:[%s7812_s17 + $0xe8] sm:$0xff] %v4900_v52  ;;  %6002 = vrsqrt.f32 %v4609_v14 }
 0x4e0   : > { %v4610_v17 = vadd.f32 1e-05, %v4538_v6 }
 0x4e1   : > { %v5995_v46 = vpop.eup %5994  ;;  %v4607_v28 = vadd.f32 1e-05, %v4535_v43  ;;  %v4430_v13 = vpop.xlane.xlu1 %4429 }
 0x4e2   : > { %v4749_v0 = vmul.f32 %v5995_v46, %v7683_v15  ;;  %v4440_v36 = vpop.xlane.xlu0 %4439  ;;  %6004 = vrsqrt.f32 %v4610_v17  ;;  %v4536_v27 = vmul.f32 0.0078125, %v4430_v13 }
 0x4e3   : > { %v4541_v49 = vmul.f32 0.0078125, %v4440_v36  ;;  %6006 = vrsqrt.f32 %v4607_v28 }
 0x4e4   : > { %v4827_v11 = vmul.f32 %v7789_v7, %v4749_v0  ;;  %v5997_v61 = vpop.eup %5996  ;;  %v4608_v55 = vadd.f32 1e-05, %v4536_v27 }
 0x4e5   : > { %v4613_v59 = vadd.f32 1e-05, %v4541_v49  ;;  %v5999_v23 = vpop.eup %5998  ;;  %v4750_v1 = vmul.f32 %v5997_v61, %v7695_v32  ;;  %v4442_v50 = vpop.xlane.xlu1 %4441 }
 0x4e6   : > { %v4905_v25 = vadd.f32 %v7800_v4, %v4827_v11  ;;  %v4436_v38 = vpop.xlane.xlu0 %4435  ;;  %v4747_v15 = vmul.f32 %v5999_v23, %v7701_v44  ;;  %6008 = vrsqrt.f32 %v4608_v55  ;;  %v4542_v34 = vmul.f32 0.0078125, %v4442_v50 }
 0x4e7   : > { %v4539_v37 = vmul.f32 0.0078125, %v4436_v38  ;;  %v4828_v39 = vmul.f32 %v7789_v7, %v4750_v1  ;;  %6010 = vrsqrt.f32 %v4613_v59 }
 0x4e8   : > { %4977 = vst [vmem:[%s7812_s17 + $0x110] sm:$0xff] %v4905_v25  ;;  %v6001_v42 = vpop.eup %6000  ;;  %v4825_v41 = vmul.f32 %v7789_v7, %v4747_v15  ;;  %v4614_v14 = vadd.f32 1e-05, %v4542_v34 }
 0x4e9   : > { %v4611_v52 = vadd.f32 1e-05, %v4539_v37  ;;  %v6003_v53 = vpop.eup %6002  ;;  %v4906_v32 = vadd.f32 %v7800_v4, %v4828_v39  ;;  %v4748_v47 = vmul.f32 %v6001_v42, %v7707_v56  ;;  %v4438_v44 = vpop.xlane.xlu1 %4437 }
 0x4ea   : > { %v4448_v6 = vpop.xlane.xlu0 %4447  ;;  %v4903_v43 = vadd.f32 %v7800_v4, %v4825_v41  ;;  %v4753_v46 = vmul.f32 %v6003_v53, %v7710_v62  ;;  %6012 = vrsqrt.f32 %v4614_v14  ;;  %v4540_v17 = vmul.f32 0.0078125, %v4438_v44 }
 0x4eb   : > { %4978 = vst [vmem:[%s7812_s17 + $0x118] sm:$0xff] %v4906_v32  ;;  %v4826_v28 = vmul.f32 %v7789_v7, %v4748_v47  ;;  %6014 = vrsqrt.f32 %v4611_v52  ;;  %v4545_v0 = vmul.f32 0.0078125, %v4448_v6 }
 0x4ec   : > { %v6005_v13 = vpop.eup %6004  ;;  %4975 = vst [vmem:[%s7812_s17 + $0x100] sm:$0xff] %v4903_v43  ;;  %v4831_v36 = vmul.f32 %v7789_v7, %v4753_v46  ;;  %v4612_v27 = vadd.f32 1e-05, %v4540_v17 }
 0x4ed   : > { %v6007_v56 = vpop.eup %6006  ;;  %v4904_v49 = vadd.f32 %v7800_v4, %v4826_v28  ;;  %v4754_v11 = vmul.f32 %v6005_v13, %v7717_v10  ;;  %v4617_v62 = vadd.f32 1e-05, %v4545_v0  ;;  %v4450_v61 = vpop.xlane.xlu1 %4449 }
 0x4ee   : > { %v4444_v55 = vpop.xlane.xlu0 %4443  ;;  %v4909_v59 = vadd.f32 %v7800_v4, %v4831_v36  ;;  %v4751_v23 = vmul.f32 %v6007_v56, %v7722_v58  ;;  %6016 = vrsqrt.f32 %v4612_v27  ;;  %v4546_v25 = vmul.f32 0.0078125, %v4450_v61  ;;  %v8088_v61 = vld [vmem:[%s8270_s10] ss:$0 sm:$0xff] }
 0x4ef   : > { %4976 = vst [vmem:[%s7812_s17 + $0x108] sm:$0xff] %v4904_v49  ;;  %v4832_v1 = vmul.f32 %v7789_v7, %v4754_v11  ;;  %6018 = vrsqrt.f32 %v4617_v62  ;;  %v4543_v50 = vmul.f32 0.0078125, %v4444_v55 }
 0x4f0   : > { %v6009_v38 = vpop.eup %6008  ;;  %4981 = vst [vmem:[%s7812_s17 + $0x130] sm:$0xff] %v4909_v59  ;;  %v4829_v10 = vmul.f32 %v7789_v7, %v4751_v23  ;;  %v4618_v15 = vadd.f32 1e-05, %v4546_v25 }
 0x4f1   : > { %v6011_v34 = vpop.eup %6010  ;;  %v4910_v37 = vadd.f32 %v7800_v4, %v4832_v1  ;;  %v4752_v39 = vmul.f32 %v6009_v38, %v7729_v9  ;;  %v4615_v58 = vadd.f32 1e-05, %v4543_v50  ;;  %v4446_v42 = vpop.xlane.xlu1 %4445 }
 0x4f2   : > { %v4907_v41 = vadd.f32 %v7800_v4, %v4829_v10  ;;  %v4757_v14 = vmul.f32 %v6011_v34, %v7732_v19  ;;  %6020 = vrsqrt.f32 %v4618_v15  ;;  %v4544_v52 = vmul.f32 0.0078125, %v4446_v42 }
 0x4f3   : > { %4982 = vst [vmem:[%s7812_s17 + $0x138] sm:$0xff] %v4910_v37  ;;  %v4830_v53 = vmul.f32 %v7789_v7, %v4752_v39  ;;  %6022 = vrsqrt.f32 %v4615_v58  ;;  %v8370_v39 = vld [vmem:[#allocation8_spill] sm:$0xff] }
 0x4f4   : > { %v6013_v32 = vpop.eup %6012  ;;  %4979 = vst [vmem:[%s7812_s17 + $0x120] sm:$0xff] %v4907_v41  ;;  %v4835_v47 = vmul.f32 %v7789_v7, %v4757_v14  ;;  %v4616_v44 = vadd.f32 1e-05, %v4544_v52 }
 0x4f5   : > { %v6015_v9 = vpop.eup %6014  ;;  %v4908_v6 = vadd.f32 %v7800_v4, %v4830_v53  ;;  %v4758_v43 = vmul.f32 %v6013_v32, %v7737_v16 }
 0x4f6   : > { %v4913_v19 = vadd.f32 %v7800_v4, %v4835_v47  ;;  %v4755_v46 = vmul.f32 %v6015_v9, %v7740_v35  ;;  %6024 = vrsqrt.f32 %v4616_v44 }
 0x4f7   : > { %4980 = vst [vmem:[%s7812_s17 + $0x128] sm:$0xff] %v4908_v6  ;;  %v4836_v17 = vmul.f32 %v7789_v7, %v4758_v43  ;;  %v8371_v43 = vld [vmem:[#allocation32_spill] sm:$0xff] }
 0x4f8   : > { %v6017_v28 = vpop.eup %6016  ;;  %4985 = vst [vmem:[%s7812_s17 + $0x150] sm:$0xff] %v4913_v19  ;;  %v4833_v0 = vmul.f32 %v7789_v7, %v4755_v46 }
 0x4f9   : > { %v6019_v13 = vpop.eup %6018  ;;  %v4914_v36 = vadd.f32 %v7800_v4, %v4836_v17  ;;  %v4756_v27 = vmul.f32 %v6017_v28, %v7747_v22  ;;  %v4456_v16 = vpop.xlane.xlu0 %4455 }
 0x4fa   : > { %v4911_v56 = vadd.f32 %v7800_v4, %v4833_v0  ;;  %v4761_v49 = vmul.f32 %v6019_v13, %v7752_v40  ;;  %v4549_v35 = vmul.f32 0.0078125, %v4456_v16  ;;  %v8372_v0 = vld [vmem:[#allocation33_spill] sm:$0xff] }
 0x4fb   : > { %4986 = vst [vmem:[%s7812_s17 + $0x158] sm:$0xff] %v4914_v36  ;;  %v4834_v11 = vmul.f32 %v7789_v7, %v4756_v27  ;;  %v8369_v7 = vld [vmem:[#allocation7_spill] sm:$0xff] }
 0x4fc   : > { %v6021_v62 = vpop.eup %6020  ;;  %4983 = vst [vmem:[%s7812_s17 + $0x140] sm:$0xff] %v4911_v56  ;;  %v4839_v22 = vmul.f32 %v8088_v61, %v4761_v49  ;;  %v4621_v55 = vadd.f32 1e-05, %v4549_v35  ;;  %v8373_v56 = vld [vmem:[#allocation34_spill] sm:$0xff] }
 0x4fd   : > { %v6023_v59 = vpop.eup %6022  ;;  %v4912_v23 = vadd.f32 %v7800_v4, %v4834_v11  ;;  %v4762_v40 = vmul.f32 %v6021_v62, %v7759_v30  ;;  %v4458_v25 = vpop.xlane.xlu1 %4457  ;;  %v8102_v30 = vld [vmem:[%s8271_s11] ss:$0 sm:$0xff] }
 0x4fe   : > { %v4917_v1 = vadd.f32 %v7800_v4, %v4839_v22  ;;  %v4759_v50 = vmul.f32 %v6023_v59, %v8369_v7  ;;  %6026 = vrsqrt.f32 %v4621_v55  ;;  %v4550_v38 = vmul.f32 0.0078125, %v4458_v25 }
 0x4ff   : > { %4984 = vst [vmem:[%s7812_s17 + $0x148] sm:$0xff] %v4912_v23  ;;  %v4840_v10 = vmul.f32 %v8088_v61, %v4762_v40  ;;  %v8374_v23 = vld [vmem:[#allocation9_spill] sm:$0xff] }
 0x500   : > { %v6025_v15 = vpop.eup %6024  ;;  %4989 = vst [vmem:[%s7812_s17 + $0x170] sm:$0xff] %v4917_v1  ;;  %v4837_v34 = vmul.f32 %v8088_v61, %v4759_v50  ;;  %v4622_v37 = vadd.f32 1e-05, %v4550_v38 }
 0x501   : > { %v4918_v4 = vadd.f32 %v8102_v30, %v4840_v10  ;;  %v4760_v58 = vmul.f32 %v6025_v15, %v8370_v39  ;;  %v4452_v42 = vpop.xlane.xlu0 %4451 }
 0x502   : > { %v4915_v41 = vadd.f32 %v8102_v30, %v4837_v34  ;;  %6028 = vrsqrt.f32 %v4622_v37  ;;  %v4547_v14 = vmul.f32 0.0078125, %v4452_v42 }
 0x503   : > { %4990 = vst [vmem:[%s7812_s17 + $0x178] sm:$0xff] %v4918_v4  ;;  %v4838_v52 = vmul.f32 %v8088_v61, %v4760_v58 }
 0x504   : > { %4987 = vst [vmem:[%s7812_s17 + $0x160] sm:$0xff] %v4915_v41  ;;  %v4619_v53 = vadd.f32 1e-05, %v4547_v14 }
 0x505   : > { %v4916_v32 = vadd.f32 %v8102_v30, %v4838_v52  ;;  %v4454_v47 = vpop.xlane.xlu1 %4453 }
 0x506   : > { %6030 = vrsqrt.f32 %v4619_v53  ;;  %v4548_v44 = vmul.f32 0.0078125, %v4454_v47 }
 0x507   : > { %4988 = vst [vmem:[%s7812_s17 + $0x168] sm:$0xff] %v4916_v32 }
 0x508   : > { %v6027_v9 = vpop.eup %6026  ;;  %v4620_v6 = vadd.f32 1e-05, %v4548_v44 }
 0x509   : > { %v4765_v19 = vmul.f32 %v6027_v9, %v8371_v43 }
 0x50a   : > { %6032 = vrsqrt.f32 %v4620_v6 }
 0x50b   : > { %v4843_v46 = vmul.f32 %v8088_v61, %v4765_v19 }
 0x50c   : > { %v6029_v17 = vpop.eup %6028 }
 0x50d   : > { %v4921_v28 = vadd.f32 %v8102_v30, %v4843_v46  ;;  %v4766_v13 = vmul.f32 %v6029_v17, %v8372_v0 }
 0x50f   : > { %4993 = vst [vmem:[%s7812_s17 + $0x190] sm:$0xff] %v4921_v28  ;;  %v4844_v36 = vmul.f32 %v8088_v61, %v4766_v13 }
 0x510   : > { %v6031_v27 = vpop.eup %6030 }
 0x511   : > { %v4922_v16 = vadd.f32 %v8102_v30, %v4844_v36  ;;  %v4763_v49 = vmul.f32 %v6031_v27, %v8373_v56  ;;  %v4464_v35 = vpop.xlane.xlu0 %4463 }
 0x512   : > { %v4553_v11 = vmul.f32 0.0078125, %v4464_v35 }
 0x513   : > { %4994 = vst [vmem:[%s7812_s17 + $0x198] sm:$0xff] %v4922_v16  ;;  %v4841_v62 = vmul.f32 %v8088_v61, %v4763_v49 }
 0x514   : > { %v6033_v22 = vpop.eup %6032  ;;  %v4625_v55 = vadd.f32 1e-05, %v4553_v11 }
 0x515   : > { %v4919_v59 = vadd.f32 %v8102_v30, %v4841_v62  ;;  %v4764_v40 = vmul.f32 %v6033_v22, %v8374_v23  ;;  %v4466_v25 = vpop.xlane.xlu1 %4465 }
 0x516   : > { %6034 = vrsqrt.f32 %v4625_v55  ;;  %v4554_v7 = vmul.f32 0.0078125, %v4466_v25 }
 0x517   : > { %4991 = vst [vmem:[%s7812_s17 + $0x180] sm:$0xff] %v4919_v59  ;;  %v4842_v1 = vmul.f32 %v8088_v61, %v4764_v40 }
 0x518   : > { %v4626_v38 = vadd.f32 1e-05, %v4554_v7 }
 0x519   : > { %v4920_v50 = vadd.f32 %v8102_v30, %v4842_v1 }
 0x51a   : > { %v4460_v10 = vpop.xlane.xlu0 %4459  ;;  %6036 = vrsqrt.f32 %v4626_v38 }
 0x51b   : > { %4992 = vst [vmem:[%s7812_s17 + $0x188] sm:$0xff] %v4920_v50  ;;  %v4551_v15 = vmul.f32 0.0078125, %v4460_v10 }
 0x51d   : > { %v4623_v34 = vadd.f32 1e-05, %v4551_v15  ;;  %v4462_v37 = vpop.xlane.xlu1 %4461 }
 0x51e   : > { %v4552_v4 = vmul.f32 0.0078125, %v4462_v37 }
 0x51f   : > { %6038 = vrsqrt.f32 %v4623_v34 }
 0x520   : > { %v6035_v39 = vpop.eup %6034  ;;  %v4624_v58 = vadd.f32 1e-05, %v4552_v4 }
 0x521   : > { %v4769_v42 = vmul.f32 %v6035_v39, %v7825_v8 }
 0x522   : > { %6040 = vrsqrt.f32 %v4624_v58 }
 0x523   : > { %v4847_v41 = vmul.f32 %v8088_v61, %v4769_v42 }
 0x524   : > { %v6037_v14 = vpop.eup %6036 }
 0x525   : > { %v4925_v52 = vadd.f32 %v8102_v30, %v4847_v41  ;;  %v4770_v53 = vmul.f32 %v6037_v14, %v7834_v33 }
 0x527   : > { %4997 = vst [vmem:[%s7812_s17 + $0x1b0] sm:$0xff] %v4925_v52  ;;  %v4848_v32 = vmul.f32 %v8088_v61, %v4770_v53 }
 0x529   : > { %v6039_v47 = vpop.eup %6038  ;;  %v4926_v44 = vadd.f32 %v8102_v30, %v4848_v32 }
 0x52a   : > { %v4767_v9 = vmul.f32 %v6039_v47, %v7845_v31  ;;  %v4472_v6 = vpop.xlane.xlu0 %4471 }
 0x52b   : > { %v4557_v8 = vmul.f32 0.0078125, %v4472_v6  ;;  %4998 = vst [vmem:[%s7812_s17 + $0x1b8] sm:$0xff] %v4926_v44 }
 0x52c   : > { %v6041_v43 = vpop.eup %6040  ;;  %v4845_v19 = vmul.f32 %v8088_v61, %v4767_v9 }
 0x52d   : > { %v4768_v46 = vmul.f32 %v6041_v43, %v7858_v21  ;;  %v4629_v17 = vadd.f32 1e-05, %v4557_v8  ;;  %v4474_v28 = vpop.xlane.xlu1 %4473 }
 0x52e   : > { %v4923_v33 = vadd.f32 %v8102_v30, %v4845_v19  ;;  %v4558_v13 = vmul.f32 0.0078125, %v4474_v28 }
 0x52f   : > { %v4846_v0 = vmul.f32 %v8088_v61, %v4768_v46  ;;  %6042 = vrsqrt.f32 %v4629_v17 }
 0x530   : > { %4995 = vst [vmem:[%s7812_s17 + $0x1a0] sm:$0xff] %v4923_v33  ;;  %v4630_v36 = vadd.f32 1e-05, %v4558_v13 }
 0x531   : > { %v4924_v31 = vadd.f32 %v8102_v30, %v4846_v0 }
 0x532   : > { %v4468_v27 = vpop.xlane.xlu0 %4467  ;;  %6044 = vrsqrt.f32 %v4630_v36 }
 0x533   : > { %4996 = vst [vmem:[%s7812_s17 + $0x1a8] sm:$0xff] %v4924_v31  ;;  %v4555_v16 = vmul.f32 0.0078125, %v4468_v27 }
 0x535   : > { %v4627_v56 = vadd.f32 1e-05, %v4555_v16  ;;  %v4470_v49 = vpop.xlane.xlu1 %4469 }
 0x536   : > { %v4556_v21 = vmul.f32 0.0078125, %v4470_v49 }
 0x537   : > { %6046 = vrsqrt.f32 %v4627_v56 }
 0x538   : > { %v4628_v35 = vadd.f32 1e-05, %v4556_v21 }
 0x539   : > { %v6043_v11 = vpop.eup %6042 }
 0x53a   : > { %v4773_v62 = vmul.f32 %v6043_v11, %v7877_v2  ;;  %6048 = vrsqrt.f32 %v4628_v35 }
 0x53c   : > { %v4851_v22 = vmul.f32 %v8088_v61, %v4773_v62  ;;  %v6045_v55 = vpop.eup %6044 }
 0x53d   : > { %v4774_v40 = vmul.f32 %v6045_v55, %v7886_v54 }
 0x53e   : > { %v4480_v59 = vpop.xlane.xlu0 %4479  ;;  %v4929_v23 = vadd.f32 %v8102_v30, %v4851_v22 }
 0x53f   : > { %v4561_v25 = vmul.f32 0.0078125, %v4480_v59  ;;  %v4852_v1 = vmul.f32 %v8088_v61, %v4774_v40 }
 0x540   : > { %5001 = vst [vmem:[%s7812_s17 + $0x1d0] sm:$0xff] %v4929_v23 }
 0x541   : > { %v4633_v7 = vadd.f32 1e-05, %v4561_v25  ;;  %v6047_v50 = vpop.eup %6046  ;;  %v4482_v38 = vpop.xlane.xlu1 %4481  ;;  %v4930_v10 = vadd.f32 %v8102_v30, %v4852_v1 }
 0x542   : > { %v4771_v2 = vmul.f32 %v6047_v50, %v7899_v26  ;;  %v4562_v15 = vmul.f32 0.0078125, %v4482_v38  ;;  %v4476_v34 = vpop.xlane.xlu0 %4475 }
 0x543   : > { %6050 = vrsqrt.f32 %v4633_v7  ;;  %v4559_v37 = vmul.f32 0.0078125, %v4476_v34  ;;  %5002 = vst [vmem:[%s7812_s17 + $0x1d8] sm:$0xff] %v4930_v10 }
 0x544   : > { %v6049_v4 = vpop.eup %6048  ;;  %v4849_v54 = vmul.f32 %v8088_v61, %v4771_v2  ;;  %v4634_v39 = vadd.f32 1e-05, %v4562_v15 }
 0x545   : > { %v4772_v58 = vmul.f32 %v6049_v4, %v7910_v45  ;;  %v4631_v42 = vadd.f32 1e-05, %v4559_v37  ;;  %v4478_v14 = vpop.xlane.xlu1 %4477 }
 0x546   : > { %v4927_v41 = vadd.f32 %v8102_v30, %v4849_v54  ;;  %6052 = vrsqrt.f32 %v4634_v39  ;;  %v4560_v52 = vmul.f32 0.0078125, %v4478_v14 }
 0x547   : > { %v4850_v26 = vmul.f32 %v8088_v61, %v4772_v58  ;;  %6054 = vrsqrt.f32 %v4631_v42 }
 0x548   : > { %4999 = vst [vmem:[%s7812_s17 + $0x1c0] sm:$0xff] %v4927_v41  ;;  %v4632_v32 = vadd.f32 1e-05, %v4560_v52 }
 0x549   : > { %v4928_v53 = vadd.f32 %v8102_v30, %v4850_v26 }
 0x54a   : > { %6056 = vrsqrt.f32 %v4632_v32 }
 0x54b   : > { %5000 = vst [vmem:[%s7812_s17 + $0x1c8] sm:$0xff] %v4928_v53 }
 0x54d   : > { %v6051_v47 = vpop.eup %6050 }
 0x54e   : > { %v4777_v44 = vmul.f32 %v6051_v47, %v7925_v20  ;;  %v4488_v45 = vpop.xlane.xlu0 %4487 }
 0x54f   : > { %v4565_v9 = vmul.f32 0.0078125, %v4488_v45 }
 0x550   : > { %v4855_v6 = vmul.f32 %v8088_v61, %v4777_v44  ;;  %v6053_v8 = vpop.eup %6052 }
 0x551   : > { %v4637_v43 = vadd.f32 1e-05, %v4565_v9  ;;  %v6055_v19 = vpop.eup %6054  ;;  %v4778_v17 = vmul.f32 %v6053_v8, %v7934_v24  ;;  %v4490_v33 = vpop.xlane.xlu1 %4489 }
 0x552   : > { %v4933_v46 = vadd.f32 %v8102_v30, %v4855_v6  ;;  %v4484_v28 = vpop.xlane.xlu0 %4483  ;;  %v4775_v0 = vmul.f32 %v6055_v19, %v7937_v57  ;;  %v4566_v13 = vmul.f32 0.0078125, %v4490_v33 }
 0x553   : > { %6058 = vrsqrt.f32 %v4637_v43  ;;  %v4563_v20 = vmul.f32 0.0078125, %v4484_v28  ;;  %v4856_v31 = vmul.f32 %v8088_v61, %v4778_v17 }
 0x554   : > { %5005 = vst [vmem:[%s7812_s17 + $0x1f0] sm:$0xff] %v4933_v46  ;;  %v4853_v36 = vmul.f32 %v8088_v61, %v4775_v0  ;;  %v4638_v27 = vadd.f32 1e-05, %v4566_v13  ;;  %v6057_v56 = vpop.eup %6056 }
 0x555   : > { %v4635_v16 = vadd.f32 1e-05, %v4563_v20  ;;  %v4934_v24 = vadd.f32 %v8102_v30, %v4856_v31  ;;  %v4776_v21 = vmul.f32 %v6057_v56, %v7948_v12  ;;  %v4486_v57 = vpop.xlane.xlu1 %4485 }
 0x556   : > { %v4931_v49 = vadd.f32 %v8102_v30, %v4853_v36  ;;  %6060 = vrsqrt.f32 %v4638_v27  ;;  %v4564_v35 = vmul.f32 0.0078125, %v4486_v57 }
 0x557   : > { %5006 = vst [vmem:[%s7812_s17 + $0x1f8] sm:$0xff] %v4934_v24  ;;  %6062 = vrsqrt.f32 %v4635_v16  ;;  %v4854_v11 = vmul.f32 %v8088_v61, %v4776_v21 }
 0x558   : > { %5003 = vst [vmem:[%s7812_s17 + $0x1e0] sm:$0xff] %v4931_v49  ;;  %v4636_v62 = vadd.f32 1e-05, %v4564_v35 }
 0x559   : > { %v4932_v22 = vadd.f32 %v8102_v30, %v4854_v11 }
 0x55a   : > { %6064 = vrsqrt.f32 %v4636_v62 }
 0x55b   : > { %5004 = vst [vmem:[%s7812_s17 + $0x1e8] sm:$0xff] %v4932_v22 }
 0x55d   : > { %v6059_v55 = vpop.eup %6058 }
 0x55e   : > { %v4781_v59 = vmul.f32 %v6059_v55, %v7965_v60 }
 0x560   : > { %v4859_v23 = vmul.f32 %v8088_v61, %v4781_v59  ;;  %v6061_v12 = vpop.eup %6060 }
 0x561   : > { %v6063_v40 = vpop.eup %6062  ;;  %v4782_v1 = vmul.f32 %v6061_v12, %v7972_v29 }
 0x562   : > { %v4937_v25 = vadd.f32 %v8102_v30, %v4859_v23  ;;  %v4492_v7 = vpop.xlane.xlu0 %4491  ;;  %v4779_v50 = vmul.f32 %v6063_v40, %v7975_v18 }
 0x563   : > { %v4567_v38 = vmul.f32 0.0078125, %v4492_v7  ;;  %v4860_v10 = vmul.f32 %v8088_v61, %v4782_v1 }
 0x564   : > { %5009 = vst [vmem:[%s7812_s17 + $0x210] sm:$0xff] %v4937_v25  ;;  %v4857_v2 = vmul.f32 %v8088_v61, %v4779_v50  ;;  %v6065_v15 = vpop.eup %6064 }
 0x565   : > { %v4639_v60 = vadd.f32 1e-05, %v4567_v38  ;;  %v4938_v34 = vadd.f32 %v8102_v30, %v4860_v10  ;;  %v4780_v29 = vmul.f32 %v6065_v15, %v7984_v3  ;;  %v4494_v54 = vpop.xlane.xlu1 %4493 }
 0x566   : > { %v4496_v37 = vpop.xlane.xlu0 %4495  ;;  %v4935_v4 = vadd.f32 %v8102_v30, %v4857_v2  ;;  %v4568_v39 = vmul.f32 0.0078125, %v4494_v54 }
 0x567   : > { %6066 = vrsqrt.f32 %v4639_v60  ;;  %v4569_v18 = vmul.f32 0.0078125, %v4496_v37  ;;  %5010 = vst [vmem:[%s7812_s17 + $0x218] sm:$0xff] %v4938_v34  ;;  %v4858_v58 = vmul.f32 %v8088_v61, %v4780_v29 }
 0x568   : > { %5007 = vst [vmem:[%s7812_s17 + $0x200] sm:$0xff] %v4935_v4  ;;  %v4640_v41 = vadd.f32 1e-05, %v4568_v39 }
 0x569   : > { %v4641_v42 = vadd.f32 1e-05, %v4569_v18  ;;  %v4936_v14 = vadd.f32 %v8102_v30, %v4858_v58  ;;  %v4498_v26 = vpop.xlane.xlu1 %4497 }
 0x56a   : > { %v4570_v52 = vmul.f32 0.0078125, %v4498_v26 }
 0x56b   : > { %6068 = vrsqrt.f32 %v4641_v42  ;;  %5008 = vst [vmem:[%s7812_s17 + $0x208] sm:$0xff] %v4936_v14 }
 0x56c   : > { %6070 = vrsqrt.f32 %v4640_v41  ;;  %v4642_v3 = vadd.f32 1e-05, %v4570_v52 }
 0x56e   : > { %6072 = vrsqrt.f32 %v4642_v3 }
 0x571   : > { %v6067_v53 = vpop.eup %6066 }
 0x572   : > { %v4783_v32 = vmul.f32 %v6067_v53, %v8003_v63 }
 0x574   : > { %v4861_v47 = vmul.f32 %v8088_v61, %v4783_v32 }
 0x575   : > { %v6069_v44 = vpop.eup %6068 }
 0x576   : > { %v6071_v45 = vpop.eup %6070  ;;  %v4939_v9 = vadd.f32 %v8102_v30, %v4861_v47  ;;  %v4785_v6 = vmul.f32 %v6069_v44, %v8007_v51 }
 0x577   : > { %v4784_v8 = vmul.f32 %v6071_v45, %v8013_v48 }
 0x578   : > { %5011 = vst [vmem:[%s7812_s17 + $0x220] sm:$0xff] %v4939_v9  ;;  %v4863_v43 = vmul.f32 %v8088_v61, %v4785_v6  ;;  %v6073_v63 = vpop.eup %6072 }
 0x579   : > { %v4862_v19 = vmul.f32 %v8088_v61, %v4784_v8  ;;  %v4786_v33 = vmul.f32 %v6073_v63, %v8023_v5 }
 0x57a   : > { %v4941_v46 = vadd.f32 %v8102_v30, %v4863_v43 }
 0x57b   : > { %v4940_v17 = vadd.f32 %v8102_v30, %v4862_v19  ;;  %v4864_v51 = vmul.f32 %v8088_v61, %v4786_v33 }
 0x57c   : > { %5013 = vst [vmem:[%s7812_s17 + $0x230] sm:$0xff] %v4941_v46 }
 0x57d   : > { %5012 = vst [vmem:[%s7812_s17 + $0x228] sm:$0xff] %v4940_v17  ;;  %v4942_v48 = vadd.f32 %v8102_v30, %v4864_v51 }
 0x57f   : > { %5014 = vst [vmem:[%s7812_s17 + $0x238] sm:$0xff] %v4942_v48 }
 0x580   : > { %6164 = shalt.err (!%p6161_p4)
}
 0x581   : > { %s6165_s15 = scalar_lea.hbm %s8211_s0, 9216  ;;  %s6169_s2 = scalar_lea.hbm %s8272_s12, 18432 }
 0x582   : > { %p6166_p7 = scmp.ne.s32.totalorder %s8211_s0, %s6165_s15  ;;  %p6170_p10 = scmp.lt.u32.totalorder %s8211_s0, %s8272_s12 }
 0x583   : > { %p6171_p11 = scmp.lt.u32.totalorder %s6169_s2, %s6165_s15  ;;  %p6173_p13 = scmp.lt.u32.totalorder %s6165_s15, %s8211_s0 }
 0x584   : > { %p6167_p8 = pnand %p6166_p7, %p6325_p5 }
 0x585   : > { %p6172_p12 = por %p6171_p11, %p6170_p10 }
 0x586   : > { %p6168_p9 = pneg %p6167_p8 }
 0x587   : > { %p6174_p0 = por %p6173_p13, %p6172_p12 }
 0x589   : > { %p6175_p1 = pnand %p6174_p0, %p6168_p9 }
 0x58b   : > { %6178 = shalt.err (!%p6175_p1)
}
 0x58c   : > { %s6220_s16 = smov 128   ;;  %s6221_s29 = smov 8  }
 0x58d   : > { %5521 = dma.vmem_to_hbm [thread:$0]  (%p6325_p5), %s8214_s23, 9216, %s8211_s0, %s8219_s25, %s6220_s16, %s6220_s16, %s6221_s29  }
 0x58e PF: > { %p5527_p2 = scmp.ge.s32.totalorder %s6213_s24, 2  ;;  %s5044_s26 = sand.u32 1, %s6201_s21  }
 0x58f   : > { %s5045_s20 = scalar_lea.sflag [#allocation3], %s5044_s26 }
 0x590   : > { %p5524_p3 = pnand %p5527_p2, %p6329_p6 }
 0x592   : > { %6196 = dma.done.wait (!%p5524_p3), %s5045_s20, 9216  }
 0x593   : > { %6198 = vsyncadd (!%p5524_p3), %s5045_s20, 4294958080  ;;  %s8375_s18 = sld [smem:[#allocation5_spill]]  ;;  %s8376_s23 = sld [smem:[#allocation6_spill]] }
 0x594   : > { %p22_p4 = scmp.ge.s32.totalorder %s6312_s27, 4   ;;  %s8377_s21 = smov %s6205_s22 }
 0x595   : > { %s8379_s24 = smov %s6312_s27 }
 0x596   :  { %24 = sbr.rel (!%p22_p4) target bundleno = 6 (0x6), region = 109 }
 0x599   : > { %s8378_s22 = smov %s8375_s18 }
 0x59d   :  { %5050 = vsyncpa [#allocation3], 1 }
 0x59e   :  { %5052 = vsyncpa [#allocation3 + $0x1], 1 }

// kernel: enc_layer_pallas.2
= control target key start
LH: loop header
LB: loop body
LE: loop exit
PB: predicated region body
PF: predicated region fallthrough
CT: control target
= control target key end

     0   :  { %s10032_s0 = inlined_call_operand.vmem [shape: f32[144,128], index: 0, kind: input, shape index: {}]   ;;  %s10033_s1 = inlined_call_operand.vmem [shape: f32[1152,128], index: 1, kind: input, shape index: {}]   ;;  %s10034_s2 = inlined_call_operand.vmem [shape: bf16[1152,128], index: 2, kind: input, shape index: {}]   ;;  %s10035_s3 = inlined_call_operand.vmem [shape: f32[144,8], index: 3, kind: input, shape index: {}]   ;;  %s10036_s4 = inlined_call_operand.vmem [shape: f32[144,1], index: 4, kind: input, shape index: {}]   ;;  %s10037_s5 = inlined_call_operand.vmem [shape: bf16[128,128], index: 5, kind: input, shape index: {}]   ;;  %s10038_s6 = inlined_call_operand.vmem [shape: bf16[256,128], index: 6, kind: input, shape index: {}]   ;;  %s10039_s7 = inlined_call_operand.vmem [shape: f32[1,128], index: 7, kind: input, shape index: {}]   ;;  %s10040_s8 = inlined_call_operand.vmem [shape: bf16[128,128], index: 8, kind: input, shape index: {}]   ;;  %s10041_s9 = inlined_call_operand.vmem [shape: f32[1,128], index: 9, kind: input, shape index: {}]   ;;  %s10042_s10 = inlined_call_operand.vmem [shape: bf16[128,128], index: 10, kind: input, shape index: {}]   ;;  %s10043_s11 = inlined_call_operand.vmem [shape: f32[1,128], index: 11, kind: input, shape index: {}]   ;;  %s10044_s12 = inlined_call_operand.vmem [shape: f32[1,128], index: 12, kind: input, shape index: {}]   ;;  %s10045_s13 = inlined_call_operand.vmem [shape: f32[1,128], index: 13, kind: input, shape index: {}]   ;;  %s10046_s14 = inlined_call_operand.vmem [shape: bf16[128,512], index: 14, kind: input, shape index: {}]   ;;  %s10047_s15 = inlined_call_operand.vmem [shape: f32[1,512], index: 15, kind: input, shape index: {}]   ;;  %s10048_s16 = inlined_call_operand.vmem [shape: bf16[512,128], index: 16, kind: input, shape index: {}]   ;;  %s10049_s17 = inlined_call_operand.vmem [shape: f32[1,128], index: 17, kind: input, shape index: {}]   ;;  %s10050_s18 = inlined_call_operand.vmem [shape: f32[1,128], index: 18, kind: input, shape index: {}]   ;;  %s10051_s19 = inlined_call_operand.vmem [shape: f32[1,128], index: 19, kind: input, shape index: {}]   ;;  %s10052_s20 = inlined_call_operand.vmem [shape: f32[144,128], index: 20, kind: output, shape index: {}]  }
   0x1   :  { %10053 = sst [smem:[#allocation2_spill]] %s10032_s0 }
   0x2   :  { %10054 = sst [smem:[#allocation3_spill]] %s10033_s1  ;;  %s8057_s1 = smov 0  }
   0x3   :  { %10055 = sst [smem:[#allocation4_spill]] %s10034_s2 }
   0x4   :  { %10056 = sst [smem:[#allocation5_spill]] %s10035_s3 }
   0x5   :  { %10057 = sst [smem:[#allocation6_spill]] %s10036_s4 }
   0x6   :  { %10058 = sst [smem:[#allocation7_spill]] %s10037_s5 }
   0x7 LB: > { %s6795_s22 = sadd.s32 4294967295, %s7946_s1   ;;  %p6799_p0 = scmp.ge.s32.totalorder %s7946_s1, 1  ;;  %s7946_s1 = sphi %s8057_s1, %s30_s1  }
   0x8   : > { %p607_p1 = scmp.lt.s32.totalorder %s7946_s1, 3 }
   0xa   : > { %p608_p2 = pnand %p6799_p0, %p607_p1 }
   0xb   : > { %v7375_v0 = vld [vmem:[%s10038_s6] sm:$0xff] (!%p608_p2)   ;;  %v7948_v1 = vmov (!%p608_p2), 0   ;;  %v7376_v2 = vld [vmem:[%s10038_s6 + $0x8] sm:$0xff] (!%p608_p2)   ;;  %v7949_v3 = vmov (!%p608_p2), 0.0   ;;  %vm7950_vm0 = vmmov (!%p608_p2), 0   ;;  %v7377_v4 = vld [vmem:[%s10038_s6 + $0x10] sm:$0xff] (!%p608_p2)  }
   0xc   : > { %611 = sbr.rel (%p608_p2) target bundleno = 2179 (0x883), region = 100  ;;  %1437 = vmatprep.subr.bf16.mxu1 (!%p608_p2), %v7948_v1  ;;  %7373 = vset.pattern.permute.xlu1 (!%p608_p2), %v7948_v1  ;;  %s10059_s5 = sld [smem:[#allocation7_spill]] (!%p608_p2)  ;;  %v7378_v7 = vld [vmem:[%s10038_s6 + $0x18] sm:$0xff] (!%p608_p2)   ;;  %v7379_v9 = vld [vmem:[%s10038_s6 + $0x20] sm:$0xff] (!%p608_p2)   ;;  %v7380_v11 = vld [vmem:[%s10038_s6 + $0x28] sm:$0xff] (!%p608_p2)   ;;  %vm5271_vm1 = vcmask (!%p608_p2), 1041409  }
   0xd   : > { %1438 = vmatpush1.bf16.msra.mxu1 (!%p608_p2), %v7375_v0  ;;  %7149 = vmatprep.subr.bf16.mxu0 (!%p608_p2), %v7949_v3  ;;  %s691_s4 = smul.u32 (!%p608_p2), 72, %s6795_s22  ;;  %v7381_v13 = vld [vmem:[%s10038_s6 + $0x30] sm:$0xff] (!%p608_p2)   ;;  %s10060_s3 = sld [smem:[#allocation4_spill]] (!%p608_p2)  ;;  %v7383_v16 = vld [vmem:[%s10038_s6 + $0x38] sm:$0xff] (!%p608_p2)   ;;  %v7385_v18 = vld [vmem:[%s10038_s6 + $0x40] sm:$0xff] (!%p608_p2)   ;;  %vm5273_vm2 = vcmask (!%p608_p2), 1042434  }
   0xe   : > { %1439 = vmatprep.subr.bf16.mxu1 (!%p608_p2), %v7948_v1  ;;  %7165 = vmatprep.mubr.msk.bf16.mxu0 (!%p608_p2), %vm7950_vm0, %v7949_v3  ;;  %s685_s2 = smul.u32 (!%p608_p2), 9, %s6795_s22  ;;  %s10061_s25 = sld [smem:[#allocation2_spill]] (!%p608_p2)  ;;  %v7387_v22 = vld [vmem:[%s10038_s6 + $0x48] sm:$0xff] (!%p608_p2)   ;;  %v7389_v24 = vld [vmem:[%s10038_s6 + $0x50] sm:$0xff] (!%p608_p2)   ;;  %v7391_v27 = vld [vmem:[%s10038_s6 + $0x58] sm:$0xff] (!%p608_p2)   ;;  %vm5275_vm3 = vcmask (!%p608_p2), 1043459  }
   0xf   : > { %7374 = vset.pattern.permute.xlu0 (!%p608_p2), %v7948_v1  ;;  %p692_p3 = scmp.lt.s32.totalorder (!%p608_p2), %s691_s4, 143  ;;  %v7393_v29 = vld [vmem:[%s10038_s6 + $0x60] sm:$0xff] (!%p608_p2)   ;;  %v7395_v30 = vld [vmem:[%s10038_s6 + $0x68] sm:$0xff] (!%p608_p2)   ;;  %v7397_v31 = vld [vmem:[%s10038_s6 + $0x70] sm:$0xff] (!%p608_p2)   ;;  %s10063_s28 = sld [smem:[#allocation5_spill]] (!%p608_p2)  ;;  %vm5277_vm4 = vcmask (!%p608_p2), 1044484  }
  0x10   : > { %p686_p4 = scmp.lt.s32.totalorder (!%p608_p2), %s685_s2, 17  ;;  %v7398_v32 = vld [vmem:[%s10038_s6 + $0x78] sm:$0xff] (!%p608_p2)   ;;  %vm5279_vm5 = vcmask (!%p608_p2), 1045509   ;;  %vm5281_vm6 = vcmask (!%p608_p2), 1046534   ;;  %vm5283_vm7 = vcmask (!%p608_p2), 1047559   ;;  %s10064_s22 = sld [smem:[#allocation6_spill]] (!%p608_p2) }
  0x11   : > { %1440 = vmatpush1.bf16.msra.mxu1 (!%p608_p2), %v7376_v2 }
  0x12   : > { %1441 = vmatprep.subr.bf16.mxu1 (!%p608_p2), %v7948_v1  ;;  %v7382_v5 = vld [vmem:[%s10059_s5] sm:$0xff] (!%p608_p2)   ;;  %v7384_v6 = vld [vmem:[%s10059_s5 + $0x8] sm:$0xff] (!%p608_p2)   ;;  %v7386_v8 = vld [vmem:[%s10059_s5 + $0x10] sm:$0xff] (!%p608_p2)  }
  0x13   : > { %7150 = vmatpush3.bf16.msra.mxu0 %v7382_v5  ;;  %s10066_s4 = smov (!%p692_p3, %s691_s4), 143  ;;  %v7388_v10 = vld [vmem:[%s10059_s5 + $0x18] sm:$0xff]   ;;  %v7390_v12 = vld [vmem:[%s10059_s5 + $0x20] sm:$0xff]   ;;  %s10068_s2 = smov (!%p686_p4, %s685_s2), 17  ;;  %v7392_v14 = vld [vmem:[%s10059_s5 + $0x28] sm:$0xff]  }
  0x14   : > { %7151 = vmatprep.subr.bf16.mxu0 %v7949_v3  ;;  %s6802_s29 = sshll.u32 %s10066_s4, 2  ;;  %s8137_s0 = sshll.u32 %s10068_s2, 3  ;;  %v7394_v17 = vld [vmem:[%s10059_s5 + $0x30] sm:$0xff]   ;;  %v7396_v19 = vld [vmem:[%s10059_s5 + $0x38] sm:$0xff]  }
  0x15   : > { %1442 = vmatpush1.bf16.msra.mxu1 %v7377_v4  ;;  %s8126_s26 = scalar_lea.vmem %s10060_s3, %s6802_s29  ;;  %s8147_s3 = scalar_lea.vmem %s10061_s25, %s8137_s0 }
  0x16   : > { %1443 = vmatprep.subr.bf16.mxu1 %v7948_v1  ;;  %v7399_v15 = vld [vmem:[%s8126_s26] sm:$0xff]   ;;  %v723_v21 = vld [vmem:[%s8147_s3 + $0x8] sm:$0xff]  ;;  %v724_v25 = vld [vmem:[%s8147_s3 + $0x10] sm:$0xff]  ;;  %s6801_s30 = sshll.u32 %s10066_s4, 3  ;;  %s10062_s25 = sld [smem:[#allocation3_spill]] }
  0x17   : > { %7152 = vmatpush3.bf16.msra.mxu0 %v7384_v6  ;;  %1469 = vmatprep.mubr.bf16.mxu1 %v7399_v15  ;;  %v722_v20 = vld [vmem:[%s8147_s3] sm:$0xff]  ;;  %v725_v26 = vld [vmem:[%s8147_s3 + $0x18] sm:$0xff]  ;;  %v727_v34 = vld [vmem:[%s8147_s3 + $0x28] sm:$0xff]  ;;  %s9992_s23 = scalar_lea.vmem %s10052_s20, %s8137_s0 }
  0x18   : > { %7153 = vmatprep.subr.bf16.mxu0 %v7949_v3  ;;  %v731_v23 = vpack.c.bf16 %v723_v21, %v722_v20  ;;  %v732_v28 = vpack.c.bf16 %v725_v26, %v724_v25  ;;  %v726_v33 = vld [vmem:[%s8147_s3 + $0x20] sm:$0xff]  ;;  %v7400_v38 = vld [vmem:[%s8126_s26 + $0x8] sm:$0xff]   ;;  %v7401_v42 = vld [vmem:[%s8126_s26 + $0x10] sm:$0xff]  }
  0x19   : > { %1444 = vmatpush1.bf16.msra.mxu1 %v7378_v7  ;;  %v733_v37 = vpack.c.bf16 %v727_v34, %v726_v33  ;;  %v7402_v46 = vld [vmem:[%s8126_s26 + $0x18] sm:$0xff]   ;;  %v7403_v50 = vld [vmem:[%s8126_s26 + $0x20] sm:$0xff]   ;;  %v7404_v54 = vld [vmem:[%s8126_s26 + $0x28] sm:$0xff]  }
  0x1a   : > { %1445 = vmatprep.subr.bf16.mxu1 %v7948_v1  ;;  %v7405_v58 = vld [vmem:[%s8126_s26 + $0x30] sm:$0xff]   ;;  %v7406_v62 = vld [vmem:[%s8126_s26 + $0x38] sm:$0xff]   ;;  %v7407_v5 = vld [vmem:[%s8126_s26 + $0x40] sm:$0xff]  }
  0x1b   : > { %7154 = vmatpush3.bf16.msra.mxu0 %v7386_v8  ;;  %v728_v6 = vld [vmem:[%s8147_s3 + $0x30] sm:$0xff]  ;;  %v729_v7 = vld [vmem:[%s8147_s3 + $0x38] sm:$0xff]  ;;  %v7428_v25 = vld [vmem:[%s10040_s8 + $0x8] sm:$0xff]  }
  0x1c   : > { %7155 = vmatprep.subr.bf16.mxu0 %v7949_v3  ;;  %s8194_s27 = scalar_lea.vmem %s10062_s25, %s6801_s30  ;;  %v7410_v20 = vld [vmem:[%s8126_s26 + $0x58] sm:$0xff]   ;;  %v7432_v34 = vld [vmem:[%s10040_s8 + $0x20] sm:$0xff]   ;;  %s8745_s30 = scalar_lea.vmem %s10063_s28, %s8137_s0 }
  0x1d   : > { %1446 = vmatpush1.bf16.msra.mxu1 %v7379_v9  ;;  %v736_v35 = vld [vmem:[%s8194_s27] sm:$0xff]  ;;  %v737_v36 = vld [vmem:[%s8194_s27 + $0x8] sm:$0xff]  ;;  %v738_v40 = vld [vmem:[%s8194_s27 + $0x10] sm:$0xff]  ;;  %s9941_s28 = scalar_lea.vmem %s10064_s22, %s8137_s0 }
  0x1e   : > { %1447 = vmatprep.subr.bf16.mxu1 %v7948_v1  ;;  %v808_v39 = vpack.c.bf16 %v737_v36, %v736_v35  ;;  %v739_v41 = vld [vmem:[%s8194_s27 + $0x18] sm:$0xff]  ;;  %v740_v44 = vld [vmem:[%s8194_s27 + $0x20] sm:$0xff]  ;;  %v741_v45 = vld [vmem:[%s8194_s27 + $0x28] sm:$0xff] }
  0x1f   : > { %7156 = vmatpush3.bf16.msra.mxu0 %v7388_v10  ;;  %v809_v43 = vpack.c.bf16 %v739_v41, %v738_v40  ;;  %v810_v47 = vpack.c.bf16 %v741_v45, %v740_v44  ;;  %v742_v48 = vld [vmem:[%s8194_s27 + $0x30] sm:$0xff]  ;;  %v743_v49 = vld [vmem:[%s8194_s27 + $0x38] sm:$0xff]  ;;  %v744_v52 = vld [vmem:[%s8194_s27 + $0x40] sm:$0xff]  ;;  %v734_v10 = vpack.c.bf16 %v729_v7, %v728_v6 }
  0x20   : > { %7157 = vmatprep.subr.bf16.mxu0 %v7949_v3  ;;  %v811_v51 = vpack.c.bf16 %v743_v49, %v742_v48  ;;  %v745_v53 = vld [vmem:[%s8194_s27 + $0x48] sm:$0xff]  ;;  %v746_v56 = vld [vmem:[%s8194_s27 + $0x50] sm:$0xff]  ;;  %v747_v57 = vld [vmem:[%s8194_s27 + $0x58] sm:$0xff] }
  0x21   : > { %1448 = vmatpush1.bf16.msra.mxu1 %v7380_v11  ;;  %v812_v55 = vpack.c.bf16 %v745_v53, %v744_v52  ;;  %v813_v59 = vpack.c.bf16 %v747_v57, %v746_v56  ;;  %v748_v60 = vld [vmem:[%s8194_s27 + $0x60] sm:$0xff]  ;;  %v749_v61 = vld [vmem:[%s8194_s27 + $0x68] sm:$0xff]  ;;  %v750_v0 = vld [vmem:[%s8194_s27 + $0x70] sm:$0xff] }
  0x22   : > { %1449 = vmatprep.subr.bf16.mxu1 %v7948_v1  ;;  %v814_v63 = vpack.c.bf16 %v749_v61, %v748_v60  ;;  %v751_v2 = vld [vmem:[%s8194_s27 + $0x78] sm:$0xff]  ;;  %v752_v8 = vld [vmem:[%s8194_s27 + $0x80] sm:$0xff]  ;;  %v753_v9 = vld [vmem:[%s8194_s27 + $0x88] sm:$0xff] }
  0x23   : > { %7158 = vmatpush3.bf16.msra.mxu0 %v7390_v12  ;;  %v815_v4 = vpack.c.bf16 %v751_v2, %v750_v0  ;;  %v816_v11 = vpack.c.bf16 %v753_v9, %v752_v8  ;;  %v7408_v12 = vld [vmem:[%s8126_s26 + $0x48] sm:$0xff]   ;;  %v759_v21 = vld [vmem:[%s8194_s27 + $0xb8] sm:$0xff]  ;;  %v760_v26 = vld [vmem:[%s8194_s27 + $0xc0] sm:$0xff] }
  0x24   : > { %7159 = vmatprep.subr.bf16.mxu0 %v7949_v3  ;;  %v763_v33 = vld [vmem:[%s8194_s27 + $0xd8] sm:$0xff]  ;;  %v7413_v36 = vld [vmem:[%s8126_s26 + $0x70] sm:$0xff]   ;;  %v730_v40 = vld [vmem:[%s8147_s3 + $0x40] sm:$0xff] }
  0x25   : > { %1450 = vmatpush1.bf16.msra.mxu1 %v7381_v13  ;;  %v754_v13 = vld [vmem:[%s8194_s27 + $0x90] sm:$0xff]  ;;  %v735_v41 = vpack.c.bf16 %v730_v40, %v730_v40  ;;  %v7414_v44 = vld [vmem:[%s8126_s26 + $0x78] sm:$0xff]   ;;  %v7415_v49 = vld [vmem:[%s8126_s26 + $0x80] sm:$0xff]  }
  0x26   : > { %1451 = vmatprep.subr.bf16.mxu1 %v7948_v1  ;;  %v7437_v45 = vld [vmem:[%s10040_s8 + $0x38] sm:$0xff]   ;;  %v7416_v53 = vld [vmem:[%s8126_s26 + $0x88] sm:$0xff]   ;;  %v7417_v57 = vld [vmem:[%s8126_s26 + $0x90] sm:$0xff]  }
  0x27   : > { %7160 = vmatpush3.bf16.msra.mxu0 %v7392_v14  ;;  %v755_v14 = vld [vmem:[%s8194_s27 + $0x98] sm:$0xff]  ;;  %v7419_v2 = vld [vmem:[%s8126_s26 + $0xa0] sm:$0xff]   ;;  %v7420_v7 = vld [vmem:[%s8126_s26 + $0xa8] sm:$0xff]  }
  0x28   : > { %7161 = vmatprep.subr.bf16.mxu0 %v7949_v3  ;;  %v817_v15 = vpack.c.bf16 %v755_v14, %v754_v13  ;;  %v7418_v61 = vld [vmem:[%s8126_s26 + $0x98] sm:$0xff]   ;;  %v778_v8 = vld [vmem:[%s8194_s27 + $0x150] sm:$0xff]  ;;  %v781_v13 = vld [vmem:[%s8194_s27 + $0x168] sm:$0xff] }
  0x29   : > { %1452 = vmatpush1.bf16.msra.mxu1 %v7383_v16  ;;  %v7409_v16 = vld [vmem:[%s8126_s26 + $0x50] sm:$0xff]   ;;  %v779_v9 = vld [vmem:[%s8194_s27 + $0x158] sm:$0xff] }
  0x2a   : > { %1453 = vmatprep.subr.bf16.mxu1 %v7948_v1 }
  0x2b   : > { %7162 = vmatpush3.bf16.msra.mxu0 %v7394_v17  ;;  %v756_v17 = vld [vmem:[%s8194_s27 + $0xa0] sm:$0xff] }
  0x2c   : > { %7163 = vmatprep.subr.bf16.mxu0 %v7949_v3 }
  0x2d   : > { %1454 = vmatpush1.bf16.msra.mxu1 %v7385_v18  ;;  %v757_v18 = vld [vmem:[%s8194_s27 + $0xa8] sm:$0xff] }
  0x2e   : > { %1455 = vmatprep.subr.bf16.mxu1 %v7948_v1 }
  0x2f   : > { %7164 = vmatpush3.bf16.msra.mxu0 %v7396_v19  ;;  %v818_v19 = vpack.c.bf16 %v757_v18, %v756_v17  ;;  %v783_v17 = vld [vmem:[%s8194_s27 + $0x178] sm:$0xff] }
  0x31   : > { %1456 = vmatpush1.bf16.msra.mxu1 %v7387_v22  ;;  %v7426_v22 = vld [vmem:[%s10040_s8] sm:$0xff]  }
  0x32   : > { %1457 = vmatprep.subr.bf16.mxu1 %v7948_v1  ;;  %7166 = vmatmul.mubr.bf16.vlgmr.msra.gmra.mrb[0].mxu0 %v731_v23 }
  0x33   : > { %7169 = vmatprep.mubr.msk.bf16.mxu0 %vm7950_vm0, %v7949_v3  ;;  %7185 = vmatprep.subr.bf16.mxu0 %v7426_v22 }
  0x34   : > { %7186 = vmatpush3.bf16.msra.mxu0 %v7426_v22 }
  0x35   : > { %1458 = vmatpush1.bf16.msra.mxu1 %v7389_v24  ;;  %v7411_v24 = vld [vmem:[%s8126_s26 + $0x60] sm:$0xff]   ;;  %7187 = vmatprep.subr.bf16.mxu0 %v7428_v25 }
  0x36   : > { %1459 = vmatprep.subr.bf16.mxu1 %v7948_v1 }
  0x38   : > { %7188 = vmatpush3.bf16.msra.mxu0 %v7428_v25 }
  0x39   : > { %1460 = vmatpush1.bf16.msra.mxu1 %v7391_v27  ;;  %v761_v27 = vld [vmem:[%s8194_s27 + $0xc8] sm:$0xff] }
  0x3a   : > { %1461 = vmatprep.subr.bf16.mxu1 %v7948_v1  ;;  %7170 = vmatmul.mubr.bf16.gmra.mrb[4].mxu0 %v732_v28  ;;  %v7429_v28 = vld [vmem:[%s10040_s8 + $0x10] sm:$0xff]  }
  0x3b   : > { %7173 = vmatprep.mubr.msk.bf16.mxu0 %vm7950_vm0, %v7949_v3  ;;  %7189 = vmatprep.subr.bf16.mxu0 %v7429_v28 }
  0x3c   : > { %7190 = vmatpush3.bf16.msra.mxu0 %v7429_v28  ;;  %v7424_v28 = vld [vmem:[%s8126_s26 + $0xc8] sm:$0xff]  }
  0x3d   : > { %1462 = vmatpush1.bf16.msra.mxu1 %v7393_v29  ;;  %v820_v29 = vpack.c.bf16 %v761_v27, %v760_v26  ;;  %v1771_v26 = vlaneseq }
  0x3e   : > { %1463 = vmatprep.subr.bf16.mxu1 %v7948_v1 }
  0x41   : > { %1464 = vmatpush1.bf16.msra.mxu1 %v7395_v30  ;;  %v7412_v30 = vld [vmem:[%s8126_s26 + $0x68] sm:$0xff]  }
  0x42   : > { %1465 = vmatprep.subr.bf16.mxu1 %v7948_v1  ;;  %7174 = vmatmul.mubr.bf16.gmra.mrb[8].mxu0 %v733_v37  ;;  %v7434_v37 = vld [vmem:[%s10040_s8 + $0x28] sm:$0xff]  }
  0x43   : > { %7177 = vmatprep.mubr.msk.bf16.mxu0 %vm7950_vm0, %v7949_v3 }
  0x45   : > { %1466 = vmatpush1.bf16.msra.mxu1 %v7397_v31  ;;  %v7431_v31 = vld [vmem:[%s10040_s8 + $0x18] sm:$0xff]  }
  0x46   : > { %1467 = vmatprep.subr.bf16.mxu1 %v7948_v1  ;;  %7191 = vmatprep.subr.bf16.mxu0 %v7431_v31 }
  0x47   : > { %7192 = vmatpush3.bf16.msra.mxu0 %v7431_v31  ;;  %v8310_v31 = vshrl.u32 %v1771_v26, 7 }
  0x48   : > { %7193 = vmatprep.subr.bf16.mxu0 %v7432_v34 }
  0x49   : > { %1468 = vmatpush1.bf16.msra.mxu1 %v7398_v32  ;;  %v762_v32 = vld [vmem:[%s8194_s27 + $0xd0] sm:$0xff] }
  0x4a   : > { %7178 = vmatmul.mubr.bf16.gmra.mrb[12].mxu0 %v734_v10  ;;  %v821_v35 = vpack.c.bf16 %v763_v33, %v762_v32  ;;  %v829_v10 = vpack.c.bf16 %v779_v9, %v778_v8  ;;  %v786_v32 = vld [vmem:[%s8194_s27 + $0x190] sm:$0xff]  ;;  %v787_v33 = vld [vmem:[%s8194_s27 + $0x198] sm:$0xff] }
  0x4b   : > { %7181 = vmatprep.mubr.msk.bf16.mxu0 %vm7950_vm0, %v7949_v3  ;;  %v758_v3 = vld [vmem:[%s8194_s27 + $0xb0] sm:$0xff]  ;;  %7194 = vmatpush3.bf16.msra.mxu0 %v7432_v34 }
  0x4c   : > { %1470 = vmatmul.mubr.bf16.vlgmr.msra.gmra.mrb[0].mxu1 %v808_v39  ;;  %v819_v23 = vpack.c.bf16 %v759_v21, %v758_v3  ;;  %v765_v39 = vld [vmem:[%s8194_s27 + $0xe8] sm:$0xff]  ;;  %7195 = vmatprep.subr.bf16.mxu0 %v7434_v37 }
  0x4d   : > { %1477 = vmatprep.mubr.bf16.mxu1 %v7400_v38  ;;  %v764_v38 = vld [vmem:[%s8194_s27 + $0xe0] sm:$0xff]  ;;  %v785_v3 = vld [vmem:[%s8194_s27 + $0x188] sm:$0xff] }
  0x4f   : > { %7196 = vmatpush3.bf16.msra.mxu0 %v7434_v37 }
  0x52   : > { %7182 = vmatmul.mubr.bf16.gmra.mrb[16].mxu0 %v735_v41 }
  0x54   : > { %1478 = vmatmul.mubr.bf16.gmra.mrb[4].mxu1 %v809_v43  ;;  %v822_v43 = vpack.c.bf16 %v765_v39, %v764_v38  ;;  %v7425_v39 = vld [vmem:[%s8126_s26 + $0xd0] sm:$0xff]  }
  0x55   : > { %1485 = vmatprep.mubr.bf16.mxu1 %v7401_v42  ;;  %v7435_v42 = vld [vmem:[%s10040_s8 + $0x30] sm:$0xff]  }
  0x56   : > { %7197 = vmatprep.subr.bf16.mxu0 %v7435_v42 }
  0x57   : > { %7198 = vmatpush3.bf16.msra.mxu0 %v7435_v42  ;;  %v788_v42 = vld [vmem:[%s8194_s27 + $0x1a0] sm:$0xff] }
  0x58   : > { %7199 = vmatprep.subr.bf16.mxu0 %v7437_v45 }
  0x5b   : > { %7200 = vmatpush3.bf16.msra.mxu0 %v7437_v45 }
  0x5c   : > { %1486 = vmatmul.mubr.bf16.gmra.mrb[8].mxu1 %v810_v47  ;;  %v767_v47 = vld [vmem:[%s8194_s27 + $0xf8] sm:$0xff] }
  0x5d   : > { %1493 = vmatprep.mubr.bf16.mxu1 %v7402_v46  ;;  %v766_v46 = vld [vmem:[%s8194_s27 + $0xf0] sm:$0xff] }
  0x5e   : > { %v823_v48 = vpack.c.bf16 %v767_v47, %v766_v46  ;;  %v7427_v46 = vld [vmem:[%s8126_s26 + $0xd8] sm:$0xff]  }
  0x64   : > { %1494 = vmatmul.mubr.bf16.gmra.mrb[12].mxu1 %v811_v51  ;;  %v769_v51 = vld [vmem:[%s8194_s27 + $0x108] sm:$0xff] }
  0x65   : > { %1501 = vmatprep.mubr.bf16.mxu1 %v7403_v50  ;;  %v768_v50 = vld [vmem:[%s8194_s27 + $0x100] sm:$0xff] }
  0x66   : > { %v824_v52 = vpack.c.bf16 %v769_v51, %v768_v50 }
  0x6c   : > { %1502 = vmatmul.mubr.bf16.gmra.mrb[16].mxu1 %v812_v55  ;;  %v771_v55 = vld [vmem:[%s8194_s27 + $0x118] sm:$0xff] }
  0x6d   : > { %1509 = vmatprep.mubr.bf16.mxu1 %v7404_v54  ;;  %v770_v54 = vld [vmem:[%s8194_s27 + $0x110] sm:$0xff] }
  0x6e   : > { %v825_v56 = vpack.c.bf16 %v771_v55, %v770_v54  ;;  %v791_v54 = vld [vmem:[%s8194_s27 + $0x1b8] sm:$0xff] }
  0x74   : > { %1510 = vmatmul.mubr.bf16.gmra.mrb[20].mxu1 %v813_v59  ;;  %v773_v59 = vld [vmem:[%s8194_s27 + $0x128] sm:$0xff] }
  0x75   : > { %1517 = vmatprep.mubr.bf16.mxu1 %v7405_v58  ;;  %v772_v58 = vld [vmem:[%s8194_s27 + $0x120] sm:$0xff] }
  0x76   : > { %v826_v60 = vpack.c.bf16 %v773_v59, %v772_v58 }
  0x7c   : > { %1518 = vmatmul.mubr.bf16.gmra.mrb[24].mxu1 %v814_v63  ;;  %v775_v63 = vld [vmem:[%s8194_s27 + $0x138] sm:$0xff] }
  0x7d   : > { %1525 = vmatprep.mubr.bf16.mxu1 %v7406_v62  ;;  %v774_v62 = vld [vmem:[%s8194_s27 + $0x130] sm:$0xff] }
  0x7e   : > { %v827_v0 = vpack.c.bf16 %v775_v63, %v774_v62  ;;  %v7430_v63 = vld [vmem:[%s8126_s26 + $0xe0] sm:$0xff]  }
  0x84   : > { %1526 = vmatmul.mubr.bf16.gmra.mrb[28].mxu1 %v815_v4  ;;  %v776_v4 = vld [vmem:[%s8194_s27 + $0x140] sm:$0xff] }
  0x85   : > { %1533 = vmatprep.mubr.bf16.mxu1 %v7407_v5  ;;  %v777_v5 = vld [vmem:[%s8194_s27 + $0x148] sm:$0xff] }
  0x86   : > { %v828_v6 = vpack.c.bf16 %v777_v5, %v776_v4 }
  0x8c   : > { %1534 = vmatmul.mubr.bf16.gmra.mrb[32].mxu1 %v816_v11  ;;  %v7421_v11 = vld [vmem:[%s8126_s26 + $0xb0] sm:$0xff]  }
  0x8d   : > { %1541 = vmatprep.mubr.bf16.mxu1 %v7408_v12  ;;  %v780_v12 = vld [vmem:[%s8194_s27 + $0x160] sm:$0xff] }
  0x8e   : > { %v830_v14 = vpack.c.bf16 %v781_v13, %v780_v12 }
  0x94   : > { %1542 = vmatmul.mubr.bf16.gmra.mrb[36].mxu1 %v817_v15  ;;  %v7422_v15 = vld [vmem:[%s8126_s26 + $0xb8] sm:$0xff]  }
  0x95   : > { %1549 = vmatprep.mubr.bf16.mxu1 %v7409_v16  ;;  %v782_v16 = vld [vmem:[%s8194_s27 + $0x170] sm:$0xff] }
  0x96   : > { %v831_v18 = vpack.c.bf16 %v783_v17, %v782_v16 }
  0x9c   : > { %1550 = vmatmul.mubr.bf16.gmra.mrb[40].mxu1 %v818_v19  ;;  %v7423_v19 = vld [vmem:[%s8126_s26 + $0xc0] sm:$0xff]  }
  0x9d   : > { %1557 = vmatprep.mubr.bf16.mxu1 %v7410_v20  ;;  %v784_v20 = vld [vmem:[%s8194_s27 + $0x180] sm:$0xff] }
  0xa4   : > { %1558 = vmatmul.mubr.bf16.gmra.mrb[44].mxu1 %v819_v23  ;;  %v832_v23 = vpack.c.bf16 %v785_v3, %v784_v20  ;;  %v7433_v3 = vld [vmem:[%s8126_s26 + $0xe8] sm:$0xff]  }
  0xa5   : > { %1565 = vmatprep.mubr.bf16.mxu1 %v7411_v24  ;;  %v7951_v24 = vmov 1966171168  }
  0xa6   : > { %v1769_v25 = vunpack.c.l.s4 %v7951_v24 }
  0xac   : > { %1566 = vmatmul.mubr.bf16.gmra.mrb[48].mxu1 %v820_v29 }
  0xad   : > { %1573 = vmatprep.mubr.bf16.mxu1 %v7412_v30  ;;  %v1770_v30 = vunpack.c.0.s8 %v1769_v25 }
  0xaf   : > { %v8317_v37 = vsub.s32 %v1770_v30, %v8310_v31  ;;  %v795_v30 = vld [vmem:[%s8194_s27 + $0x1d8] sm:$0xff] }
  0xb4   : > { %1574 = vmatmul.mubr.bf16.gmra.mrb[52].mxu1 %v821_v35 }
  0xb5   : > { %1581 = vmatprep.mubr.bf16.mxu1 %v7413_v36  ;;  %v833_v36 = vpack.c.bf16 %v787_v33, %v786_v32 }
  0xbc   : > { %1582 = vmatmul.mubr.bf16.gmra.mrb[56].mxu1 %v822_v43  ;;  %v789_v43 = vld [vmem:[%s8194_s27 + $0x1a8] sm:$0xff] }
  0xbd   : > { %1589 = vmatprep.mubr.bf16.mxu1 %v7414_v44  ;;  %v834_v45 = vpack.c.bf16 %v789_v43, %v788_v42 }
  0xc4   : > { %1590 = vmatmul.mubr.bf16.gmra.mrb[60].mxu1 %v823_v48  ;;  %v8328_v48 = vsub.s32 0, %v8310_v31 }
  0xc5   : > { %1597 = vmatprep.mubr.bf16.mxu1 %v7415_v49 }
  0xcc   : > { %1598 = vmatmul.mubr.bf16.gmra.mrb[64].mxu1 %v824_v52  ;;  %v8336_v52 = vld [vmem:[%s10039_s7] ss:$0 sm:$0xff] }
  0xcd   : > { %1605 = vmatprep.mubr.bf16.mxu1 %v7416_v53  ;;  %v790_v53 = vld [vmem:[%s8194_s27 + $0x1b0] sm:$0xff] }
  0xd4   : > { %1606 = vmatmul.mubr.bf16.gmra.mrb[68].mxu1 %v825_v56 }
  0xd5   : > { %1613 = vmatprep.mubr.bf16.mxu1 %v7417_v57 }
  0xdc   : > { %1614 = vmatmul.mubr.bf16.gmra.mrb[72].mxu1 %v826_v60 }
  0xdd   : > { %1621 = vmatprep.mubr.bf16.mxu1 %v7418_v61  ;;  %v835_v61 = vpack.c.bf16 %v791_v54, %v790_v53 }
  0xe4   : > { %1622 = vmatmul.mubr.bf16.gmra.mrb[76].mxu1 %v827_v0 }
  0xe5   : > { %1629 = vmatprep.mubr.bf16.mxu1 %v7419_v2 }
  0xec   : > { %1630 = vmatmul.mubr.bf16.gmra.mrb[80].mxu1 %v828_v6 }
  0xed   : > { %1637 = vmatprep.mubr.bf16.mxu1 %v7420_v7 }
  0xf4   : > { %1638 = vmatmul.mubr.bf16.gmra.mrb[84].mxu1 %v829_v10  ;;  %v792_v10 = vld [vmem:[%s8194_s27 + $0x1c0] sm:$0xff] }
  0xf5   : > { %1645 = vmatprep.mubr.bf16.mxu1 %v7421_v11  ;;  %v793_v11 = vld [vmem:[%s8194_s27 + $0x1c8] sm:$0xff] }
  0xfc   : > { %1646 = vmatmul.mubr.bf16.gmra.mrb[88].mxu1 %v830_v14 }
  0xfd   : > { %1653 = vmatprep.mubr.bf16.mxu1 %v7422_v15  ;;  %v836_v15 = vpack.c.bf16 %v793_v11, %v792_v10 }
 0x104   : > { %1654 = vmatmul.mubr.bf16.gmra.mrb[92].mxu1 %v831_v18 }
 0x105   : > { %1661 = vmatprep.mubr.bf16.mxu1 %v7423_v19  ;;  %v1081_v21 = vpop.f32.mrb[0].mxu0 }
 0x106   : > { %v7167_v22 = vpop.f32.mrb[1].mxu0  ;;  %v1774_v41 = vrot.slane %v1081_v21, %v8317_v37  ;;  %v1767_v57 = vcombine.high %v1081_v21, %v1081_v21 }
 0x107   : > { %v8307_v27 = vpop.f32.mrb[2].mxu0 }
 0x108   : > { %v7168_v29 = vpop.f32.mrb[3].mxu0  ;;  %v1782_v44 = vcombine.high %v1774_v41, %v1774_v41  ;;  %v1790_v47 = vrot.slane %v1774_v41, %v8317_v37  ;;  %v1781_v6 = vrot.slane %v1767_v57, %v8317_v37 }
 0x109   : > { %v794_v29 = vld [vmem:[%s8194_s27 + $0x1d0] sm:$0xff] }
 0x10a   : > { %v1804_v50 = vrot.slane %v1782_v44, %v8317_v37  ;;  %v2211_v55 = vrot.slane %v1790_v47, %v8328_v48  ;;  %v1812_v0 = vcombine.high %v1790_v47, %v1790_v47  ;;  %v1783_v16 = vcombine.high %v1781_v6, %v1781_v6 }
 0x10b   : > { %v1797_v21 = vrot.slane %v1781_v6, %v8317_v37  ;;  %v837_v42 = vpack.c.bf16 %v795_v30, %v794_v29  ;;  %v798_v30 = vld [vmem:[%s8194_s27 + $0x1f0] sm:$0xff] }
 0x10c   : > { %1662 = vmatmul.mubr.bf16.gmra.mrb[96].mxu1 %v832_v23  ;;  %v2215_v60 = vrot.slane %v1804_v50, %v8328_v48  ;;  %v1814_v9 = vcombine.high %v1804_v50, %v1804_v50  ;;  %v2219_v13 = vrot.slane %v1812_v0, %v8328_v48 }
 0x10d   : > { %1669 = vmatprep.mubr.bf16.mxu1 %v7424_v28  ;;  %v8314_v34 = vpop.f32.mrb[4].mxu0  ;;  %v1811_v28 = vrot.slane %v1783_v16, %v8317_v37  ;;  %v2227_v33 = vrot.slane %v1797_v21, %v8328_v48  ;;  %v1813_v53 = vcombine.high %v1797_v21, %v1797_v21 }
 0x10e   : > { %v7171_v35 = vpop.f32.mrb[5].mxu0  ;;  %v2223_v19 = vrot.slane %v1814_v9, %v8328_v48 }
 0x10f   : > { %v8319_v38 = vpop.f32.mrb[6].mxu0  ;;  %v2231_v41 = vrot.slane %v1811_v28, %v8328_v48 }
 0x110   : > { %v7172_v40 = vpop.f32.mrb[7].mxu0 }
 0x114   : > { %1670 = vmatmul.mubr.bf16.gmra.mrb[100].mxu1 %v833_v36 }
 0x115   : > { %1677 = vmatprep.mubr.bf16.mxu1 %v7425_v39  ;;  %v8330_v49 = vpop.f32.mrb[8].mxu0 }
 0x116   : > { %v7175_v51 = vpop.f32.mrb[9].mxu0 }
 0x11c   : > { %1678 = vmatmul.mubr.bf16.gmra.mrb[104].mxu1 %v834_v45  ;;  %v7436_v45 = vld [vmem:[%s8126_s26 + $0xf0] sm:$0xff]  }
 0x11d   : > { %1685 = vmatprep.mubr.bf16.mxu1 %v7427_v46 }
 0x11f   : > { %v1471_v56 = vpop.f32.mrb[0].mxu1 }
 0x120   : > { %v1472_v58 = vadd.f32 %v8336_v52, %v1471_v56  ;;  %v1473_v59 = vpop.f32.mrb[1].mxu1 }
 0x121   : > { %v1474_v62 = vpop.f32.mrb[2].mxu1  ;;  %v1815_v59 = vcombine.high %v1811_v28, %v1811_v28 }
 0x122   : > { %v2568_v2 = vadd.f32 %v2211_v55, %v1472_v58  ;;  %v1475_v4 = vadd.f32 %v8336_v52, %v1474_v62  ;;  %v1476_v5 = vpop.f32.mrb[3].mxu1  ;;  %v797_v62 = vld [vmem:[%s8194_s27 + $0x1e8] sm:$0xff] }
 0x123   : > { %v2239_v11 = vrot.slane %v1815_v59, %v8328_v48 }
 0x124   : > { %v2712_v7 = vmul.f32 0.70710677, %v2568_v2  ;;  %v2569_v8 = vadd.f32 %v2215_v60, %v1475_v4  ;;  %1686 = vmatmul.mubr.bf16.gmra.mrb[108].mxu1 %v835_v61  ;;  %v2640_v54 = vmul.f32 0.5, %v2568_v2  ;;  %v1823_v60 = vrot.slane %v8307_v27, %v8317_v37  ;;  %v796_v61 = vld [vmem:[%s8194_s27 + $0x1e0] sm:$0xff] }
 0x125   : > { %1693 = vmatprep.mubr.bf16.mxu1 %v7430_v63  ;;  %v2235_v4 = vrot.slane %v1813_v53, %v8328_v48  ;;  %v7439_v53 = vld [vmem:[%s8126_s26 + $0x100] sm:$0xff]  }
 0x126   : > { %7531 = verf.f32 %v2712_v7  ;;  %v2713_v12 = vmul.f32 0.70710677, %v2569_v8  ;;  %v2641_v55 = vmul.f32 0.5, %v2569_v8  ;;  %v838_v7 = vpack.c.bf16 %v797_v62, %v796_v61 }
 0x127   : > { %v1479_v14 = vpop.f32.mrb[4].mxu1 }
 0x128   : > { %7533 = verf.f32 %v2713_v12  ;;  %v1480_v17 = vadd.f32 %v8336_v52, %v1479_v14  ;;  %v1481_v18 = vpop.f32.mrb[5].mxu1  ;;  %v1831_v12 = vcombine.high %v1823_v60, %v1823_v60 }
 0x129   : > { %v1482_v20 = vpop.f32.mrb[6].mxu1 }
 0x12a   : > { %v2570_v22 = vadd.f32 %v2219_v13, %v1480_v17  ;;  %v1483_v23 = vadd.f32 %v8336_v52, %v1482_v20  ;;  %v1484_v24 = vpop.f32.mrb[7].mxu1  ;;  %v1839_v20 = vrot.slane %v1823_v60, %v8317_v37  ;;  %v1853_v29 = vrot.slane %v1831_v12, %v8317_v37 }
 0x12b   : > { %v8380_v24 = vpop.f32.mrb[10].mxu0 }
 0x12c   : > { %v2714_v25 = vmul.f32 0.70710677, %v2570_v22  ;;  %v2571_v26 = vadd.f32 %v2223_v19, %v1483_v23  ;;  %1694 = vmatmul.mubr.bf16.gmra.mrb[112].mxu1 %v836_v15  ;;  %v7438_v15 = vld [vmem:[%s8126_s26 + $0xf8] sm:$0xff]  }
 0x12d   : > { %1701 = vmatprep.mubr.bf16.mxu1 %v7433_v3  ;;  %v2642_v3 = vmul.f32 0.5, %v2570_v22 }
 0x12e   : > { %7535 = verf.f32 %v2714_v25  ;;  %v2715_v32 = vmul.f32 0.70710677, %v2571_v26  ;;  %v2643_v21 = vmul.f32 0.5, %v2571_v26  ;;  %v2243_v26 = vrot.slane %v1839_v20, %v8328_v48 }
 0x12f   : > { %v1487_v35 = vpop.f32.mrb[8].mxu1 }
 0x130   : > { %v7532_v36 = vpop.eup %7531  ;;  %7537 = verf.f32 %v2715_v32  ;;  %v1488_v39 = vadd.f32 %v8336_v52, %v1487_v35  ;;  %v1489_v40 = vpop.f32.mrb[9].mxu1  ;;  %v799_v32 = vld [vmem:[%s8194_s27 + $0x1f8] sm:$0xff] }
 0x131   : > { %v2856_v43 = vadd.f32 1.0, %v7532_v36  ;;  %v1490_v44 = vpop.f32.mrb[10].mxu1 }
 0x132   : > { %v7534_v46 = vpop.eup %7533  ;;  %v8361_v47 = vadd.f32 %v2227_v33, %v1488_v39  ;;  %v1491_v50 = vadd.f32 %v8336_v52, %v1490_v44  ;;  %v1492_v51 = vpop.f32.mrb[11].mxu1 }
 0x133   : > { %v2857_v56 = vadd.f32 1.0, %v7534_v46  ;;  %v2928_v63 = vmul.f32 %v2856_v43, %v2640_v54  ;;  %v7176_v33 = vpop.f32.mrb[11].mxu0  ;;  %v1816_v43 = vcombine.high %v8307_v27, %v8307_v27  ;;  %v2247_v46 = vrot.slane %v1853_v29, %v8328_v48 }
 0x134   : > { %v2716_v57 = vmul.f32 0.70710677, %v8361_v47  ;;  %v8365_v58 = vadd.f32 %v2231_v41, %v1491_v50  ;;  %1702 = vmatmul.mubr.bf16.gmra.mrb[116].mxu1 %v837_v42  ;;  %v839_v41 = vpack.c.bf16 %v799_v32, %v798_v30  ;;  %v2644_v27 = vmul.f32 0.5, %v8361_v47 }
 0x135   : > { %v2929_v0 = vmul.f32 %v2857_v56, %v2641_v55  ;;  %1709 = vmatprep.mubr.bf16.mxu1 %v7436_v45  ;;  %v1861_v55 = vcombine.high %v1839_v20, %v1839_v20  ;;  %v1830_v62 = vrot.slane %v1816_v43, %v8317_v37 }
 0x136   : > { %7539 = verf.f32 %v2716_v57  ;;  %v2717_v2 = vmul.f32 0.70710677, %v8365_v58  ;;  %v2645_v60 = vmul.f32 0.5, %v8365_v58 }
 0x137   : > { %v1495_v5 = vpop.f32.mrb[12].mxu1  ;;  %v3000_v6 = vpack.c.bf16 %v2929_v0, %v2928_v63  ;;  %v2251_v47 = vrot.slane %v1861_v55, %v8328_v48  ;;  %v1832_v12 = vcombine.high %v1830_v62, %v1830_v62 }
 0x138   : > { %v7536_v8 = vpop.eup %7535  ;;  %7541 = verf.f32 %v2717_v2  ;;  %v1496_v9 = vadd.f32 %v8336_v52, %v1495_v5  ;;  %v1497_v10 = vpop.f32.mrb[13].mxu1  ;;  %v1863_v2 = vcombine.high %v1853_v29, %v1853_v29  ;;  %v801_v5 = vld [vmem:[%s8194_s27 + $0x208] sm:$0xff] }
 0x139   : > { %v2858_v13 = vadd.f32 1.0, %v7536_v8  ;;  %v1498_v14 = vpop.f32.mrb[14].mxu1  ;;  %7201 = vmatprep.mubr.bf16.mxu0 %v3000_v6 }
 0x13a   : > { %v7538_v16 = vpop.eup %7537  ;;  %v8376_v17 = vadd.f32 %v2235_v4, %v1496_v9  ;;  %v1499_v18 = vadd.f32 %v8336_v52, %v1498_v14  ;;  %v1500_v19 = vpop.f32.mrb[15].mxu1  ;;  %v800_v4 = vld [vmem:[%s8194_s27 + $0x200] sm:$0xff] }
 0x13b   : > { %v2859_v23 = vadd.f32 1.0, %v7538_v16  ;;  %v2930_v35 = vmul.f32 %v2858_v13, %v2642_v3  ;;  %v840_v10 = vpack.c.bf16 %v801_v5, %v800_v4  ;;  %v7440_v19 = vld [vmem:[%s8126_s26 + $0x108] sm:$0xff]   ;;  %v1846_v3 = vrot.slane %v1830_v62, %v8317_v37 }
 0x13c   : > { %v2718_v25 = vmul.f32 0.70710677, %v8376_v17  ;;  %v8383_v28 = vadd.f32 %v2239_v11, %v1499_v18  ;;  %1710 = vmatmul.mubr.bf16.gmra.mrb[120].mxu1 %v838_v7  ;;  %v2646_v29 = vmul.f32 0.5, %v8376_v17 }
 0x13d   : > { %v2931_v36 = vmul.f32 %v2859_v23, %v2643_v21  ;;  %1717 = vmatprep.mubr.bf16.mxu1 %v7438_v15  ;;  %v2255_v15 = vrot.slane %v1863_v2, %v8328_v48 }
 0x13e   : > { %7543 = verf.f32 %v2718_v25  ;;  %v2719_v22 = vmul.f32 0.70710677, %v8383_v28  ;;  %v2647_v30 = vmul.f32 0.5, %v8383_v28 }
 0x13f   : > { %v3001_v39 = vpack.c.bf16 %v2931_v36, %v2930_v35  ;;  %v1503_v40 = vpop.f32.mrb[16].mxu1  ;;  %v1860_v36 = vrot.slane %v1832_v12, %v8317_v37 }
 0x140   : > { %v7540_v42 = vpop.eup %7539  ;;  %7545 = verf.f32 %v2719_v22  ;;  %v1504_v44 = vadd.f32 %v8336_v52, %v1503_v40  ;;  %v1505_v45 = vpop.f32.mrb[17].mxu1  ;;  %v803_v40 = vld [vmem:[%s8194_s27 + $0x218] sm:$0xff] }
 0x141   : > { %v2860_v50 = vadd.f32 1.0, %v7540_v42  ;;  %v1506_v51 = vpop.f32.mrb[18].mxu1  ;;  %7202 = vmatmul.mubr.bf16.vlgmr.msra.gmra.mrb[20].mxu0 %v3001_v39  ;;  %v802_v39 = vld [vmem:[%s8194_s27 + $0x210] sm:$0xff]  ;;  %v2259_v42 = vrot.slane %v1846_v3, %v8328_v48  ;;  %v1864_v5 = vcombine.high %v1860_v36, %v1860_v36 }
 0x142   : > { %v7542_v54 = vpop.eup %7541  ;;  %v8395_v56 = vadd.f32 %v2243_v26, %v1504_v44  ;;  %v1507_v57 = vadd.f32 %v8336_v52, %v1506_v51  ;;  %v1508_v59 = vpop.f32.mrb[19].mxu1 }
 0x143   : > { %v2861_v61 = vadd.f32 1.0, %v7542_v54  ;;  %v2932_v6 = vmul.f32 %v2860_v50, %v2644_v27  ;;  %v841_v50 = vpack.c.bf16 %v803_v40, %v802_v39  ;;  %v7441_v54 = vld [vmem:[%s8126_s26 + $0x110] sm:$0xff]  }
 0x144   : > { %v2720_v63 = vmul.f32 0.70710677, %v8395_v56  ;;  %v2577_v0 = vadd.f32 %v2247_v46, %v1507_v57  ;;  %1718 = vmatmul.mubr.bf16.gmra.mrb[124].mxu1 %v839_v41  ;;  %v2263_v46 = vrot.slane %v1860_v36, %v8328_v48 }
 0x145   : > { %v2933_v7 = vmul.f32 %v2861_v61, %v2645_v60  ;;  %1725 = vmatprep.mubr.bf16.mxu1 %v7439_v53  ;;  %v1862_v60 = vcombine.high %v1846_v3, %v1846_v3  ;;  %v2648_v61 = vmul.f32 0.5, %v8395_v56 }
 0x146   : > { %7547 = verf.f32 %v2720_v63  ;;  %v2721_v8 = vmul.f32 0.70710677, %v2577_v0  ;;  %v2649_v62 = vmul.f32 0.5, %v2577_v0 }
 0x147   : > { %v1511_v9 = vpop.f32.mrb[20].mxu1  ;;  %v3002_v58 = vpack.c.bf16 %v2933_v7, %v2932_v6  ;;  %v1872_v6 = vrot.slane %v8314_v34, %v8317_v37  ;;  %v804_v7 = vld [vmem:[%s8194_s27 + $0x220] sm:$0xff]  ;;  %v2267_v0 = vrot.slane %v1862_v60, %v8328_v48 }
 0x148   : > { %v7544_v11 = vpop.eup %7543  ;;  %7549 = verf.f32 %v2721_v8  ;;  %v1512_v13 = vadd.f32 %v8336_v52, %v1511_v9  ;;  %v1513_v14 = vpop.f32.mrb[21].mxu1  ;;  %v805_v8 = vld [vmem:[%s8194_s27 + $0x228] sm:$0xff] }
 0x149   : > { %v2862_v16 = vadd.f32 1.0, %v7544_v11  ;;  %v1514_v18 = vpop.f32.mrb[22].mxu1  ;;  %7205 = vmatprep.mubr.bf16.mxu0 %v3002_v58  ;;  %v842_v11 = vpack.c.bf16 %v805_v8, %v804_v7 }
 0x14a   : > { %v7546_v20 = vpop.eup %7545  ;;  %v8409_v21 = vadd.f32 %v2251_v47, %v1512_v13  ;;  %v1515_v23 = vadd.f32 %v8336_v52, %v1514_v18  ;;  %v1516_v25 = vpop.f32.mrb[23].mxu1 }
 0x14b   : > { %v2863_v32 = vadd.f32 1.0, %v7546_v20  ;;  %v2934_v22 = vmul.f32 %v2862_v16, %v2646_v29  ;;  %v1880_v16 = vcombine.high %v1872_v6, %v1872_v6  ;;  %v7442_v20 = vld [vmem:[%s8126_s26 + $0x118] sm:$0xff]  }
 0x14c   : > { %v2722_v33 = vmul.f32 0.70710677, %v8409_v21  ;;  %v2579_v35 = vadd.f32 %v2255_v15, %v1515_v23  ;;  %1726 = vmatmul.mubr.bf16.gmra.mrb[128].mxu1 %v840_v10  ;;  %v2271_v15 = vrot.slane %v1864_v5, %v8328_v48 }
 0x14d   : > { %v2935_v26 = vmul.f32 %v2863_v32, %v2647_v30  ;;  %1733 = vmatprep.mubr.bf16.mxu1 %v7440_v19  ;;  %v1888_v30 = vrot.slane %v1872_v6, %v8317_v37  ;;  %v2650_v32 = vmul.f32 0.5, %v8409_v21  ;;  %v1902_v40 = vrot.slane %v1880_v16, %v8317_v37 }
 0x14e   : > { %7551 = verf.f32 %v2722_v33  ;;  %v2723_v41 = vmul.f32 0.70710677, %v2579_v35  ;;  %v2651_v33 = vmul.f32 0.5, %v2579_v35 }
 0x14f   : > { %v1519_v17 = vpop.f32.mrb[24].mxu1  ;;  %v3003_v43 = vpack.c.bf16 %v2935_v26, %v2934_v22  ;;  %v8443_v22 = vpop.f32.mrb[12].mxu0  ;;  %v2275_v21 = vrot.slane %v1888_v30, %v8328_v48 }
 0x150   : > { %v7548_v28 = vpop.eup %7547  ;;  %7553 = verf.f32 %v2723_v41  ;;  %v1520_v44 = vadd.f32 %v8336_v52, %v1519_v17  ;;  %v1521_v45 = vpop.f32.mrb[25].mxu1  ;;  %v806_v41 = vld [vmem:[%s8194_s27 + $0x230] sm:$0xff] }
 0x151   : > { %v2864_v51 = vadd.f32 1.0, %v7548_v28  ;;  %v1522_v53 = vpop.f32.mrb[26].mxu1  ;;  %7206 = vmatmul.mubr.bf16.gmra.mrb[24].mxu0 %v3003_v43  ;;  %v7179_v17 = vpop.f32.mrb[13].mxu0 }
 0x152   : > { %v7550_v55 = vpop.eup %7549  ;;  %v8422_v57 = vadd.f32 %v2259_v42, %v1520_v44  ;;  %v1523_v59 = vadd.f32 %v8336_v52, %v1522_v53  ;;  %v1524_v27 = vpop.f32.mrb[27].mxu1  ;;  %v807_v42 = vld [vmem:[%s8194_s27 + $0x238] sm:$0xff] }
 0x153   : > { %v2865_v63 = vadd.f32 1.0, %v7550_v55  ;;  %v2936_v47 = vmul.f32 %v2864_v51, %v2648_v61  ;;  %v1865_v51 = vcombine.high %v8314_v34, %v8314_v34  ;;  %v2279_v55 = vrot.slane %v1902_v40, %v8328_v48 }
 0x154   : > { %v2724_v2 = vmul.f32 0.70710677, %v8422_v57  ;;  %v8427_v4 = vadd.f32 %v2263_v46, %v1523_v59  ;;  %1734 = vmatmul.mubr.bf16.gmra.mrb[132].mxu1 %v841_v50  ;;  %v843_v46 = vpack.c.bf16 %v807_v42, %v806_v41  ;;  %v1910_v61 = vcombine.high %v1888_v30, %v1888_v30 }
 0x155   : > { %v2937_v9 = vmul.f32 %v2865_v63, %v2649_v62  ;;  %1741 = vmatprep.mubr.bf16.mxu1 %v7441_v54  ;;  %v2652_v5 = vmul.f32 0.5, %v8422_v57  ;;  %v1879_v34 = vrot.slane %v1865_v51, %v8317_v37 }
 0x156   : > { %7555 = verf.f32 %v2724_v2  ;;  %v2725_v56 = vmul.f32 0.70710677, %v8427_v4  ;;  %v2653_v6 = vmul.f32 0.5, %v8427_v4 }
 0x157   : > { %v1527_v58 = vpop.f32.mrb[28].mxu1  ;;  %v3004_v10 = vpack.c.bf16 %v2937_v9, %v2936_v47  ;;  %v1912_v9 = vcombine.high %v1902_v40, %v1902_v40 }
 0x158   : > { %v7552_v12 = vpop.eup %7551  ;;  %7557 = verf.f32 %v2725_v56  ;;  %v1528_v13 = vadd.f32 %v8336_v52, %v1527_v58  ;;  %v1529_v14 = vpop.f32.mrb[29].mxu1 }
 0x159   : > { %v2866_v18 = vadd.f32 1.0, %v7552_v12  ;;  %v1530_v19 = vpop.f32.mrb[30].mxu1  ;;  %7209 = vmatprep.mubr.bf16.mxu0 %v3004_v10  ;;  %v2283_v10 = vrot.slane %v1910_v61, %v8328_v48 }
 0x15a   : > { %v7554_v3 = vpop.eup %7553  ;;  %v8438_v23 = vadd.f32 %v2267_v0, %v1528_v13  ;;  %v1531_v25 = vadd.f32 %v8336_v52, %v1530_v19  ;;  %v1532_v29 = vpop.f32.mrb[31].mxu1  ;;  %v1881_v13 = vcombine.high %v1879_v34, %v1879_v34 }
 0x15b   : > { %v2867_v36 = vadd.f32 1.0, %v7554_v3  ;;  %v2938_v43 = vmul.f32 %v2866_v18, %v2650_v32 }
 0x15c   : > { %v2726_v26 = vmul.f32 0.70710677, %v8438_v23  ;;  %v2583_v39 = vadd.f32 %v2271_v15, %v1531_v25  ;;  %1742 = vmatmul.mubr.bf16.gmra.mrb[136].mxu1 %v842_v11  ;;  %v2287_v15 = vrot.slane %v1912_v9, %v8328_v48  ;;  %v2654_v30 = vmul.f32 0.5, %v8438_v23 }
 0x15d   : > { %v2939_v28 = vmul.f32 %v2867_v36, %v2651_v33  ;;  %1749 = vmatprep.mubr.bf16.mxu1 %v7442_v20  ;;  %v1895_v20 = vrot.slane %v1879_v34, %v8317_v37  ;;  %v1909_v40 = vrot.slane %v1881_v13, %v8317_v37 }
 0x15e   : > { %7559 = verf.f32 %v2726_v26  ;;  %v2727_v44 = vmul.f32 0.70710677, %v2583_v39  ;;  %v2655_v32 = vmul.f32 0.5, %v2583_v39 }
 0x15f   : > { %v1535_v35 = vpop.f32.mrb[32].mxu1  ;;  %v3005_v45 = vpack.c.bf16 %v2939_v28, %v2938_v43  ;;  %v2291_v43 = vrot.slane %v1895_v20, %v8328_v48  ;;  %v2295_v23 = vrot.slane %v1909_v40, %v8328_v48 }
 0x160   : > { %v7556_v50 = vpop.eup %7555  ;;  %7561 = verf.f32 %v2727_v44  ;;  %v1536_v53 = vadd.f32 %v8336_v52, %v1535_v35  ;;  %v1537_v54 = vpop.f32.mrb[33].mxu1 }
 0x161   : > { %v2868_v59 = vadd.f32 1.0, %v7556_v50  ;;  %v1538_v27 = vpop.f32.mrb[34].mxu1  ;;  %7210 = vmatmul.mubr.bf16.gmra.mrb[28].mxu0 %v3005_v45 }
 0x162   : > { %v7558_v60 = vpop.eup %7557  ;;  %v2584_v62 = vadd.f32 %v2275_v21, %v1536_v53  ;;  %v1539_v63 = vadd.f32 %v8336_v52, %v1538_v27  ;;  %v1540_v2 = vpop.f32.mrb[35].mxu1 }
 0x163   : > { %v2869_v7 = vadd.f32 1.0, %v7558_v60  ;;  %v2940_v56 = vmul.f32 %v2868_v59, %v2652_v5  ;;  %v1913_v2 = vcombine.high %v1909_v40, %v1909_v40  ;;  %v1921_v5 = vrot.slane %v8319_v38, %v8317_v37 }
 0x164   : > { %v2728_v8 = vmul.f32 0.70710677, %v2584_v62  ;;  %v2585_v47 = vadd.f32 %v2279_v55, %v1539_v63  ;;  %1750 = vmatmul.mubr.bf16.gmra.mrb[140].mxu1 %v843_v46  ;;  %v1911_v55 = vcombine.high %v1895_v20, %v1895_v20  ;;  %v2656_v59 = vmul.f32 0.5, %v2584_v62  ;;  %v7443_v20 = vld [vmem:[%s10042_s10] sm:$0xff]  }
 0x165   : > { %v2941_v0 = vmul.f32 %v2869_v7, %v2653_v6  ;;  %5742 = vmatprep.mubr.bf16.mxu1 %v7948_v1  ;;  %7273 = vmatprep.subr.bf16.mxu0 %v7443_v20 }
 0x166   : > { %7563 = verf.f32 %v2728_v8  ;;  %v2729_v58 = vmul.f32 0.70710677, %v2585_v47  ;;  %v2657_v27 = vmul.f32 0.5, %v2585_v47  ;;  %v2299_v8 = vrot.slane %v1911_v55, %v8328_v48  ;;  %7274 = vmatpush3.bf16.msra.mxu0 %v7443_v20 }
 0x167   : > { %v1543_v11 = vpop.f32.mrb[36].mxu1  ;;  %v3006_v12 = vpack.c.bf16 %v2941_v0, %v2940_v56 }
 0x168   : > { %v7560_v57 = vpop.eup %7559  ;;  %7565 = verf.f32 %v2729_v58  ;;  %v1544_v4 = vadd.f32 %v8336_v52, %v1543_v11  ;;  %v1545_v14 = vpop.f32.mrb[37].mxu1  ;;  %v2303_v58 = vrot.slane %v1913_v2, %v8328_v48 }
 0x169   : > { %v2870_v16 = vadd.f32 1.0, %v7560_v57  ;;  %v1546_v18 = vpop.f32.mrb[38].mxu1  ;;  %7213 = vmatprep.mubr.bf16.mxu0 %v3006_v12 }
 0x16a   : > { %v7562_v19 = vpop.eup %7561  ;;  %v2586_v3 = vadd.f32 %v2283_v10, %v1544_v4  ;;  %v1547_v25 = vadd.f32 %v8336_v52, %v1546_v18  ;;  %v1548_v29 = vpop.f32.mrb[39].mxu1  ;;  %v1929_v10 = vcombine.high %v1921_v5, %v1921_v5 }
 0x16b   : > { %v2871_v33 = vadd.f32 1.0, %v7562_v19  ;;  %v2942_v41 = vmul.f32 %v2870_v16, %v2654_v30 }
 0x16c   : > { %v2730_v36 = vmul.f32 0.70710677, %v2586_v3  ;;  %v2587_v26 = vadd.f32 %v2287_v15, %v1547_v25  ;;  %v1937_v15 = vrot.slane %v1921_v5, %v8317_v37  ;;  %v2658_v16 = vmul.f32 0.5, %v2586_v3  ;;  %v8485_v25 = vpop.f32.mrb[14].mxu0 }
 0x16d   : > { %v2943_v42 = vmul.f32 %v2871_v33, %v2655_v32  ;;  %v1951_v32 = vrot.slane %v1929_v10, %v8317_v37  ;;  %v7180_v33 = vpop.f32.mrb[15].mxu0 }
 0x16e   : > { %7567 = verf.f32 %v2730_v36  ;;  %v2731_v17 = vmul.f32 0.70710677, %v2587_v26  ;;  %v2659_v18 = vmul.f32 0.5, %v2587_v26  ;;  %v2307_v3 = vrot.slane %v1937_v15, %v8328_v48 }
 0x16f   : > { %v1551_v28 = vpop.f32.mrb[40].mxu1  ;;  %v3007_v44 = vpack.c.bf16 %v2943_v42, %v2942_v41 }
 0x170   : > { %v7564_v21 = vpop.eup %7563  ;;  %7569 = verf.f32 %v2731_v17  ;;  %v1552_v35 = vadd.f32 %v8336_v52, %v1551_v28  ;;  %v1553_v45 = vpop.f32.mrb[41].mxu1 }
 0x171   : > { %v2872_v39 = vadd.f32 1.0, %v7564_v21  ;;  %v1554_v46 = vpop.f32.mrb[42].mxu1  ;;  %7214 = vmatmul.mubr.bf16.gmra.mrb[32].mxu0 %v3007_v44  ;;  %v2311_v21 = vrot.slane %v1951_v32, %v8328_v48 }
 0x172   : > { %v7566_v50 = vpop.eup %7565  ;;  %v8469_v51 = vadd.f32 %v2291_v43, %v1552_v35  ;;  %v1555_v53 = vadd.f32 %v8336_v52, %v1554_v46  ;;  %v1556_v54 = vpop.f32.mrb[43].mxu1  ;;  %v1914_v43 = vcombine.high %v8319_v38, %v8319_v38 }
 0x173   : > { %v2873_v60 = vadd.f32 1.0, %v7566_v50  ;;  %v2944_v6 = vmul.f32 %v2872_v39, %v2656_v59  ;;  %v1959_v39 = vcombine.high %v1937_v15, %v1937_v15 }
 0x174   : > { %v2732_v61 = vmul.f32 0.70710677, %v8469_v51  ;;  %v2589_v63 = vadd.f32 %v2295_v23, %v1555_v53  ;;  %v2660_v54 = vmul.f32 0.5, %v8469_v51  ;;  %v1928_v38 = vrot.slane %v1914_v43, %v8317_v37  ;;  %v7444_v43 = vld [vmem:[%s10042_s10 + $0x8] sm:$0xff]  }
 0x175   : > { %v2945_v7 = vmul.f32 %v2873_v60, %v2657_v27  ;;  %7275 = vmatprep.subr.bf16.mxu0 %v7444_v43 }
 0x176   : > { %7571 = verf.f32 %v2732_v61  ;;  %v2733_v34 = vmul.f32 0.70710677, %v2589_v63  ;;  %v2661_v55 = vmul.f32 0.5, %v2589_v63  ;;  %v1961_v61 = vcombine.high %v1951_v32, %v1951_v32  ;;  %7276 = vmatpush3.bf16.msra.mxu0 %v7444_v43 }
 0x177   : > { %v1559_v9 = vpop.f32.mrb[44].mxu1  ;;  %v3008_v56 = vpack.c.bf16 %v2945_v7, %v2944_v6  ;;  %v2315_v7 = vrot.slane %v1959_v39, %v8328_v48  ;;  %v1944_v10 = vrot.slane %v1928_v38, %v8317_v37 }
 0x178   : > { %v7568_v0 = vpop.eup %7567  ;;  %7573 = verf.f32 %v2733_v34  ;;  %v1560_v62 = vadd.f32 %v8336_v52, %v1559_v9  ;;  %v1561_v47 = vpop.f32.mrb[45].mxu1 }
 0x179   : > { %v2874_v11 = vadd.f32 1.0, %v7568_v0  ;;  %v1562_v12 = vpop.f32.mrb[46].mxu1  ;;  %7217 = vmatprep.mubr.bf16.mxu0 %v3008_v56  ;;  %v1930_v56 = vcombine.high %v1928_v38, %v1928_v38  ;;  %v2319_v0 = vrot.slane %v1961_v61, %v8328_v48  ;;  %v2323_v33 = vrot.slane %v1944_v10, %v8328_v48 }
 0x17a   : > { %v7570_v57 = vpop.eup %7569  ;;  %v8478_v13 = vadd.f32 %v2299_v8, %v1560_v62  ;;  %v1563_v4 = vadd.f32 %v8336_v52, %v1562_v12  ;;  %v1564_v14 = vpop.f32.mrb[47].mxu1  ;;  %v1970_v61 = vrot.slane %v8330_v49, %v8317_v37 }
 0x17b   : > { %v2875_v19 = vadd.f32 1.0, %v7570_v57  ;;  %v2946_v36 = vmul.f32 %v2874_v11, %v2658_v16 }
 0x17c   : > { %v2734_v29 = vmul.f32 0.70710677, %v8478_v13  ;;  %v2591_v30 = vadd.f32 %v2303_v58, %v1563_v4  ;;  %v2662_v4 = vmul.f32 0.5, %v8478_v13 }
 0x17d   : > { %v2947_v40 = vmul.f32 %v2875_v19, %v2659_v18  ;;  %v1958_v19 = vrot.slane %v1930_v56, %v8317_v37 }
 0x17e   : > { %7575 = verf.f32 %v2734_v29  ;;  %v2735_v41 = vmul.f32 0.70710677, %v2591_v30  ;;  %v2663_v14 = vmul.f32 0.5, %v2591_v30 }
 0x17f   : > { %v1567_v26 = vpop.f32.mrb[48].mxu1  ;;  %v3009_v42 = vpack.c.bf16 %v2947_v40, %v2946_v36  ;;  %v2327_v30 = vrot.slane %v1958_v19, %v8328_v48 }
 0x180   : > { %v7572_v17 = vpop.eup %7571  ;;  %7577 = verf.f32 %v2735_v41  ;;  %v1568_v28 = vadd.f32 %v8336_v52, %v1567_v26  ;;  %v1569_v44 = vpop.f32.mrb[49].mxu1 }
 0x181   : > { %v2876_v35 = vadd.f32 1.0, %v7572_v17  ;;  %v1570_v45 = vpop.f32.mrb[50].mxu1  ;;  %7218 = vmatmul.mubr.bf16.gmra.mrb[36].mxu0 %v3009_v42  ;;  %v8510_v26 = vpop.f32.mrb[16].mxu0 }
 0x182   : > { %v7574_v23 = vpop.eup %7573  ;;  %v2592_v46 = vadd.f32 %v2307_v3, %v1568_v28  ;;  %v1571_v50 = vadd.f32 %v8336_v52, %v1570_v45  ;;  %v1572_v53 = vpop.f32.mrb[51].mxu1 }
 0x183   : > { %v2877_v59 = vadd.f32 1.0, %v7574_v23  ;;  %v2948_v2 = vmul.f32 %v2876_v35, %v2660_v54  ;;  %v7183_v28 = vpop.f32.mrb[17].mxu0  ;;  %v1960_v23 = vcombine.high %v1944_v10, %v1944_v10 }
 0x184   : > { %v2736_v27 = vmul.f32 0.70710677, %v2592_v46  ;;  %v2593_v60 = vadd.f32 %v2311_v21, %v1571_v50  ;;  %v1116_v39 = vpop.f32.mrb[18].mxu0  ;;  %v2664_v50 = vmul.f32 0.5, %v2592_v46 }
 0x185   : > { %v2949_v5 = vmul.f32 %v2877_v59, %v2661_v55  ;;  %v7184_v55 = vpop.f32.mrb[19].mxu0 }
 0x186   : > { %7579 = verf.f32 %v2736_v27  ;;  %v2737_v6 = vmul.f32 0.70710677, %v2593_v60  ;;  %v2665_v53 = vmul.f32 0.5, %v2593_v60  ;;  %v1962_v27 = vcombine.high %v1958_v19, %v1958_v19 }
 0x187   : > { %v1575_v34 = vpop.f32.mrb[52].mxu1  ;;  %v3010_v8 = vpack.c.bf16 %v2949_v5, %v2948_v2 }
 0x188   : > { %v7576_v9 = vpop.eup %7575  ;;  %7581 = verf.f32 %v2737_v6  ;;  %v1576_v51 = vadd.f32 %v8336_v52, %v1575_v34  ;;  %v1577_v63 = vpop.f32.mrb[53].mxu1  ;;  %v2335_v56 = vrot.slane %v1962_v27, %v8328_v48 }
 0x189   : > { %v2878_v62 = vadd.f32 1.0, %v7576_v9  ;;  %v1578_v47 = vpop.f32.mrb[54].mxu1  ;;  %7221 = vmatprep.mubr.bf16.mxu0 %v3010_v8 }
 0x18a   : > { %v7578_v58 = vpop.eup %7577  ;;  %v8501_v11 = vadd.f32 %v2315_v7, %v1576_v51  ;;  %v1579_v12 = vadd.f32 %v8336_v52, %v1578_v47  ;;  %v1580_v57 = vpop.f32.mrb[55].mxu1  ;;  %v2331_v7 = vrot.slane %v1960_v23, %v8328_v48  ;;  %v1978_v51 = vcombine.high %v1970_v61, %v1970_v61 }
 0x18b   : > { %v2879_v15 = vadd.f32 1.0, %v7578_v58  ;;  %v2950_v20 = vmul.f32 %v2878_v62, %v2662_v4 }
 0x18c   : > { %v2738_v16 = vmul.f32 0.70710677, %v8501_v11  ;;  %v2595_v18 = vadd.f32 %v2319_v0, %v1579_v12  ;;  %v1986_v12 = vrot.slane %v1970_v61, %v8317_v37  ;;  %v2666_v57 = vmul.f32 0.5, %v8501_v11 }
 0x18d   : > { %v2951_v29 = vmul.f32 %v2879_v15, %v2663_v14  ;;  %v2000_v19 = vrot.slane %v1978_v51, %v8317_v37 }
 0x18e   : > { %7583 = verf.f32 %v2738_v16  ;;  %v2739_v32 = vmul.f32 0.70710677, %v2595_v18  ;;  %v2667_v4 = vmul.f32 0.5, %v2595_v18  ;;  %v2008_v43 = vcombine.high %v1986_v12, %v1986_v12 }
 0x18f   : > { %v1583_v36 = vpop.f32.mrb[56].mxu1  ;;  %v3011_v40 = vpack.c.bf16 %v2951_v29, %v2950_v20  ;;  %v2010_v55 = vcombine.high %v2000_v19, %v2000_v19 }
 0x190   : > { %v7580_v41 = vpop.eup %7579  ;;  %7585 = verf.f32 %v2739_v32  ;;  %v1584_v3 = vadd.f32 %v8336_v52, %v1583_v36  ;;  %v1585_v13 = vpop.f32.mrb[57].mxu1 }
 0x191   : > { %v2880_v42 = vadd.f32 1.0, %v7580_v41  ;;  %v1586_v17 = vpop.f32.mrb[58].mxu1  ;;  %7222 = vmatmul.mubr.bf16.gmra.mrb[40].mxu0 %v3011_v40  ;;  %v2343_v13 = vrot.slane %v2000_v19, %v8328_v48 }
 0x192   : > { %v7582_v44 = vpop.eup %7581  ;;  %v2596_v21 = vadd.f32 %v2323_v33, %v1584_v3  ;;  %v1587_v35 = vadd.f32 %v8336_v52, %v1586_v17  ;;  %v1588_v45 = vpop.f32.mrb[59].mxu1  ;;  %v2339_v33 = vrot.slane %v1986_v12, %v8328_v48  ;;  %v1963_v3 = vcombine.high %v8330_v49, %v8330_v49  ;;  %v7445_v49 = vld [vmem:[%s10042_s10 + $0x10] sm:$0xff]  }
 0x193   : > { %v2881_v54 = vadd.f32 1.0, %v7582_v44  ;;  %v2952_v2 = vmul.f32 %v2880_v42, %v2664_v50  ;;  %7277 = vmatprep.subr.bf16.mxu0 %v7445_v49 }
 0x194   : > { %v2740_v59 = vmul.f32 0.70710677, %v2596_v21  ;;  %v2597_v38 = vadd.f32 %v2327_v30, %v1587_v35  ;;  %v2668_v45 = vmul.f32 0.5, %v2596_v21  ;;  %v1977_v50 = vrot.slane %v1963_v3, %v8317_v37  ;;  %7278 = vmatpush3.bf16.msra.mxu0 %v7445_v49 }
 0x195   : > { %v2953_v5 = vmul.f32 %v2881_v54, %v2665_v53 }
 0x196   : > { %7587 = verf.f32 %v2740_v59  ;;  %v2741_v6 = vmul.f32 0.70710677, %v2597_v38  ;;  %v2669_v23 = vmul.f32 0.5, %v2597_v38 }
 0x197   : > { %v1591_v34 = vpop.f32.mrb[60].mxu1  ;;  %v3012_v8 = vpack.c.bf16 %v2953_v5, %v2952_v2  ;;  %v1979_v5 = vcombine.high %v1977_v50, %v1977_v50 }
 0x198   : > { %v7584_v46 = vpop.eup %7583  ;;  %7589 = verf.f32 %v2741_v6  ;;  %v1592_v60 = vadd.f32 %v8336_v52, %v1591_v34  ;;  %v1593_v9 = vpop.f32.mrb[61].mxu1  ;;  %v8539_v6 = vld [vmem:[%s10039_s7] ss:$0 sm:$0xff] }
 0x199   : > { %v2882_v63 = vadd.f32 1.0, %v7584_v46  ;;  %v1594_v0 = vpop.f32.mrb[62].mxu1  ;;  %7225 = vmatprep.mubr.bf16.mxu0 %v3012_v8  ;;  %v2351_v8 = vrot.slane %v2010_v55, %v8328_v48 }
 0x19a   : > { %v7586_v62 = vpop.eup %7585  ;;  %v2598_v47 = vadd.f32 %v2331_v7, %v1592_v60  ;;  %v1595_v58 = vadd.f32 %v8336_v52, %v1594_v0  ;;  %v1596_v10 = vpop.f32.mrb[63].mxu1 }
 0x19b   : > { %v2883_v14 = vadd.f32 1.0, %v7586_v62  ;;  %v2954_v20 = vmul.f32 %v2882_v63, %v2666_v57 }
 0x19c   : > { %v2742_v15 = vmul.f32 0.70710677, %v2598_v47  ;;  %v2599_v16 = vadd.f32 %v2335_v56, %v1595_v58  ;;  %v1993_v56 = vrot.slane %v1977_v50, %v8317_v37  ;;  %v2670_v62 = vmul.f32 0.5, %v2598_v47 }
 0x19d   : > { %v2955_v29 = vmul.f32 %v2883_v14, %v2667_v4  ;;  %v2007_v4 = vrot.slane %v1979_v5, %v8317_v37 }
 0x19e   : > { %7591 = verf.f32 %v2742_v15  ;;  %v2743_v32 = vmul.f32 0.70710677, %v2599_v16  ;;  %v2671_v58 = vmul.f32 0.5, %v2599_v16 }
 0x19f   : > { %v1599_v36 = vpop.f32.mrb[64].mxu1  ;;  %v3013_v40 = vpack.c.bf16 %v2955_v29, %v2954_v20  ;;  %v2355_v20 = vrot.slane %v1993_v56, %v8328_v48  ;;  %v2359_v47 = vrot.slane %v2007_v4, %v8328_v48 }
 0x1a0   : > { %v7588_v41 = vpop.eup %7587  ;;  %7593 = verf.f32 %v2743_v32  ;;  %v1600_v11 = vadd.f32 %v8336_v52, %v1599_v36  ;;  %v1601_v18 = vpop.f32.mrb[65].mxu1 }
 0x1a1   : > { %v2884_v30 = vadd.f32 1.0, %v7588_v41  ;;  %v1602_v42 = vpop.f32.mrb[66].mxu1  ;;  %7226 = vmatmul.mubr.bf16.gmra.mrb[44].mxu0 %v3013_v40 }
 0x1a2   : > { %v7590_v17 = vpop.eup %7589  ;;  %v2600_v28 = vadd.f32 %v2339_v33, %v1600_v11  ;;  %v1603_v44 = vadd.f32 %v8336_v52, %v1602_v42  ;;  %v1604_v35 = vpop.f32.mrb[67].mxu1  ;;  %v2347_v52 = vrot.slane %v2008_v43, %v8328_v48 }
 0x1a3   : > { %v2885_v39 = vadd.f32 1.0, %v7590_v17  ;;  %v2956_v59 = vmul.f32 %v2884_v30, %v2668_v45  ;;  %v2009_v30 = vcombine.high %v1993_v56, %v1993_v56  ;;  %v2011_v45 = vcombine.high %v2007_v4, %v2007_v4 }
 0x1a4   : > { %v2744_v53 = vmul.f32 0.70710677, %v2600_v28  ;;  %v2601_v54 = vadd.f32 %v2343_v13, %v1603_v44  ;;  %v2672_v42 = vmul.f32 0.5, %v2600_v28 }
 0x1a5   : > { %v2957_v27 = vmul.f32 %v2885_v39, %v2669_v23  ;;  %v2019_v23 = vrot.slane %v8380_v24, %v8317_v37  ;;  %v7446_v39 = vld [vmem:[%s10042_s10 + $0x18] sm:$0xff]   ;;  %v2363_v55 = vrot.slane %v2009_v30, %v8328_v48 }
 0x1a6   : > { %7595 = verf.f32 %v2744_v53  ;;  %v2745_v61 = vmul.f32 0.70710677, %v2601_v54  ;;  %v2673_v17 = vmul.f32 0.5, %v2601_v54  ;;  %7279 = vmatprep.subr.bf16.mxu0 %v7446_v39 }
 0x1a7   : > { %v1607_v21 = vpop.f32.mrb[68].mxu1  ;;  %v3014_v38 = vpack.c.bf16 %v2957_v27, %v2956_v59  ;;  %7280 = vmatpush3.bf16.msra.mxu0 %v7446_v39 }
 0x1a8   : > { %v7592_v2 = vpop.eup %7591  ;;  %7597 = verf.f32 %v2745_v61  ;;  %v1608_v7 = vadd.f32 %v8539_v6, %v1607_v21  ;;  %v1609_v34 = vpop.f32.mrb[69].mxu1  ;;  %v2027_v21 = vcombine.high %v2019_v23, %v2019_v23 }
 0x1a9   : > { %v2886_v46 = vadd.f32 1.0, %v7592_v2  ;;  %v1610_v60 = vpop.f32.mrb[70].mxu1  ;;  %7229 = vmatprep.mubr.bf16.mxu0 %v3014_v38 }
 0x1aa   : > { %v7594_v9 = vpop.eup %7593  ;;  %v2602_v51 = vadd.f32 %v2347_v52, %v1608_v7  ;;  %v1611_v63 = vadd.f32 %v8539_v6, %v1610_v60  ;;  %v1612_v0 = vpop.f32.mrb[71].mxu1  ;;  %v2367_v52 = vrot.slane %v2011_v45, %v8328_v48 }
 0x1ab   : > { %v2887_v10 = vadd.f32 1.0, %v7594_v9  ;;  %v2958_v14 = vmul.f32 %v2886_v46, %v2670_v62  ;;  %v2035_v46 = vrot.slane %v2019_v23, %v8317_v37  ;;  %v2049_v62 = vrot.slane %v2027_v21, %v8317_v37 }
 0x1ac   : > { %v2746_v12 = vmul.f32 0.70710677, %v2602_v51  ;;  %v2603_v57 = vadd.f32 %v2351_v8, %v1611_v63  ;;  %v2674_v60 = vmul.f32 0.5, %v2602_v51 }
 0x1ad   : > { %v2959_v15 = vmul.f32 %v2887_v10, %v2671_v58  ;;  %v2371_v4 = vrot.slane %v2035_v46, %v8328_v48 }
 0x1ae   : > { %7599 = verf.f32 %v2746_v12  ;;  %v2747_v19 = vmul.f32 0.70710677, %v2603_v57  ;;  %v2675_v9 = vmul.f32 0.5, %v2603_v57 }
 0x1af   : > { %v1615_v29 = vpop.f32.mrb[72].mxu1  ;;  %v3015_v32 = vpack.c.bf16 %v2959_v15, %v2958_v14 }
 0x1b0   : > { %v7596_v33 = vpop.eup %7595  ;;  %7601 = verf.f32 %v2747_v19  ;;  %v1616_v36 = vadd.f32 %v8539_v6, %v1615_v29  ;;  %v1617_v40 = vpop.f32.mrb[73].mxu1  ;;  %v2375_v29 = vrot.slane %v2049_v62, %v8328_v48 }
 0x1b1   : > { %v2888_v16 = vadd.f32 1.0, %v7596_v33  ;;  %v1618_v41 = vpop.f32.mrb[74].mxu1  ;;  %7230 = vmatmul.mubr.bf16.gmra.mrb[48].mxu0 %v3015_v32  ;;  %v2057_v40 = vcombine.high %v2035_v46, %v2035_v46 }
 0x1b2   : > { %v7598_v3 = vpop.eup %7597  ;;  %v2604_v11 = vadd.f32 %v2355_v20, %v1616_v36  ;;  %v1619_v18 = vadd.f32 %v8539_v6, %v1618_v41  ;;  %v1620_v13 = vpop.f32.mrb[75].mxu1  ;;  %v2012_v20 = vcombine.high %v8380_v24, %v8380_v24 }
 0x1b3   : > { %v2889_v43 = vadd.f32 1.0, %v7598_v3  ;;  %v2960_v49 = vmul.f32 %v2888_v16, %v2672_v42  ;;  %v2379_v23 = vrot.slane %v2057_v40, %v8328_v48  ;;  %v7448_v40 = vld [vmem:[%s10042_s10 + $0x28] sm:$0xff]  }
 0x1b4   : > { %v2748_v44 = vmul.f32 0.70710677, %v2604_v11  ;;  %v2605_v35 = vadd.f32 %v2359_v47, %v1619_v18  ;;  %v2676_v3 = vmul.f32 0.5, %v2604_v11  ;;  %v2026_v30 = vrot.slane %v2012_v20, %v8317_v37 }
 0x1b5   : > { %v2961_v50 = vmul.f32 %v2889_v43, %v2673_v17  ;;  %v2059_v17 = vcombine.high %v2049_v62, %v2049_v62 }
 0x1b6   : > { %7603 = verf.f32 %v2748_v44  ;;  %v2749_v53 = vmul.f32 0.70710677, %v2605_v35  ;;  %v2677_v18 = vmul.f32 0.5, %v2605_v35  ;;  %v2028_v35 = vcombine.high %v2026_v30, %v2026_v30 }
 0x1b7   : > { %v1623_v28 = vpop.f32.mrb[76].mxu1  ;;  %v3016_v54 = vpack.c.bf16 %v2961_v50, %v2960_v49  ;;  %v7447_v50 = vld [vmem:[%s10042_s10 + $0x20] sm:$0xff]  }
 0x1b8   : > { %v7600_v59 = vpop.eup %7599  ;;  %7605 = verf.f32 %v2749_v53  ;;  %v1624_v27 = vadd.f32 %v8539_v6, %v1623_v28  ;;  %v1625_v61 = vpop.f32.mrb[77].mxu1  ;;  %v2383_v28 = vrot.slane %v2059_v17, %v8328_v48  ;;  %7281 = vmatprep.subr.bf16.mxu0 %v7447_v50 }
 0x1b9   : > { %v2890_v38 = vadd.f32 1.0, %v7600_v59  ;;  %v1626_v2 = vpop.f32.mrb[78].mxu1  ;;  %7233 = vmatprep.mubr.bf16.mxu0 %v3016_v54  ;;  %v2042_v61 = vrot.slane %v2026_v30, %v8317_v37  ;;  %7282 = vmatpush3.bf16.msra.mxu0 %v7447_v50 }
 0x1ba   : > { %v7602_v5 = vpop.eup %7601  ;;  %v2606_v7 = vadd.f32 %v2363_v55, %v1624_v27  ;;  %v1627_v34 = vadd.f32 %v8539_v6, %v1626_v2  ;;  %v1628_v8 = vpop.f32.mrb[79].mxu1  ;;  %7283 = vmatprep.subr.bf16.mxu0 %v7448_v40 }
 0x1bb   : > { %v2891_v56 = vadd.f32 1.0, %v7602_v5  ;;  %v2962_v58 = vmul.f32 %v2890_v38, %v2674_v60  ;;  %v2056_v60 = vrot.slane %v2028_v35, %v8317_v37  ;;  %v2387_v62 = vrot.slane %v2042_v61, %v8328_v48 }
 0x1bc   : > { %v2750_v63 = vmul.f32 0.70710677, %v2606_v7  ;;  %v2607_v0 = vadd.f32 %v2367_v52, %v1627_v34  ;;  %v2678_v2 = vmul.f32 0.5, %v2606_v7 }
 0x1bd   : > { %v2963_v10 = vmul.f32 %v2891_v56, %v2675_v9  ;;  %7284 = vmatpush3.bf16.msra.mxu0 %v7448_v40 }
 0x1be   : > { %7607 = verf.f32 %v2750_v63  ;;  %v2751_v12 = vmul.f32 0.70710677, %v2607_v0  ;;  %v2679_v5 = vmul.f32 0.5, %v2607_v0  ;;  %v2391_v0 = vrot.slane %v2056_v60, %v8328_v48 }
 0x1bf   : > { %v1631_v14 = vpop.f32.mrb[80].mxu1  ;;  %v3017_v15 = vpack.c.bf16 %v2963_v10, %v2962_v58 }
 0x1c0   : > { %v7604_v19 = vpop.eup %7603  ;;  %7609 = verf.f32 %v2751_v12  ;;  %v1632_v51 = vadd.f32 %v8539_v6, %v1631_v14  ;;  %v1633_v57 = vpop.f32.mrb[81].mxu1 }
 0x1c1   : > { %v2892_v32 = vadd.f32 1.0, %v7604_v19  ;;  %v1634_v33 = vpop.f32.mrb[82].mxu1  ;;  %7234 = vmatmul.mubr.bf16.gmra.mrb[52].mxu0 %v3017_v15 }
 0x1c2   : > { %v7606_v36 = vpop.eup %7605  ;;  %v2608_v47 = vadd.f32 %v2371_v4, %v1632_v51  ;;  %v1635_v16 = vadd.f32 %v8539_v6, %v1634_v33  ;;  %v1636_v41 = vpop.f32.mrb[83].mxu1 }
 0x1c3   : > { %v2893_v13 = vadd.f32 1.0, %v7606_v36  ;;  %v2964_v43 = vmul.f32 %v2892_v32, %v2676_v3  ;;  %v2060_v3 = vcombine.high %v2056_v60, %v2056_v60 }
 0x1c4   : > { %v2752_v24 = vmul.f32 0.70710677, %v2608_v47  ;;  %v2609_v42 = vadd.f32 %v2375_v29, %v1635_v16  ;;  %v2058_v29 = vcombine.high %v2042_v61, %v2042_v61  ;;  %v2680_v32 = vmul.f32 0.5, %v2608_v47 }
 0x1c5   : > { %v2965_v44 = vmul.f32 %v2893_v13, %v2677_v18  ;;  %v2068_v18 = vrot.slane %v8443_v22, %v8317_v37 }
 0x1c6   : > { %7611 = verf.f32 %v2752_v24  ;;  %v2753_v45 = vmul.f32 0.70710677, %v2609_v42  ;;  %v2681_v33 = vmul.f32 0.5, %v2609_v42  ;;  %v2395_v47 = vrot.slane %v2058_v29, %v8328_v48 }
 0x1c7   : > { %v1639_v39 = vpop.f32.mrb[84].mxu1  ;;  %v3018_v49 = vpack.c.bf16 %v2965_v44, %v2964_v43  ;;  %v7449_v43 = vld [vmem:[%s10042_s10 + $0x30] sm:$0xff]  }
 0x1c8   : > { %v7608_v11 = vpop.eup %7607  ;;  %7613 = verf.f32 %v2753_v45  ;;  %v1640_v53 = vadd.f32 %v8539_v6, %v1639_v39  ;;  %v1641_v55 = vpop.f32.mrb[85].mxu1  ;;  %v2399_v39 = vrot.slane %v2060_v3, %v8328_v48  ;;  %7285 = vmatprep.subr.bf16.mxu0 %v7449_v43 }
 0x1c9   : > { %v2894_v54 = vadd.f32 1.0, %v7608_v11  ;;  %v1642_v59 = vpop.f32.mrb[86].mxu1  ;;  %7237 = vmatprep.mubr.bf16.mxu0 %v3018_v49  ;;  %v2076_v49 = vcombine.high %v2068_v18, %v2068_v18  ;;  %7286 = vmatpush3.bf16.msra.mxu0 %v7449_v43 }
 0x1ca   : > { %v7610_v27 = vpop.eup %7609  ;;  %v8575_v52 = vadd.f32 %v2379_v23, %v1640_v53  ;;  %v1643_v21 = vadd.f32 %v8539_v6, %v1642_v59  ;;  %v1644_v38 = vpop.f32.mrb[87].mxu1 }
 0x1cb   : > { %v2895_v34 = vadd.f32 1.0, %v7610_v27  ;;  %v2966_v9 = vmul.f32 %v2894_v54, %v2678_v2  ;;  %v2084_v54 = vrot.slane %v2068_v18, %v8317_v37 }
 0x1cc   : > { %v2754_v8 = vmul.f32 0.70710677, %v8575_v52  ;;  %v2611_v46 = vadd.f32 %v2383_v28, %v1643_v21  ;;  %v2682_v59 = vmul.f32 0.5, %v8575_v52  ;;  %v7450_v21 = vld [vmem:[%s10042_s10 + $0x38] sm:$0xff]  }
 0x1cd   : > { %v2967_v56 = vmul.f32 %v2895_v34, %v2679_v5  ;;  %v2098_v5 = vrot.slane %v2076_v49, %v8317_v37  ;;  %7287 = vmatprep.subr.bf16.mxu0 %v7450_v21 }
 0x1ce   : > { %7615 = verf.f32 %v2754_v8  ;;  %v2755_v63 = vmul.f32 0.70710677, %v2611_v46  ;;  %v2683_v27 = vmul.f32 0.5, %v2611_v46  ;;  %7288 = vmatpush3.bf16.msra.mxu0 %v7450_v21 }
 0x1cf   : > { %v1647_v58 = vpop.f32.mrb[88].mxu1  ;;  %v3019_v10 = vpack.c.bf16 %v2967_v56, %v2966_v9  ;;  %v2403_v9 = vrot.slane %v2084_v54, %v8328_v48 }
 0x1d0   : > { %v7612_v12 = vpop.eup %7611  ;;  %7617 = verf.f32 %v2755_v63  ;;  %v1648_v4 = vadd.f32 %v8539_v6, %v1647_v58  ;;  %v1649_v7 = vpop.f32.mrb[89].mxu1  ;;  %v2061_v63 = vcombine.high %v8443_v22, %v8443_v22 }
 0x1d1   : > { %v2896_v14 = vadd.f32 1.0, %v7612_v12  ;;  %v1650_v15 = vpop.f32.mrb[90].mxu1  ;;  %7238 = vmatmul.mubr.bf16.gmra.mrb[56].mxu0 %v3019_v10  ;;  %v2407_v10 = vrot.slane %v2098_v5, %v8328_v48 }
 0x1d2   : > { %v7614_v19 = vpop.eup %7613  ;;  %v8583_v20 = vadd.f32 %v2387_v62, %v1648_v4  ;;  %v1651_v51 = vadd.f32 %v8539_v6, %v1650_v15  ;;  %v1652_v57 = vpop.f32.mrb[91].mxu1  ;;  %v2075_v22 = vrot.slane %v2061_v63, %v8317_v37 }
 0x1d3   : > { %v2897_v36 = vadd.f32 1.0, %v7614_v19  ;;  %v2968_v13 = vmul.f32 %v2896_v14, %v2680_v32 }
 0x1d4   : > { %v2756_v16 = vmul.f32 0.70710677, %v8583_v20  ;;  %v2613_v41 = vadd.f32 %v2391_v0, %v1651_v51  ;;  %v2106_v0 = vcombine.high %v2084_v54, %v2084_v54  ;;  %v2684_v51 = vmul.f32 0.5, %v8583_v20 }
 0x1d5   : > { %v2969_v30 = vmul.f32 %v2897_v36, %v2681_v33  ;;  %v2108_v36 = vcombine.high %v2098_v5, %v2098_v5 }
 0x1d6   : > { %7619 = verf.f32 %v2756_v16  ;;  %v2757_v24 = vmul.f32 0.70710677, %v2613_v41  ;;  %v2685_v57 = vmul.f32 0.5, %v2613_v41  ;;  %v2411_v18 = vrot.slane %v2106_v0, %v8328_v48 }
 0x1d7   : > { %v1655_v42 = vpop.f32.mrb[92].mxu1  ;;  %v3020_v17 = vpack.c.bf16 %v2969_v30, %v2968_v13 }
 0x1d8   : > { %v7616_v44 = vpop.eup %7615  ;;  %7621 = verf.f32 %v2757_v24  ;;  %v1656_v45 = vadd.f32 %v8539_v6, %v1655_v42  ;;  %v1657_v23 = vpop.f32.mrb[93].mxu1  ;;  %v2415_v42 = vrot.slane %v2108_v36, %v8328_v48 }
 0x1d9   : > { %v2898_v50 = vadd.f32 1.0, %v7616_v44  ;;  %v1658_v11 = vpop.f32.mrb[94].mxu1  ;;  %7241 = vmatprep.mubr.bf16.mxu0 %v3020_v17 }
 0x1da   : > { %v7618_v35 = vpop.eup %7617  ;;  %v2614_v53 = vadd.f32 %v2395_v47, %v1656_v45  ;;  %v1659_v55 = vadd.f32 %v8539_v6, %v1658_v11  ;;  %v1660_v28 = vpop.f32.mrb[95].mxu1  ;;  %v2077_v47 = vcombine.high %v2075_v22, %v2075_v22  ;;  %v2091_v45 = vrot.slane %v2075_v22, %v8317_v37 }
 0x1db   : > { %v2899_v61 = vadd.f32 1.0, %v7618_v35  ;;  %v2970_v34 = vmul.f32 %v2898_v50, %v2682_v59 }
 0x1dc   : > { %v2758_v38 = vmul.f32 0.70710677, %v2614_v53  ;;  %v2615_v2 = vadd.f32 %v2399_v39, %v1659_v55  ;;  %v2686_v50 = vmul.f32 0.5, %v2614_v53  ;;  %v2105_v54 = vrot.slane %v2077_v47, %v8317_v37 }
 0x1dd   : > { %v2971_v8 = vmul.f32 %v2899_v61, %v2683_v27  ;;  %v2419_v21 = vrot.slane %v2091_v45, %v8328_v48 }
 0x1de   : > { %7623 = verf.f32 %v2758_v38  ;;  %v2759_v60 = vmul.f32 0.70710677, %v2615_v2  ;;  %v2687_v11 = vmul.f32 0.5, %v2615_v2  ;;  %v2423_v53 = vrot.slane %v2105_v54, %v8328_v48 }
 0x1df   : > { %v1663_v56 = vpop.f32.mrb[96].mxu1  ;;  %v3021_v52 = vpack.c.bf16 %v2971_v8, %v2970_v34  ;;  %v2109_v0 = vcombine.high %v2105_v54, %v2105_v54 }
 0x1e0   : > { %v7620_v46 = vpop.eup %7619  ;;  %7625 = verf.f32 %v2759_v60  ;;  %v1664_v62 = vadd.f32 %v8539_v6, %v1663_v56  ;;  %v1665_v58 = vpop.f32.mrb[97].mxu1 }
 0x1e1   : > { %v2900_v12 = vadd.f32 1.0, %v7620_v46  ;;  %v1666_v4 = vpop.f32.mrb[98].mxu1  ;;  %7242 = vmatmul.mubr.bf16.gmra.mrb[60].mxu0 %v3021_v52 }
 0x1e2   : > { %v7622_v7 = vpop.eup %7621  ;;  %v2616_v14 = vadd.f32 %v2403_v9, %v1664_v62  ;;  %v1667_v15 = vadd.f32 %v8539_v6, %v1666_v4  ;;  %v1668_v19 = vpop.f32.mrb[99].mxu1  ;;  %v2107_v62 = vcombine.high %v2091_v45, %v2091_v45 }
 0x1e3   : > { %v2901_v29 = vadd.f32 1.0, %v7622_v7  ;;  %v2972_v40 = vmul.f32 %v2900_v12, %v2684_v51 }
 0x1e4   : > { %v2760_v32 = vmul.f32 0.70710677, %v2616_v14  ;;  %v2617_v33 = vadd.f32 %v2407_v10, %v1667_v15  ;;  %v2688_v58 = vmul.f32 0.5, %v2616_v14  ;;  %v2117_v15 = vrot.slane %v8485_v25, %v8317_v37 }
 0x1e5   : > { %v2973_v16 = vmul.f32 %v2901_v29, %v2685_v57  ;;  %v2427_v29 = vrot.slane %v2107_v62, %v8328_v48 }
 0x1e6   : > { %7627 = verf.f32 %v2760_v32  ;;  %v2761_v3 = vmul.f32 0.70710677, %v2617_v33  ;;  %v2689_v10 = vmul.f32 0.5, %v2617_v33 }
 0x1e7   : > { %v1671_v13 = vpop.f32.mrb[100].mxu1  ;;  %v3022_v30 = vpack.c.bf16 %v2973_v16, %v2972_v40  ;;  %v2431_v40 = vrot.slane %v2109_v0, %v8328_v48  ;;  %v2125_v16 = vcombine.high %v2117_v15, %v2117_v15 }
 0x1e8   : > { %v7624_v24 = vpop.eup %7623  ;;  %7629 = verf.f32 %v2761_v3  ;;  %v1672_v20 = vadd.f32 %v8539_v6, %v1671_v13  ;;  %v1673_v41 = vpop.f32.mrb[101].mxu1 }
 0x1e9   : > { %v2902_v17 = vadd.f32 1.0, %v7624_v24  ;;  %v1674_v43 = vpop.f32.mrb[102].mxu1  ;;  %7245 = vmatprep.mubr.bf16.mxu0 %v3022_v30  ;;  %v2147_v45 = vrot.slane %v2125_v16, %v8317_v37 }
 0x1ea   : > { %v7626_v44 = vpop.eup %7625  ;;  %v2618_v23 = vadd.f32 %v2411_v18, %v1672_v20  ;;  %v1675_v39 = vadd.f32 %v8539_v6, %v1674_v43  ;;  %v1676_v49 = vpop.f32.mrb[103].mxu1  ;;  %v2133_v20 = vrot.slane %v2117_v15, %v8317_v37 }
 0x1eb   : > { %v2903_v35 = vadd.f32 1.0, %v7626_v44  ;;  %v2974_v59 = vmul.f32 %v2902_v17, %v2686_v50 }
 0x1ec   : > { %v2762_v55 = vmul.f32 0.70710677, %v2618_v23  ;;  %v2619_v28 = vadd.f32 %v2415_v42, %v1675_v39  ;;  %v2690_v41 = vmul.f32 0.5, %v2618_v23 }
 0x1ed   : > { %v2975_v27 = vmul.f32 %v2903_v35, %v2687_v11  ;;  %v2435_v11 = vrot.slane %v2133_v20, %v8328_v48 }
 0x1ee   : > { %7631 = verf.f32 %v2762_v55  ;;  %v2763_v61 = vmul.f32 0.70710677, %v2619_v28  ;;  %v2691_v42 = vmul.f32 0.5, %v2619_v28 }
 0x1ef   : > { %v1679_v38 = vpop.f32.mrb[104].mxu1  ;;  %v3023_v5 = vpack.c.bf16 %v2975_v27, %v2974_v59  ;;  %v2110_v59 = vcombine.high %v8485_v25, %v8485_v25  ;;  %v2439_v27 = vrot.slane %v2147_v45, %v8328_v48 }
 0x1f0   : > { %v7628_v34 = vpop.eup %7627  ;;  %7633 = verf.f32 %v2763_v61  ;;  %v1680_v8 = vadd.f32 %v8539_v6, %v1679_v38  ;;  %v1681_v60 = vpop.f32.mrb[105].mxu1 }
 0x1f1   : > { %v2904_v2 = vadd.f32 1.0, %v7628_v34  ;;  %v1682_v9 = vpop.f32.mrb[106].mxu1  ;;  %7246 = vmatmul.mubr.bf16.gmra.mrb[64].mxu0 %v3023_v5  ;;  %v2155_v5 = vcombine.high %v2133_v20, %v2133_v20 }
 0x1f2   : > { %v7630_v56 = vpop.eup %7629  ;;  %v2620_v52 = vadd.f32 %v2419_v21, %v1680_v8  ;;  %v1683_v46 = vadd.f32 %v8539_v6, %v1682_v9  ;;  %v1684_v63 = vpop.f32.mrb[107].mxu1 }
 0x1f3   : > { %v2905_v12 = vadd.f32 1.0, %v7630_v56  ;;  %v2976_v19 = vmul.f32 %v2904_v2, %v2688_v58  ;;  %v2124_v56 = vrot.slane %v2110_v59, %v8317_v37  ;;  %v2157_v63 = vcombine.high %v2147_v45, %v2147_v45 }
 0x1f4   : > { %v2764_v4 = vmul.f32 0.70710677, %v2620_v52  ;;  %v2621_v7 = vadd.f32 %v2423_v53, %v1683_v46  ;;  %v2692_v53 = vmul.f32 0.5, %v2620_v52 }
 0x1f5   : > { %v2977_v51 = vmul.f32 %v2905_v12, %v2689_v10  ;;  %v2443_v12 = vrot.slane %v2155_v5, %v8328_v48 }
 0x1f6   : > { %7635 = verf.f32 %v2764_v4  ;;  %v2765_v57 = vmul.f32 0.70710677, %v2621_v7  ;;  %v2693_v2 = vmul.f32 0.5, %v2621_v7 }
 0x1f7   : > { %v1687_v22 = vpop.f32.mrb[108].mxu1  ;;  %v3024_v32 = vpack.c.bf16 %v2977_v51, %v2976_v19  ;;  %v2126_v19 = vcombine.high %v2124_v56, %v2124_v56  ;;  %v2447_v51 = vrot.slane %v2157_v63, %v8328_v48 }
 0x1f8   : > { %v7632_v36 = vpop.eup %7631  ;;  %7637 = verf.f32 %v2765_v57  ;;  %v1688_v14 = vadd.f32 %v8539_v6, %v1687_v22  ;;  %v1689_v33 = vpop.f32.mrb[109].mxu1 }
 0x1f9   : > { %v2906_v3 = vadd.f32 1.0, %v7632_v36  ;;  %v1690_v18 = vpop.f32.mrb[110].mxu1  ;;  %7249 = vmatprep.mubr.bf16.mxu0 %v3024_v32  ;;  %v2140_v32 = vrot.slane %v2124_v56, %v8317_v37 }
 0x1fa   : > { %v7634_v13 = vpop.eup %7633  ;;  %v2622_v30 = vadd.f32 %v2427_v29, %v1688_v14  ;;  %v1691_v24 = vadd.f32 %v8539_v6, %v1690_v18  ;;  %v1692_v47 = vpop.f32.mrb[111].mxu1 }
 0x1fb   : > { %v2907_v17 = vadd.f32 1.0, %v7634_v13  ;;  %v2978_v39 = vmul.f32 %v2906_v3, %v2690_v41 }
 0x1fc   : > { %v2766_v43 = vmul.f32 0.70710677, %v2622_v30  ;;  %v2623_v44 = vadd.f32 %v2431_v40, %v1691_v24  ;;  %v2694_v40 = vmul.f32 0.5, %v2622_v30  ;;  %v2154_v24 = vrot.slane %v2126_v19, %v8317_v37 }
 0x1fd   : > { %v2979_v49 = vmul.f32 %v2907_v17, %v2691_v42  ;;  %v2451_v42 = vrot.slane %v2140_v32, %v8328_v48 }
 0x1fe   : > { %7639 = verf.f32 %v2766_v43  ;;  %v2767_v50 = vmul.f32 0.70710677, %v2623_v44  ;;  %v2695_v16 = vmul.f32 0.5, %v2623_v44 }
 0x1ff   : > { %v1695_v35 = vpop.f32.mrb[112].mxu1  ;;  %v3025_v55 = vpack.c.bf16 %v2979_v49, %v2978_v39  ;;  %v2455_v39 = vrot.slane %v2154_v24, %v8328_v48  ;;  %v2156_v49 = vcombine.high %v2140_v32, %v2140_v32 }
 0x200   : > { %v7636_v54 = vpop.eup %7635  ;;  %7641 = verf.f32 %v2767_v50  ;;  %v1696_v23 = vadd.f32 %v8539_v6, %v1695_v35  ;;  %v1697_v28 = vpop.f32.mrb[113].mxu1 }
 0x201   : > { %v2908_v61 = vadd.f32 1.0, %v7636_v54  ;;  %v1698_v21 = vpop.f32.mrb[114].mxu1  ;;  %7250 = vmatmul.mubr.bf16.gmra.mrb[68].mxu0 %v3025_v55  ;;  %v8661_v28 = vld [vmem:[%s10041_s9] ss:$0 sm:$0xff] }
 0x202   : > { %v7638_v38 = vpop.eup %7637  ;;  %v2624_v34 = vadd.f32 %v2435_v11, %v1696_v23  ;;  %v1699_v8 = vadd.f32 %v8539_v6, %v1698_v21  ;;  %v1700_v60 = vpop.f32.mrb[115].mxu1  ;;  %v2166_v11 = vrot.slane %v8510_v26, %v8317_v37 }
 0x203   : > { %v2909_v9 = vadd.f32 1.0, %v7638_v38  ;;  %v2980_v62 = vmul.f32 %v2908_v61, %v2692_v53 }
 0x204   : > { %v2768_v25 = vmul.f32 0.70710677, %v2624_v34  ;;  %v2625_v46 = vadd.f32 %v2439_v27, %v1699_v8  ;;  %v2158_v27 = vcombine.high %v2154_v24, %v2154_v24  ;;  %v2696_v61 = vmul.f32 0.5, %v2624_v34 }
 0x205   : > { %v2981_v58 = vmul.f32 %v2909_v9, %v2693_v2  ;;  %v2159_v8 = vcombine.high %v8510_v26, %v8510_v26  ;;  %v2459_v2 = vrot.slane %v2156_v49, %v8328_v48  ;;  %v2174_v9 = vcombine.high %v2166_v11, %v2166_v11 }
 0x206   : > { %7643 = verf.f32 %v2768_v25  ;;  %v2769_v10 = vmul.f32 0.70710677, %v2625_v46  ;;  %v2697_v21 = vmul.f32 0.5, %v2625_v46  ;;  %v2463_v26 = vrot.slane %v2158_v27, %v8328_v48 }
 0x207   : > { %v1703_v4 = vpop.f32.mrb[116].mxu1  ;;  %v3026_v0 = vpack.c.bf16 %v2981_v58, %v2980_v62  ;;  %v2196_v32 = vrot.slane %v2174_v9, %v8317_v37 }
 0x208   : > { %v7640_v15 = vpop.eup %7639  ;;  %7645 = verf.f32 %v2769_v10  ;;  %v1704_v52 = vadd.f32 %v8539_v6, %v1703_v4  ;;  %v1705_v7 = vpop.f32.mrb[117].mxu1  ;;  %v2182_v10 = vrot.slane %v2166_v11, %v8317_v37 }
 0x209   : > { %v2910_v57 = vadd.f32 1.0, %v7640_v15  ;;  %v1706_v29 = vpop.f32.mrb[118].mxu1  ;;  %7253 = vmatprep.mubr.bf16.mxu0 %v3026_v0  ;;  %v2173_v7 = vrot.slane %v2159_v8, %v8317_v37  ;;  %v2206_v49 = vcombine.high %v2196_v32, %v2196_v32  ;;  %v2471_v27 = vrot.slane %v2196_v32, %v8328_v48 }
 0x20a   : > { %v7642_v22 = vpop.eup %7641  ;;  %v8642_v36 = vadd.f32 %v2443_v12, %v1704_v52  ;;  %v1707_v14 = vadd.f32 %v8539_v6, %v1706_v29  ;;  %v1708_v33 = vpop.f32.mrb[119].mxu1 }
 0x20b   : > { %v2911_v3 = vadd.f32 1.0, %v7642_v22  ;;  %v2982_v47 = vmul.f32 %v2910_v57, %v2694_v40 }
 0x20c   : > { %v2770_v18 = vmul.f32 0.70710677, %v8642_v36  ;;  %v8646_v13 = vadd.f32 %v2447_v51, %v1707_v14 }
 0x20d   : > { %v2983_v20 = vmul.f32 %v2911_v3, %v2695_v16 }
 0x20e   : > { %7647 = verf.f32 %v2770_v18  ;;  %v2771_v41 = vmul.f32 0.70710677, %v8646_v13 }
 0x20f   : > { %v1711_v17 = vpop.f32.mrb[120].mxu1  ;;  %v3027_v43 = vpack.c.bf16 %v2983_v20, %v2982_v47  ;;  %v2698_v47 = vmul.f32 0.5, %v8642_v36  ;;  %v2699_v20 = vmul.f32 0.5, %v8646_v13  ;;  %v2467_v36 = vrot.slane %v2182_v10, %v8328_v48 }
 0x210   : > { %v7644_v45 = vpop.eup %7643  ;;  %7649 = verf.f32 %v2771_v41  ;;  %v1712_v30 = vadd.f32 %v8539_v6, %v1711_v17  ;;  %v1713_v44 = vpop.f32.mrb[121].mxu1  ;;  %v2204_v17 = vcombine.high %v2182_v10, %v2182_v10 }
 0x211   : > { %v2912_v50 = vadd.f32 1.0, %v7644_v45  ;;  %v1714_v35 = vpop.f32.mrb[122].mxu1  ;;  %7254 = vmatmul.mubr.bf16.gmra.mrb[72].mxu0 %v3027_v43 }
 0x212   : > { %v7646_v55 = vpop.eup %7645  ;;  %v8655_v54 = vadd.f32 %v2451_v42, %v1712_v30  ;;  %v1715_v59 = vadd.f32 %v8539_v6, %v1714_v35  ;;  %v1716_v23 = vpop.f32.mrb[123].mxu1  ;;  %v8694_v42 = vrot.slane %v2173_v7, %v8317_v37 }
 0x213   : > { %v2913_v38 = vadd.f32 1.0, %v7646_v55  ;;  %v2984_v63 = vmul.f32 %v2912_v50, %v2696_v61  ;;  %v2175_v50 = vcombine.high %v2173_v7, %v2173_v7 }
 0x214   : > { %v2772_v5 = vmul.f32 0.70710677, %v8655_v54  ;;  %v8666_v60 = vadd.f32 %v2455_v39, %v1715_v59  ;;  %v7203_v53 = vpop.f32.mrb[20].mxu0  ;;  %v2205_v10 = vcombine.high %v8694_v42, %v8694_v42 }
 0x215   : > { %v8670_v56 = vadd.f32 %v7203_v53, %v8661_v28  ;;  %v3124_v25 = vpop.f32.mrb[21].mxu0  ;;  %v2985_v62 = vmul.f32 %v2913_v38, %v2697_v21  ;;  %v2475_v21 = vrot.slane %v2204_v17, %v8328_v48  ;;  %v8705_v38 = vrot.slane %v2206_v49, %v8328_v48 }
 0x216   : > { %7651 = verf.f32 %v2772_v5  ;;  %v2773_v34 = vmul.f32 0.70710677, %v8666_v60  ;;  %v8674_v46 = vadd.f32 %v8661_v28, %v3124_v25  ;;  %v7204_v58 = vpop.f32.mrb[22].mxu0  ;;  %v2483_v5 = vrot.slane %v8694_v42, %v8328_v48 }
 0x217   : > { %v3485_v12 = vmul.f32 0.70710677, %v8670_v56  ;;  %v8680_v4 = vadd.f32 %v7204_v58, %v8661_v28  ;;  %v1719_v0 = vpop.f32.mrb[124].mxu1  ;;  %v3127_v15 = vpop.f32.mrb[23].mxu0  ;;  %v3028_v19 = vpack.c.bf16 %v2985_v62, %v2984_v63  ;;  %v8713_v63 = vrot.slane %v2175_v50, %v8317_v37 }
 0x218   : > { %v7648_v52 = vpop.eup %7647  ;;  %7653 = verf.f32 %v2773_v34  ;;  %v3483_v51 = vmul.f32 0.70710677, %v8674_v46  ;;  %v1720_v57 = vadd.f32 %v8539_v6, %v1719_v0  ;;  %v1721_v29 = vpop.f32.mrb[125].mxu1  ;;  %v8688_v3 = vadd.f32 %v8661_v28, %v3127_v15 }
 0x219   : > { %v2914_v22 = vadd.f32 1.0, %v7648_v52  ;;  %7655 = verf.f32 %v3485_v12  ;;  %v3486_v14 = vmul.f32 0.70710677, %v8680_v4  ;;  %v1722_v33 = vpop.f32.mrb[126].mxu1  ;;  %7257 = vmatprep.mubr.bf16.mxu0 %v3028_v19  ;;  %v2700_v34 = vmul.f32 0.5, %v8655_v54 }
 0x21a   : > { %v7650_v40 = vpop.eup %7649  ;;  %7657 = verf.f32 %v3483_v51  ;;  %v2630_v16 = vadd.f32 %v2459_v2, %v1720_v57  ;;  %v1723_v18 = vadd.f32 %v8539_v6, %v1722_v33  ;;  %v1724_v24 = vpop.f32.mrb[127].mxu1  ;;  %v3484_v45 = vmul.f32 0.70710677, %v8688_v3 }
 0x21b   : > { %v2915_v41 = vadd.f32 1.0, %v7650_v40  ;;  %7659 = verf.f32 %v3486_v14  ;;  %v2986_v44 = vmul.f32 %v2914_v22, %v2698_v47  ;;  %v2701_v58 = vmul.f32 0.5, %v8666_v60 }
 0x21c   : > { %v2774_v43 = vmul.f32 0.70710677, %v2630_v16  ;;  %v8697_v30 = vadd.f32 %v2463_v26, %v1723_v18  ;;  %v3413_v0 = vmul.f32 0.5, %v8670_v56  ;;  %v3411_v51 = vmul.f32 0.5, %v8674_v46 }
 0x21d   : > { %v2987_v39 = vmul.f32 %v2915_v41, %v2699_v20  ;;  %v3414_v54 = vmul.f32 0.5, %v8680_v4  ;;  %v2702_v14 = vmul.f32 0.5, %v2630_v16 }
 0x21e   : > { %7661 = verf.f32 %v2774_v43  ;;  %v2775_v13 = vmul.f32 0.70710677, %v8697_v30 }
 0x21f   : > { %7663 = verf.f32 %v3484_v45  ;;  %v1727_v11 = vpop.f32.mrb[128].mxu1  ;;  %v3029_v35 = vpack.c.bf16 %v2987_v39, %v2986_v44  ;;  %v3412_v44 = vmul.f32 0.5, %v8688_v3  ;;  %v2703_v39 = vmul.f32 0.5, %v8697_v30 }
 0x220   : > { %v7652_v55 = vpop.eup %7651  ;;  %v1728_v59 = vadd.f32 %v8539_v6, %v1727_v11  ;;  %v1729_v23 = vpop.f32.mrb[129].mxu1  ;;  %7665 = verf.f32 %v2775_v13 }
 0x221   : > { %v1730_v61 = vpop.f32.mrb[130].mxu1  ;;  %7258 = vmatmul.mubr.bf16.gmra.mrb[76].mxu0 %v3029_v35  ;;  %v2916_v53 = vadd.f32 1.0, %v7652_v55 }
 0x222   : > { %v7654_v8 = vpop.eup %7653  ;;  %v8709_v2 = vadd.f32 %v2467_v36, %v1728_v59  ;;  %v1731_v9 = vadd.f32 %v8539_v6, %v1730_v61  ;;  %v1732_v25 = vpop.f32.mrb[131].mxu1 }
 0x223   : > { %v7656_v62 = vpop.eup %7655  ;;  %v2917_v26 = vadd.f32 1.0, %v7654_v8  ;;  %v2988_v33 = vmul.f32 %v2916_v53, %v2700_v34  ;;  %v8764_v53 = vld [vmem:[%s8745_s30] sm:$0xff] }
 0x224   : > { %v7658_v12 = vpop.eup %7657  ;;  %v3629_v15 = vadd.f32 1.0, %v7656_v62  ;;  %v2776_v19 = vmul.f32 0.70710677, %v8709_v2  ;;  %v8721_v52 = vadd.f32 %v2471_v27, %v1731_v9  ;;  %v7207_v7 = vpop.f32.mrb[24].mxu0  ;;  %v8770_v25 = vld [vmem:[%s10039_s7] ss:$0 sm:$0xff]  ;;  %v2207_v62 = vcombine.high %v8713_v63, %v8713_v63 }
 0x225   : > { %v7660_v37 = vpop.eup %7659  ;;  %v8726_v60 = vadd.f32 %v7207_v7, %v8661_v28  ;;  %v3140_v57 = vpop.f32.mrb[25].mxu0  ;;  %v2989_v29 = vmul.f32 %v2917_v26, %v2701_v58  ;;  %v3627_v22 = vadd.f32 1.0, %v7658_v12 }
 0x226   : > { %v3630_v32 = vadd.f32 1.0, %v7660_v37  ;;  %v7208_v56 = vpop.f32.mrb[26].mxu0  ;;  %v8728_v40 = vmul.f32 %v3629_v15, %v3413_v0  ;;  %7667 = verf.f32 %v2776_v19  ;;  %v2777_v18 = vmul.f32 0.70710677, %v8721_v52 }
 0x227   : > { %v3489_v46 = vmul.f32 0.70710677, %v8726_v60  ;;  %v1735_v24 = vpop.f32.mrb[132].mxu1  ;;  %v8735_v20 = vadd.f32 %v8661_v28, %v3140_v57  ;;  %v8738_v41 = vadd.f32 %v7208_v56, %v8661_v28  ;;  %v3143_v17 = vpop.f32.mrb[27].mxu0  ;;  %v3030_v36 = vpack.c.bf16 %v2989_v29, %v2988_v33 }
 0x228   : > { %v7662_v4 = vpop.eup %7661  ;;  %v8732_v47 = vmul.f32 %v3630_v32, %v3414_v54  ;;  %v1736_v16 = vadd.f32 %v8539_v6, %v1735_v24  ;;  %v1737_v43 = vpop.f32.mrb[133].mxu1  ;;  %v8750_v49 = vadd.f32 %v8661_v28, %v3143_v17  ;;  %v8758_v23 = vmul.f32 %v3627_v22, %v3411_v51 }
 0x229   : > { %v7664_v45 = vpop.eup %7663  ;;  %v1738_v50 = vpop.f32.mrb[134].mxu1  ;;  %v2918_v13 = vadd.f32 1.0, %v7662_v4  ;;  %7669 = verf.f32 %v3489_v46  ;;  %v3487_v59 = vmul.f32 0.70710677, %v8735_v20  ;;  %v3490_v3 = vmul.f32 0.70710677, %v8738_v41  ;;  %7261 = vmatprep.mubr.bf16.mxu0 %v3030_v36 }
 0x22a   : > { %v3772_v6 = vpack.c.bf16 %v8732_v47, %v8728_v40  ;;  %v3628_v11 = vadd.f32 1.0, %v7664_v45  ;;  %v1740_v35 = vpop.f32.mrb[135].mxu1  ;;  %v7666_v55 = vpop.eup %7665  ;;  %7671 = verf.f32 %v2777_v18  ;;  %v8756_v30 = vadd.f32 %v2475_v21, %v1736_v16  ;;  %v8811_v46 = vld [vmem:[%s8745_s30 + $0x8] sm:$0xff] }
 0x22b   : > { %v2919_v61 = vadd.f32 1.0, %v7666_v55  ;;  %v3488_v8 = vmul.f32 0.70710677, %v8750_v49  ;;  %7673 = verf.f32 %v3487_v59  ;;  %v1739_v21 = vadd.f32 %v8770_v25, %v1738_v50 }
 0x22c   : > { %v8760_v27 = vmul.f32 %v3628_v11, %v3412_v44  ;;  %v2778_v9 = vmul.f32 0.70710677, %v8756_v30  ;;  %7675 = verf.f32 %v3490_v3  ;;  %v2990_v34 = vmul.f32 %v2918_v13, %v2702_v14 }
 0x22d   : > { %v2991_v58 = vmul.f32 %v2919_v61, %v2703_v39  ;;  %v8778_v12 = vadd.f32 %v8705_v38, %v1739_v21  ;;  %v4194_v15 = vrot.slane %v8764_v53, %v8328_v48  ;;  %v8783_v19 = vsub.s32 1, %v8310_v31 }
 0x22e   : > { %v3771_v26 = vpack.c.bf16 %v8760_v27, %v8758_v23  ;;  %7677 = verf.f32 %v2778_v9  ;;  %v2487_v51 = vrot.slane %v8713_v63, %v8328_v48  ;;  %v8793_v22 = vrot.slane %v2205_v10, %v8328_v48 }
 0x22f   : > { %v1743_v0 = vpop.f32.mrb[136].mxu1  ;;  %7679 = verf.f32 %v3488_v8  ;;  %v3031_v54 = vpack.c.bf16 %v2991_v58, %v2990_v34  ;;  %v2779_v38 = vmul.f32 0.70710677, %v8778_v12  ;;  %4196 = vbcast.lane.b32.xlu0 %v4194_v15, 256  ;;  %v4201_v32 = vrot.slane %v8764_v53, %v8783_v19 }
 0x230   : > { %v1744_v7 = vadd.f32 %v8770_v25, %v1743_v0  ;;  %v1745_v37 = vpop.f32.mrb[137].mxu1  ;;  %v7668_v57 = vpop.eup %7667  ;;  %v8798_v14 = vsub.s32 2, %v8310_v31  ;;  %v2704_v63 = vmul.f32 0.5, %v8709_v2  ;;  %v8808_v10 = vrot.slane %v2207_v62, %v8328_v48 }
 0x231   : > { %v1746_v29 = vpop.f32.mrb[138].mxu1  ;;  %7262 = vmatmul.mubr.bf16.gmra.mrb[80].mxu0 %v3031_v54  ;;  %v2705_v24 = vmul.f32 0.5, %v8721_v52  ;;  %v3417_v4 = vmul.f32 0.5, %v8726_v60  ;;  %7681 = verf.f32 %v2779_v38  ;;  %v4250_v2 = vrot.slane %v8811_v46, %v8328_v48 }
 0x232   : > { %v8804_v56 = vadd.f32 %v2483_v5, %v1744_v7  ;;  %v1747_v33 = vadd.f32 %v8770_v25, %v1746_v29  ;;  %v1748_v18 = vpop.f32.mrb[139].mxu1  ;;  %v3415_v5 = vmul.f32 0.5, %v8735_v20  ;;  %v8822_v45 = vsub.s32 3, %v8310_v31 }
 0x233   : > { %v7670_v42 = vpop.eup %7669  ;;  %v2920_v39 = vadd.f32 1.0, %v7668_v57  ;;  %v3418_v52 = vmul.f32 0.5, %v8738_v41  ;;  %4203 = vbcast.lane.b32.xlu0 %v4201_v32, 256  ;;  %v4208_v20 = vrot.slane %v8764_v53, %v8798_v14  ;;  %4252 = vbcast.lane.b32.xlu1 %v4250_v2, 256  ;;  %v2706_v41 = vmul.f32 0.5, %v8756_v30 }
 0x234   : > { %v2780_v16 = vmul.f32 0.70710677, %v8804_v56  ;;  %v8819_v17 = vadd.f32 %v2487_v51, %v1747_v33  ;;  %v7211_v43 = vpop.f32.mrb[28].mxu0  ;;  %v7672_v44 = vpop.eup %7671  ;;  %v3633_v36 = vadd.f32 1.0, %v7670_v42  ;;  %v3416_v59 = vmul.f32 0.5, %v8750_v49 }
 0x235   : > { %v8826_v60 = vadd.f32 %v7211_v43, %v8661_v28  ;;  %v3156_v50 = vpop.f32.mrb[29].mxu0  ;;  %v7674_v55 = vpop.eup %7673  ;;  %v2921_v62 = vadd.f32 1.0, %v7672_v44  ;;  %v4215_v0 = vrot.slane %v8764_v53, %v8822_v45  ;;  %v2992_v38 = vmul.f32 %v2920_v39, %v2704_v63 }
 0x236   : > { %7683 = verf.f32 %v2780_v16  ;;  %v2781_v13 = vmul.f32 0.70710677, %v8819_v17  ;;  %v8832_v11 = vadd.f32 %v8661_v28, %v3156_v50  ;;  %v7212_v35 = vpop.f32.mrb[30].mxu0  ;;  %v7676_v21 = vpop.eup %7675  ;;  %v3631_v30 = vadd.f32 1.0, %v7674_v55 }
 0x237   : > { %v3493_v3 = vmul.f32 0.70710677, %v8826_v60  ;;  %v8838_v61 = vadd.f32 %v7212_v35, %v8661_v28  ;;  %v1751_v8 = vpop.f32.mrb[140].mxu1  ;;  %v3159_v9 = vpop.f32.mrb[31].mxu0  ;;  %v3634_v7 = vadd.f32 1.0, %v7676_v21  ;;  %4210 = vbcast.lane.b32.xlu0 %v4208_v20, 256  ;;  %v8844_v54 = vmul.f32 %v3633_v36, %v3417_v4 }
 0x238   : > { %7685 = verf.f32 %v2781_v13  ;;  %v3491_v34 = vmul.f32 0.70710677, %v8832_v11  ;;  %v1753_v58 = vpop.f32.mrb[141].mxu1  ;;  %v7678_v15 = vpop.eup %7677  ;;  %v1752_v57 = vadd.f32 %v8770_v25, %v1751_v8  ;;  %v8850_v18 = vadd.f32 %v8661_v28, %v3159_v9 }
 0x239   : > { %7687 = verf.f32 %v3493_v3  ;;  %v3494_v49 = vmul.f32 0.70710677, %v8838_v61  ;;  %v1754_v37 = vpop.f32.mrb[142].mxu1  ;;  %v7680_v51 = vpop.eup %7679  ;;  %v8847_v32 = vmul.f32 %v3634_v7, %v3418_v52  ;;  %v2922_v2 = vadd.f32 1.0, %v7678_v15 }
 0x23a   : > { %7689 = verf.f32 %v3491_v34  ;;  %v1756_v29 = vpop.f32.mrb[143].mxu1  ;;  %v3632_v33 = vadd.f32 1.0, %v7680_v51  ;;  %v8853_v42 = vadd.f32 %v8793_v22, %v1752_v57  ;;  %v1755_v16 = vadd.f32 %v8770_v25, %v1754_v37 }
 0x23b   : > { %7691 = verf.f32 %v3494_v49  ;;  %v2993_v4 = vmul.f32 %v2921_v62, %v2705_v24  ;;  %v7682_v43 = vpop.eup %7681  ;;  %v8856_v44 = vmul.f32 %v3631_v30, %v3415_v5  ;;  %v3492_v63 = vmul.f32 0.70710677, %v8850_v18  ;;  %4217 = vbcast.lane.b32.xlu0 %v4215_v0, 256 }
 0x23c   : > { %v8858_v50 = vmul.f32 %v3632_v33, %v3416_v59  ;;  %v3774_v39 = vpack.c.bf16 %v8847_v32, %v8844_v54  ;;  %v2707_v52 = vmul.f32 0.5, %v8778_v12  ;;  %v2923_v20 = vadd.f32 1.0, %v7682_v43 }
 0x23d   : > { %v2782_v22 = vmul.f32 0.70710677, %v8853_v42  ;;  %v8866_v36 = vadd.f32 %v8808_v10, %v1755_v16  ;;  %7693 = verf.f32 %v3492_v63  ;;  %v3032_v25 = vpack.c.bf16 %v2993_v4, %v2992_v38 }
 0x23e   : > { %v3773_v24 = vpack.c.bf16 %v8858_v50, %v8856_v44  ;;  %v4257_v5 = vrot.slane %v8811_v46, %v8783_v19  ;;  %v2994_v55 = vmul.f32 %v2922_v2, %v2706_v41  ;;  %v2995_v12 = vmul.f32 %v2923_v20, %v2707_v52 }
 0x23f   : > { %7695 = verf.f32 %v2782_v22  ;;  %v2783_v35 = vmul.f32 0.70710677, %v8866_v36  ;;  %7265 = vmatprep.mubr.bf16.mxu0 %v3032_v25  ;;  %v8874_v59 = vsub.s32 4, %v8310_v31  ;;  %v4264_v10 = vrot.slane %v8811_v46, %v8798_v14 }
 0x240   : > { %v7684_v13 = vpop.eup %7683  ;;  %4259 = vbcast.lane.b32.xlu1 %v4257_v5, 256  ;;  %v8879_v3 = vsub.s32 5, %v8310_v31  ;;  %v3033_v21 = vpack.c.bf16 %v2995_v12, %v2994_v55  ;;  %v8882_v62 = vsub.s32 6, %v8310_v31  ;;  %v2708_v34 = vmul.f32 0.5, %v8804_v56 }
 0x241   : > { %v2924_v9 = vadd.f32 1.0, %v7684_v13  ;;  %7697 = verf.f32 %v2783_v35  ;;  %v2709_v58 = vmul.f32 0.5, %v8819_v17  ;;  %v4222_v15 = vrot.slane %v8764_v53, %v8874_v59 }
 0x242   : > { %v7686_v8 = vpop.eup %7685  ;;  %v3421_v7 = vmul.f32 0.5, %v8826_v60  ;;  %v3419_v49 = vmul.f32 0.5, %v8832_v11  ;;  %v3422_v37 = vmul.f32 0.5, %v8838_v61  ;;  %7266 = vmatmul.mubr.bf16.gmra.mrb[84].mxu0 %v3033_v21  ;;  %v4271_v57 = vrot.slane %v8811_v46, %v8822_v45 }
 0x243   : > { %v7688_v41 = vpop.eup %7687  ;;  %v2925_v0 = vadd.f32 1.0, %v7686_v8  ;;  %4224 = vbcast.lane.b32.xlu0 %v4222_v15, 256  ;;  %v4229_v60 = vrot.slane %v8764_v53, %v8879_v3  ;;  %v2996_v16 = vmul.f32 %v2924_v9, %v2708_v34  ;;  %v4236_v4 = vrot.slane %v8764_v53, %v8882_v62 }
 0x244   : > { %v7690_v30 = vpop.eup %7689  ;;  %v7215_v51 = vpop.f32.mrb[32].mxu0  ;;  %v3637_v56 = vadd.f32 1.0, %v7688_v41  ;;  %4266 = vbcast.lane.b32.xlu1 %v4264_v10, 256  ;;  %v4278_v20 = vrot.slane %v8811_v46, %v8874_v59  ;;  %v8903_v22 = vsub.s32 7, %v8310_v31  ;;  %v3420_v21 = vmul.f32 0.5, %v8850_v18 }
 0x245   : > { %v7692_v38 = vpop.eup %7691  ;;  %v3181_v17 = vadd.f32 %v7215_v51, %v8661_v28  ;;  %v3172_v29 = vpop.f32.mrb[33].mxu0  ;;  %v2997_v33 = vmul.f32 %v2925_v0, %v2709_v58  ;;  %v3635_v25 = vadd.f32 1.0, %v7690_v30  ;;  %v2710_v30 = vmul.f32 0.5, %v8853_v42 }
 0x246   : > { %v3638_v2 = vadd.f32 1.0, %v7692_v38  ;;  %v3173_v11 = vadd.f32 %v8661_v28, %v3172_v29  ;;  %v7216_v61 = vpop.f32.mrb[34].mxu0  ;;  %v8908_v12 = vmul.f32 %v3637_v56, %v3421_v7  ;;  %v2711_v18 = vmul.f32 0.5, %v8866_v36  ;;  %v8926_v38 = vld [vmem:[%s8745_s30 + $0x10] sm:$0xff] }
 0x247   : > { %v3497_v43 = vmul.f32 0.70710677, %v3181_v17  ;;  %v3184_v63 = vadd.f32 %v7216_v61, %v8661_v28  ;;  %v3175_v52 = vpop.f32.mrb[35].mxu0  ;;  %v7694_v55 = vpop.eup %7693  ;;  %v3034_v8 = vpack.c.bf16 %v2997_v33, %v2996_v16  ;;  %4231 = vbcast.lane.b32.xlu0 %v4229_v60, 256  ;;  %v8913_v15 = vmul.f32 %v3635_v25, %v3419_v49 }
 0x248   : > { %v8905_v5 = vmul.f32 %v3638_v2, %v3422_v37  ;;  %v3495_v13 = vmul.f32 0.70710677, %v3173_v11  ;;  %v3176_v35 = vadd.f32 %v8661_v28, %v3175_v52  ;;  %4273 = vbcast.lane.b32.xlu1 %v4271_v57, 256  ;;  %v3636_v41 = vadd.f32 1.0, %v7694_v55 }
 0x249   : > { %7699 = verf.f32 %v3497_v43  ;;  %v3498_v10 = vmul.f32 0.70710677, %v3184_v63  ;;  %v7696_v9 = vpop.eup %7695  ;;  %7269 = vmatprep.mubr.bf16.mxu0 %v3034_v8  ;;  %v4243_v51 = vrot.slane %v8764_v53, %v8903_v22  ;;  %v4285_v57 = vrot.slane %v8811_v46, %v8879_v3  ;;  %v8933_v53 = vld [vmem:[%s8745_s30 + $0x18] sm:$0xff] }
 0x24a   : > { %7701 = verf.f32 %v3495_v13  ;;  %v3496_v31 = vmul.f32 0.70710677, %v3176_v35  ;;  %v2926_v34 = vadd.f32 1.0, %v7696_v9  ;;  %v3776_v58 = vpack.c.bf16 %v8905_v5, %v8908_v12 }
 0x24b   : > { %7703 = verf.f32 %v3498_v10  ;;  %v7698_v0 = vpop.eup %7697  ;;  %v8916_v7 = vmul.f32 %v3636_v41, %v3420_v21  ;;  %4238 = vbcast.lane.b32.xlu0 %v4236_v4, 256  ;;  %v4306_v36 = vrot.slane %v8926_v38, %v8328_v48  ;;  %v4292_v33 = vrot.slane %v8811_v46, %v8882_v62 }
 0x24c   : > { %7705 = verf.f32 %v3496_v31  ;;  %v2927_v37 = vadd.f32 1.0, %v7698_v0  ;;  %4280 = vbcast.lane.b32.xlu1 %v4278_v20, 256  ;;  %v2998_v42 = vmul.f32 %v2926_v34, %v2710_v30  ;;  %v3425_v61 = vmul.f32 0.5, %v3181_v17 }
 0x24d   : > { %v3775_v49 = vpack.c.bf16 %v8916_v7, %v8913_v15  ;;  %v3423_v4 = vmul.f32 0.5, %v3173_v11  ;;  %v4362_v55 = vrot.slane %v8933_v53, %v8328_v48  ;;  %v4299_v17 = vrot.slane %v8811_v46, %v8903_v22 }
 0x24e   : > { %v2999_v56 = vmul.f32 %v2927_v37, %v2711_v18  ;;  %v3426_v11 = vmul.f32 0.5, %v3184_v63  ;;  %v3424_v9 = vmul.f32 0.5, %v3176_v35  ;;  %v4320_v31 = vrot.slane %v8926_v38, %v8798_v14 }
 0x24f   : > { %4245 = vbcast.lane.b32.xlu0 %v4243_v51, 256  ;;  %v4313_v34 = vrot.slane %v8926_v38, %v8783_v19  ;;  %v4334_v40 = vrot.slane %v8926_v38, %v8874_v59  ;;  %v4376_v47 = vrot.slane %v8933_v53, %v8798_v14  ;;  %v4383_v54 = vrot.slane %v8933_v53, %v8822_v45 }
 0x250   : > { %v3035_v29 = vpack.c.bf16 %v2999_v56, %v2998_v42  ;;  %4287 = vbcast.lane.b32.xlu1 %v4285_v57, 256  ;;  %v4404_v12 = vrot.slane %v8933_v53, %v8882_v62 }
 0x252   : > { %7270 = vmatmul.mubr.bf16.gmra.mrb[88].mxu0 %v3035_v29  ;;  %v4327_v29 = vrot.slane %v8926_v38, %v8822_v45 }
 0x253   : > { %v7700_v60 = vpop.eup %7699  ;;  %7289 = vmatprep.mubr.bf16.mxu0 %v3771_v26  ;;  %4308 = vbcast.lane.b32.xlu0 %v4306_v36, 256  ;;  %v4369_v36 = vrot.slane %v8933_v53, %v8783_v19 }
 0x254   : > { %v7702_v2 = vpop.eup %7701  ;;  %v3641_v16 = vadd.f32 1.0, %v7700_v60  ;;  %v7219_v43 = vpop.f32.mrb[36].mxu0  ;;  %4294 = vbcast.lane.b32.xlu1 %v4292_v33, 256 }
 0x255   : > { %v7704_v52 = vpop.eup %7703  ;;  %v3639_v20 = vadd.f32 1.0, %v7702_v2  ;;  %v3197_v25 = vadd.f32 %v7219_v43, %v8661_v28  ;;  %v3188_v13 = vpop.f32.mrb[37].mxu0 }
 0x256   : > { %v7706_v10 = vpop.eup %7705  ;;  %v3642_v8 = vadd.f32 1.0, %v7704_v52  ;;  %v3189_v23 = vadd.f32 %v8661_v28, %v3188_v13  ;;  %v7220_v27 = vpop.f32.mrb[38].mxu0  ;;  %v8948_v0 = vmul.f32 %v3641_v16, %v3425_v61  ;;  %v4341_v61 = vrot.slane %v8926_v38, %v8879_v3 }
 0x257   : > { %v3640_v26 = vadd.f32 1.0, %v7706_v10  ;;  %v3501_v21 = vmul.f32 0.70710677, %v3197_v25  ;;  %v3191_v41 = vpop.f32.mrb[39].mxu0  ;;  %v3200_v63 = vadd.f32 %v7220_v27, %v8661_v28  ;;  %v8953_v35 = vmul.f32 %v3639_v20, %v3423_v4  ;;  %4364 = vbcast.lane.b32.xlu0 %v4362_v55, 256 }
 0x258   : > { %v8950_v30 = vmul.f32 %v3642_v8, %v3426_v11  ;;  %v3499_v46 = vmul.f32 0.70710677, %v3189_v23  ;;  %v3192_v37 = vadd.f32 %v8661_v28, %v3191_v41  ;;  %4301 = vbcast.lane.b32.xlu1 %v4299_v17, 256  ;;  %v3429_v50 = vmul.f32 0.5, %v3197_v25 }
 0x259   : > { %v8955_v18 = vmul.f32 %v3640_v26, %v3424_v9  ;;  %7707 = verf.f32 %v3501_v21  ;;  %v3502_v51 = vmul.f32 0.70710677, %v3200_v63  ;;  %v3430_v4 = vmul.f32 0.5, %v3200_v63 }
 0x25a   : > { %7709 = verf.f32 %v3499_v46  ;;  %v3778_v57 = vpack.c.bf16 %v8950_v30, %v8948_v0  ;;  %v3500_v42 = vmul.f32 0.70710677, %v3192_v37  ;;  %7290 = vmatmul.mubr.bf16.vlgmr.msra.gmra.mrb[92].mxu0 %v3772_v6  ;;  %v3428_v52 = vmul.f32 0.5, %v3192_v37 }
 0x25b   : > { %v3777_v56 = vpack.c.bf16 %v8955_v18, %v8953_v35  ;;  %7711 = verf.f32 %v3502_v51  ;;  %7293 = vmatprep.mubr.bf16.mxu0 %v3773_v24  ;;  %4322 = vbcast.lane.b32.xlu0 %v4320_v31, 256  ;;  %v4348_v13 = vrot.slane %v8926_v38, %v8882_v62  ;;  %v4390_v11 = vrot.slane %v8933_v53, %v8874_v59  ;;  %v9008_v35 = vld [vmem:[%s8745_s30 + $0x20] sm:$0xff] }
 0x25c   : > { %7713 = verf.f32 %v3500_v42  ;;  %4315 = vbcast.lane.b32.xlu1 %v4313_v34, 256  ;;  %v4355_v46 = vrot.slane %v8926_v38, %v8903_v22  ;;  %v4397_v63 = vrot.slane %v8933_v53, %v8879_v3  ;;  %v4418_v5 = vrot.slane %v9008_v35, %v8328_v48 }
 0x25f   : > { %4329 = vbcast.lane.b32.xlu0 %v4327_v29, 256 }
 0x260   : > { %4371 = vbcast.lane.b32.xlu1 %v4369_v36, 256 }
 0x262   : > { %7294 = vmatmul.mubr.bf16.gmra.mrb[96].mxu0 %v3774_v39  ;;  %v3427_v39 = vmul.f32 0.5, %v3189_v23 }
 0x263   : > { %v7708_v6 = vpop.eup %7707  ;;  %7297 = vmatprep.mubr.bf16.mxu0 %v3775_v49  ;;  %4336 = vbcast.lane.b32.xlu0 %v4334_v40, 256  ;;  %v4411_v40 = vrot.slane %v8933_v53, %v8903_v22  ;;  %v4425_v53 = vrot.slane %v9008_v35, %v8783_v19 }
 0x264   : > { %v7710_v44 = vpop.eup %7709  ;;  %v7223_v24 = vpop.f32.mrb[40].mxu0  ;;  %v3645_v33 = vadd.f32 1.0, %v7708_v6  ;;  %4378 = vbcast.lane.b32.xlu1 %v4376_v47, 256 }
 0x265   : > { %v3213_v60 = vadd.f32 %v7223_v24, %v8661_v28  ;;  %v3204_v2 = vpop.f32.mrb[41].mxu0  ;;  %v7712_v32 = vpop.eup %7711  ;;  %v3643_v16 = vadd.f32 1.0, %v7710_v44 }
 0x266   : > { %v3205_v15 = vadd.f32 %v8661_v28, %v3204_v2  ;;  %v7224_v7 = vpop.f32.mrb[42].mxu0  ;;  %v7714_v49 = vpop.eup %7713  ;;  %v3646_v43 = vadd.f32 1.0, %v7712_v32  ;;  %v8993_v8 = vmul.f32 %v3645_v33, %v3429_v50 }
 0x267   : > { %v3505_v20 = vmul.f32 0.70710677, %v3213_v60  ;;  %v3207_v25 = vpop.f32.mrb[43].mxu0  ;;  %v3644_v55 = vadd.f32 1.0, %v7714_v49  ;;  %v3216_v10 = vadd.f32 %v7224_v7, %v8661_v28  ;;  %4343 = vbcast.lane.b32.xlu0 %v4341_v61, 256  ;;  %v3715_v27 = vmul.f32 %v3643_v16, %v3427_v39 }
 0x268   : > { %v3503_v17 = vmul.f32 0.70710677, %v3205_v15  ;;  %v8995_v9 = vmul.f32 %v3646_v43, %v3430_v4  ;;  %v3208_v23 = vadd.f32 %v8661_v28, %v3207_v25  ;;  %4385 = vbcast.lane.b32.xlu1 %v4383_v54, 256  ;;  %v3433_v37 = vmul.f32 0.5, %v3213_v60 }
 0x269   : > { %7715 = verf.f32 %v3505_v20  ;;  %v3716_v26 = vmul.f32 %v3644_v55, %v3428_v52  ;;  %v3506_v21 = vmul.f32 0.70710677, %v3216_v10  ;;  %v3431_v6 = vmul.f32 0.5, %v3205_v15 }
 0x26a   : > { %7717 = verf.f32 %v3503_v17  ;;  %v3504_v41 = vmul.f32 0.70710677, %v3208_v23  ;;  %7298 = vmatmul.mubr.bf16.gmra.mrb[100].mxu0 %v3776_v58  ;;  %v3780_v31 = vpack.c.bf16 %v8995_v9, %v8993_v8  ;;  %v9015_v58 = vld [vmem:[%s8745_s30 + $0x28] sm:$0xff]  ;;  %v3434_v30 = vmul.f32 0.5, %v3216_v10 }
 0x26b   : > { %7719 = verf.f32 %v3506_v21  ;;  %7301 = vmatprep.mubr.bf16.mxu0 %v3777_v56  ;;  %v3779_v34 = vpack.c.bf16 %v3716_v26, %v3715_v27  ;;  %4350 = vbcast.lane.b32.xlu0 %v4348_v13, 256  ;;  %v4474_v36 = vrot.slane %v9015_v58, %v8328_v48  ;;  %v3432_v33 = vmul.f32 0.5, %v3208_v23 }
 0x26c   : > { %7721 = verf.f32 %v3504_v41  ;;  %4392 = vbcast.lane.b32.xlu1 %v4390_v11, 256  ;;  %v4432_v61 = vrot.slane %v9008_v35, %v8798_v14  ;;  %v4439_v13 = vrot.slane %v9008_v35, %v8822_v45  ;;  %v4481_v55 = vrot.slane %v9015_v58, %v8783_v19 }
 0x26d   : > { %v4446_v17 = vrot.slane %v9008_v35, %v8874_v59  ;;  %v4488_v10 = vrot.slane %v9015_v58, %v8798_v14  ;;  %v4453_v41 = vrot.slane %v9008_v35, %v8879_v3 }
 0x26f   : > { %4357 = vbcast.lane.b32.xlu0 %v4355_v46, 256 }
 0x270   : > { %4399 = vbcast.lane.b32.xlu1 %v4397_v63, 256 }
 0x272   : > { %7302 = vmatmul.mubr.bf16.gmra.mrb[104].mxu0 %v3778_v57 }
 0x273   : > { %v7716_v18 = vpop.eup %7715  ;;  %7305 = vmatprep.mubr.bf16.mxu0 %v3779_v34  ;;  %4420 = vbcast.lane.b32.xlu0 %v4418_v5, 256 }
 0x274   : > { %v7718_v38 = vpop.eup %7717  ;;  %v7227_v51 = vpop.f32.mrb[44].mxu0  ;;  %v3649_v42 = vadd.f32 1.0, %v7716_v18  ;;  %4406 = vbcast.lane.b32.xlu1 %v4404_v12, 256 }
 0x275   : > { %v3229_v56 = vadd.f32 %v7227_v51, %v8661_v28  ;;  %v3220_v29 = vpop.f32.mrb[45].mxu0  ;;  %v7720_v47 = vpop.eup %7719  ;;  %v3647_v0 = vadd.f32 1.0, %v7718_v38 }
 0x276   : > { %v3221_v57 = vadd.f32 %v8661_v28, %v3220_v29  ;;  %v7228_v44 = vpop.f32.mrb[46].mxu0  ;;  %v7722_v50 = vpop.eup %7721  ;;  %v3650_v24 = vadd.f32 1.0, %v7720_v47  ;;  %v3721_v16 = vmul.f32 %v3649_v42, %v3433_v37  ;;  %v4460_v29 = vrot.slane %v9008_v35, %v8882_v62  ;;  %v9051_v47 = vld [vmem:[%s10041_s9] ss:$0 sm:$0xff] }
 0x277   : > { %v3509_v60 = vmul.f32 0.70710677, %v3229_v56  ;;  %v3223_v2 = vpop.f32.mrb[47].mxu0  ;;  %v3648_v54 = vadd.f32 1.0, %v7722_v50  ;;  %v3232_v39 = vadd.f32 %v7228_v44, %v8661_v28  ;;  %4476 = vbcast.lane.b32.xlu0 %v4474_v36, 256  ;;  %v3719_v7 = vmul.f32 %v3647_v0, %v3431_v6 }
 0x278   : > { %v3507_v32 = vmul.f32 0.70710677, %v3221_v57  ;;  %v3722_v4 = vmul.f32 %v3650_v24, %v3434_v30  ;;  %v3224_v15 = vadd.f32 %v8661_v28, %v3223_v2  ;;  %4413 = vbcast.lane.b32.xlu1 %v4411_v40, 256  ;;  %v3437_v9 = vmul.f32 0.5, %v3229_v56 }
 0x279   : > { %7723 = verf.f32 %v3509_v60  ;;  %v3720_v49 = vmul.f32 %v3648_v54, %v3432_v33  ;;  %v3510_v43 = vmul.f32 0.70710677, %v3232_v39  ;;  %v3435_v46 = vmul.f32 0.5, %v3221_v57 }
 0x27a   : > { %7725 = verf.f32 %v3507_v32  ;;  %v3508_v52 = vmul.f32 0.70710677, %v3224_v15  ;;  %7306 = vmatmul.mubr.bf16.gmra.mrb[108].mxu0 %v3780_v31  ;;  %v3782_v20 = vpack.c.bf16 %v3722_v4, %v3721_v16  ;;  %v4495_v31 = vrot.slane %v9015_v58, %v8822_v45  ;;  %v9062_v32 = vld [vmem:[%s8745_s30 + $0x30] sm:$0xff]  ;;  %v9069_v16 = vld [vmem:[%s8745_s30 + $0x38] sm:$0xff] }
 0x27b   : > { %7727 = verf.f32 %v3510_v43  ;;  %v3781_v25 = vpack.c.bf16 %v3720_v49, %v3719_v7  ;;  %4434 = vbcast.lane.b32.xlu0 %v4432_v61, 256  ;;  %v3438_v5 = vmul.f32 0.5, %v3232_v39  ;;  %v3436_v51 = vmul.f32 0.5, %v3224_v15 }
 0x27c   : > { %7729 = verf.f32 %v3508_v52  ;;  %4427 = vbcast.lane.b32.xlu1 %v4425_v53, 256  ;;  %v4467_v61 = vrot.slane %v9008_v35, %v8903_v22  ;;  %v4509_v54 = vrot.slane %v9015_v58, %v8879_v3  ;;  %v4530_v39 = vrot.slane %v9062_v32, %v8328_v48 }
 0x27d   : > { %7309 = vmatprep.mubr.bf16.mxu0 %v3781_v25  ;;  %v4516_v53 = vrot.slane %v9015_v58, %v8882_v62  ;;  %v4523_v25 = vrot.slane %v9015_v58, %v8903_v22 }
 0x27f   : > { %4441 = vbcast.lane.b32.xlu0 %v4439_v13, 256 }
 0x280   : > { %4483 = vbcast.lane.b32.xlu1 %v4481_v55, 256 }
 0x282   : > { %7310 = vmatmul.mubr.bf16.gmra.mrb[112].mxu0 %v3782_v20  ;;  %v4586_v20 = vrot.slane %v9069_v16, %v8328_v48 }
 0x283   : > { %v7724_v11 = vpop.eup %7723  ;;  %4448 = vbcast.lane.b32.xlu0 %v4446_v17, 256 }
 0x284   : > { %v7726_v8 = vpop.eup %7725  ;;  %v7231_v23 = vpop.f32.mrb[48].mxu0  ;;  %v3653_v27 = vadd.f32 1.0, %v7724_v11  ;;  %4490 = vbcast.lane.b32.xlu1 %v4488_v10, 256 }
 0x285   : > { %v3245_v26 = vadd.f32 %v7231_v23, %v8661_v28  ;;  %v3236_v21 = vpop.f32.mrb[49].mxu0  ;;  %v7728_v34 = vpop.eup %7727  ;;  %v3651_v63 = vadd.f32 1.0, %v7726_v8 }
 0x286   : > { %v3237_v12 = vadd.f32 %v8661_v28, %v3236_v21  ;;  %v7232_v18 = vpop.f32.mrb[50].mxu0  ;;  %v7730_v38 = vpop.eup %7729  ;;  %v3654_v37 = vadd.f32 1.0, %v7728_v34  ;;  %v4502_v28 = vrot.slane %v9015_v58, %v8874_v59  ;;  %v3725_v0 = vmul.f32 %v3653_v27, %v3437_v9 }
 0x287   : > { %v3513_v42 = vmul.f32 0.70710677, %v3245_v26  ;;  %v3239_v56 = vpop.f32.mrb[51].mxu0  ;;  %v3652_v36 = vadd.f32 1.0, %v7730_v38  ;;  %v3248_v6 = vadd.f32 %v9051_v47, %v7232_v18  ;;  %4455 = vbcast.lane.b32.xlu0 %v4453_v41, 256  ;;  %v3723_v44 = vmul.f32 %v3651_v63, %v3435_v46 }
 0x288   : > { %v3511_v40 = vmul.f32 0.70710677, %v3237_v12  ;;  %v3726_v30 = vmul.f32 %v3654_v37, %v3438_v5  ;;  %v3240_v57 = vadd.f32 %v9051_v47, %v3239_v56  ;;  %4497 = vbcast.lane.b32.xlu1 %v4495_v31, 256  ;;  %v3441_v35 = vmul.f32 0.5, %v3245_v26 }
 0x289   : > { %7731 = verf.f32 %v3513_v42  ;;  %v3724_v50 = vmul.f32 %v3652_v36, %v3436_v51  ;;  %v3514_v24 = vmul.f32 0.70710677, %v3248_v6  ;;  %v3439_v55 = vmul.f32 0.5, %v3237_v12 }
 0x28a   : > { %7733 = verf.f32 %v3511_v40  ;;  %v3512_v33 = vmul.f32 0.70710677, %v3240_v57  ;;  %v3784_v60 = vpack.c.bf16 %v3726_v30, %v3725_v0  ;;  %v3442_v10 = vmul.f32 0.5, %v3248_v6 }
 0x28b   : > { %7735 = verf.f32 %v3514_v24  ;;  %v3783_v2 = vpack.c.bf16 %v3724_v50, %v3723_v44  ;;  %4462 = vbcast.lane.b32.xlu0 %v4460_v29, 256  ;;  %v3440_v27 = vmul.f32 0.5, %v3240_v57  ;;  %v4544_v41 = vrot.slane %v9062_v32, %v8798_v14 }
 0x28c   : > { %7737 = verf.f32 %v3512_v33  ;;  %4504 = vbcast.lane.b32.xlu1 %v4502_v28, 256  ;;  %v4537_v58 = vrot.slane %v9062_v32, %v8783_v19  ;;  %v4551_v29 = vrot.slane %v9062_v32, %v8822_v45  ;;  %v4593_v36 = vrot.slane %v9069_v16, %v8783_v19 }
 0x28d   : > { %7313 = vmatprep.mubr.bf16.mxu0 %v3783_v2  ;;  %v4558_v40 = vrot.slane %v9062_v32, %v8874_v59  ;;  %v4600_v6 = vrot.slane %v9069_v16, %v8798_v14  ;;  %v4565_v33 = vrot.slane %v9062_v32, %v8879_v3 }
 0x28e   : > { %7314 = vmatmul.mubr.bf16.gmra.mrb[116].mxu0 %v3784_v60  ;;  %v4607_v60 = vrot.slane %v9069_v16, %v8822_v45 }
 0x28f   : > { %4469 = vbcast.lane.b32.xlu0 %v4467_v61, 256 }
 0x290   : > { %4511 = vbcast.lane.b32.xlu1 %v4509_v54, 256 }
 0x293   : > { %v7732_v4 = vpop.eup %7731  ;;  %4532 = vbcast.lane.b32.xlu0 %v4530_v39, 256 }
 0x294   : > { %v7734_v15 = vpop.eup %7733  ;;  %v7235_v7 = vpop.f32.mrb[52].mxu0  ;;  %v3657_v49 = vadd.f32 1.0, %v7732_v4  ;;  %4518 = vbcast.lane.b32.xlu1 %v4516_v53, 256 }
 0x295   : > { %v3261_v43 = vadd.f32 %v9051_v47, %v7235_v7  ;;  %v3252_v52 = vpop.f32.mrb[53].mxu0  ;;  %v7736_v13 = vpop.eup %7735  ;;  %v3655_v17 = vadd.f32 1.0, %v7734_v15 }
 0x296   : > { %v3253_v11 = vadd.f32 %v9051_v47, %v3252_v52  ;;  %v7236_v8 = vpop.f32.mrb[54].mxu0  ;;  %v7738_v9 = vpop.eup %7737  ;;  %v3658_v23 = vadd.f32 1.0, %v7736_v13  ;;  %v3729_v63 = vmul.f32 %v3657_v49, %v3441_v35  ;;  %v4572_v52 = vrot.slane %v9062_v32, %v8882_v62 }
 0x297   : > { %v3517_v26 = vmul.f32 0.70710677, %v3261_v43  ;;  %v3255_v21 = vpop.f32.mrb[55].mxu0  ;;  %v3656_v31 = vadd.f32 1.0, %v7738_v9  ;;  %v3264_v46 = vadd.f32 %v9051_v47, %v7236_v8  ;;  %4588 = vbcast.lane.b32.xlu0 %v4586_v20, 256  ;;  %v3727_v18 = vmul.f32 %v3655_v17, %v3439_v55 }
 0x298   : > { %v3515_v34 = vmul.f32 0.70710677, %v3253_v11  ;;  %v3730_v5 = vmul.f32 %v3658_v23, %v3442_v10  ;;  %v3256_v12 = vadd.f32 %v9051_v47, %v3255_v21  ;;  %4525 = vbcast.lane.b32.xlu1 %v4523_v25, 256  ;;  %v3445_v30 = vmul.f32 0.5, %v3261_v43 }
 0x299   : > { %7739 = verf.f32 %v3517_v26  ;;  %v3728_v38 = vmul.f32 %v3656_v31, %v3440_v27  ;;  %v3518_v37 = vmul.f32 0.70710677, %v3264_v46  ;;  %v3443_v61 = vmul.f32 0.5, %v3253_v11 }
 0x29a   : > { %7741 = verf.f32 %v3515_v34  ;;  %v3516_v51 = vmul.f32 0.70710677, %v3256_v12  ;;  %v3786_v42 = vpack.c.bf16 %v3730_v5, %v3729_v63  ;;  %v3446_v39 = vmul.f32 0.5, %v3264_v46  ;;  %v9108_v34 = vld [vmem:[%s8745_s30 + $0x40] sm:$0xff] }
 0x29b   : > { %7743 = verf.f32 %v3518_v37  ;;  %v3785_v56 = vpack.c.bf16 %v3728_v38, %v3727_v18  ;;  %4546 = vbcast.lane.b32.xlu0 %v4544_v41, 256  ;;  %v3444_v7 = vmul.f32 0.5, %v3256_v12  ;;  %v4614_v55 = vrot.slane %v9069_v16, %v8874_v59 }
 0x29c   : > { %7745 = verf.f32 %v3516_v51  ;;  %4539 = vbcast.lane.b32.xlu1 %v4537_v58, 256  ;;  %v4579_v41 = vrot.slane %v9062_v32, %v8903_v22  ;;  %v4621_v31 = vrot.slane %v9069_v16, %v8879_v3  ;;  %v4642_v46 = vrot.slane %v9108_v34, %v8328_v48 }
 0x29d   : > { %7317 = vmatprep.mubr.bf16.mxu0 %v3785_v56  ;;  %v4628_v58 = vrot.slane %v9069_v16, %v8882_v62  ;;  %v4656_v51 = vrot.slane %v9108_v34, %v8798_v14 }
 0x29e   : > { %7318 = vmatmul.mubr.bf16.gmra.mrb[120].mxu0 %v3786_v42  ;;  %v4635_v42 = vrot.slane %v9069_v16, %v8903_v22  ;;  %v4649_v16 = vrot.slane %v9108_v34, %v8783_v19 }
 0x29f   : > { %4553 = vbcast.lane.b32.xlu0 %v4551_v29, 256 }
 0x2a0   : > { %4595 = vbcast.lane.b32.xlu1 %v4593_v36, 256 }
 0x2a3   : > { %v7740_v28 = vpop.eup %7739  ;;  %4560 = vbcast.lane.b32.xlu0 %v4558_v40, 256 }
 0x2a4   : > { %v7742_v0 = vpop.eup %7741  ;;  %v7239_v57 = vpop.f32.mrb[56].mxu0  ;;  %v3661_v44 = vadd.f32 1.0, %v7740_v28  ;;  %4602 = vbcast.lane.b32.xlu1 %v4600_v6, 256 }
 0x2a5   : > { %v3277_v50 = vadd.f32 %v9051_v47, %v7239_v57  ;;  %v3268_v24 = vpop.f32.mrb[57].mxu0  ;;  %v7744_v2 = vpop.eup %7743  ;;  %v3659_v54 = vadd.f32 1.0, %v7742_v0 }
 0x2a6   : > { %v3269_v53 = vadd.f32 %v9051_v47, %v3268_v24  ;;  %v7240_v4 = vpop.f32.mrb[58].mxu0  ;;  %v7746_v15 = vpop.eup %7745  ;;  %v3662_v35 = vadd.f32 1.0, %v7744_v2  ;;  %v3733_v17 = vmul.f32 %v3661_v44, %v3445_v30  ;;  %v4670_v24 = vrot.slane %v9108_v34, %v8874_v59 }
 0x2a7   : > { %v3521_v49 = vmul.f32 0.70710677, %v3277_v50  ;;  %v3271_v43 = vpop.f32.mrb[59].mxu0  ;;  %v3660_v20 = vadd.f32 1.0, %v7746_v15  ;;  %v3280_v13 = vadd.f32 %v9051_v47, %v7240_v4  ;;  %4567 = vbcast.lane.b32.xlu0 %v4565_v33, 256  ;;  %v3731_v8 = vmul.f32 %v3659_v54, %v3443_v61 }
 0x2a8   : > { %v3519_v25 = vmul.f32 0.70710677, %v3269_v53  ;;  %v3734_v10 = vmul.f32 %v3662_v35, %v3446_v39  ;;  %v3272_v11 = vadd.f32 %v9051_v47, %v3271_v43  ;;  %4609 = vbcast.lane.b32.xlu1 %v4607_v60, 256  ;;  %v3449_v12 = vmul.f32 0.5, %v3277_v50 }
 0x2a9   : > { %7747 = verf.f32 %v3521_v49  ;;  %v3732_v9 = vmul.f32 %v3660_v20, %v3444_v7  ;;  %v3522_v23 = vmul.f32 0.70710677, %v3280_v13  ;;  %v3447_v29 = vmul.f32 0.5, %v3269_v53 }
 0x2aa   : > { %7749 = verf.f32 %v3519_v25  ;;  %v3520_v27 = vmul.f32 0.70710677, %v3272_v11  ;;  %v3788_v26 = vpack.c.bf16 %v3734_v10, %v3733_v17  ;;  %v3450_v40 = vmul.f32 0.5, %v3280_v13 }
 0x2ab   : > { %7751 = verf.f32 %v3522_v23  ;;  %v3787_v21 = vpack.c.bf16 %v3732_v9, %v3731_v8  ;;  %4574 = vbcast.lane.b32.xlu0 %v4572_v52, 256  ;;  %v3448_v57 = vmul.f32 0.5, %v3272_v11  ;;  %v4684_v49 = vrot.slane %v9108_v34, %v8882_v62 }
 0x2ac   : > { %7753 = verf.f32 %v3520_v27  ;;  %4616 = vbcast.lane.b32.xlu1 %v4614_v55, 256  ;;  %v4663_v43 = vrot.slane %v9108_v34, %v8822_v45  ;;  %v4677_v52 = vrot.slane %v9108_v34, %v8879_v3  ;;  %v4691_v62 = vrot.slane %v9108_v34, %v8903_v22 }
 0x2ad   : > { %7321 = vmatprep.mubr.bf16.mxu0 %v3787_v21 }
 0x2ae   : > { %7322 = vmatmul.mubr.bf16.gmra.mrb[124].mxu0 %v3788_v26 }
 0x2af   : > { %4581 = vbcast.lane.b32.xlu0 %v4579_v41, 256 }
 0x2b0   : > { %4623 = vbcast.lane.b32.xlu1 %v4621_v31, 256 }
 0x2b3   : > { %v7748_v63 = vpop.eup %7747  ;;  %4644 = vbcast.lane.b32.xlu0 %v4642_v46, 256 }
 0x2b4   : > { %v7750_v5 = vpop.eup %7749  ;;  %v7243_v18 = vpop.f32.mrb[60].mxu0  ;;  %v3665_v32 = vadd.f32 1.0, %v7748_v63  ;;  %4630 = vbcast.lane.b32.xlu1 %v4628_v58, 256 }
 0x2b5   : > { %v3293_v38 = vadd.f32 %v9051_v47, %v7243_v18  ;;  %v3284_v37 = vpop.f32.mrb[61].mxu0  ;;  %v7752_v56 = vpop.eup %7751  ;;  %v3663_v36 = vadd.f32 1.0, %v7750_v5 }
 0x2b6   : > { %v3285_v6 = vadd.f32 %v9051_v47, %v3284_v37  ;;  %v7244_v28 = vpop.f32.mrb[62].mxu0  ;;  %v7754_v0 = vpop.eup %7753  ;;  %v3666_v30 = vadd.f32 1.0, %v7752_v56  ;;  %v3737_v61 = vmul.f32 %v3665_v32, %v3449_v12 }
 0x2b7   : > { %v3525_v44 = vmul.f32 0.70710677, %v3293_v38  ;;  %v3287_v50 = vpop.f32.mrb[63].mxu0  ;;  %v3664_v33 = vadd.f32 1.0, %v7754_v0  ;;  %v3296_v2 = vadd.f32 %v9051_v47, %v7244_v28  ;;  %4658 = vbcast.lane.b32.xlu0 %v4656_v51, 256  ;;  %v3735_v53 = vmul.f32 %v3663_v36, %v3447_v29 }
 0x2b8   : > { %v3523_v60 = vmul.f32 0.70710677, %v3285_v6  ;;  %v3738_v54 = vmul.f32 %v3666_v30, %v3450_v40  ;;  %v3288_v39 = vadd.f32 %v9051_v47, %v3287_v50  ;;  %4637 = vbcast.lane.b32.xlu1 %v4635_v42, 256  ;;  %v3453_v8 = vmul.f32 0.5, %v3293_v38 }
 0x2b9   : > { %7755 = verf.f32 %v3525_v44  ;;  %v3736_v4 = vmul.f32 %v3664_v33, %v3448_v57  ;;  %v3526_v15 = vmul.f32 0.70710677, %v3296_v2  ;;  %v3451_v21 = vmul.f32 0.5, %v3285_v6 }
 0x2ba   : > { %7757 = verf.f32 %v3523_v60  ;;  %v3524_v35 = vmul.f32 0.70710677, %v3288_v39  ;;  %v3790_v59 = vpack.c.bf16 %v3738_v54, %v3737_v61  ;;  %v3454_v3 = vmul.f32 0.5, %v3296_v2 }
 0x2bb   : > { %7759 = verf.f32 %v3526_v15  ;;  %v3789_v7 = vpack.c.bf16 %v3736_v4, %v3735_v53  ;;  %4672 = vbcast.lane.b32.xlu0 %v4670_v24, 256  ;;  %v3452_v58 = vmul.f32 0.5, %v3288_v39 }
 0x2bc   : > { %7761 = verf.f32 %v3524_v35  ;;  %4651 = vbcast.lane.b32.xlu1 %v4649_v16, 256 }
 0x2bd   : > { %7325 = vmatprep.mubr.bf16.mxu0 %v3789_v7 }
 0x2be   : > { %7326 = vmatmul.mubr.bf16.gmra.mrb[128].mxu0 %v3790_v59 }
 0x2bf   : > { %4686 = vbcast.lane.b32.xlu0 %v4684_v49, 256 }
 0x2c0   : > { %4665 = vbcast.lane.b32.xlu1 %v4663_v43, 256 }
 0x2c3   : > { %v7756_v20 = vpop.eup %7755 }
 0x2c4   : > { %v7758_v25 = vpop.eup %7757  ;;  %v7247_v13 = vpop.f32.mrb[64].mxu0  ;;  %v3669_v55 = vadd.f32 1.0, %v7756_v20  ;;  %4679 = vbcast.lane.b32.xlu1 %v4677_v52, 256 }
 0x2c5   : > { %v3309_v17 = vadd.f32 %v9051_v47, %v7247_v13  ;;  %v3300_v10 = vpop.f32.mrb[65].mxu0  ;;  %v7760_v11 = vpop.eup %7759  ;;  %v3667_v9 = vadd.f32 1.0, %v7758_v25 }
 0x2c6   : > { %v3301_v23 = vadd.f32 %v9051_v47, %v3300_v10  ;;  %v7248_v27 = vpop.f32.mrb[66].mxu0  ;;  %v7762_v26 = vpop.eup %7761  ;;  %v3670_v41 = vadd.f32 1.0, %v7760_v11  ;;  %v3741_v18 = vmul.f32 %v3669_v55, %v3453_v8 }
 0x2c7   : > { %v3529_v31 = vmul.f32 0.70710677, %v3309_v17  ;;  %v3303_v46 = vpop.f32.mrb[67].mxu0  ;;  %v3668_v63 = vadd.f32 1.0, %v7762_v26  ;;  %v3312_v12 = vadd.f32 %v9051_v47, %v7248_v27  ;;  %v3739_v34 = vmul.f32 %v3667_v9, %v3451_v21 }
 0x2c8   : > { %v3527_v5 = vmul.f32 0.70710677, %v3301_v23  ;;  %v3742_v32 = vmul.f32 %v3670_v41, %v3454_v3  ;;  %v3304_v22 = vadd.f32 %v9051_v47, %v3303_v46  ;;  %4693 = vbcast.lane.b32.xlu1 %v4691_v62, 256  ;;  %v3457_v57 = vmul.f32 0.5, %v3309_v17 }
 0x2c9   : > { %7763 = verf.f32 %v3529_v31  ;;  %v3740_v38 = vmul.f32 %v3668_v63, %v3452_v58  ;;  %v3530_v37 = vmul.f32 0.70710677, %v3312_v12  ;;  %v3455_v60 = vmul.f32 0.5, %v3301_v23 }
 0x2ca   : > { %7765 = verf.f32 %v3527_v5  ;;  %v3528_v51 = vmul.f32 0.70710677, %v3304_v22  ;;  %v3792_v42 = vpack.c.bf16 %v3742_v32, %v3741_v18  ;;  %v3458_v2 = vmul.f32 0.5, %v3312_v12 }
 0x2cb   : > { %7767 = verf.f32 %v3530_v37  ;;  %v3791_v56 = vpack.c.bf16 %v3740_v38, %v3739_v34  ;;  %v3456_v39 = vmul.f32 0.5, %v3304_v22 }
 0x2cc   : > { %7769 = verf.f32 %v3528_v51 }
 0x2cd   : > { %7329 = vmatprep.mubr.bf16.mxu0 %v3791_v56 }
 0x2ce   : > { %7330 = vmatmul.mubr.bf16.gmra.mrb[132].mxu0 %v3792_v42 }
 0x2d3   : > { %v7764_v29 = vpop.eup %7763 }
 0x2d4   : > { %v7766_v36 = vpop.eup %7765  ;;  %v7251_v40 = vpop.f32.mrb[68].mxu0  ;;  %v3673_v6 = vadd.f32 1.0, %v7764_v29 }
 0x2d5   : > { %v3325_v28 = vadd.f32 %v9051_v47, %v7251_v40  ;;  %v3316_v0 = vpop.f32.mrb[69].mxu0  ;;  %v7768_v30 = vpop.eup %7767  ;;  %v3671_v44 = vadd.f32 1.0, %v7766_v36 }
 0x2d6   : > { %v3317_v50 = vadd.f32 %v9051_v47, %v3316_v0  ;;  %v7252_v24 = vpop.f32.mrb[70].mxu0  ;;  %v7770_v33 = vpop.eup %7769  ;;  %v3674_v16 = vadd.f32 1.0, %v7768_v30  ;;  %v3745_v35 = vmul.f32 %v3673_v6, %v3457_v57 }
 0x2d7   : > { %v3533_v61 = vmul.f32 0.70710677, %v3325_v28  ;;  %v3319_v54 = vpop.f32.mrb[71].mxu0  ;;  %v3672_v53 = vadd.f32 1.0, %v7770_v33  ;;  %v3328_v15 = vadd.f32 %v9051_v47, %v7252_v24  ;;  %v3743_v49 = vmul.f32 %v3671_v44, %v3455_v60 }
 0x2d8   : > { %v3531_v4 = vmul.f32 0.70710677, %v3317_v50  ;;  %v3746_v59 = vmul.f32 %v3674_v16, %v3458_v2  ;;  %v3320_v7 = vadd.f32 %v9051_v47, %v3319_v54  ;;  %v3461_v23 = vmul.f32 0.5, %v3325_v28 }
 0x2d9   : > { %7771 = verf.f32 %v3533_v61  ;;  %v3744_v43 = vmul.f32 %v3672_v53, %v3456_v39  ;;  %v3534_v52 = vmul.f32 0.70710677, %v3328_v15  ;;  %v3459_v41 = vmul.f32 0.5, %v3317_v50 }
 0x2da   : > { %7773 = verf.f32 %v3531_v4  ;;  %v3532_v20 = vmul.f32 0.70710677, %v3320_v7  ;;  %v3794_v25 = vpack.c.bf16 %v3746_v59, %v3745_v35  ;;  %v3462_v31 = vmul.f32 0.5, %v3328_v15 }
 0x2db   : > { %7775 = verf.f32 %v3534_v52  ;;  %v3793_v13 = vpack.c.bf16 %v3744_v43, %v3743_v49  ;;  %v3460_v5 = vmul.f32 0.5, %v3320_v7 }
 0x2dc   : > { %7777 = verf.f32 %v3532_v20 }
 0x2dd   : > { %7333 = vmatprep.mubr.bf16.mxu0 %v3793_v13 }
 0x2de   : > { %7334 = vmatmul.mubr.bf16.gmra.mrb[136].mxu0 %v3794_v25 }
 0x2e3   : > { %v7772_v55 = vpop.eup %7771 }
 0x2e4   : > { %v7774_v17 = vpop.eup %7773  ;;  %v7255_v10 = vpop.f32.mrb[72].mxu0  ;;  %v3677_v62 = vadd.f32 1.0, %v7772_v55 }
 0x2e5   : > { %v3341_v11 = vadd.f32 %v9051_v47, %v7255_v10  ;;  %v3332_v8 = vpop.f32.mrb[73].mxu0  ;;  %v7776_v9 = vpop.eup %7775  ;;  %v3675_v27 = vadd.f32 1.0, %v7774_v17 }
 0x2e6   : > { %v3333_v26 = vadd.f32 %v9051_v47, %v3332_v8  ;;  %v7256_v21 = vpop.f32.mrb[74].mxu0  ;;  %v7778_v3 = vpop.eup %7777  ;;  %v3678_v46 = vadd.f32 1.0, %v7776_v9  ;;  %v3749_v22 = vmul.f32 %v3677_v62, %v3461_v23 }
 0x2e7   : > { %v3537_v58 = vmul.f32 0.70710677, %v3341_v11  ;;  %v3335_v63 = vpop.f32.mrb[75].mxu0  ;;  %v3676_v12 = vadd.f32 1.0, %v7778_v3  ;;  %v3344_v32 = vadd.f32 %v9051_v47, %v7256_v21  ;;  %v3747_v37 = vmul.f32 %v3675_v27, %v3459_v41  ;;  %v9150_v10 = vpop.permute.xlu0 %4196 }
 0x2e8   : > { %v3535_v18 = vmul.f32 0.70710677, %v3333_v26  ;;  %v3750_v34 = vmul.f32 %v3678_v46, %v3462_v31  ;;  %v3336_v38 = vadd.f32 %v9051_v47, %v3335_v63  ;;  %v3465_v50 = vmul.f32 0.5, %v3341_v11 }
 0x2e9   : > { %7779 = verf.f32 %v3537_v58  ;;  %v3748_v51 = vmul.f32 %v3676_v12, %v3460_v5  ;;  %v3538_v42 = vmul.f32 0.70710677, %v3344_v32  ;;  %v3463_v16 = vmul.f32 0.5, %v3333_v26 }
 0x2ea   : > { %7781 = verf.f32 %v3535_v18  ;;  %v3536_v56 = vmul.f32 0.70710677, %v3336_v38  ;;  %v3796_v29 = vpack.c.bf16 %v3750_v34, %v3749_v22  ;;  %v3466_v61 = vmul.f32 0.5, %v3344_v32 }
 0x2eb   : > { %7783 = verf.f32 %v3538_v42  ;;  %v3795_v36 = vpack.c.bf16 %v3748_v51, %v3747_v37  ;;  %v3464_v4 = vmul.f32 0.5, %v3336_v38  ;;  %v9154_v12 = vpop.permute.xlu0 %4203 }
 0x2ec   : > { %7785 = verf.f32 %v3536_v56 }
 0x2ed   : > { %7337 = vmatprep.mubr.bf16.mxu0 %v3795_v36 }
 0x2ee   : > { %7338 = vmatmul.mubr.bf16.gmra.mrb[140].mxu0 %v3796_v29 }
 0x2f3   : > { %v7780_v40 = vpop.eup %7779 }
 0x2f4   : > { %v7782_v6 = vpop.eup %7781  ;;  %v7259_v28 = vpop.f32.mrb[76].mxu0  ;;  %v3681_v0 = vadd.f32 1.0, %v7780_v40 }
 0x2f5   : > { %v3357_v30 = vadd.f32 %v9051_v47, %v7259_v28  ;;  %v3348_v57 = vpop.f32.mrb[77].mxu0  ;;  %v7784_v44 = vpop.eup %7783  ;;  %v3679_v24 = vadd.f32 1.0, %v7782_v6 }
 0x2f6   : > { %v3349_v33 = vadd.f32 %v9051_v47, %v3348_v57  ;;  %v7260_v60 = vpop.f32.mrb[78].mxu0  ;;  %v7786_v2 = vpop.eup %7785  ;;  %v3682_v54 = vadd.f32 1.0, %v7784_v44  ;;  %v3753_v7 = vmul.f32 %v3681_v0, %v3465_v50 }
 0x2f7   : > { %v3541_v39 = vmul.f32 0.70710677, %v3357_v30  ;;  %v3351_v53 = vpop.f32.mrb[79].mxu0  ;;  %v3680_v15 = vadd.f32 1.0, %v7786_v2  ;;  %v3360_v59 = vadd.f32 %v9051_v47, %v7260_v60  ;;  %v3751_v52 = vmul.f32 %v3679_v24, %v3463_v16 }
 0x2f8   : > { %v3539_v35 = vmul.f32 0.70710677, %v3349_v33  ;;  %v3754_v49 = vmul.f32 %v3682_v54, %v3466_v61  ;;  %v3352_v43 = vadd.f32 %v9051_v47, %v3351_v53  ;;  %v3469_v27 = vmul.f32 0.5, %v3357_v30  ;;  %v9158_v30 = vpop.permute.xlu0 %4210 }
 0x2f9   : > { %7787 = verf.f32 %v3541_v39  ;;  %v3752_v20 = vmul.f32 %v3680_v15, %v3464_v4  ;;  %v3542_v25 = vmul.f32 0.70710677, %v3360_v59  ;;  %v3467_v31 = vmul.f32 0.5, %v3349_v33 }
 0x2fa   : > { %7789 = verf.f32 %v3539_v35  ;;  %v3540_v13 = vmul.f32 0.70710677, %v3352_v43  ;;  %v3798_v55 = vpack.c.bf16 %v3754_v49, %v3753_v7  ;;  %v3470_v46 = vmul.f32 0.5, %v3360_v59 }
 0x2fb   : > { %7791 = verf.f32 %v3542_v25  ;;  %v3797_v17 = vpack.c.bf16 %v3752_v20, %v3751_v52  ;;  %v3468_v18 = vmul.f32 0.5, %v3352_v43 }
 0x2fc   : > { %7793 = verf.f32 %v3540_v13  ;;  %v9160_v57 = vpop.permute.xlu0 %4217 }
 0x2fd   : > { %7341 = vmatprep.mubr.bf16.mxu0 %v3797_v17 }
 0x2fe   : > { %7342 = vmatmul.mubr.bf16.gmra.mrb[144].mxu0 %v3798_v55 }
 0x300   : > { %v9164_v20 = vpop.permute.xlu0 %4224 }
 0x303   : > { %v7788_v62 = vpop.eup %7787 }
 0x304   : > { %v7790_v11 = vpop.eup %7789  ;;  %v3685_v8 = vadd.f32 1.0, %v7788_v62  ;;  %v7263_v9 = vpop.f32.mrb[80].mxu0 }
 0x305   : > { %v7792_v23 = vpop.eup %7791  ;;  %v3683_v26 = vadd.f32 1.0, %v7790_v11  ;;  %v3373_v21 = vadd.f32 %v9051_v47, %v7263_v9  ;;  %v3364_v3 = vpop.f32.mrb[81].mxu0 }
 0x306   : > { %v7794_v41 = vpop.eup %7793  ;;  %v3686_v58 = vadd.f32 1.0, %v7792_v23  ;;  %v3365_v63 = vadd.f32 %v9051_v47, %v3364_v3  ;;  %v7264_v5 = vpop.f32.mrb[82].mxu0  ;;  %v3757_v37 = vmul.f32 %v3685_v8, %v3469_v27 }
 0x307   : > { %v3684_v32 = vadd.f32 1.0, %v7794_v41  ;;  %v3545_v22 = vmul.f32 0.70710677, %v3373_v21  ;;  %v3376_v34 = vadd.f32 %v9051_v47, %v7264_v5  ;;  %v3367_v38 = vpop.f32.mrb[83].mxu0  ;;  %v3755_v29 = vmul.f32 %v3683_v26, %v3467_v31  ;;  %v9170_v3 = vpop.permute.xlu0 %4231 }
 0x308   : > { %v3758_v51 = vmul.f32 %v3686_v58, %v3470_v46  ;;  %v3543_v42 = vmul.f32 0.70710677, %v3365_v63  ;;  %v3368_v56 = vadd.f32 %v9051_v47, %v3367_v38  ;;  %v3473_v16 = vmul.f32 0.5, %v3373_v21  ;;  %v9168_v21 = vpop.permute.xlu1 %4252 }
 0x309   : > { %v3756_v36 = vmul.f32 %v3684_v32, %v3468_v18  ;;  %7795 = verf.f32 %v3545_v22  ;;  %v3546_v40 = vmul.f32 0.70710677, %v3376_v34  ;;  %v3474_v61 = vmul.f32 0.5, %v3376_v34 }
 0x30a   : > { %7797 = verf.f32 %v3543_v42  ;;  %v3544_v6 = vmul.f32 0.70710677, %v3368_v56  ;;  %v3800_v28 = vpack.c.bf16 %v3758_v51, %v3757_v37  ;;  %v3471_v53 = vmul.f32 0.5, %v3365_v63 }
 0x30b   : > { %7799 = verf.f32 %v3546_v40  ;;  %v3799_v0 = vpack.c.bf16 %v3756_v36, %v3755_v29  ;;  %v3472_v4 = vmul.f32 0.5, %v3368_v56  ;;  %v9174_v31 = vpop.permute.xlu0 %4238 }
 0x30c   : > { %7801 = verf.f32 %v3544_v6  ;;  %v9172_v41 = vpop.permute.xlu1 %4259 }
 0x30d   : > { %7345 = vmatprep.mubr.bf16.mxu0 %v3799_v0 }
 0x30e   : > { %7346 = vmatmul.mubr.bf16.gmra.mrb[148].mxu0 %v3800_v28 }
 0x313   : > { %v7796_v44 = vpop.eup %7795 }
 0x314   : > { %v7798_v50 = vpop.eup %7797  ;;  %v3689_v24 = vadd.f32 1.0, %v7796_v44 }
 0x315   : > { %v7800_v33 = vpop.eup %7799  ;;  %v3687_v60 = vadd.f32 1.0, %v7798_v50  ;;  %v7267_v39 = vpop.f32.mrb[84].mxu0 }
 0x316   : > { %v7802_v2 = vpop.eup %7801  ;;  %v3690_v54 = vadd.f32 1.0, %v7800_v33  ;;  %v3389_v35 = vadd.f32 %v9051_v47, %v7267_v39  ;;  %v3380_v59 = vpop.f32.mrb[85].mxu0  ;;  %v3761_v7 = vmul.f32 %v3689_v24, %v3473_v16  ;;  %v9187_v39 = vld [vmem:[%s10043_s11] ss:$0 sm:$0xff] }
 0x317   : > { %v3688_v15 = vadd.f32 1.0, %v7802_v2  ;;  %v3381_v43 = vadd.f32 %v9051_v47, %v3380_v59  ;;  %v7268_v52 = vpop.f32.mrb[86].mxu0  ;;  %v3759_v25 = vmul.f32 %v3687_v60, %v3471_v53  ;;  %v9178_v50 = vpop.permute.xlu1 %4266 }
 0x318   : > { %v3762_v49 = vmul.f32 %v3690_v54, %v3474_v61  ;;  %v3549_v55 = vmul.f32 0.70710677, %v3389_v35  ;;  %v3392_v17 = vadd.f32 %v9051_v47, %v7268_v52  ;;  %v3383_v62 = vpop.f32.mrb[87].mxu0  ;;  %v3477_v42 = vmul.f32 0.5, %v3389_v35  ;;  %v9182_v2 = vpop.permute.xlu0 %4245 }
 0x319   : > { %v3760_v13 = vmul.f32 %v3688_v15, %v3472_v4  ;;  %v3547_v11 = vmul.f32 0.70710677, %v3381_v43  ;;  %v3384_v8 = vadd.f32 %v9051_v47, %v3383_v62  ;;  %v3475_v6 = vmul.f32 0.5, %v3381_v43 }
 0x31a   : > { %v3802_v9 = vpack.c.bf16 %v3762_v49, %v3761_v7  ;;  %7803 = verf.f32 %v3549_v55  ;;  %v3550_v23 = vmul.f32 0.70710677, %v3392_v17  ;;  %v3478_v56 = vmul.f32 0.5, %v3392_v17 }
 0x31b   : > { %v3801_v27 = vpack.c.bf16 %v3760_v13, %v3759_v25  ;;  %7805 = verf.f32 %v3547_v11  ;;  %v3548_v26 = vmul.f32 0.70710677, %v3384_v8  ;;  %v3476_v28 = vmul.f32 0.5, %v3384_v8  ;;  %v9191_v52 = vpop.permute.xlu1 %4273 }
 0x31c   : > { %7807 = verf.f32 %v3550_v23  ;;  %v9195_v17 = vpop.permute.xlu0 %4308 }
 0x31d   : > { %7349 = vmatprep.mubr.bf16.mxu0 %v3801_v27  ;;  %7809 = verf.f32 %v3548_v26 }
 0x31e   : > { %7350 = vmatmul.mubr.bf16.gmra.mrb[152].mxu0 %v3802_v9 }
 0x324   : > { %v7804_v46 = vpop.eup %7803 }
 0x325   : > { %v7271_v58 = vpop.f32.mrb[88].mxu0  ;;  %v7806_v63 = vpop.eup %7805  ;;  %v3693_v22 = vadd.f32 1.0, %v7804_v46 }
 0x326   : > { %v3405_v5 = vadd.f32 %v9051_v47, %v7271_v58  ;;  %v3396_v18 = vpop.f32.mrb[89].mxu0  ;;  %v7808_v32 = vpop.eup %7807  ;;  %v3691_v34 = vadd.f32 1.0, %v7806_v63 }
 0x327   : > { %v3397_v38 = vadd.f32 %v9051_v47, %v3396_v18  ;;  %v7272_v37 = vpop.f32.mrb[90].mxu0  ;;  %v7810_v51 = vpop.eup %7809  ;;  %v3694_v29 = vadd.f32 1.0, %v7808_v32  ;;  %v3765_v16 = vmul.f32 %v3693_v22, %v3477_v42 }
 0x328   : > { %v3553_v36 = vmul.f32 0.70710677, %v3405_v5  ;;  %v3399_v40 = vpop.f32.mrb[91].mxu0  ;;  %v3692_v0 = vadd.f32 1.0, %v7810_v51  ;;  %v3408_v33 = vadd.f32 %v9051_v47, %v7272_v37  ;;  %v3763_v61 = vmul.f32 %v3691_v34, %v3475_v6  ;;  %v9201_v51 = vpop.permute.xlu1 %4280 }
 0x329   : > { %v3551_v44 = vmul.f32 0.70710677, %v3397_v38  ;;  %v3766_v24 = vmul.f32 %v3694_v29, %v3478_v56  ;;  %v3400_v60 = vadd.f32 %v9051_v47, %v3399_v40  ;;  %v3481_v46 = vmul.f32 0.5, %v3405_v5 }
 0x32a   : > { %7811 = verf.f32 %v3553_v36  ;;  %v3764_v54 = vmul.f32 %v3692_v0, %v3476_v28  ;;  %v3554_v53 = vmul.f32 0.70710677, %v3408_v33  ;;  %v3479_v18 = vmul.f32 0.5, %v3397_v38 }
 0x32b   : > { %7813 = verf.f32 %v3551_v44  ;;  %v3552_v4 = vmul.f32 0.70710677, %v3400_v60  ;;  %v3804_v59 = vpack.c.bf16 %v3766_v24, %v3765_v16  ;;  %v3482_v32 = vmul.f32 0.5, %v3408_v33 }
 0x32c   : > { %v3803_v35 = vpack.c.bf16 %v3764_v54, %v3763_v61  ;;  %7815 = verf.f32 %v3554_v53  ;;  %v3480_v0 = vmul.f32 0.5, %v3400_v60  ;;  %v9209_v60 = vpop.permute.xlu1 %4287 }
 0x32d   : > { %v7291_v15 = vpop.f32.mrb[92].mxu0  ;;  %7817 = verf.f32 %v3552_v4 }
 0x32e   : > { %v3904_v7 = vadd.f32 %v7291_v15, %v9187_v39  ;;  %v3895_v47 = vpop.f32.mrb[93].mxu0  ;;  %7353 = vmatprep.mubr.bf16.mxu0 %v3803_v35 }
 0x32f   : > { %v3896_v49 = vadd.f32 %v9187_v39, %v3895_v47  ;;  %v7292_v43 = vpop.f32.mrb[94].mxu0  ;;  %7354 = vmatmul.mubr.bf16.gmra.mrb[156].mxu0 %v3804_v59 }
 0x330   : > { %v4697_v25 = vmul.f32 %v9158_v30, %v3904_v7  ;;  %v3907_v13 = vadd.f32 %v7292_v43, %v9187_v39  ;;  %v3898_v55 = vpop.f32.mrb[95].mxu0 }
 0x331   : > { %v4695_v62 = vmul.f32 %v9150_v10, %v3896_v49  ;;  %v3899_v11 = vadd.f32 %v9187_v39, %v3898_v55 }
 0x332   : > { %v4779_v8 = vrot.slane %v4697_v25, 4  ;;  %v4698_v9 = vmul.f32 %v9160_v57, %v3907_v13 }
 0x333   : > { %v4767_v23 = vrot.slane %v4695_v62, 4  ;;  %v4696_v27 = vmul.f32 %v9154_v12, %v3899_v11  ;;  %v9204_v12 = vpop.permute.xlu0 %4364 }
 0x334   : > { %v7812_v26 = vpop.eup %7811  ;;  %v4780_v58 = vadd.f32 %v4779_v8, %v4697_v25  ;;  %v4785_v30 = vrot.slane %v4698_v9, 4 }
 0x335   : > { %v7814_v63 = vpop.eup %7813  ;;  %v4768_v22 = vadd.f32 %v4767_v23, %v4695_v62  ;;  %v4773_v34 = vrot.slane %v4696_v27, 4  ;;  %v7295_v37 = vpop.f32.mrb[96].mxu0  ;;  %v3697_v10 = vadd.f32 1.0, %v7812_v26 }
 0x336   : > { %v4781_v42 = vrot.slane %v4780_v58, 2  ;;  %v4786_v56 = vadd.f32 %v4785_v30, %v4698_v9  ;;  %v3920_v57 = vadd.f32 %v7295_v37, %v9187_v39  ;;  %v3911_v29 = vpop.f32.mrb[97].mxu0  ;;  %v3695_v5 = vadd.f32 1.0, %v7814_v63  ;;  %v7816_v28 = vpop.eup %7815 }
 0x337   : > { %v4769_v36 = vrot.slane %v4768_v22, 2  ;;  %v4774_v40 = vadd.f32 %v4773_v34, %v4696_v27  ;;  %v3912_v38 = vadd.f32 %v9187_v39, %v3911_v29  ;;  %v7296_v6 = vpop.f32.mrb[98].mxu0  ;;  %v7818_v61 = vpop.eup %7817  ;;  %v3698_v54 = vadd.f32 1.0, %v7816_v28 }
 0x338   : > { %v4782_v44 = vadd.f32 %v4781_v42, %v4780_v58  ;;  %v4787_v24 = vrot.slane %v4786_v56, 2  ;;  %v4701_v33 = vmul.f32 %v9174_v31, %v3920_v57  ;;  %v3914_v16 = vpop.f32.mrb[99].mxu0  ;;  %v3769_v35 = vmul.f32 %v3697_v10, %v3481_v46  ;;  %v9211_v8 = vpop.permute.xlu0 %4322 }
 0x339   : > { %v4770_v53 = vadd.f32 %v4769_v36, %v4768_v22  ;;  %v4775_v4 = vrot.slane %v4774_v40, 2  ;;  %v4699_v15 = vmul.f32 %v9164_v20, %v3912_v38  ;;  %v3696_v59 = vadd.f32 1.0, %v7818_v61  ;;  %v7451_v36 = vld [vmem:[%s10046_s14] ss:$16 sps:$4 sm:$0xff]  }
 0x33a   : > { %v4788_v7 = vadd.f32 %v4787_v24, %v4786_v56  ;;  %v4803_v47 = vrot.slane %v4701_v33, 4  ;;  %v3767_v49 = vmul.f32 %v3695_v5, %v3479_v18  ;;  %v3770_v55 = vmul.f32 %v3698_v54, %v3482_v32 }
 0x33b   : > { %v4771_v43 = vrot.slane %v4770_v53, 1  ;;  %v4776_v25 = vadd.f32 %v4775_v4, %v4774_v40  ;;  %v4791_v13 = vrot.slane %v4699_v15, 4  ;;  %v3768_v62 = vmul.f32 %v3696_v59, %v3480_v0  ;;  %v7453_v40 = vld [vmem:[%s10046_s14 + $0x4] ss:$16 sps:$4 sm:$0xff]  }
 0x33c   : > { %v4783_v31 = vrot.slane %v4782_v44, 1  ;;  %v4804_v11 = vadd.f32 %v4803_v47, %v4701_v33  ;;  %v4789_v9 = vrot.slane %v4788_v7, 1  ;;  %v3923_v20 = vadd.f32 %v7296_v6, %v9187_v39  ;;  %5710 = vmatprep.subr.bf16.mxu1 %v7453_v40 }
 0x33d   : > { %v4777_v23 = vrot.slane %v4776_v25, 1  ;;  %v4792_v27 = vadd.f32 %v4791_v13, %v4699_v15  ;;  %v7299_v26 = vpop.f32.mrb[100].mxu0  ;;  %v4772_v46 = vadd.f32 %v4771_v43, %v4770_v53  ;;  %v3915_v30 = vadd.f32 %v9187_v39, %v3914_v16  ;;  %v9233_v16 = vpop.permute.xlu0 %4329  ;;  %5711 = vmatpush1.bf16.msra.mxu1 %v7451_v36 }
 0x33e   : > { %v4805_v58 = vrot.slane %v4804_v11, 2  ;;  %v3936_v63 = vadd.f32 %v7299_v26, %v9187_v39  ;;  %v3927_v18 = vpop.f32.mrb[101].mxu0  ;;  %v4702_v34 = vmul.f32 %v9182_v2, %v3923_v20  ;;  %v3805_v29 = vpack.c.bf16 %v3768_v62, %v3767_v49 }
 0x33f   : > { %v4778_v22 = vadd.f32 %v4777_v23, %v4776_v25  ;;  %v4793_v32 = vrot.slane %v4792_v27, 2  ;;  %v3928_v37 = vadd.f32 %v9187_v39, %v3927_v18  ;;  %v7300_v10 = vpop.f32.mrb[102].mxu0  ;;  %v4700_v56 = vmul.f32 %v9170_v3, %v3915_v30  ;;  %v4295_v3 = vpop.permute.xlu1 %4294 }
 0x340   : > { %v4806_v42 = vadd.f32 %v4805_v58, %v4804_v11  ;;  %v4705_v57 = vmul.f32 %v9178_v50, %v3936_v63  ;;  %v3930_v5 = vpop.f32.mrb[103].mxu0  ;;  %v4809_v6 = vrot.slane %v4702_v34, 4  ;;  %v9230_v0 = vadd.f32 %v4783_v31, %v4782_v44  ;;  %7357 = vmatprep.mubr.bf16.mxu0 %v3805_v29 }
 0x341   : > { %v9227_v2 = vsel %vm5271_vm1, %v4778_v22, %v4772_v46  ;;  %v4794_v38 = vadd.f32 %v4793_v32, %v4792_v27  ;;  %v4703_v28 = vmul.f32 %v9168_v21, %v3928_v37  ;;  %v4797_v50 = vrot.slane %v4700_v56, 4  ;;  %v9243_v18 = vpop.permute.xlu0 %4336 }
 0x342   : > { %v4827_v24 = vrot.slane %v4705_v57, 4  ;;  %v3939_v33 = vadd.f32 %v7300_v10, %v9187_v39  ;;  %v9235_v61 = vadd.f32 %v4789_v9, %v4788_v7  ;;  %v4810_v54 = vadd.f32 %v4809_v6, %v4702_v34 }
 0x343   : > { %v4815_v53 = vrot.slane %v4703_v28, 4  ;;  %v3806_v4 = vpack.c.bf16 %v3770_v55, %v3769_v35  ;;  %v4807_v15 = vrot.slane %v4806_v42, 1  ;;  %v4798_v59 = vadd.f32 %v4797_v50, %v4700_v56  ;;  %v4302_v20 = vpop.permute.xlu1 %4301 }
 0x344   : > { %v4828_v21 = vadd.f32 %v4827_v24, %v4705_v57  ;;  %v4706_v44 = vmul.f32 %v9191_v52, %v3939_v33  ;;  %v4795_v47 = vrot.slane %v4794_v38, 1  ;;  %v4811_v49 = vrot.slane %v4810_v54, 2 }
 0x345   : > { %v4816_v43 = vadd.f32 %v4815_v53, %v4703_v28  ;;  %7358 = vmatmul.mubr.bf16.gmra.mrb[160].mxu0 %v3806_v4  ;;  %v3931_v25 = vadd.f32 %v9187_v39, %v3930_v5  ;;  %v7303_v13 = vpop.f32.mrb[104].mxu0  ;;  %v4799_v62 = vrot.slane %v4798_v59, 2  ;;  %v9246_v10 = vadd.f32 %v4807_v15, %v4806_v42 }
 0x346   : > { %v4829_v31 = vrot.slane %v4828_v21, 2  ;;  %v4833_v7 = vrot.slane %v4706_v44, 4  ;;  %v3952_v11 = vadd.f32 %v7303_v13, %v9187_v39  ;;  %v3943_v9 = vpop.f32.mrb[105].mxu0  ;;  %5823 = vmatprep.mubr.bf16.mxu0 %v7948_v1  ;;  %v4812_v35 = vadd.f32 %v4811_v49, %v4810_v54 }
 0x347   : > { %v4817_v55 = vrot.slane %v4816_v43, 2  ;;  %v4704_v23 = vmul.f32 %v9172_v41, %v3931_v25  ;;  %v3944_v52 = vadd.f32 %v9187_v39, %v3943_v9  ;;  %v7304_v27 = vpop.f32.mrb[106].mxu0  ;;  %v4800_v26 = vadd.f32 %v4799_v62, %v4798_v59  ;;  %v9248_v6 = vpop.permute.xlu1 %4315 }
 0x348   : > { %v4830_v46 = vadd.f32 %v4829_v31, %v4828_v21  ;;  %v4834_v58 = vadd.f32 %v4833_v7, %v4706_v44  ;;  %v4709_v30 = vmul.f32 %v4295_v3, %v3952_v11  ;;  %v3946_v63 = vpop.f32.mrb[107].mxu0  ;;  %v4813_v22 = vrot.slane %v4812_v35, 1  ;;  %v9255_v44 = vpop.permute.xlu0 %4343 }
 0x349   : > { %v4818_v32 = vadd.f32 %v4817_v55, %v4816_v43  ;;  %v4821_v34 = vrot.slane %v4704_v23, 4  ;;  %v4707_v37 = vmul.f32 %v9201_v51, %v3944_v52  ;;  %v4801_v41 = vrot.slane %v4800_v26, 1 }
 0x34a   : > { %v4835_v56 = vrot.slane %v4834_v58, 2  ;;  %v4851_v57 = vrot.slane %v4709_v30, 4  ;;  %v4796_v29 = vadd.f32 %v4795_v47, %v4794_v38  ;;  %v4831_v5 = vrot.slane %v4830_v46, 1 }
 0x34b   : > { %v4822_v36 = vadd.f32 %v4821_v34, %v4704_v23  ;;  %v4839_v40 = vrot.slane %v4707_v37, 4  ;;  %v9250_v28 = vadd.f32 %v4813_v22, %v4812_v35  ;;  %v4819_v3 = vrot.slane %v4818_v32, 1  ;;  %v9258_v62 = vpop.permute.xlu1 %4371 }
 0x34c   : > { %v4836_v50 = vadd.f32 %v4835_v56, %v4834_v58  ;;  %v4852_v24 = vadd.f32 %v4851_v57, %v4709_v30  ;;  %v4802_v51 = vadd.f32 %v4801_v41, %v4800_v26  ;;  %v3955_v54 = vadd.f32 %v7304_v27, %v9187_v39  ;;  %v4351_v56 = vpop.permute.xlu0 %4350 }
 0x34d   : > { %v4823_v33 = vrot.slane %v4822_v36, 2  ;;  %v4840_v42 = vadd.f32 %v4839_v40, %v4707_v37  ;;  %v7307_v53 = vpop.f32.mrb[108].mxu0  ;;  %v3947_v15 = vadd.f32 %v9187_v39, %v3946_v63  ;;  %v9260_v31 = vadd.f32 %v4831_v5, %v4830_v46 }
 0x34e   : > { %v4837_v38 = vrot.slane %v4836_v50, 1  ;;  %v4853_v4 = vrot.slane %v4852_v24, 2  ;;  %v3968_v59 = vadd.f32 %v7307_v53, %v9187_v39  ;;  %v3959_v21 = vpop.f32.mrb[109].mxu0  ;;  %v4710_v43 = vmul.f32 %v4302_v20, %v3955_v54 }
 0x34f   : > { %v4824_v47 = vadd.f32 %v4823_v33, %v4822_v36  ;;  %v4841_v49 = vrot.slane %v4840_v42, 2  ;;  %v3960_v25 = vadd.f32 %v9187_v39, %v3959_v21  ;;  %v7308_v13 = vpop.f32.mrb[110].mxu0  ;;  %v4708_v11 = vmul.f32 %v9209_v60, %v3947_v15  ;;  %v9273_v40 = vpop.permute.xlu1 %4378 }
 0x350   : > { %v4854_v7 = vadd.f32 %v4853_v4, %v4852_v24  ;;  %v4713_v9 = vmul.f32 %v9211_v8, %v3968_v59  ;;  %v3962_v35 = vpop.f32.mrb[111].mxu0  ;;  %v4857_v52 = vrot.slane %v4710_v43, 4  ;;  %v4820_v26 = vadd.f32 %v4819_v3, %v4818_v32 }
 0x351   : > { %v4825_v55 = vrot.slane %v4824_v47, 1  ;;  %v4842_v23 = vadd.f32 %v4841_v49, %v4840_v42  ;;  %v4711_v27 = vmul.f32 %v9195_v17, %v3960_v25  ;;  %v4845_v20 = vrot.slane %v4708_v11, 4 }
 0x352   : > { %v4875_v58 = vrot.slane %v4713_v9, 4  ;;  %v5274_v30 = vsel %vm5273_vm2, %v9230_v0, %v9227_v2  ;;  %v9268_v46 = vadd.f32 %v4837_v38, %v4836_v50  ;;  %v4858_v22 = vadd.f32 %v4857_v52, %v4710_v43  ;;  %v4358_v52 = vpop.permute.xlu0 %4357 }
 0x353   : > { %v4826_v63 = vadd.f32 %v4825_v55, %v4824_v47  ;;  %v4863_v60 = vrot.slane %v4711_v27, 4  ;;  %v4855_v34 = vrot.slane %v4854_v7, 1  ;;  %v4846_v8 = vadd.f32 %v4845_v20, %v4708_v11 }
 0x354   : > { %v4876_v37 = vadd.f32 %v4875_v58, %v4713_v9  ;;  %v5276_v41 = vsel %vm5275_vm3, %v9235_v61, %v5274_v30  ;;  %v4843_v32 = vrot.slane %v4842_v23, 1  ;;  %v4859_v57 = vrot.slane %v4858_v22, 2 }
 0x355   : > { %v5285_v17 = vsel %vm5271_vm1, %v4826_v63, %v4820_v26  ;;  %v4864_v5 = vadd.f32 %v4863_v60, %v4711_v27  ;;  %v7311_v36 = vpop.f32.mrb[112].mxu0  ;;  %v4847_v2 = vrot.slane %v4846_v8, 2  ;;  %v5278_v3 = vsel %vm5277_vm4, %v4796_v29, %v5276_v41 }
 0x356   : > { %v4877_v0 = vrot.slane %v4876_v37, 2  ;;  %v3971_v50 = vadd.f32 %v7308_v13, %v9187_v39  ;;  %v3975_v24 = vpop.f32.mrb[113].mxu0  ;;  %v4860_v33 = vadd.f32 %v4859_v57, %v4858_v22  ;;  %v5280_v61 = vsel %vm5279_vm5, %v4802_v51, %v5278_v3  ;;  %v7930_v13 = vld [vmem:[%s8147_s3] sm:$0xff] }
 0x357   : > { %v4865_v42 = vrot.slane %v4864_v5, 2  ;;  %v3963_v54 = vadd.f32 %v9187_v39, %v3962_v35  ;;  %v7312_v53 = vpop.f32.mrb[114].mxu0  ;;  %v4848_v38 = vadd.f32 %v4847_v2, %v4846_v8  ;;  %v5282_v15 = vsel %vm5281_vm6, %v9246_v10, %v5280_v61 }
 0x358   : > { %v9279_v4 = vadd.f32 %v4877_v0, %v4876_v37  ;;  %v4714_v59 = vmul.f32 %v9233_v16, %v3971_v50  ;;  %v3978_v29 = vpop.f32.mrb[115].mxu0  ;;  %v4856_v21 = vadd.f32 %v4855_v34, %v4854_v7  ;;  %v5284_v49 = vsel %vm5283_vm7, %v9250_v28, %v5282_v15  ;;  %v9292_v7 = vpop.permute.xlu1 %4385 }
 0x359   : > { %v4866_v47 = vadd.f32 %v4865_v42, %v4864_v5  ;;  %v4712_v43 = vmul.f32 %v9248_v6, %v3963_v54  ;;  %v4844_v51 = vadd.f32 %v4843_v32, %v4842_v23  ;;  %v4849_v25 = vrot.slane %v4848_v38, 1 }
 0x35a   : > { %v9288_v11 = vadd.f32 %v7930_v13, %v5284_v49  ;;  %v4881_v9 = vrot.slane %v4714_v59, 4  ;;  %v3984_v10 = vadd.f32 %v7311_v36, %v9187_v39  ;;  %v3976_v16 = vadd.f32 %v9187_v39, %v3975_v24 }
 0x35b   : > { %v4867_v35 = vrot.slane %v4866_v47, 1  ;;  %v4869_v55 = vrot.slane %v4712_v43, 4  ;;  %v4861_v27 = vrot.slane %v4860_v33, 1  ;;  %v4879_v28 = vrot.slane %v9279_v4, 1 }
 0x35c   : > { %5361 = vadd.xlane.f32.xlu0 %v9288_v11  ;;  %v4882_v6 = vadd.f32 %v4881_v9, %v4714_v59  ;;  %v3987_v23 = vadd.f32 %v7312_v53, %v9187_v39  ;;  %v4850_v26 = vadd.f32 %v4849_v25, %v4848_v38  ;;  %v4717_v58 = vmul.f32 %v4351_v56, %v3984_v10  ;;  %v9305_v24 = vpop.permute.xlu1 %4392  ;;  %v7454_v59 = vld [vmem:[%s10046_s14 + $0x20] ss:$16 sps:$4 sm:$0xff]  }
 0x35d   : > { %v4870_v20 = vadd.f32 %v4869_v55, %v4712_v43  ;;  %v4715_v30 = vmul.f32 %v9243_v18, %v3976_v16  ;;  %v4868_v63 = vadd.f32 %v4867_v35, %v4866_v47  ;;  %v3979_v60 = vadd.f32 %v9187_v39, %v3978_v29  ;;  %v7931_v35 = vld [vmem:[%s8147_s3 + $0x8] sm:$0xff] }
 0x35e   : > { %v4883_v22 = vrot.slane %v4882_v6, 2  ;;  %v4718_v34 = vmul.f32 %v4358_v52, %v3987_v23  ;;  %v4899_v37 = vrot.slane %v4717_v58, 4  ;;  %v5286_v32 = vsel %vm5273_vm2, %v9260_v31, %v5285_v17 }
 0x35f   : > { %v4871_v8 = vrot.slane %v4870_v20, 2  ;;  %v4887_v41 = vrot.slane %v4715_v30, 4  ;;  %v4716_v5 = vmul.f32 %v9255_v44, %v3979_v60  ;;  %v5287_v56 = vsel %vm5275_vm3, %v9268_v46, %v5286_v32 }
 0x360   : > { %v4884_v57 = vadd.f32 %v4883_v22, %v4882_v6  ;;  %v4905_v36 = vrot.slane %v4718_v34, 4  ;;  %v4900_v18 = vadd.f32 %v4899_v37, %v4717_v58  ;;  %v5288_v3 = vsel %vm5277_vm4, %v4844_v51, %v5287_v56  ;;  %v7456_v51 = vld [vmem:[%s10046_s14 + $0x24] ss:$16 sps:$4 sm:$0xff]  }
 0x361   : > { %v4872_v2 = vadd.f32 %v4871_v8, %v4870_v20  ;;  %v4888_v0 = vadd.f32 %v4887_v41, %v4715_v30  ;;  %v7315_v50 = vpop.f32.mrb[116].mxu0  ;;  %v4893_v42 = vrot.slane %v4716_v5, 4  ;;  %v4862_v54 = vadd.f32 %v4861_v27, %v4860_v33  ;;  %5712 = vmatprep.subr.bf16.mxu1 %v7456_v51  ;;  %v9325_v20 = vpop.permute.xlu1 %4399 }
 0x362   : > { %v4906_v61 = vadd.f32 %v4905_v36, %v4718_v34  ;;  %v5289_v31 = vsel %vm5279_vm5, %v4850_v26, %v5288_v3  ;;  %v3991_v17 = vpop.f32.mrb[117].mxu0  ;;  %v4901_v53 = vrot.slane %v4900_v18, 2  ;;  %v4885_v29 = vrot.slane %v4884_v57, 1  ;;  %5713 = vmatpush1.bf16.msra.mxu1 %v7454_v59 }
 0x363   : > { %v4873_v44 = vrot.slane %v4872_v2, 1  ;;  %v4889_v38 = vrot.slane %v4888_v0, 2  ;;  %v5290_v46 = vsel %vm5281_vm6, %v4856_v21, %v5289_v31  ;;  %v7316_v15 = vpop.f32.mrb[118].mxu0  ;;  %v4894_v47 = vadd.f32 %v4893_v42, %v4716_v5 }
 0x364   : > { %v4907_v49 = vrot.slane %v4906_v61, 2  ;;  %v5291_v43 = vsel %vm5283_vm7, %v4862_v54, %v5290_v46  ;;  %v3994_v33 = vpop.f32.mrb[119].mxu0  ;;  %v4902_v13 = vadd.f32 %v4901_v53, %v4900_v18  ;;  %v4000_v16 = vadd.f32 %v7315_v50, %v9187_v39 }
 0x365   : > { %v4874_v25 = vadd.f32 %v4873_v44, %v4872_v2  ;;  %v4890_v9 = vadd.f32 %v4889_v38, %v4888_v0  ;;  %v9317_v21 = vadd.f32 %v7931_v35, %v5291_v43  ;;  %v4895_v55 = vrot.slane %v4894_v47, 2  ;;  %v4407_v42 = vpop.permute.xlu1 %4406 }
 0x366   : > { %v4908_v10 = vadd.f32 %v4907_v49, %v4906_v61  ;;  %v3992_v52 = vadd.f32 %v9187_v39, %v3991_v17  ;;  %v4880_v27 = vadd.f32 %v4879_v28, %v9279_v4  ;;  %v4003_v26 = vadd.f32 %v7316_v15, %v9187_v39  ;;  %v7932_v49 = vld [vmem:[%s8147_s3 + $0x10] sm:$0xff] }
 0x367   : > { %v5292_v6 = vsel %vm5271_vm1, %v4874_v25, %v4868_v63  ;;  %v4891_v23 = vrot.slane %v4890_v9, 1  ;;  %5363 = vadd.xlane.f32.xlu1 %v9317_v21  ;;  %v4886_v58 = vadd.f32 %v4885_v29, %v4884_v57  ;;  %v4896_v30 = vadd.f32 %v4895_v55, %v4894_v47  ;;  %v9331_v63 = vpop.permute.xlu0 %4420 }
 0x368   : > { %v4721_v22 = vmul.f32 %v9273_v40, %v4000_v16  ;;  %v4719_v60 = vmul.f32 %v9204_v12, %v3992_v52  ;;  %v4903_v34 = vrot.slane %v4902_v13, 1  ;;  %v3995_v4 = vadd.f32 %v9187_v39, %v3994_v33 }
 0x369   : > { %v4892_v8 = vadd.f32 %v4891_v23, %v4890_v9  ;;  %v4722_v28 = vmul.f32 %v9292_v7, %v4003_v26  ;;  %v4897_v37 = vrot.slane %v4896_v30, 1  ;;  %v4909_v41 = vrot.slane %v4908_v10, 1 }
 0x36a   : > { %v4923_v32 = vrot.slane %v4721_v22, 4  ;;  %v4911_v5 = vrot.slane %v4719_v60, 4  ;;  %v4720_v36 = vmul.f32 %v9258_v62, %v3995_v4  ;;  %v5293_v56 = vsel %vm5273_vm2, %v4880_v27, %v5292_v6 }
 0x36b   : > { %v4929_v57 = vrot.slane %v4722_v28, 4  ;;  %v4898_v40 = vadd.f32 %v4897_v37, %v4896_v30  ;;  %v5294_v18 = vsel %vm5275_vm3, %v4886_v58, %v5293_v56  ;;  %v4904_v0 = vadd.f32 %v4903_v34, %v4902_v13  ;;  %v9339_v38 = vpop.permute.xlu0 %4476 }
 0x36c   : > { %v4924_v2 = vadd.f32 %v4923_v32, %v4721_v22  ;;  %v4912_v12 = vadd.f32 %v4911_v5, %v4719_v60  ;;  %v4917_v3 = vrot.slane %v4720_v36, 4  ;;  %v5295_v7 = vsel %vm5277_vm4, %v4892_v8, %v5294_v18 }
 0x36d   : > { %v4930_v50 = vadd.f32 %v4929_v57, %v4722_v28  ;;  %v4910_v61 = vadd.f32 %v4909_v41, %v4908_v10  ;;  %v5296_v62 = vsel %vm5279_vm5, %v4898_v40, %v5295_v7  ;;  %v4414_v10 = vpop.permute.xlu1 %4413 }
 0x36e   : > { %v4925_v54 = vrot.slane %v4924_v2, 2  ;;  %v4913_v31 = vrot.slane %v4912_v12, 2  ;;  %v4918_v17 = vadd.f32 %v4917_v3, %v4720_v36  ;;  %v5297_v53 = vsel %vm5281_vm6, %v4904_v0, %v5296_v62 }
 0x36f   : > { %v4931_v44 = vrot.slane %v4930_v50, 2  ;;  %v5298_v59 = vsel %vm5283_vm7, %v4910_v61, %v5297_v53  ;;  %v4435_v22 = vpop.permute.xlu0 %4434 }
 0x370   : > { %v4926_v46 = vadd.f32 %v4925_v54, %v4924_v2  ;;  %v4914_v15 = vadd.f32 %v4913_v31, %v4912_v12  ;;  %v4919_v29 = vrot.slane %v4918_v17, 2  ;;  %v9343_v43 = vadd.f32 %v7932_v49, %v5298_v59 }
 0x371   : > { %v4932_v47 = vadd.f32 %v4931_v44, %v4930_v50  ;;  %v7319_v33 = vpop.f32.mrb[120].mxu0 }
 0x372   : > { %v4016_v51 = vadd.f32 %v7319_v33, %v9187_v39  ;;  %v4007_v25 = vpop.f32.mrb[121].mxu0  ;;  %v4915_v13 = vrot.slane %v4914_v15, 1  ;;  %v4920_v9 = vadd.f32 %v4919_v29, %v4918_v17  ;;  %5365 = vadd.xlane.f32.xlu0 %v9343_v43  ;;  %v4927_v16 = vrot.slane %v4926_v46, 1 }
 0x373   : > { %v4008_v35 = vadd.f32 %v9187_v39, %v4007_v25  ;;  %v7320_v55 = vpop.f32.mrb[122].mxu0  ;;  %v4933_v26 = vrot.slane %v4932_v47, 1  ;;  %v4442_v3 = vpop.permute.xlu0 %4441 }
 0x374   : > { %v4725_v52 = vmul.f32 %v4407_v42, %v4016_v51  ;;  %v4019_v27 = vadd.f32 %v7320_v55, %v9187_v39  ;;  %v4010_v6 = vpop.f32.mrb[123].mxu0  ;;  %v4921_v23 = vrot.slane %v4920_v9, 1  ;;  %v4916_v8 = vadd.f32 %v4915_v13, %v4914_v15  ;;  %v7457_v13 = vld [vmem:[%s10046_s14 + $0x40] ss:$16 sps:$4 sm:$0xff]  }
 0x375   : > { %v4723_v58 = vmul.f32 %v9305_v24, %v4008_v35  ;;  %v4011_v30 = vadd.f32 %v9187_v39, %v4010_v6  ;;  %v4928_v41 = vadd.f32 %v4927_v16, %v4926_v46  ;;  %v4934_v57 = vadd.f32 %v4933_v26, %v4932_v47 }
 0x376   : > { %v4947_v60 = vrot.slane %v4725_v52, 4  ;;  %v4726_v34 = vmul.f32 %v4414_v10, %v4019_v27  ;;  %v4922_v4 = vadd.f32 %v4921_v23, %v4920_v9  ;;  %v7459_v9 = vld [vmem:[%s10046_s14 + $0x44] ss:$16 sps:$4 sm:$0xff]  }
 0x377   : > { %v4935_v28 = vrot.slane %v4723_v58, 4  ;;  %v4724_v37 = vmul.f32 %v9325_v20, %v4011_v30  ;;  %v9355_v59 = vpop.permute.xlu0 %4448  ;;  %5714 = vmatprep.subr.bf16.mxu1 %v7459_v9 }
 0x378   : > { %v4948_v32 = vadd.f32 %v4947_v60, %v4725_v52  ;;  %v4953_v5 = vrot.slane %v4726_v34, 4  ;;  %v5299_v36 = vsel %vm5271_vm1, %v4922_v4, %v4916_v8  ;;  %v4428_v52 = vpop.permute.xlu1 %4427  ;;  %5715 = vmatpush1.bf16.msra.mxu1 %v7457_v13 }
 0x379   : > { %v4936_v56 = vadd.f32 %v4935_v28, %v4723_v58  ;;  %v4941_v40 = vrot.slane %v4724_v37, 4  ;;  %v5300_v12 = vsel %vm5273_vm2, %v4928_v41, %v5299_v36  ;;  %v7933_v41 = vld [vmem:[%s8147_s3 + $0x18] sm:$0xff] }
 0x37a   : > { %v4949_v2 = vrot.slane %v4948_v32, 2  ;;  %v4954_v24 = vadd.f32 %v4953_v5, %v4726_v34  ;;  %v5301_v50 = vsel %vm5275_vm3, %v4934_v57, %v5300_v12 }
 0x37b   : > { %v4937_v18 = vrot.slane %v4936_v56, 2  ;;  %v4942_v0 = vadd.f32 %v4941_v40, %v4724_v37  ;;  %v4456_v4 = vpop.permute.xlu0 %4455 }
 0x37c   : > { %v4950_v7 = vadd.f32 %v4949_v2, %v4948_v32  ;;  %v4955_v42 = vrot.slane %v4954_v24, 2 }
 0x37d   : > { %v4938_v20 = vadd.f32 %v4937_v18, %v4936_v56  ;;  %v4943_v61 = vrot.slane %v4942_v0, 2 }
 0x37e   : > { %v4956_v54 = vadd.f32 %v4955_v42, %v4954_v24  ;;  %v4951_v17 = vrot.slane %v4950_v7, 1  ;;  %v9376_v42 = vpop.permute.xlu1 %4483 }
 0x37f   : > { %v4939_v31 = vrot.slane %v4938_v20, 1  ;;  %v4944_v62 = vadd.f32 %v4943_v61, %v4942_v0  ;;  %v4463_v0 = vpop.permute.xlu0 %4462 }
 0x380   : > { %v4957_v46 = vrot.slane %v4956_v54, 1  ;;  %v4952_v35 = vadd.f32 %v4951_v17, %v4950_v7 }
 0x381   : > { %v4940_v44 = vadd.f32 %v4939_v31, %v4938_v20  ;;  %v4945_v53 = vrot.slane %v4944_v62, 1  ;;  %v7323_v15 = vpop.f32.mrb[124].mxu0 }
 0x382   : > { %v4032_v29 = vadd.f32 %v7323_v15, %v9187_v39  ;;  %v4023_v47 = vpop.f32.mrb[125].mxu0  ;;  %v4958_v27 = vadd.f32 %v4957_v46, %v4956_v54 }
 0x383   : > { %v4946_v49 = vadd.f32 %v4945_v53, %v4944_v62  ;;  %v4024_v33 = vadd.f32 %v9187_v39, %v4023_v47  ;;  %v7324_v51 = vpop.f32.mrb[126].mxu0  ;;  %v5302_v25 = vsel %vm5277_vm4, %v4940_v44, %v5301_v50 }
 0x384   : > { %v4729_v55 = vmul.f32 %v4435_v22, %v4032_v29  ;;  %v4035_v10 = vadd.f32 %v7324_v51, %v9187_v39  ;;  %v4026_v16 = vpop.f32.mrb[127].mxu0  ;;  %v4470_v29 = vpop.permute.xlu0 %4469 }
 0x385   : > { %v4727_v6 = vmul.f32 %v9331_v63, %v4024_v33  ;;  %v4027_v23 = vadd.f32 %v9187_v39, %v4026_v16  ;;  %v5303_v26 = vsel %vm5279_vm5, %v4946_v49, %v5302_v25 }
 0x386   : > { %v4971_v58 = vrot.slane %v4729_v55, 4  ;;  %v4730_v30 = vmul.f32 %v4442_v3, %v4035_v10  ;;  %v5304_v60 = vsel %vm5281_vm6, %v4952_v35, %v5303_v26 }
 0x387   : > { %v4959_v34 = vrot.slane %v4727_v6, 4  ;;  %v4728_v22 = vmul.f32 %v4428_v52, %v4027_v23  ;;  %v5305_v8 = vsel %vm5283_vm7, %v4958_v27, %v5304_v60 }
 0x388   : > { %v4972_v28 = vadd.f32 %v4971_v58, %v4729_v55  ;;  %v4977_v37 = vrot.slane %v4730_v30, 4  ;;  %v9373_v32 = vadd.f32 %v7933_v41, %v5305_v8  ;;  %v4491_v55 = vpop.permute.xlu1 %4490 }
 0x389   : > { %v4960_v63 = vadd.f32 %v4959_v34, %v4727_v6  ;;  %v4965_v5 = vrot.slane %v4728_v22, 4 }
 0x38a   : > { %v4973_v36 = vrot.slane %v4972_v28, 2  ;;  %v4978_v57 = vadd.f32 %v4977_v37, %v4730_v30  ;;  %5367 = vadd.xlane.f32.xlu0 %v9373_v32 }
 0x38b   : > { %v4961_v56 = vrot.slane %v4960_v63, 2  ;;  %v4966_v40 = vadd.f32 %v4965_v5, %v4728_v22 }
 0x38c   : > { %v4974_v2 = vadd.f32 %v4973_v36, %v4972_v28  ;;  %v4979_v24 = vrot.slane %v4978_v57, 2 }
 0x38d   : > { %v4962_v12 = vadd.f32 %v4961_v56, %v4960_v63  ;;  %v4967_v18 = vrot.slane %v4966_v40, 2 }
 0x38e   : > { %v4980_v3 = vadd.f32 %v4979_v24, %v4978_v57  ;;  %v4975_v20 = vrot.slane %v4974_v2, 1 }
 0x38f   : > { %v4963_v50 = vrot.slane %v4962_v12, 1  ;;  %v4968_v7 = vadd.f32 %v4967_v18, %v4966_v40 }
 0x390   : > { %v4981_v61 = vrot.slane %v4980_v3, 1  ;;  %v4976_v47 = vadd.f32 %v4975_v20, %v4974_v2 }
 0x391   : > { %v4969_v54 = vrot.slane %v4968_v7, 1  ;;  %v7327_v31 = vpop.f32.mrb[128].mxu0  ;;  %v4964_v44 = vadd.f32 %v4963_v50, %v4962_v12 }
 0x392   : > { %v4048_v62 = vadd.f32 %v7327_v31, %v9187_v39  ;;  %v4039_v17 = vpop.f32.mrb[129].mxu0  ;;  %v4982_v25 = vadd.f32 %v4981_v61, %v4980_v3 }
 0x393   : > { %v4970_v53 = vadd.f32 %v4969_v54, %v4968_v7  ;;  %v4040_v46 = vadd.f32 %v9187_v39, %v4039_v17  ;;  %v7328_v15 = vpop.f32.mrb[130].mxu0 }
 0x394   : > { %v4733_v49 = vmul.f32 %v4463_v0, %v4048_v62  ;;  %v4051_v33 = vadd.f32 %v7328_v15, %v9187_v39  ;;  %v4042_v51 = vpop.f32.mrb[131].mxu0 }
 0x395   : > { %v5306_v13 = vsel %vm5271_vm1, %v4970_v53, %v4964_v44  ;;  %v4731_v9 = vmul.f32 %v9355_v59, %v4040_v46  ;;  %v4043_v35 = vadd.f32 %v9187_v39, %v4042_v51  ;;  %v4498_v59 = vpop.permute.xlu1 %4497 }
 0x396   : > { %v5307_v10 = vsel %vm5273_vm2, %v4976_v47, %v5306_v13  ;;  %v4995_v16 = vrot.slane %v4733_v49, 4  ;;  %v4734_v52 = vmul.f32 %v4470_v29, %v4051_v33 }
 0x397   : > { %v4983_v27 = vrot.slane %v4731_v9, 4  ;;  %v4732_v6 = vmul.f32 %v4456_v4, %v4043_v35  ;;  %v5308_v23 = vsel %vm5275_vm3, %v4982_v25, %v5307_v10 }
 0x398   : > { %v4996_v26 = vadd.f32 %v4995_v16, %v4733_v49  ;;  %v5001_v58 = vrot.slane %v4734_v52, 4 }
 0x399   : > { %v4984_v30 = vadd.f32 %v4983_v27, %v4731_v9  ;;  %v4989_v60 = vrot.slane %v4732_v6, 4  ;;  %v9386_v18 = vpop.permute.xlu1 %4504  ;;  %v7460_v27 = vld [vmem:[%s10046_s14 + $0x60] ss:$16 sps:$4 sm:$0xff]  }
 0x39a   : > { %v4997_v34 = vrot.slane %v4996_v26, 2  ;;  %v5002_v22 = vadd.f32 %v5001_v58, %v4734_v52 }
 0x39b   : > { %v4985_v8 = vrot.slane %v4984_v30, 2  ;;  %v4990_v28 = vadd.f32 %v4989_v60, %v4732_v6 }
 0x39c   : > { %v4998_v37 = vadd.f32 %v4997_v34, %v4996_v26  ;;  %v5003_v41 = vrot.slane %v5002_v22, 2  ;;  %v9408_v26 = vpop.permute.xlu0 %4532 }
 0x39d   : > { %v4986_v63 = vadd.f32 %v4985_v8, %v4984_v30  ;;  %v4991_v5 = vrot.slane %v4990_v28, 2  ;;  %v4512_v13 = vpop.permute.xlu1 %4511 }
 0x39e   : > { %v5004_v36 = vadd.f32 %v5003_v41, %v5002_v22  ;;  %v4999_v40 = vrot.slane %v4998_v37, 1 }
 0x39f   : > { %v4987_v57 = vrot.slane %v4986_v63, 1  ;;  %v4992_v56 = vadd.f32 %v4991_v5, %v4990_v28 }
 0x3a0   : > { %v5005_v24 = vrot.slane %v5004_v36, 1  ;;  %v5000_v54 = vadd.f32 %v4999_v40, %v4998_v37  ;;  %v9410_v5 = vpop.permute.xlu0 %4588 }
 0x3a1   : > { %v4988_v4 = vadd.f32 %v4987_v57, %v4986_v63  ;;  %v4993_v2 = vrot.slane %v4992_v56, 1  ;;  %v7331_v12 = vpop.f32.mrb[132].mxu0  ;;  %v4519_v22 = vpop.permute.xlu1 %4518  ;;  %v9415_v57 = vld [vmem:[%s10043_s11] ss:$0 sm:$0xff] }
 0x3a2   : > { %v4064_v0 = vadd.f32 %v7331_v12, %v9187_v39  ;;  %v4055_v3 = vpop.f32.mrb[133].mxu0  ;;  %v5006_v44 = vadd.f32 %v5005_v24, %v5004_v36 }
 0x3a3   : > { %v4994_v50 = vadd.f32 %v4993_v2, %v4992_v56  ;;  %v4056_v7 = vadd.f32 %v9187_v39, %v4055_v3  ;;  %v7332_v20 = vpop.f32.mrb[134].mxu0  ;;  %v5309_v61 = vsel %vm5277_vm4, %v4988_v4, %v5308_v23 }
 0x3a4   : > { %v4737_v31 = vmul.f32 %v4491_v55, %v4064_v0  ;;  %v4067_v62 = vadd.f32 %v7332_v20, %v9187_v39  ;;  %v4058_v17 = vpop.f32.mrb[135].mxu0  ;;  %v7934_v55 = vld [vmem:[%s8147_s3 + $0x20] sm:$0xff] }
 0x3a5   : > { %v4735_v53 = vmul.f32 %v9339_v38, %v4056_v7  ;;  %v4059_v46 = vadd.f32 %v9187_v39, %v4058_v17  ;;  %v5310_v15 = vsel %vm5279_vm5, %v4994_v50, %v5309_v61  ;;  %v4526_v0 = vpop.permute.xlu1 %4525 }
 0x3a6   : > { %v5019_v29 = vrot.slane %v4737_v31, 4  ;;  %v4738_v47 = vmul.f32 %v4498_v59, %v4067_v62  ;;  %v5311_v49 = vsel %vm5281_vm6, %v5000_v54, %v5310_v15  ;;  %v4547_v15 = vpop.permute.xlu0 %4546 }
 0x3a7   : > { %v5007_v33 = vrot.slane %v4735_v53, 4  ;;  %v4736_v51 = vmul.f32 %v9376_v42, %v4059_v46  ;;  %v5312_v25 = vsel %vm5283_vm7, %v5006_v44, %v5311_v49  ;;  %v7462_v42 = vld [vmem:[%s10046_s14 + $0x64] ss:$16 sps:$4 sm:$0xff]  }
 0x3a8   : > { %v5020_v9 = vadd.f32 %v5019_v29, %v4737_v31  ;;  %v5025_v35 = vrot.slane %v4738_v47, 4  ;;  %v9399_v10 = vadd.f32 %v7934_v55, %v5312_v25  ;;  %5716 = vmatprep.subr.bf16.mxu1 %v7462_v42 }
 0x3a9   : > { %v5008_v38 = vadd.f32 %v5007_v33, %v4735_v53  ;;  %v5013_v16 = vrot.slane %v4736_v51, 4  ;;  %5717 = vmatpush1.bf16.msra.mxu1 %v7460_v27 }
 0x3aa   : > { %v5021_v39 = vrot.slane %v5020_v9, 2  ;;  %v5026_v52 = vadd.f32 %v5025_v35, %v4738_v47  ;;  %5369 = vadd.xlane.f32.xlu1 %v9399_v10  ;;  %v4554_v27 = vpop.permute.xlu0 %4553 }
 0x3ab   : > { %v5009_v6 = vrot.slane %v5008_v38, 2  ;;  %v5014_v23 = vadd.f32 %v5013_v16, %v4736_v51 }
 0x3ac   : > { %v5022_v58 = vadd.f32 %v5021_v39, %v5020_v9  ;;  %v5027_v30 = vrot.slane %v5026_v52, 2 }
 0x3ad   : > { %v5010_v60 = vadd.f32 %v5009_v6, %v5008_v38  ;;  %v5015_v34 = vrot.slane %v5014_v23, 2  ;;  %v7463_v6 = vld [vmem:[%s10046_s14 + $0x80] ss:$16 sps:$4 sm:$0xff]  }
 0x3ae   : > { %v5028_v8 = vadd.f32 %v5027_v30, %v5026_v52  ;;  %v5023_v37 = vrot.slane %v5022_v58, 1  ;;  %v7466_v30 = vld [vmem:[%s10046_s14 + $0x8] ss:$16 sps:$4 sm:$0xff]  }
 0x3af   : > { %v5011_v28 = vrot.slane %v5010_v60, 1  ;;  %v5016_v59 = vadd.f32 %v5015_v34, %v5014_v23 }
 0x3b0   : > { %v5029_v63 = vrot.slane %v5028_v8, 1  ;;  %v5024_v3 = vadd.f32 %v5023_v37, %v5022_v58 }
 0x3b1   : > { %v5017_v41 = vrot.slane %v5016_v59, 1  ;;  %v7335_v36 = vpop.f32.mrb[136].mxu0  ;;  %v5012_v4 = vadd.f32 %v5011_v28, %v5010_v60  ;;  %v7468_v60 = vld [vmem:[%s10046_s14 + $0xc] ss:$16 sps:$4 sm:$0xff]  }
 0x3b2   : > { %v4080_v56 = vadd.f32 %v9415_v57, %v7335_v36  ;;  %v4071_v40 = vpop.f32.mrb[137].mxu0  ;;  %v5030_v54 = vadd.f32 %v5029_v63, %v5028_v8  ;;  %5791 = vmatprep.subr.bf16.mxu0 %v7468_v60  ;;  %v7469_v36 = vld [vmem:[%s10046_s14 + $0x28] ss:$16 sps:$4 sm:$0xff]  }
 0x3b3   : > { %v5018_v2 = vadd.f32 %v5017_v41, %v5016_v59  ;;  %v4072_v24 = vadd.f32 %v9415_v57, %v4071_v40  ;;  %v7336_v12 = vpop.f32.mrb[138].mxu0  ;;  %5792 = vmatpush1.bf16.msra.mxu0 %v7466_v30  ;;  %v4561_v40 = vpop.permute.xlu0 %4560 }
 0x3b4   : > { %v4741_v50 = vmul.f32 %v4519_v22, %v4080_v56  ;;  %v4083_v7 = vadd.f32 %v9415_v57, %v7336_v12  ;;  %v4074_v20 = vpop.f32.mrb[139].mxu0  ;;  %v7471_v22 = vld [vmem:[%s10046_s14 + $0x2c] ss:$16 sps:$4 sm:$0xff]  }
 0x3b5   : > { %v5313_v61 = vsel %vm5271_vm1, %v5018_v2, %v5012_v4  ;;  %v4739_v31 = vmul.f32 %v9386_v18, %v4072_v24  ;;  %v4075_v62 = vadd.f32 %v9415_v57, %v4074_v20  ;;  %5793 = vmatprep.subr.bf16.mxu0 %v7471_v22 }
 0x3b6   : > { %v5314_v17 = vsel %vm5273_vm2, %v5024_v3, %v5313_v61  ;;  %v5043_v44 = vrot.slane %v4741_v50, 4  ;;  %v4742_v53 = vmul.f32 %v4526_v0, %v4083_v7 }
 0x3b7   : > { %v5315_v46 = vsel %vm5275_vm3, %v5030_v54, %v5314_v17  ;;  %v5031_v29 = vrot.slane %v4739_v31, 4  ;;  %v4740_v47 = vmul.f32 %v4512_v13, %v4075_v62  ;;  %v7465_v13 = vld [vmem:[%s10046_s14 + $0x84] ss:$16 sps:$4 sm:$0xff]   ;;  %5794 = vmatpush1.bf16.msra.mxu0 %v7469_v36 }
 0x3b8   : > { %v5044_v49 = vadd.f32 %v5043_v44, %v4741_v50  ;;  %v5049_v33 = vrot.slane %v4742_v53, 4  ;;  %5718 = vmatprep.subr.bf16.mxu1 %v7465_v13 }
 0x3b9   : > { %v5032_v51 = vadd.f32 %v5031_v29, %v4739_v31  ;;  %v5037_v25 = vrot.slane %v4740_v47, 4  ;;  %5719 = vmatpush1.bf16.msra.mxu1 %v7463_v6  ;;  %v4540_v31 = vpop.permute.xlu1 %4539 }
 0x3ba   : > { %v5045_v9 = vrot.slane %v5044_v49, 2  ;;  %v5050_v35 = vadd.f32 %v5049_v33, %v4742_v53 }
 0x3bb   : > { %v5033_v55 = vrot.slane %v5032_v51, 2  ;;  %v5038_v38 = vadd.f32 %v5037_v25, %v4740_v47 }
 0x3bc   : > { %v5046_v18 = vadd.f32 %v5045_v9, %v5044_v49  ;;  %v5051_v16 = vrot.slane %v5050_v35, 2  ;;  %v7936_v49 = vld [vmem:[%s8147_s3 + $0x28] sm:$0xff] }
 0x3bd   : > { %v5034_v39 = vadd.f32 %v5033_v55, %v5032_v51  ;;  %v5039_v52 = vrot.slane %v5038_v38, 2 }
 0x3be   : > { %v5052_v42 = vadd.f32 %v5051_v16, %v5050_v35  ;;  %v5047_v34 = vrot.slane %v5046_v18, 1 }
 0x3bf   : > { %v5035_v23 = vrot.slane %v5034_v39, 1  ;;  %v5040_v58 = vadd.f32 %v5039_v52, %v5038_v38 }
 0x3c0   : > { %v5053_v59 = vrot.slane %v5052_v42, 1  ;;  %v5048_v12 = vadd.f32 %v5047_v34, %v5046_v18 }
 0x3c1   : > { %v5036_v8 = vadd.f32 %v5035_v23, %v5034_v39  ;;  %v5041_v28 = vrot.slane %v5040_v58, 1  ;;  %v7339_v37 = vpop.f32.mrb[140].mxu0 }
 0x3c2   : > { %v4096_v41 = vadd.f32 %v9415_v57, %v7339_v37  ;;  %v4087_v63 = vpop.f32.mrb[141].mxu0  ;;  %v5054_v7 = vadd.f32 %v5053_v59, %v5052_v42 }
 0x3c3   : > { %v5042_v56 = vadd.f32 %v5041_v28, %v5040_v58  ;;  %v4088_v4 = vadd.f32 %v9415_v57, %v4087_v63  ;;  %v7340_v2 = vpop.f32.mrb[142].mxu0  ;;  %v5316_v24 = vsel %vm5277_vm4, %v5036_v8, %v5315_v46  ;;  %v9456_v58 = vpop.permute.xlu1 %4595 }
 0x3c4   : > { %v4745_v0 = vmul.f32 %v4547_v15, %v4096_v41  ;;  %v4099_v3 = vadd.f32 %v9415_v57, %v7340_v2  ;;  %v4090_v50 = vpop.f32.mrb[143].mxu0 }
 0x3c5   : > { %v4743_v20 = vmul.f32 %v9408_v26, %v4088_v4  ;;  %v4091_v61 = vadd.f32 %v9415_v57, %v4090_v50  ;;  %v5317_v54 = vsel %vm5279_vm5, %v5042_v56, %v5316_v24  ;;  %v4568_v26 = vpop.permute.xlu0 %4567 }
 0x3c6   : > { %v5067_v62 = vrot.slane %v4745_v0, 4  ;;  %v4746_v17 = vmul.f32 %v4554_v27, %v4099_v3  ;;  %v5318_v44 = vsel %vm5281_vm6, %v5048_v12, %v5317_v54 }
 0x3c7   : > { %v5055_v53 = vrot.slane %v4743_v20, 4  ;;  %v4744_v46 = vmul.f32 %v4540_v31, %v4091_v61  ;;  %v5319_v15 = vsel %vm5283_vm7, %v5054_v7, %v5318_v44  ;;  %v4603_v61 = vpop.permute.xlu1 %4602 }
 0x3c8   : > { %v5068_v29 = vadd.f32 %v5067_v62, %v4745_v0  ;;  %v5073_v47 = vrot.slane %v4746_v17, 4  ;;  %v9453_v33 = vadd.f32 %v7936_v49, %v5319_v15 }
 0x3c9   : > { %v5056_v51 = vadd.f32 %v5055_v53, %v4743_v20  ;;  %v5061_v25 = vrot.slane %v4744_v46, 4  ;;  %v4575_v42 = vpop.permute.xlu0 %4574 }
 0x3ca   : > { %v5069_v9 = vrot.slane %v5068_v29, 2  ;;  %v5074_v35 = vadd.f32 %v5073_v47, %v4746_v17  ;;  %5371 = vadd.xlane.f32.xlu0 %v9453_v33 }
 0x3cb   : > { %v5057_v55 = vrot.slane %v5056_v51, 2  ;;  %v5062_v38 = vadd.f32 %v5061_v25, %v4744_v46  ;;  %v4610_v25 = vpop.permute.xlu1 %4609 }
 0x3cc   : > { %v5070_v18 = vadd.f32 %v5069_v9, %v5068_v29  ;;  %v5075_v16 = vrot.slane %v5074_v35, 2 }
 0x3cd   : > { %v5058_v39 = vadd.f32 %v5057_v55, %v5056_v51  ;;  %v5063_v52 = vrot.slane %v5062_v38, 2  ;;  %v4582_v12 = vpop.permute.xlu0 %4581 }
 0x3ce   : > { %v5076_v27 = vadd.f32 %v5075_v16, %v5074_v35  ;;  %v5071_v23 = vrot.slane %v5070_v18, 1 }
 0x3cf   : > { %v5059_v6 = vrot.slane %v5058_v39, 1  ;;  %v5064_v13 = vadd.f32 %v5063_v52, %v5062_v38  ;;  %v7474_v38 = vld [vmem:[%s10046_s14 + $0xa4] ss:$16 sps:$4 sm:$0xff]   ;;  %v7477_v52 = vld [vmem:[%s10046_s14 + $0x4c] ss:$16 sps:$4 sm:$0xff]  }
 0x3d0   : > { %v5077_v30 = vrot.slane %v5076_v27, 1  ;;  %v5072_v63 = vadd.f32 %v5071_v23, %v5070_v18  ;;  %5720 = vmatprep.subr.bf16.mxu1 %v7474_v38  ;;  %5795 = vmatprep.subr.bf16.mxu0 %v7477_v52 }
 0x3d1   : > { %v5065_v60 = vrot.slane %v5064_v13, 1  ;;  %v7343_v34 = vpop.f32.mrb[144].mxu0  ;;  %v5060_v28 = vadd.f32 %v5059_v6, %v5058_v39  ;;  %v7475_v39 = vld [vmem:[%s10046_s14 + $0x48] ss:$16 sps:$4 sm:$0xff]  }
 0x3d2   : > { %v4112_v22 = vadd.f32 %v9415_v57, %v7343_v34  ;;  %v4103_v8 = vpop.f32.mrb[145].mxu0  ;;  %v5078_v2 = vadd.f32 %v5077_v30, %v5076_v27  ;;  %5796 = vmatpush1.bf16.msra.mxu0 %v7475_v39  ;;  %v4617_v34 = vpop.permute.xlu1 %4616 }
 0x3d3   : > { %v5066_v59 = vadd.f32 %v5065_v60, %v5064_v13  ;;  %v4104_v37 = vadd.f32 %v9415_v57, %v4103_v8  ;;  %v7344_v41 = vpop.f32.mrb[146].mxu0 }
 0x3d4   : > { %v4749_v36 = vmul.f32 %v4575_v42, %v4112_v22  ;;  %v4115_v56 = vadd.f32 %v9415_v57, %v7344_v41  ;;  %v4106_v4 = vpop.f32.mrb[147].mxu0 }
 0x3d5   : > { %v5320_v24 = vsel %vm5271_vm1, %v5066_v59, %v5060_v28  ;;  %v4747_v0 = vmul.f32 %v4561_v40, %v4104_v37  ;;  %v4107_v3 = vadd.f32 %v9415_v57, %v4106_v4 }
 0x3d6   : > { %v5091_v50 = vrot.slane %v4749_v36, 4  ;;  %v4750_v7 = vmul.f32 %v4582_v12, %v4115_v56  ;;  %v5321_v20 = vsel %vm5273_vm2, %v5072_v63, %v5320_v24 }
 0x3d7   : > { %v5079_v54 = vrot.slane %v4747_v0, 4  ;;  %v4748_v31 = vmul.f32 %v4568_v26, %v4107_v3  ;;  %v5322_v62 = vsel %vm5275_vm3, %v5078_v2, %v5321_v20  ;;  %v7472_v26 = vld [vmem:[%s10046_s14 + $0xa0] ss:$16 sps:$4 sm:$0xff]  }
 0x3d8   : > { %v5092_v17 = vadd.f32 %v5091_v50, %v4749_v36  ;;  %v5097_v44 = vrot.slane %v4750_v7, 4  ;;  %5721 = vmatpush1.bf16.msra.mxu1 %v7472_v26 }
 0x3d9   : > { %v5080_v53 = vadd.f32 %v5079_v54, %v4747_v0  ;;  %v5085_v46 = vrot.slane %v4748_v31, 4 }
 0x3da   : > { %v5093_v15 = vrot.slane %v5092_v17, 2  ;;  %v5098_v29 = vadd.f32 %v5097_v44, %v4750_v7 }
 0x3db   : > { %v5081_v47 = vrot.slane %v5080_v53, 2  ;;  %v5086_v49 = vadd.f32 %v5085_v46, %v4748_v31 }
 0x3dc   : > { %v5094_v40 = vadd.f32 %v5093_v15, %v5092_v17  ;;  %v5099_v51 = vrot.slane %v5098_v29, 2  ;;  %v4624_v17 = vpop.permute.xlu1 %4623 }
 0x3dd   : > { %v5082_v9 = vadd.f32 %v5081_v47, %v5080_v53  ;;  %v5087_v35 = vrot.slane %v5086_v49, 2 }
 0x3de   : > { %v5100_v55 = vadd.f32 %v5099_v51, %v5098_v29  ;;  %v5095_v27 = vrot.slane %v5094_v40, 1 }
 0x3df   : > { %v5083_v18 = vrot.slane %v5082_v9, 1  ;;  %v5088_v16 = vadd.f32 %v5087_v35, %v5086_v49 }
 0x3e0   : > { %v5101_v6 = vrot.slane %v5100_v55, 1  ;;  %v5096_v37 = vadd.f32 %v5095_v27, %v5094_v40  ;;  %v4631_v35 = vpop.permute.xlu1 %4630 }
 0x3e1   : > { %v5084_v42 = vadd.f32 %v5083_v18, %v5082_v9  ;;  %v5089_v13 = vrot.slane %v5088_v16, 1  ;;  %v7347_v23 = vpop.f32.mrb[148].mxu0 }
 0x3e2   : > { %v4128_v30 = vadd.f32 %v9415_v57, %v7347_v23  ;;  %v4119_v60 = vpop.f32.mrb[149].mxu0  ;;  %v5102_v2 = vadd.f32 %v5101_v6, %v5100_v55 }
 0x3e3   : > { %v5090_v22 = vadd.f32 %v5089_v13, %v5088_v16  ;;  %v4120_v8 = vadd.f32 %v9415_v57, %v4119_v60  ;;  %v7348_v28 = vpop.f32.mrb[150].mxu0  ;;  %v5323_v59 = vsel %vm5277_vm4, %v5084_v42, %v5322_v62  ;;  %v7937_v62 = vld [vmem:[%s8147_s3 + $0x30] sm:$0xff] }
 0x3e4   : > { %v4753_v41 = vmul.f32 %v4603_v61, %v4128_v30  ;;  %v4131_v63 = vadd.f32 %v9415_v57, %v7348_v28  ;;  %v4122_v36 = vpop.f32.mrb[151].mxu0  ;;  %v9487_v61 = vpop.permute.xlu0 %4644 }
 0x3e5   : > { %v4751_v56 = vmul.f32 %v9410_v5, %v4120_v8  ;;  %v4123_v4 = vadd.f32 %v9415_v57, %v4122_v36  ;;  %v5324_v24 = vsel %vm5279_vm5, %v5090_v22, %v5323_v59  ;;  %v4638_v59 = vpop.permute.xlu1 %4637 }
 0x3e6   : > { %v5115_v12 = vrot.slane %v4753_v41, 4  ;;  %v4754_v0 = vmul.f32 %v4610_v25, %v4131_v63  ;;  %v5325_v3 = vsel %vm5281_vm6, %v5096_v37, %v5324_v24 }
 0x3e7   : > { %v5103_v50 = vrot.slane %v4751_v56, 4  ;;  %v4752_v7 = vmul.f32 %v9456_v58, %v4123_v4  ;;  %v5326_v20 = vsel %vm5283_vm7, %v5102_v2, %v5325_v3 }
 0x3e8   : > { %v5116_v54 = vadd.f32 %v5115_v12, %v4753_v41  ;;  %v5121_v31 = vrot.slane %v4754_v0, 4  ;;  %v9490_v5 = vadd.f32 %v7937_v62, %v5326_v20  ;;  %v9493_v25 = vpop.permute.xlu0 %4658 }
 0x3e9   : > { %v5104_v44 = vadd.f32 %v5103_v50, %v4751_v56  ;;  %v5109_v53 = vrot.slane %v4752_v7, 4 }
 0x3ea   : > { %v5117_v46 = vrot.slane %v5116_v54, 2  ;;  %v5122_v15 = vadd.f32 %v5121_v31, %v4754_v0  ;;  %5373 = vadd.xlane.f32.xlu1 %v9490_v5 }
 0x3eb   : > { %v5105_v29 = vrot.slane %v5104_v44, 2  ;;  %v5110_v47 = vadd.f32 %v5109_v53, %v4752_v7 }
 0x3ec   : > { %v5118_v49 = vadd.f32 %v5117_v46, %v5116_v54  ;;  %v5123_v58 = vrot.slane %v5122_v15, 2  ;;  %v9497_v30 = vpop.permute.xlu0 %4672 }
 0x3ed   : > { %v5106_v40 = vadd.f32 %v5105_v29, %v5104_v44  ;;  %v5111_v51 = vrot.slane %v5110_v47, 2  ;;  %v7480_v44 = vld [vmem:[%s10046_s14 + $0x6c] ss:$16 sps:$4 sm:$0xff]  }
 0x3ee   : > { %v5124_v9 = vadd.f32 %v5123_v58, %v5122_v15  ;;  %v5119_v38 = vrot.slane %v5118_v49, 1  ;;  %5797 = vmatprep.subr.bf16.mxu0 %v7480_v44  ;;  %v7481_v58 = vld [vmem:[%s10046_s14 + $0xc0] ss:$16 sps:$4 sm:$0xff]  }
 0x3ef   : > { %v5107_v55 = vrot.slane %v5106_v40, 1  ;;  %v5112_v26 = vadd.f32 %v5111_v51, %v5110_v47 }
 0x3f0   : > { %v5125_v18 = vrot.slane %v5124_v9, 1  ;;  %v5120_v60 = vadd.f32 %v5119_v38, %v5118_v49  ;;  %v9504_v54 = vpop.permute.xlu0 %4686 }
 0x3f1   : > { %v5113_v16 = vrot.slane %v5112_v26, 1  ;;  %v7351_v39 = vpop.f32.mrb[152].mxu0  ;;  %v5108_v42 = vadd.f32 %v5107_v55, %v5106_v40  ;;  %v7483_v40 = vld [vmem:[%s10046_s14 + $0xc4] ss:$16 sps:$4 sm:$0xff]   ;;  %v7486_v55 = vld [vmem:[%s10046_s14 + $0x8c] ss:$16 sps:$4 sm:$0xff]  }
 0x3f2   : > { %v4144_v52 = vadd.f32 %v9415_v57, %v7351_v39  ;;  %v4135_v27 = vpop.f32.mrb[153].mxu0  ;;  %v5126_v37 = vadd.f32 %v5125_v18, %v5124_v9  ;;  %5722 = vmatprep.subr.bf16.mxu1 %v7483_v40  ;;  %v4652_v18 = vpop.permute.xlu1 %4651 }
 0x3f3   : > { %v5114_v6 = vadd.f32 %v5113_v16, %v5112_v26  ;;  %v4136_v13 = vadd.f32 %v9415_v57, %v4135_v27  ;;  %v7352_v23 = vpop.f32.mrb[154].mxu0  ;;  %5723 = vmatpush1.bf16.msra.mxu1 %v7481_v58 }
 0x3f4   : > { %v4757_v22 = vmul.f32 %v4631_v35, %v4144_v52  ;;  %v4147_v8 = vadd.f32 %v9415_v57, %v7352_v23  ;;  %v4138_v28 = vpop.f32.mrb[155].mxu0  ;;  %v7484_v35 = vld [vmem:[%s10046_s14 + $0x88] ss:$16 sps:$4 sm:$0xff]   ;;  %v5362_v26 = vpop.xlane.xlu0 %5361 }
 0x3f5   : > { %v5327_v41 = vsel %vm5271_vm1, %v5114_v6, %v5108_v42  ;;  %v4755_v63 = vmul.f32 %v4617_v34, %v4136_v13  ;;  %v4139_v36 = vadd.f32 %v9415_v57, %v4138_v28  ;;  %v7478_v34 = vld [vmem:[%s10046_s14 + $0x68] ss:$16 sps:$4 sm:$0xff]   ;;  %v5380_v27 = vmul.f32 0.0078125, %v5362_v26 }
 0x3f6   : > { %v5139_v56 = vrot.slane %v4757_v22, 4  ;;  %v4758_v4 = vmul.f32 %v4638_v59, %v4147_v8  ;;  %v5328_v2 = vsel %vm5273_vm2, %v5120_v60, %v5327_v41  ;;  %5798 = vmatpush1.bf16.msra.mxu0 %v7478_v34 }
 0x3f7   : > { %v5127_v24 = vrot.slane %v4755_v63, 4  ;;  %v4756_v12 = vmul.f32 %v4624_v17, %v4139_v36  ;;  %v5329_v0 = vsel %vm5275_vm3, %v5126_v37, %v5328_v2  ;;  %5799 = vmatprep.subr.bf16.mxu0 %v7486_v55  ;;  %v9532_v2 = vsub.f32 %v9288_v11, %v5380_v27 }
 0x3f8   : > { %v5140_v3 = vadd.f32 %v5139_v56, %v4757_v22  ;;  %v5145_v50 = vrot.slane %v4758_v4, 4 }
 0x3f9   : > { %v5128_v7 = vadd.f32 %v5127_v24, %v4755_v63  ;;  %v5133_v20 = vrot.slane %v4756_v12, 4  ;;  %v4666_v24 = vpop.permute.xlu1 %4665 }
 0x3fa   : > { %v5141_v31 = vrot.slane %v5140_v3, 2  ;;  %v5146_v62 = vadd.f32 %v5145_v50, %v4758_v4  ;;  %5800 = vmatpush1.bf16.msra.mxu0 %v7484_v35 }
 0x3fb   : > { %v5129_v53 = vrot.slane %v5128_v7, 2  ;;  %v5134_v17 = vadd.f32 %v5133_v20, %v4756_v12 }
 0x3fc   : > { %v5142_v46 = vadd.f32 %v5141_v31, %v5140_v3  ;;  %v5147_v15 = vrot.slane %v5146_v62, 2  ;;  %v7938_v31 = vld [vmem:[%s8147_s3 + $0x38] sm:$0xff] }
 0x3fd   : > { %v5130_v29 = vadd.f32 %v5129_v53, %v5128_v7  ;;  %v5135_v47 = vrot.slane %v5134_v17, 2  ;;  %v4680_v27 = vpop.permute.xlu1 %4679 }
 0x3fe   : > { %v5148_v49 = vadd.f32 %v5147_v15, %v5146_v62  ;;  %v5143_v38 = vrot.slane %v5142_v46, 1 }
 0x3ff   : > { %v5131_v51 = vrot.slane %v5130_v29, 1  ;;  %v5136_v9 = vadd.f32 %v5135_v47, %v5134_v17  ;;  %v5366_v8 = vpop.xlane.xlu0 %5365 }
 0x400   : > { %v5149_v39 = vrot.slane %v5148_v49, 1  ;;  %v5144_v23 = vadd.f32 %v5143_v38, %v5142_v46  ;;  %v5382_v50 = vmul.f32 0.0078125, %v5366_v8 }
 0x401   : > { %v5132_v16 = vadd.f32 %v5131_v51, %v5130_v29  ;;  %v5137_v52 = vrot.slane %v5136_v9, 1  ;;  %v5398_v29 = vmul.f32 %v9532_v2, %v9532_v2 }
 0x402   : > { %v7355_v6 = vpop.f32.mrb[156].mxu0  ;;  %v5150_v37 = vadd.f32 %v5149_v39, %v5148_v49 }
 0x403   : > { %v5138_v42 = vadd.f32 %v5137_v52, %v5136_v9  ;;  %v5330_v13 = vsel %vm5277_vm4, %v5132_v16, %v5329_v0  ;;  %v4160_v60 = vadd.f32 %v9415_v57, %v7355_v6  ;;  %v4151_v22 = vpop.f32.mrb[157].mxu0 }
 0x404   : > { %v4152_v28 = vadd.f32 %v9415_v57, %v4151_v22  ;;  %v7356_v59 = vpop.f32.mrb[158].mxu0 }
 0x405   : > { %v5331_v41 = vsel %vm5279_vm5, %v5138_v42, %v5330_v13  ;;  %v4761_v63 = vmul.f32 %v9493_v25, %v4160_v60  ;;  %v4163_v36 = vadd.f32 %v9415_v57, %v7356_v59  ;;  %v4154_v56 = vpop.f32.mrb[159].mxu0 }
 0x406   : > { %v5332_v4 = vsel %vm5281_vm6, %v5144_v23, %v5331_v41  ;;  %v4759_v12 = vmul.f32 %v9487_v61, %v4152_v28  ;;  %v4155_v0 = vadd.f32 %v9415_v57, %v4154_v56  ;;  %v9542_v61 = vsub.f32 %v9343_v43, %v5382_v50  ;;  %v4694_v56 = vpop.permute.xlu1 %4693 }
 0x407   : > { %v5333_v3 = vsel %vm5283_vm7, %v5150_v37, %v5332_v4  ;;  %v5163_v7 = vrot.slane %v4761_v63, 4  ;;  %v4762_v20 = vmul.f32 %v4666_v24, %v4163_v36 }
 0x408   : > { %v9538_v25 = vadd.f32 %v7938_v31, %v5333_v3  ;;  %v5151_v62 = vrot.slane %v4759_v12, 4  ;;  %v4760_v34 = vmul.f32 %v4652_v18, %v4155_v0  ;;  %v5400_v55 = vmul.f32 %v9542_v61, %v9542_v61 }
 0x409   : > { %v5164_v44 = vadd.f32 %v5163_v7, %v4761_v63  ;;  %v5169_v53 = vrot.slane %v4762_v20, 4 }
 0x40a   : > { %5375 = vadd.xlane.f32.xlu0 %v9538_v25  ;;  %v5152_v11 = vadd.f32 %v5151_v62, %v4759_v12  ;;  %v5157_v17 = vrot.slane %v4760_v34, 4 }
 0x40b   : > { %v5165_v46 = vrot.slane %v5164_v44, 2  ;;  %v5170_v15 = vadd.f32 %v5169_v53, %v4762_v20 }
 0x40c   : > { %v5153_v47 = vrot.slane %v5152_v11, 2  ;;  %v5158_v49 = vadd.f32 %v5157_v17, %v4760_v34 }
 0x40d   : > { %v5166_v58 = vadd.f32 %v5165_v46, %v5164_v44  ;;  %v5171_v40 = vrot.slane %v5170_v15, 2 }
 0x40e   : > { %5407 = vadd.xlane.f32.xlu0 %v5398_v29  ;;  %v5154_v51 = vadd.f32 %v5153_v47, %v5152_v11  ;;  %v5159_v9 = vrot.slane %v5158_v49, 2 }
 0x40f   : > { %v5172_v35 = vadd.f32 %v5171_v40, %v5170_v15  ;;  %v5167_v43 = vrot.slane %v5166_v58, 1 }
 0x410   : > { %v5155_v26 = vrot.slane %v5154_v51, 1  ;;  %v5160_v38 = vadd.f32 %v5159_v9, %v5158_v49  ;;  %v5364_v49 = vpop.xlane.xlu1 %5363 }
 0x411   : > { %v5173_v18 = vrot.slane %v5172_v35, 1  ;;  %v5168_v42 = vadd.f32 %v5167_v43, %v5166_v58 }
 0x412   : > { %5411 = vadd.xlane.f32.xlu0 %v5400_v55  ;;  %v5161_v16 = vrot.slane %v5160_v38, 1  ;;  %v5156_v39 = vadd.f32 %v5155_v26, %v5154_v51  ;;  %v5381_v55 = vmul.f32 0.0078125, %v5364_v49 }
 0x413   : > { %v5174_v6 = vadd.f32 %v5173_v18, %v5172_v35 }
 0x414   : > { %v5162_v52 = vadd.f32 %v5161_v16, %v5160_v38 }
 0x416   : > { %v5334_v13 = vsel %vm5271_vm1, %v5162_v52, %v5156_v39  ;;  %v7487_v39 = vld [vmem:[%s10046_s14 + $0xa8] ss:$16 sps:$4 sm:$0xff]   ;;  %v7489_v52 = vld [vmem:[%s10046_s14 + $0xac] ss:$16 sps:$4 sm:$0xff]  }
 0x417   : > { %v5335_v60 = vsel %vm5273_vm2, %v5168_v42, %v5334_v13  ;;  %v5368_v38 = vpop.xlane.xlu0 %5367  ;;  %v7495_v13 = vld [vmem:[%s10046_s14 + $0xcc] ss:$16 sps:$4 sm:$0xff]   ;;  %5801 = vmatprep.subr.bf16.mxu0 %v7489_v52 }
 0x418   : > { %v7359_v23 = vpop.f32.mrb[160].mxu0  ;;  %v5336_v28 = vsel %vm5275_vm3, %v5174_v6, %v5335_v60  ;;  %v7492_v6 = vld [vmem:[%s10046_s14 + $0xe4] ss:$16 sps:$4 sm:$0xff]   ;;  %v5383_v60 = vmul.f32 0.0078125, %v5368_v38  ;;  %5802 = vmatpush1.bf16.msra.mxu0 %v7487_v39 }
 0x419   : > { %v4176_v22 = vadd.f32 %v9415_v57, %v7359_v23  ;;  %v4167_v8 = vpop.f32.mrb[161].mxu0  ;;  %v9577_v23 = vsub.f32 %v9317_v21, %v5381_v55  ;;  %5724 = vmatprep.subr.bf16.mxu1 %v7492_v6  ;;  %5803 = vmatprep.subr.bf16.mxu0 %v7495_v13 }
 0x41a   : > { %v4168_v59 = vadd.f32 %v9415_v57, %v4167_v8  ;;  %v7360_v37 = vpop.f32.mrb[162].mxu0 }
 0x41b   : > { %v4765_v41 = vmul.f32 %v9504_v54, %v4176_v22  ;;  %v4179_v63 = vadd.f32 %v9415_v57, %v7360_v37  ;;  %v4170_v36 = vpop.f32.mrb[163].mxu0  ;;  %v7939_v22 = vld [vmem:[%s8147_s3 + $0x40] sm:$0xff]  ;;  %v5399_v21 = vmul.f32 %v9577_v23, %v9577_v23 }
 0x41c   : > { %v4763_v4 = vmul.f32 %v9497_v30, %v4168_v59  ;;  %v4171_v24 = vadd.f32 %v9415_v57, %v4170_v36  ;;  %v9584_v59 = vsub.f32 %v9373_v32, %v5383_v60  ;;  %v7496_v32 = vld [vmem:[%s10046_s14 + $0xe8] ss:$16 sps:$4 sm:$0xff]  }
 0x41d   : > { %v5187_v12 = vrot.slane %v4765_v41, 4  ;;  %v4766_v0 = vmul.f32 %v4694_v56, %v4179_v63 }
 0x41e   : > { %v5175_v3 = vrot.slane %v4763_v4, 4  ;;  %v4764_v50 = vmul.f32 %v4680_v27, %v4171_v24  ;;  %v7490_v27 = vld [vmem:[%s10046_s14 + $0xe0] ss:$16 sps:$4 sm:$0xff]   ;;  %v5401_v37 = vmul.f32 %v9584_v59, %v9584_v59 }
 0x41f   : > { %v5188_v7 = vadd.f32 %v5187_v12, %v4765_v41  ;;  %v5193_v20 = vrot.slane %v4766_v0, 4  ;;  %5725 = vmatpush1.bf16.msra.mxu1 %v7490_v27 }
 0x420   : > { %v5176_v31 = vadd.f32 %v5175_v3, %v4763_v4  ;;  %v5181_v62 = vrot.slane %v4764_v50, 4  ;;  %v7498_v4 = vld [vmem:[%s10046_s14 + $0xec] ss:$16 sps:$4 sm:$0xff]  }
 0x421   : > { %v5189_v34 = vrot.slane %v5188_v7, 2  ;;  %v5194_v44 = vadd.f32 %v5193_v20, %v4766_v0 }
 0x422   : > { %v5177_v53 = vrot.slane %v5176_v31, 2  ;;  %v5182_v54 = vadd.f32 %v5181_v62, %v4764_v50 }
 0x423   : > { %v5190_v11 = vadd.f32 %v5189_v34, %v5188_v7  ;;  %v5195_v17 = vrot.slane %v5194_v44, 2 }
 0x424   : > { %v5178_v46 = vadd.f32 %v5177_v53, %v5176_v31  ;;  %v5183_v15 = vrot.slane %v5182_v54, 2 }
 0x425   : > { %v5196_v29 = vadd.f32 %v5195_v17, %v5194_v44  ;;  %v5191_v57 = vrot.slane %v5190_v11, 1 }
 0x426   : > { %v5179_v30 = vrot.slane %v5178_v46, 1  ;;  %v5184_v47 = vadd.f32 %v5183_v15, %v5182_v54 }
 0x427   : > { %v5197_v40 = vrot.slane %v5196_v29, 1  ;;  %v5192_v26 = vadd.f32 %v5191_v57, %v5190_v11 }
 0x428   : > { %v5180_v58 = vadd.f32 %v5179_v30, %v5178_v46  ;;  %v5185_v51 = vrot.slane %v5184_v47, 1 }
 0x429   : > { %v5198_v43 = vadd.f32 %v5197_v40, %v5196_v29 }
 0x42a   : > { %v5186_v9 = vadd.f32 %v5185_v51, %v5184_v47  ;;  %v5337_v35 = vsel %vm5277_vm4, %v5180_v58, %v5336_v28  ;;  %v7493_v28 = vld [vmem:[%s10046_s14 + $0xc8] ss:$16 sps:$4 sm:$0xff]  }
 0x42b   : > { %5804 = vmatpush1.bf16.msra.mxu0 %v7493_v28 }
 0x42c   : > { %v5338_v18 = vsel %vm5279_vm5, %v5186_v9, %v5337_v35  ;;  %5805 = vmatprep.subr.bf16.mxu0 %v7498_v4  ;;  %v9624_v35 = vld [vmem:[%s10044_s12] ss:$0 sm:$0xff] }
 0x42d   : > { %v5339_v16 = vsel %vm5281_vm6, %v5192_v26, %v5338_v18  ;;  %v9631_v18 = vld [vmem:[%s10045_s13] ss:$0 sm:$0xff] }
 0x42e   : > { %v5340_v42 = vsel %vm5283_vm7, %v5198_v43, %v5339_v16 }
 0x42f   : > { %v5358_v8 = vadd.f32 %v7939_v22, %v5340_v42  ;;  %5806 = vmatpush1.bf16.msra.mxu0 %v7496_v32  ;;  %v7503_v32 = vld [vmem:[%s10048_s16 + $0x48] sm:$0xff]  }
 0x431   : > { %5377 = vadd.xlane.f32.xlu1 %v5358_v8 }
 0x435   : > { %5409 = vadd.xlane.f32.xlu1 %v5399_v21  ;;  %v7499_v21 = vld [vmem:[%s10048_s16 + $0x40] sm:$0xff]  }
 0x436   : > { %7057 = vmatprep.subr.bf16.mxu1 %v7499_v21  ;;  %v7524_v21 = vld [vmem:[%s10048_s16 + $0x30] sm:$0xff]  }
 0x437   : > { %v5370_v41 = vpop.xlane.xlu1 %5369 }
 0x438   : > { %v5384_v63 = vmul.f32 0.0078125, %v5370_v41  ;;  %v7501_v41 = vld [vmem:[%s10048_s16 + $0xc0] sm:$0xff]  }
 0x439   : > { %5413 = vadd.xlane.f32.xlu1 %v5401_v37  ;;  %v7500_v37 = vld [vmem:[%s10048_s16] sm:$0xff]   ;;  %7103 = vmatprep.subr.bf16.mxu0 %v7501_v41  ;;  %v7527_v41 = vld [vmem:[%s10048_s16 + $0x78] sm:$0xff]  }
 0x43a   : > { %v9591_v36 = vsub.f32 %v9399_v10, %v5384_v63 }
 0x43c   : > { %v5402_v56 = vmul.f32 %v9591_v36, %v9591_v36 }
 0x43e   : > { %5415 = vadd.xlane.f32.xlu0 %v5402_v56  ;;  %v7502_v56 = vld [vmem:[%s10048_s16 + $0x80] sm:$0xff]  }
 0x457   : > { %v5372_v24 = vpop.xlane.xlu0 %5371 }
 0x458   : > { %v5385_v12 = vmul.f32 0.0078125, %v5372_v24  ;;  %v7505_v24 = vld [vmem:[%s10048_s16 + $0xc8] sm:$0xff]  }
 0x45a   : > { %v9602_v0 = vsub.f32 %v9453_v33, %v5385_v12  ;;  %v7504_v12 = vld [vmem:[%s10048_s16 + $0x8] sm:$0xff]  }
 0x45c   : > { %v5403_v10 = vmul.f32 %v9602_v0, %v9602_v0 }
 0x45e   : > { %5417 = vadd.xlane.f32.xlu1 %v5403_v10  ;;  %v7506_v10 = vld [vmem:[%s10048_s16 + $0x88] sm:$0xff]  }
 0x477   : > { %v5374_v3 = vpop.xlane.xlu1 %5373 }
 0x478   : > { %v5386_v50 = vmul.f32 0.0078125, %v5374_v3 }
 0x47a   : > { %v9607_v7 = vsub.f32 %v9490_v5, %v5386_v50  ;;  %v7507_v50 = vld [vmem:[%s10048_s16 + $0x50] sm:$0xff]  }
 0x47c   : > { %v5404_v20 = vmul.f32 %v9607_v7, %v9607_v7 }
 0x47e   : > { %5419 = vadd.xlane.f32.xlu0 %v5404_v20  ;;  %v7509_v20 = vld [vmem:[%s10048_s16 + $0xd0] sm:$0xff]  }
 0x497   : > { %v5376_v31 = vpop.xlane.xlu0 %5375 }
 0x498   : > { %v5387_v62 = vmul.f32 0.0078125, %v5376_v31  ;;  %v7508_v31 = vld [vmem:[%s10048_s16 + $0x10] sm:$0xff]  }
 0x49a   : > { %v9612_v34 = vsub.f32 %v9538_v25, %v5387_v62  ;;  %v7510_v62 = vld [vmem:[%s10048_s16 + $0x90] sm:$0xff]  }
 0x49b   : > { %v5408_v44 = vpop.xlane.xlu0 %5407 }
 0x49c   : > { %v5405_v33 = vmul.f32 %v9612_v34, %v9612_v34  ;;  %v5425_v53 = vmul.f32 0.0078125, %v5408_v44 }
 0x49e   : > { %5421 = vadd.xlane.f32.xlu1 %v5405_v33  ;;  %v5434_v54 = vadd.f32 1e-05, %v5425_v53 }
 0x49f   : > { %v5412_v11 = vpop.xlane.xlu0 %5411 }
 0x4a0   : > { %7819 = vrsqrt.f32 %v5434_v54  ;;  %v5427_v46 = vmul.f32 0.0078125, %v5412_v11 }
 0x4a2   : > { %v5436_v47 = vadd.f32 1e-05, %v5427_v46 }
 0x4aa   : > { %v7820_v51 = vpop.eup %7819 }
 0x4ab   : > { %v5452_v9 = vmul.f32 %v7820_v51, %v9532_v2 }
 0x4ad   : > { %v5467_v26 = vmul.f32 %v9624_v35, %v5452_v9 }
 0x4af   : > { %v9635_v2 = vadd.f32 %v9631_v18, %v5467_v26  ;;  %v7513_v26 = vld [vmem:[%s10048_s16 + $0xd8] sm:$0xff]  }
 0x4be   : > { %v5378_v17 = vpop.xlane.xlu1 %5377 }
 0x4bf   : > { %v5388_v5 = vmul.f32 0.0078125, %v5378_v17 }
 0x4c1   : > { %v9616_v15 = vsub.f32 %v5358_v8, %v5388_v5 }
 0x4c2   : > { %v5410_v29 = vpop.xlane.xlu1 %5409 }
 0x4c3   : > { %v5426_v30 = vmul.f32 0.0078125, %v5410_v29  ;;  %v5406_v25 = vmul.f32 %v9616_v15, %v9616_v15 }
 0x4c5   : > { %v5435_v57 = vadd.f32 1e-05, %v5426_v30  ;;  %5423 = vadd.xlane.f32.xlu0 %v5406_v25 }
 0x4c6   : > { %v5414_v49 = vpop.xlane.xlu1 %5413 }
 0x4c7   : > { %7821 = vrsqrt.f32 %v5435_v57  ;;  %v5428_v58 = vmul.f32 0.0078125, %v5414_v49 }
 0x4c8   : > { %7823 = vrsqrt.f32 %v5436_v47 }
 0x4c9   : > { %v5437_v40 = vadd.f32 1e-05, %v5428_v58 }
 0x4cb   : > { %7825 = vrsqrt.f32 %v5437_v40  ;;  %v5416_v22 = vpop.xlane.xlu0 %5415 }
 0x4cc   : > { %v5429_v28 = vmul.f32 0.0078125, %v5416_v22  ;;  %v7521_v22 = vld [vmem:[%s10048_s16 + $0xe8] sm:$0xff]  }
 0x4d1   : > { %v7822_v55 = vpop.eup %7821 }
 0x4d2   : > { %v5453_v38 = vmul.f32 %v7822_v55, %v9577_v23  ;;  %v7824_v43 = vpop.eup %7823  ;;  %v7511_v55 = vld [vmem:[%s10048_s16 + $0x58] sm:$0xff]  }
 0x4d3   : > { %v5454_v27 = vmul.f32 %v7824_v43, %v9542_v61  ;;  %v7512_v43 = vld [vmem:[%s10048_s16 + $0x18] sm:$0xff]  }
 0x4d4   : > { %v5468_v16 = vmul.f32 %v9624_v35, %v5453_v38 }
 0x4d5   : > { %v7826_v39 = vpop.eup %7825  ;;  %v5469_v23 = vmul.f32 %v9624_v35, %v5454_v27  ;;  %v7517_v27 = vld [vmem:[%s10048_s16 + $0xe0] sm:$0xff]  }
 0x4d6   : > { %v9638_v52 = vadd.f32 %v9631_v18, %v5468_v16  ;;  %v5455_v42 = vmul.f32 %v7826_v39, %v9584_v59  ;;  %v5438_v59 = vadd.f32 1e-05, %v5429_v28  ;;  %v7515_v39 = vld [vmem:[%s10048_s16 + $0x60] sm:$0xff]   ;;  %v7522_v28 = vld [vmem:[%s10048_s16 + $0xa8] sm:$0xff]  }
 0x4d7   : > { %v9652_v61 = vadd.f32 %v9631_v18, %v5469_v23  ;;  %v7519_v23 = vld [vmem:[%s10048_s16 + $0x68] sm:$0xff]  }
 0x4d8   : > { %v5491_v6 = vpack.c.bf16 %v9638_v52, %v9635_v2  ;;  %v5470_v13 = vmul.f32 %v9624_v35, %v5455_v42  ;;  %7827 = vrsqrt.f32 %v5438_v59  ;;  %v7525_v59 = vld [vmem:[%s10048_s16 + $0xf0] sm:$0xff]  }
 0x4da   : > { %5743 = vmatmul.mubr.bf16.vlgmr.msra.gmra.mrb[144].mxu1 %v5491_v6  ;;  %5824 = vmatmul.mubr.bf16.vlgmr.msra.gmra.mrb[164].mxu0 %v5491_v6  ;;  %v9649_v60 = vadd.f32 %v9631_v18, %v5470_v13  ;;  %v7516_v6 = vld [vmem:[%s10048_s16 + $0x20] sm:$0xff]  }
 0x4db   : > { %5752 = vmatprep.mubr.bf16.mxu1 %v7948_v1  ;;  %5833 = vmatprep.mubr.bf16.mxu0 %v7948_v1  ;;  %v7518_v13 = vld [vmem:[%s10048_s16 + $0xa0] sm:$0xff]  }
 0x4dc   : > { %v5492_v8 = vpack.c.bf16 %v9649_v60, %v9652_v61  ;;  %7058 = vmatpush3.bf16.msra.mxu1 %v7500_v37  ;;  %7104 = vmatpush3.bf16.msra.mxu0 %v7502_v56  ;;  %v7526_v37 = vld [vmem:[%s10048_s16 + $0xb0] sm:$0xff]   ;;  %v7528_v56 = vld [vmem:[%s10048_s16 + $0x38] sm:$0xff]  }
 0x4dd   : > { %7059 = vmatprep.subr.bf16.mxu1 %v7503_v32  ;;  %7105 = vmatprep.subr.bf16.mxu0 %v7505_v24  ;;  %v7530_v32 = vld [vmem:[%s10048_s16 + $0xb8] sm:$0xff]  }
 0x4e0   : > { %7060 = vmatpush3.bf16.msra.mxu1 %v7504_v12  ;;  %7106 = vmatpush3.bf16.msra.mxu0 %v7506_v10 }
 0x4e1   : > { %7061 = vmatprep.subr.bf16.mxu1 %v7507_v50  ;;  %7107 = vmatprep.subr.bf16.mxu0 %v7509_v20 }
 0x4e2   : > { %5753 = vmatmul.mubr.bf16.gmra.mrb[148].mxu1 %v5492_v8  ;;  %5834 = vmatmul.mubr.bf16.gmra.mrb[168].mxu0 %v5492_v8  ;;  %v7828_v33 = vpop.eup %7827  ;;  %v7520_v8 = vld [vmem:[%s10048_s16 + $0x28] sm:$0xff]  }
 0x4e3   : > { %5762 = vmatprep.mubr.bf16.mxu1 %v7948_v1  ;;  %5843 = vmatprep.mubr.bf16.mxu0 %v7948_v1  ;;  %v5456_v44 = vmul.f32 %v7828_v33, %v9591_v36 }
 0x4e4   : > { %7062 = vmatpush3.bf16.msra.mxu1 %v7508_v31  ;;  %7108 = vmatpush3.bf16.msra.mxu0 %v7510_v62  ;;  %v5528_v62 = vld [vmem:[%s10047_s15] sm:$0xf] }
 0x4e5   : > { %v5471_v11 = vmul.f32 %v9624_v35, %v5456_v44  ;;  %7063 = vmatprep.subr.bf16.mxu1 %v7511_v55  ;;  %7109 = vmatprep.subr.bf16.mxu0 %v7513_v26  ;;  %v9793_v33 = vrot.slane %v5528_v62, %v8328_v48  ;;  %v9796_v44 = vrot.slane %v5528_v62, %v8798_v14 }
 0x4e7   : > { %v9699_v5 = vadd.f32 %v9631_v18, %v5471_v11 }
 0x4e8   : > { %7064 = vmatpush3.bf16.msra.mxu1 %v7512_v43 }
 0x4e9   : > { %7065 = vmatprep.subr.bf16.mxu1 %v7515_v39 }
 0x4eb   : > { %v5418_v63 = vpop.xlane.xlu1 %5417 }
 0x4ec   : > { %v5430_v4 = vmul.f32 0.0078125, %v5418_v63  ;;  %7066 = vmatpush3.bf16.msra.mxu1 %v7516_v6  ;;  %v7529_v63 = vld [vmem:[%s10048_s16 + $0xf8] sm:$0xff]  }
 0x4ed   : > { %7067 = vmatprep.subr.bf16.mxu1 %v7519_v23 }
 0x4ee   : > { %v5439_v3 = vadd.f32 1e-05, %v5430_v4 }
 0x4f0   : > { %7829 = vrsqrt.f32 %v5439_v3  ;;  %7068 = vmatpush3.bf16.msra.mxu1 %v7520_v8 }
 0x4fa   : > { %v7830_v53 = vpop.eup %7829 }
 0x4fb   : > { %v5457_v54 = vmul.f32 %v7830_v53, %v9602_v0 }
 0x4fd   : > { %v5472_v17 = vmul.f32 %v9624_v35, %v5457_v54 }
 0x4ff   : > { %v9702_v46 = vadd.f32 %v9631_v18, %v5472_v17 }
 0x501   : > { %v5493_v29 = vpack.c.bf16 %v9702_v46, %v9699_v5 }
 0x503   : > { %5763 = vmatmul.mubr.bf16.gmra.mrb[152].mxu1 %v5493_v29  ;;  %5844 = vmatmul.mubr.bf16.gmra.mrb[172].mxu0 %v5493_v29 }
 0x504   : > { %5772 = vmatprep.mubr.bf16.mxu1 %v7948_v1  ;;  %5853 = vmatprep.mubr.bf16.mxu0 %v7948_v1 }
 0x50b   : > { %v5420_v36 = vpop.xlane.xlu0 %5419 }
 0x50c   : > { %v5431_v0 = vmul.f32 0.0078125, %v5420_v36 }
 0x50e   : > { %v5440_v30 = vadd.f32 1e-05, %v5431_v0 }
 0x510   : > { %7831 = vrsqrt.f32 %v5440_v30 }
 0x51a   : > { %v7832_v49 = vpop.eup %7831 }
 0x51b   : > { %v5458_v58 = vmul.f32 %v7832_v49, %v9607_v7  ;;  %v7514_v7 = vld [vmem:[%s10048_s16 + $0x98] sm:$0xff]  }
 0x51c   : > { %7110 = vmatpush3.bf16.msra.mxu0 %v7514_v7 }
 0x51d   : > { %v5473_v9 = vmul.f32 %v9624_v35, %v5458_v58  ;;  %7111 = vmatprep.subr.bf16.mxu0 %v7517_v27 }
 0x520   : > { %7112 = vmatpush3.bf16.msra.mxu0 %v7518_v13 }
 0x521   : > { %7113 = vmatprep.subr.bf16.mxu0 %v7521_v22 }
 0x524   : > { %7114 = vmatpush3.bf16.msra.mxu0 %v7522_v28 }
 0x525   : > { %7115 = vmatprep.subr.bf16.mxu0 %v7525_v59 }
 0x528   : > { %7116 = vmatpush3.bf16.msra.mxu0 %v7526_v37 }
 0x529   : > { %7117 = vmatprep.subr.bf16.mxu0 %v7529_v63 }
 0x52b   : > { %v5422_v25 = vpop.xlane.xlu1 %5421 }
 0x52c   : > { %v5432_v47 = vmul.f32 0.0078125, %v5422_v25  ;;  %7118 = vmatpush3.bf16.msra.mxu0 %v7530_v32 }
 0x52e   : > { %v5441_v57 = vadd.f32 1e-05, %v5432_v47 }
 0x530   : > { %7833 = vrsqrt.f32 %v5441_v57 }
 0x53a   : > { %v7834_v40 = vpop.eup %7833 }
 0x53b   : > { %v5459_v51 = vmul.f32 %v7834_v40, %v9612_v34  ;;  %v9725_v34 = vadd.f32 %v9631_v18, %v5473_v9 }
 0x53d   : > { %v5474_v38 = vmul.f32 %v9624_v35, %v5459_v51 }
 0x53f   : > { %v9728_v16 = vadd.f32 %v9631_v18, %v5474_v38 }
 0x541   : > { %v5494_v42 = vpack.c.bf16 %v9728_v16, %v9725_v34 }
 0x543   : > { %5773 = vmatmul.mubr.bf16.gmra.mrb[156].mxu1 %v5494_v42  ;;  %5854 = vmatmul.mubr.bf16.gmra.mrb[176].mxu0 %v5494_v42 }
 0x544   : > { %5782 = vmatprep.mubr.bf16.mxu1 %v7948_v1  ;;  %5863 = vmatprep.mubr.bf16.mxu0 %v7948_v1  ;;  %v7523_v1 = vld [vmem:[%s10048_s16 + $0x70] sm:$0xff]  }
 0x545   : > { %7069 = vmatprep.subr.bf16.mxu1 %v7523_v1 }
 0x546   : > { %7070 = vmatpush3.bf16.msra.mxu1 %v7524_v21 }
 0x547   : > { %7071 = vmatprep.subr.bf16.mxu1 %v7527_v41 }
 0x54a   : > { %7072 = vmatpush3.bf16.msra.mxu1 %v7528_v56 }
 0x552   : > { %v5424_v4 = vpop.xlane.xlu0 %5423 }
 0x553   : > { %v5433_v24 = vmul.f32 0.0078125, %v5424_v4 }
 0x555   : > { %v5442_v12 = vadd.f32 1e-05, %v5433_v24 }
 0x557   : > { %7835 = vrsqrt.f32 %v5442_v12 }
 0x561   : > { %v7836_v10 = vpop.eup %7835 }
 0x562   : > { %v5460_v3 = vmul.f32 %v7836_v10, %v9616_v15  ;;  %v9799_v15 = vrot.slane %v5528_v62, %v8783_v19 }
 0x564   : > { %v5475_v50 = vmul.f32 %v9624_v35, %v5460_v3  ;;  %v9802_v35 = vrot.slane %v5528_v62, %v8822_v45 }
 0x566   : > { %v9785_v20 = vadd.f32 %v9631_v18, %v5475_v50 }
 0x568   : > { %v5495_v31 = vpack.c.bf16 %v9785_v20, %v9785_v20 }
 0x56a   : > { %5783 = vmatmul.mubr.bf16.gmra.mrb[160].mxu1 %v5495_v31  ;;  %5864 = vmatmul.mubr.bf16.gmra.mrb[180].mxu0 %v5495_v31 }
 0x5ad   : > { %v5744_v18 = vpop.f32.mrb[144].mxu1  ;;  %v5825_v53 = vpop.f32.mrb[164].mxu0 }
 0x5ae   : > { %v5745_v54 = vadd.f32 %v5744_v18, %v9793_v33  ;;  %v5826_v11 = vadd.f32 %v5825_v53, %v9796_v44  ;;  %v5746_v17 = vpop.f32.mrb[145].mxu1  ;;  %v5827_v29 = vpop.f32.mrb[165].mxu0 }
 0x5af   : > { %v5747_v48 = vadd.f32 %v5746_v17, %v9799_v15  ;;  %v5828_v36 = vadd.f32 %v5827_v29, %v9802_v35  ;;  %v5748_v14 = vpop.f32.mrb[146].mxu1  ;;  %v5829_v0 = vpop.f32.mrb[166].mxu0 }
 0x5b0   : > { %v5908_v30 = vmul.f32 0.70710677, %v5745_v54  ;;  %v5910_v19 = vmul.f32 0.70710677, %v5826_v11  ;;  %v5749_v45 = vadd.f32 %v5748_v14, %v9793_v33  ;;  %v9810_v57 = vadd.f32 %v5829_v0, %v9796_v44  ;;  %v5750_v49 = vpop.f32.mrb[147].mxu1  ;;  %v5831_v58 = vpop.f32.mrb[167].mxu0 }
 0x5b1   : > { %v5909_v25 = vmul.f32 0.70710677, %v5747_v48  ;;  %v5911_v47 = vmul.f32 0.70710677, %v5828_v36  ;;  %v5751_v40 = vadd.f32 %v5750_v49, %v9799_v15  ;;  %v9814_v51 = vadd.f32 %v5831_v58, %v9802_v35 }
 0x5b2   : > { %7837 = verf.f32 %v5908_v30  ;;  %v5912_v9 = vmul.f32 0.70710677, %v5749_v45  ;;  %v5914_v55 = vmul.f32 0.70710677, %v9810_v57  ;;  %v5872_v50 = vmul.f32 0.5, %v5745_v54 }
 0x5b3   : > { %7839 = verf.f32 %v5910_v19  ;;  %v5913_v26 = vmul.f32 0.70710677, %v5751_v40  ;;  %v5915_v43 = vmul.f32 0.70710677, %v9814_v51  ;;  %v5874_v31 = vmul.f32 0.5, %v5826_v11 }
 0x5b4   : > { %7841 = verf.f32 %v5909_v25  ;;  %v5873_v17 = vmul.f32 0.5, %v5747_v48  ;;  %v5875_v30 = vmul.f32 0.5, %v5828_v36  ;;  %v5876_v19 = vmul.f32 0.5, %v5749_v45 }
 0x5b5   : > { %7843 = verf.f32 %v5911_v47  ;;  %v5754_v38 = vpop.f32.mrb[148].mxu1  ;;  %v5835_v39 = vpop.f32.mrb[168].mxu0  ;;  %v5877_v48 = vmul.f32 0.5, %v5751_v40 }
 0x5b6   : > { %7845 = verf.f32 %v5912_v9  ;;  %v9819_v7 = vadd.f32 %v5754_v38, %v9793_v33  ;;  %v5756_v27 = vpop.f32.mrb[149].mxu1  ;;  %v9822_v42 = vadd.f32 %v5835_v39, %v9796_v44  ;;  %v5837_v13 = vpop.f32.mrb[169].mxu0  ;;  %v5878_v9 = vmul.f32 0.5, %v9810_v57 }
 0x5b7   : > { %7847 = verf.f32 %v5914_v55  ;;  %v9825_v6 = vadd.f32 %v5756_v27, %v9799_v15  ;;  %v5758_v23 = vpop.f32.mrb[150].mxu1  ;;  %v9829_v8 = vadd.f32 %v5837_v13, %v9802_v35  ;;  %v5839_v28 = vpop.f32.mrb[170].mxu0  ;;  %v5879_v27 = vmul.f32 0.5, %v9814_v51 }
 0x5b8   : > { %7849 = verf.f32 %v5913_v26  ;;  %v5916_v22 = vmul.f32 0.70710677, %v9819_v7  ;;  %v5760_v1 = vpop.f32.mrb[151].mxu1  ;;  %v5918_v59 = vmul.f32 0.70710677, %v9822_v42  ;;  %v5841_v21 = vpop.f32.mrb[171].mxu0  ;;  %v5759_v63 = vadd.f32 %v5758_v23, %v9793_v33 }
 0x5b9   : > { %7851 = verf.f32 %v5915_v43  ;;  %v5917_v37 = vmul.f32 0.70710677, %v9825_v6  ;;  %v5919_v41 = vmul.f32 0.70710677, %v9829_v8  ;;  %v9836_v56 = vadd.f32 %v5839_v28, %v9796_v44 }
 0x5ba   : > { %7853 = verf.f32 %v5916_v22  ;;  %v9839_v32 = vadd.f32 %v5760_v1, %v9799_v15  ;;  %v5920_v12 = vmul.f32 0.70710677, %v5759_v63  ;;  %v9842_v10 = vadd.f32 %v5841_v21, %v9802_v35 }
 0x5bb   : > { %7855 = verf.f32 %v5918_v59  ;;  %v5922_v62 = vmul.f32 0.70710677, %v9836_v56 }
 0x5bc   : > { %v7838_v4 = vpop.eup %7837  ;;  %7857 = verf.f32 %v5917_v37  ;;  %v5921_v29 = vmul.f32 0.70710677, %v9839_v32  ;;  %v5923_v54 = vmul.f32 0.70710677, %v9842_v10 }
 0x5bd   : > { %v7840_v24 = vpop.eup %7839  ;;  %7859 = verf.f32 %v5919_v41  ;;  %v5980_v53 = vadd.f32 1.0, %v7838_v4 }
 0x5be   : > { %v7842_v3 = vpop.eup %7841  ;;  %7861 = verf.f32 %v5920_v12  ;;  %v5982_v0 = vadd.f32 1.0, %v7840_v24 }
 0x5bf   : > { %v7844_v18 = vpop.eup %7843  ;;  %7863 = verf.f32 %v5922_v62  ;;  %v5981_v47 = vadd.f32 1.0, %v7842_v3  ;;  %v6016_v38 = vmul.f32 %v5980_v53, %v5872_v50  ;;  %v5880_v50 = vmul.f32 0.5, %v9819_v7 }
 0x5c0   : > { %v7846_v14 = vpop.eup %7845  ;;  %7865 = verf.f32 %v5921_v29  ;;  %v5983_v58 = vadd.f32 1.0, %v7844_v18  ;;  %v6018_v36 = vmul.f32 %v5982_v0, %v5874_v31  ;;  %v5882_v62 = vmul.f32 0.5, %v9822_v42 }
 0x5c1   : > { %v7848_v25 = vpop.eup %7847  ;;  %v5984_v49 = vadd.f32 1.0, %v7846_v14  ;;  %7867 = verf.f32 %v5923_v54  ;;  %v6017_v22 = vmul.f32 %v5981_v47, %v5873_v17  ;;  %v5884_v53 = vmul.f32 0.5, %v5759_v63 }
 0x5c2   : > { %v7850_v11 = vpop.eup %7849  ;;  %v5986_v55 = vadd.f32 1.0, %v7848_v25  ;;  %v6019_v21 = vmul.f32 %v5983_v58, %v5875_v30  ;;  %v5881_v14 = vmul.f32 0.5, %v9825_v6  ;;  %v5886_v0 = vmul.f32 0.5, %v9836_v56 }
 0x5c3   : > { %v7852_v26 = vpop.eup %7851  ;;  %v6020_v43 = vmul.f32 %v5984_v49, %v5876_v19  ;;  %v5985_v39 = vadd.f32 1.0, %v7850_v11  ;;  %v5885_v19 = vmul.f32 0.5, %v9839_v32  ;;  %v5883_v63 = vmul.f32 0.5, %v9829_v8 }
 0x5c4   : > { %v6022_v45 = vmul.f32 %v5986_v55, %v5878_v9  ;;  %v5987_v13 = vadd.f32 1.0, %v7852_v26  ;;  %v7854_v23 = vpop.eup %7853  ;;  %v5887_v58 = vmul.f32 0.5, %v9842_v10 }
 0x5c5   : > { %v6052_v28 = vpack.c.bf16 %v6020_v43, %v6016_v38  ;;  %v6021_v1 = vmul.f32 %v5985_v39, %v5877_v48  ;;  %v7856_v59 = vpop.eup %7855  ;;  %v5988_v24 = vadd.f32 1.0, %v7854_v23 }
 0x5c6   : > { %v6054_v37 = vpack.c.bf16 %v6022_v45, %v6018_v36  ;;  %v6023_v57 = vmul.f32 %v5987_v13, %v5879_v27  ;;  %v7858_v41 = vpop.eup %7857  ;;  %v5990_v31 = vadd.f32 1.0, %v7856_v59 }
 0x5c7   : > { %v6053_v40 = vpack.c.bf16 %v6021_v1, %v6017_v22  ;;  %v7860_v4 = vpop.eup %7859  ;;  %v5989_v18 = vadd.f32 1.0, %v7858_v41  ;;  %v6024_v7 = vmul.f32 %v5988_v24, %v5880_v50 }
 0x5c8   : > { %v6055_v12 = vpack.c.bf16 %v6023_v57, %v6019_v21  ;;  %v7862_v3 = vpop.eup %7861  ;;  %v5991_v25 = vadd.f32 1.0, %v7860_v4  ;;  %v6026_v42 = vmul.f32 %v5990_v31, %v5882_v62 }
 0x5c9   : > { %6367 = vmatprep.mubr.bf16.mxu1 %v6053_v40  ;;  %v7864_v51 = vpop.eup %7863  ;;  %v5992_v17 = vadd.f32 1.0, %v7862_v3  ;;  %v6025_v9 = vmul.f32 %v5989_v18, %v5881_v14 }
 0x5ca   : > { %6439 = vmatprep.mubr.bf16.mxu0 %v6055_v12  ;;  %6368 = vmatmul.mubr.bf16.vlgmr.msra.gmra.mrb[164].mxu1 %v6052_v28  ;;  %v7866_v29 = vpop.eup %7865  ;;  %v5994_v30 = vadd.f32 1.0, %v7864_v51  ;;  %v6027_v26 = vmul.f32 %v5991_v25, %v5883_v63 }
 0x5cb   : > { %6440 = vmatmul.mubr.bf16.vlgmr.msra.gmra.mrb[184].mxu0 %v6054_v37  ;;  %v6028_v47 = vmul.f32 %v5992_v17, %v5884_v53  ;;  %v5993_v49 = vadd.f32 1.0, %v7866_v29  ;;  %v7868_v54 = vpop.eup %7867 }
 0x5cc   : > { %v6030_v11 = vmul.f32 %v5994_v30, %v5886_v0  ;;  %v5995_v6 = vadd.f32 1.0, %v7868_v54 }
 0x5cd   : > { %v6029_v55 = vmul.f32 %v5993_v49, %v5885_v19  ;;  %v6056_v48 = vpack.c.bf16 %v6028_v47, %v6024_v7 }
 0x5ce   : > { %v6058_v56 = vpack.c.bf16 %v6030_v11, %v6026_v42  ;;  %v6031_v38 = vmul.f32 %v5995_v6, %v5887_v58 }
 0x5cf   : > { %v6057_v32 = vpack.c.bf16 %v6029_v55, %v6025_v9 }
 0x5d0   : > { %v6059_v43 = vpack.c.bf16 %v6031_v38, %v6027_v26 }
 0x5d1   : > { %6375 = vmatprep.mubr.bf16.mxu1 %v6057_v32 }
 0x5d2   : > { %6376 = vmatmul.mubr.bf16.gmra.mrb[168].mxu1 %v6056_v48  ;;  %6447 = vmatprep.mubr.bf16.mxu0 %v6059_v43 }
 0x5d3   : > { %6448 = vmatmul.mubr.bf16.gmra.mrb[188].mxu0 %v6058_v56 }
 0x5d6   : > { %v5764_v39 = vpop.f32.mrb[152].mxu1  ;;  %v5845_v36 = vpop.f32.mrb[172].mxu0 }
 0x5d7   : > { %v5765_v8 = vadd.f32 %v5764_v39, %v9793_v33  ;;  %v5846_v45 = vadd.f32 %v5845_v36, %v9796_v44  ;;  %v5766_v10 = vpop.f32.mrb[153].mxu1  ;;  %v5847_v27 = vpop.f32.mrb[173].mxu0 }
 0x5d8   : > { %v5767_v13 = vadd.f32 %v5766_v10, %v9799_v15  ;;  %v5848_v23 = vadd.f32 %v5847_v27, %v9802_v35  ;;  %v5768_v22 = vpop.f32.mrb[154].mxu1  ;;  %v5849_v28 = vpop.f32.mrb[174].mxu0 }
 0x5d9   : > { %v5924_v1 = vmul.f32 0.70710677, %v5765_v8  ;;  %v5926_v59 = vmul.f32 0.70710677, %v5846_v45  ;;  %v5769_v57 = vadd.f32 %v5768_v22, %v9793_v33  ;;  %v5850_v41 = vadd.f32 %v5849_v28, %v9796_v44  ;;  %v5770_v40 = vpop.f32.mrb[155].mxu1  ;;  %v5851_v4 = vpop.f32.mrb[175].mxu0 }
 0x5da   : > { %v5925_v21 = vmul.f32 0.70710677, %v5767_v13  ;;  %v5927_v37 = vmul.f32 0.70710677, %v5848_v23  ;;  %v5771_v24 = vadd.f32 %v5770_v40, %v9799_v15  ;;  %v5852_v12 = vadd.f32 %v5851_v4, %v9802_v35 }
 0x5db   : > { %7869 = verf.f32 %v5924_v1  ;;  %v5928_v3 = vmul.f32 0.70710677, %v5769_v57  ;;  %v5930_v50 = vmul.f32 0.70710677, %v5850_v41  ;;  %v5888_v0 = vmul.f32 0.5, %v5765_v8 }
 0x5dc   : > { %7871 = verf.f32 %v5926_v59  ;;  %v5929_v31 = vmul.f32 0.70710677, %v5771_v24  ;;  %v5931_v51 = vmul.f32 0.70710677, %v5852_v12  ;;  %v5890_v30 = vmul.f32 0.5, %v5846_v45 }
 0x5dd   : > { %7873 = verf.f32 %v5925_v21  ;;  %v5889_v25 = vmul.f32 0.5, %v5767_v13  ;;  %v5892_v49 = vmul.f32 0.5, %v5769_v57  ;;  %v5891_v63 = vmul.f32 0.5, %v5848_v23 }
 0x5de   : > { %7875 = verf.f32 %v5927_v37  ;;  %v5894_v58 = vmul.f32 0.5, %v5850_v41  ;;  %v5893_v56 = vmul.f32 0.5, %v5771_v24  ;;  %v5895_v43 = vmul.f32 0.5, %v5852_v12 }
 0x5df   : > { %7877 = verf.f32 %v5928_v3 }
 0x5e0   : > { %7879 = verf.f32 %v5930_v50 }
 0x5e1   : > { %7881 = verf.f32 %v5929_v31 }
 0x5e2   : > { %7883 = verf.f32 %v5931_v51 }
 0x5e5   : > { %v7870_v62 = vpop.eup %7869 }
 0x5e6   : > { %v7872_v18 = vpop.eup %7871  ;;  %v5996_v29 = vadd.f32 1.0, %v7870_v62 }
 0x5e7   : > { %v7874_v53 = vpop.eup %7873  ;;  %v5998_v19 = vadd.f32 1.0, %v7872_v18 }
 0x5e8   : > { %v7876_v17 = vpop.eup %7875  ;;  %v5997_v47 = vadd.f32 1.0, %v7874_v53  ;;  %v6032_v6 = vmul.f32 %v5996_v29, %v5888_v0 }
 0x5e9   : > { %v7878_v14 = vpop.eup %7877  ;;  %v5999_v11 = vadd.f32 1.0, %v7876_v17  ;;  %v6034_v38 = vmul.f32 %v5998_v19, %v5890_v30 }
 0x5ea   : > { %v7880_v7 = vpop.eup %7879  ;;  %v6000_v54 = vadd.f32 1.0, %v7878_v14  ;;  %v6033_v36 = vmul.f32 %v5997_v47, %v5889_v25 }
 0x5eb   : > { %v7882_v42 = vpop.eup %7881  ;;  %v6002_v9 = vadd.f32 1.0, %v7880_v7  ;;  %v6035_v10 = vmul.f32 %v5999_v11, %v5891_v63 }
 0x5ec   : > { %v7884_v55 = vpop.eup %7883  ;;  %v6036_v48 = vmul.f32 %v6000_v54, %v5892_v49  ;;  %v6001_v26 = vadd.f32 1.0, %v7882_v42 }
 0x5ed   : > { %v6038_v32 = vmul.f32 %v6002_v9, %v5894_v58  ;;  %v6003_v39 = vadd.f32 1.0, %v7884_v55 }
 0x5ee   : > { %v6037_v8 = vmul.f32 %v6001_v26, %v5893_v56  ;;  %v6060_v45 = vpack.c.bf16 %v6036_v48, %v6032_v6 }
 0x5ef   : > { %v6039_v27 = vmul.f32 %v6003_v39, %v5895_v43  ;;  %v6062_v13 = vpack.c.bf16 %v6038_v32, %v6034_v38 }
 0x5f0   : > { %v6061_v22 = vpack.c.bf16 %v6037_v8, %v6033_v36 }
 0x5f1   : > { %v6063_v23 = vpack.c.bf16 %v6039_v27, %v6035_v10 }
 0x5f2   : > { %6383 = vmatprep.mubr.bf16.mxu1 %v6061_v22 }
 0x5f3   : > { %6455 = vmatprep.mubr.bf16.mxu0 %v6063_v23  ;;  %6384 = vmatmul.mubr.bf16.gmra.mrb[172].mxu1 %v6060_v45 }
 0x5f4   : > { %6456 = vmatmul.mubr.bf16.gmra.mrb[192].mxu0 %v6062_v13 }
 0x616   : > { %v5774_v28 = vpop.f32.mrb[156].mxu1  ;;  %v5855_v1 = vpop.f32.mrb[176].mxu0 }
 0x617   : > { %v5775_v59 = vadd.f32 %v5774_v28, %v9793_v33  ;;  %v5856_v21 = vadd.f32 %v5855_v1, %v9796_v44  ;;  %v5776_v37 = vpop.f32.mrb[157].mxu1  ;;  %v5857_v57 = vpop.f32.mrb[177].mxu0 }
 0x618   : > { %v5777_v41 = vadd.f32 %v5776_v37, %v9799_v15  ;;  %v5858_v40 = vadd.f32 %v5857_v57, %v9802_v35  ;;  %v5778_v4 = vpop.f32.mrb[158].mxu1  ;;  %v5859_v24 = vpop.f32.mrb[178].mxu0 }
 0x619   : > { %v5932_v12 = vmul.f32 0.70710677, %v5775_v59  ;;  %v5934_v3 = vmul.f32 0.70710677, %v5856_v21  ;;  %v5779_v51 = vadd.f32 %v5778_v4, %v9793_v33  ;;  %v5860_v62 = vadd.f32 %v5859_v24, %v9796_v44  ;;  %v5780_v18 = vpop.f32.mrb[159].mxu1  ;;  %v5861_v53 = vpop.f32.mrb[179].mxu0 }
 0x61a   : > { %v5933_v50 = vmul.f32 0.70710677, %v5777_v41  ;;  %v5935_v31 = vmul.f32 0.70710677, %v5858_v40  ;;  %v5781_v17 = vadd.f32 %v5780_v18, %v9799_v15  ;;  %v5862_v29 = vadd.f32 %v5861_v53, %v9802_v35 }
 0x61b   : > { %7885 = verf.f32 %v5932_v12  ;;  %v5936_v14 = vmul.f32 0.70710677, %v5779_v51  ;;  %v5938_v0 = vmul.f32 0.70710677, %v5860_v62  ;;  %v5896_v63 = vmul.f32 0.5, %v5775_v59 }
 0x61c   : > { %7887 = verf.f32 %v5934_v3  ;;  %v5937_v30 = vmul.f32 0.70710677, %v5781_v17  ;;  %v5939_v19 = vmul.f32 0.70710677, %v5862_v29  ;;  %v5898_v11 = vmul.f32 0.5, %v5856_v21 }
 0x61d   : > { %7889 = verf.f32 %v5933_v50  ;;  %v5897_v55 = vmul.f32 0.5, %v5777_v41  ;;  %v5900_v48 = vmul.f32 0.5, %v5779_v51  ;;  %v5899_v38 = vmul.f32 0.5, %v5858_v40 }
 0x61e   : > { %7891 = verf.f32 %v5935_v31  ;;  %v5902_v43 = vmul.f32 0.5, %v5860_v62  ;;  %v5901_v10 = vmul.f32 0.5, %v5781_v17  ;;  %v5903_v23 = vmul.f32 0.5, %v5862_v29 }
 0x61f   : > { %7893 = verf.f32 %v5936_v14 }
 0x620   : > { %7895 = verf.f32 %v5938_v0 }
 0x621   : > { %7897 = verf.f32 %v5937_v30 }
 0x622   : > { %7899 = verf.f32 %v5939_v19 }
 0x625   : > { %v7886_v7 = vpop.eup %7885 }
 0x626   : > { %v7888_v25 = vpop.eup %7887  ;;  %v6004_v54 = vadd.f32 1.0, %v7886_v7 }
 0x627   : > { %v7890_v47 = vpop.eup %7889  ;;  %v6006_v58 = vadd.f32 1.0, %v7888_v25 }
 0x628   : > { %v7892_v49 = vpop.eup %7891  ;;  %v6005_v6 = vadd.f32 1.0, %v7890_v47  ;;  %v6040_v8 = vmul.f32 %v6004_v54, %v5896_v63 }
 0x629   : > { %v7894_v42 = vpop.eup %7893  ;;  %v6007_v32 = vadd.f32 1.0, %v7892_v49  ;;  %v6042_v13 = vmul.f32 %v6006_v58, %v5898_v11 }
 0x62a   : > { %v7896_v9 = vpop.eup %7895  ;;  %v6008_v56 = vadd.f32 1.0, %v7894_v42  ;;  %v6041_v1 = vmul.f32 %v6005_v6, %v5897_v55 }
 0x62b   : > { %v7898_v26 = vpop.eup %7897  ;;  %v6010_v39 = vadd.f32 1.0, %v7896_v9  ;;  %v6043_v37 = vmul.f32 %v6007_v32, %v5899_v38 }
 0x62c   : > { %v7900_v36 = vpop.eup %7899  ;;  %v6044_v45 = vmul.f32 %v6008_v56, %v5900_v48  ;;  %v6009_v27 = vadd.f32 1.0, %v7898_v26 }
 0x62d   : > { %v6046_v22 = vmul.f32 %v6010_v39, %v5902_v43  ;;  %v6011_v28 = vadd.f32 1.0, %v7900_v36  ;;  %v9879_v36 = vld [vmem:[%s10049_s17] ss:$0 sm:$0xff] }
 0x62e   : > { %v6045_v59 = vmul.f32 %v6009_v27, %v5901_v10  ;;  %v6064_v21 = vpack.c.bf16 %v6044_v45, %v6040_v8 }
 0x62f   : > { %v6047_v57 = vmul.f32 %v6011_v28, %v5903_v23  ;;  %v6066_v41 = vpack.c.bf16 %v6046_v22, %v6042_v13 }
 0x630   : > { %v6065_v4 = vpack.c.bf16 %v6045_v59, %v6041_v1 }
 0x631   : > { %v6067_v40 = vpack.c.bf16 %v6047_v57, %v6043_v37 }
 0x632   : > { %6391 = vmatprep.mubr.bf16.mxu1 %v6065_v4 }
 0x633   : > { %6463 = vmatprep.mubr.bf16.mxu0 %v6067_v40  ;;  %6392 = vmatmul.mubr.bf16.gmra.mrb[176].mxu1 %v6064_v21 }
 0x634   : > { %6464 = vmatmul.mubr.bf16.gmra.mrb[196].mxu0 %v6066_v41 }
 0x63d   : > { %v5784_v24 = vpop.f32.mrb[160].mxu1  ;;  %v5865_v12 = vpop.f32.mrb[180].mxu0 }
 0x63e   : > { %v5785_v3 = vadd.f32 %v5784_v24, %v9793_v33  ;;  %v5866_v50 = vadd.f32 %v5865_v12, %v9796_v44  ;;  %v5786_v31 = vpop.f32.mrb[161].mxu1  ;;  %v5867_v51 = vpop.f32.mrb[181].mxu0 }
 0x63f   : > { %v5787_v62 = vadd.f32 %v5786_v31, %v9799_v15  ;;  %v5868_v18 = vadd.f32 %v5867_v51, %v9802_v35  ;;  %v5788_v53 = vpop.f32.mrb[162].mxu1  ;;  %v5869_v17 = vpop.f32.mrb[182].mxu0 }
 0x640   : > { %v5940_v29 = vmul.f32 0.70710677, %v5785_v3  ;;  %v5942_v14 = vmul.f32 0.70710677, %v5866_v50  ;;  %v5789_v19 = vpop.f32.mrb[163].mxu1  ;;  %v5870_v7 = vpop.f32.mrb[183].mxu0 }
 0x641   : > { %v5941_v0 = vmul.f32 0.70710677, %v5787_v62  ;;  %v5943_v30 = vmul.f32 0.70710677, %v5868_v18  ;;  %v5904_v49 = vmul.f32 0.5, %v5785_v3  ;;  %v5906_v35 = vmul.f32 0.5, %v5866_v50 }
 0x642   : > { %7901 = verf.f32 %v5940_v29  ;;  %v5905_v42 = vmul.f32 0.5, %v5787_v62  ;;  %v5907_v11 = vmul.f32 0.5, %v5868_v18 }
 0x643   : > { %7903 = verf.f32 %v5942_v14 }
 0x644   : > { %7905 = verf.f32 %v5941_v0 }
 0x645   : > { %7907 = verf.f32 %v5943_v30 }
 0x64c   : > { %v7902_v33 = vpop.eup %7901 }
 0x64d   : > { %v7904_v44 = vpop.eup %7903  ;;  %v6012_v25 = vadd.f32 1.0, %v7902_v33 }
 0x64e   : > { %v7906_v47 = vpop.eup %7905  ;;  %v6014_v15 = vadd.f32 1.0, %v7904_v44 }
 0x64f   : > { %v7908_v54 = vpop.eup %7907  ;;  %v6013_v63 = vadd.f32 1.0, %v7906_v47  ;;  %v6048_v9 = vmul.f32 %v6012_v25, %v5904_v49 }
 0x650   : > { %v6015_v58 = vadd.f32 1.0, %v7908_v54  ;;  %v6050_v6 = vmul.f32 %v6014_v15, %v5906_v35 }
 0x651   : > { %v6049_v55 = vmul.f32 %v6013_v63, %v5905_v42  ;;  %v6068_v38 = vpack.c.bf16 %v6048_v9, %v6048_v9 }
 0x652   : > { %v6051_v48 = vmul.f32 %v6015_v58, %v5907_v11  ;;  %v6070_v32 = vpack.c.bf16 %v6050_v6, %v6050_v6 }
 0x653   : > { %v6069_v56 = vpack.c.bf16 %v6049_v55, %v6049_v55 }
 0x654   : > { %v6071_v26 = vpack.c.bf16 %v6051_v48, %v6051_v48 }
 0x655   : > { %6399 = vmatprep.mubr.bf16.mxu1 %v6069_v56 }
 0x656   : > { %6471 = vmatprep.mubr.bf16.mxu0 %v6071_v26  ;;  %6400 = vmatmul.mubr.bf16.gmra.mrb[180].mxu1 %v6068_v38 }
 0x657   : > { %6472 = vmatmul.mubr.bf16.gmra.mrb[200].mxu0 %v6070_v32 }
 0x69d   : > { %v7073_v43 = vpop.f32.mrb[164].mxu1 }
 0x69e   : > { %v7119_v39 = vpop.f32.mrb[184].mxu0  ;;  %v7074_v8 = vpop.f32.mrb[165].mxu1 }
 0x69f   : > { %v7075_v45 = vadd.f32 %v7074_v8, %v7073_v43  ;;  %v7120_v10 = vpop.f32.mrb[185].mxu0  ;;  %v7076_v27 = vpop.f32.mrb[166].mxu1 }
 0x6a0   : > { %v7121_v13 = vadd.f32 %v7120_v10, %v7119_v39  ;;  %v7122_v22 = vpop.f32.mrb[186].mxu0  ;;  %v7077_v23 = vpop.f32.mrb[167].mxu1 }
 0x6a1   : > { %v6370_v28 = vadd.f32 %v7075_v45, %v9879_v36  ;;  %v7078_v1 = vadd.f32 %v7077_v23, %v7076_v27  ;;  %v7123_v59 = vpop.f32.mrb[187].mxu0 }
 0x6a2   : > { %v7124_v21 = vadd.f32 %v7123_v59, %v7122_v22 }
 0x6a3   : > { %v6442_v37 = vadd.f32 %v7121_v13, %v6370_v28  ;;  %v6373_v57 = vadd.f32 %v7078_v1, %v9879_v36 }
 0x6a5   : > { %v6445_v41 = vadd.f32 %v7124_v21, %v6373_v57  ;;  %v9884_v4 = vadd.f32 %v6442_v37, %v9635_v2  ;;  %v7079_v40 = vpop.f32.mrb[168].mxu1 }
 0x6a6   : > { %v7080_v24 = vpop.f32.mrb[169].mxu1  ;;  %v7125_v3 = vpop.f32.mrb[188].mxu0 }
 0x6a7   : > { %6490 = vadd.xlane.f32.xlu1 %v9884_v4  ;;  %v9888_v12 = vadd.f32 %v6445_v41, %v9638_v52  ;;  %v7081_v50 = vadd.f32 %v7080_v24, %v7079_v40  ;;  %v7082_v31 = vpop.f32.mrb[170].mxu1  ;;  %v7126_v51 = vpop.f32.mrb[189].mxu0 }
 0x6a8   : > { %v7083_v62 = vpop.f32.mrb[171].mxu1  ;;  %v7127_v53 = vadd.f32 %v7126_v51, %v7125_v3  ;;  %v7128_v17 = vpop.f32.mrb[190].mxu0 }
 0x6a9   : > { %6492 = vadd.xlane.f32.xlu0 %v9888_v12  ;;  %v6378_v18 = vadd.f32 %v7081_v50, %v9879_v36  ;;  %v7084_v2 = vadd.f32 %v7083_v62, %v7082_v31  ;;  %v7129_v29 = vpop.f32.mrb[191].mxu0 }
 0x6aa   : > { %v7130_v30 = vadd.f32 %v7129_v29, %v7128_v17 }
 0x6ab   : > { %v6450_v14 = vadd.f32 %v7127_v53, %v6378_v18  ;;  %v6381_v0 = vadd.f32 %v7084_v2, %v9879_v36 }
 0x6ad   : > { %v6453_v19 = vadd.f32 %v7130_v30, %v6381_v0  ;;  %v9894_v52 = vadd.f32 %v6450_v14, %v9652_v61 }
 0x6af   : > { %6494 = vadd.xlane.f32.xlu1 %v9894_v52  ;;  %v9898_v7 = vadd.f32 %v6453_v19, %v9649_v60 }
 0x6b1   : > { %6496 = vadd.xlane.f32.xlu0 %v9898_v7 }
 0x6c6   : > { %v7085_v33 = vpop.f32.mrb[172].mxu1 }
 0x6c7   : > { %v7131_v44 = vpop.f32.mrb[192].mxu0  ;;  %v7086_v25 = vpop.f32.mrb[173].mxu1 }
 0x6c8   : > { %v7087_v47 = vadd.f32 %v7086_v25, %v7085_v33  ;;  %v7132_v49 = vpop.f32.mrb[193].mxu0  ;;  %v7088_v15 = vpop.f32.mrb[174].mxu1 }
 0x6c9   : > { %v7133_v54 = vadd.f32 %v7132_v49, %v7131_v44  ;;  %v7134_v35 = vpop.f32.mrb[194].mxu0  ;;  %v7089_v42 = vpop.f32.mrb[175].mxu1 }
 0x6ca   : > { %v6386_v63 = vadd.f32 %v7087_v47, %v9879_v36  ;;  %v7090_v61 = vadd.f32 %v7089_v42, %v7088_v15  ;;  %v7135_v11 = vpop.f32.mrb[195].mxu0 }
 0x6cb   : > { %v7136_v58 = vadd.f32 %v7135_v11, %v7134_v35 }
 0x6cc   : > { %v6458_v9 = vadd.f32 %v7133_v54, %v6386_v63  ;;  %v6389_v60 = vadd.f32 %v7090_v61, %v9879_v36 }
 0x6ce   : > { %v6461_v55 = vadd.f32 %v7136_v58, %v6389_v60  ;;  %v9904_v6 = vadd.f32 %v6458_v9, %v9699_v5 }
 0x6d0   : > { %6498 = vadd.xlane.f32.xlu1 %v9904_v6  ;;  %v9908_v48 = vadd.f32 %v6461_v55, %v9702_v46 }
 0x6d2   : > { %6500 = vadd.xlane.f32.xlu0 %v9908_v48 }
 0x706   : > { %v7091_v56 = vpop.f32.mrb[176].mxu1 }
 0x707   : > { %v7137_v26 = vpop.f32.mrb[196].mxu0  ;;  %v7092_v38 = vpop.f32.mrb[177].mxu1 }
 0x708   : > { %v7093_v32 = vadd.f32 %v7092_v38, %v7091_v56  ;;  %v7138_v43 = vpop.f32.mrb[197].mxu0  ;;  %v7094_v39 = vpop.f32.mrb[178].mxu1  ;;  %v6621_v56 = vld [vmem:[%s9941_s28 + $0x10] sm:$0xff]  ;;  %v6623_v38 = vld [vmem:[%s9941_s28 + $0x20] sm:$0xff] }
 0x709   : > { %v7139_v8 = vadd.f32 %v7138_v43, %v7137_v26  ;;  %v7140_v45 = vpop.f32.mrb[198].mxu0  ;;  %v7095_v10 = vpop.f32.mrb[179].mxu1  ;;  %v6622_v26 = vld [vmem:[%s9941_s28 + $0x18] sm:$0xff]  ;;  %v6625_v43 = vld [vmem:[%s9941_s28 + $0x30] sm:$0xff] }
 0x70a   : > { %v6394_v27 = vadd.f32 %v7093_v32, %v9879_v36  ;;  %v7096_v5 = vadd.f32 %v7095_v10, %v7094_v39  ;;  %v7141_v13 = vpop.f32.mrb[199].mxu0  ;;  %v6624_v32 = vld [vmem:[%s9941_s28 + $0x28] sm:$0xff] }
 0x70b   : > { %v7142_v22 = vadd.f32 %v7141_v13, %v7140_v45 }
 0x70c   : > { %v6466_v23 = vadd.f32 %v7139_v8, %v6394_v27  ;;  %v6397_v46 = vadd.f32 %v7096_v5, %v9879_v36  ;;  %v6626_v8 = vld [vmem:[%s9941_s28 + $0x38] sm:$0xff]  ;;  %v6627_v27 = vld [vmem:[%s9941_s28 + $0x40] sm:$0xff] }
 0x70e   : > { %v6469_v28 = vadd.f32 %v7142_v22, %v6397_v46  ;;  %v6485_v1 = vadd.f32 %v6466_v23, %v9725_v34  ;;  %v9974_v46 = vld [vmem:[%s10050_s18] ss:$0 sm:$0xff] }
 0x710   : > { %6502 = vadd.xlane.f32.xlu1 %v6485_v1  ;;  %v6486_v59 = vadd.f32 %v6469_v28, %v9728_v16 }
 0x712   : > { %6504 = vadd.xlane.f32.xlu0 %v6486_v59 }
 0x729   : > { %v7097_v21 = vpop.f32.mrb[180].mxu1 }
 0x72a   : > { %v7143_v37 = vpop.f32.mrb[200].mxu0  ;;  %v7098_v57 = vpop.f32.mrb[181].mxu1 }
 0x72b   : > { %v7099_v41 = vadd.f32 %v7098_v57, %v7097_v21  ;;  %v7144_v40 = vpop.f32.mrb[201].mxu0  ;;  %v7100_v24 = vpop.f32.mrb[182].mxu1 }
 0x72c   : > { %v7145_v3 = vadd.f32 %v7144_v40, %v7143_v37  ;;  %v7146_v50 = vpop.f32.mrb[202].mxu0  ;;  %v7101_v31 = vpop.f32.mrb[183].mxu1 }
 0x72d   : > { %v6402_v51 = vadd.f32 %v7099_v41, %v9879_v36  ;;  %v7147_v62 = vpop.f32.mrb[203].mxu0 }
 0x72f   : > { %v6474_v18 = vadd.f32 %v7145_v3, %v6402_v51  ;;  %v6620_v3 = vld [vmem:[%s9941_s28 + $0x8] sm:$0xff] }
 0x731   : > { %v6487_v47 = vadd.f32 %v6474_v18, %v9785_v20 }
 0x734   : > { %v6491_v53 = vpop.xlane.xlu1 %6490 }
 0x735   : > { %v6508_v17 = vmul.f32 0.0078125, %v6491_v53 }
 0x736   : > { %v6493_v34 = vpop.xlane.xlu0 %6492 }
 0x737   : > { %v9917_v2 = vsub.f32 %v9884_v4, %v6508_v17  ;;  %v6509_v16 = vmul.f32 0.0078125, %v6493_v34 }
 0x739   : > { %v9920_v29 = vsub.f32 %v9888_v12, %v6509_v16  ;;  %v6526_v14 = vmul.f32 %v9917_v2, %v9917_v2 }
 0x73b   : > { %6535 = vadd.xlane.f32.xlu0 %v6526_v14  ;;  %v6527_v36 = vmul.f32 %v9920_v29, %v9920_v29 }
 0x73c   : > { %v6495_v0 = vpop.xlane.xlu1 %6494 }
 0x73d   : > { %6537 = vadd.xlane.f32.xlu1 %v6527_v36  ;;  %v6510_v30 = vmul.f32 0.0078125, %v6495_v0 }
 0x73e   : > { %v6497_v19 = vpop.xlane.xlu0 %6496 }
 0x73f   : > { %v9927_v33 = vsub.f32 %v9894_v52, %v6510_v30  ;;  %v6511_v4 = vmul.f32 0.0078125, %v6497_v19  ;;  %v6619_v52 = vld [vmem:[%s9941_s28] sm:$0xff] }
 0x741   : > { %v9930_v44 = vsub.f32 %v9898_v7, %v6511_v4  ;;  %v6528_v12 = vmul.f32 %v9927_v33, %v9927_v33 }
 0x743   : > { %6539 = vadd.xlane.f32.xlu0 %v6528_v12  ;;  %v6529_v25 = vmul.f32 %v9930_v44, %v9930_v44 }
 0x745   : > { %6541 = vadd.xlane.f32.xlu1 %v6529_v25 }
 0x749   : > { %6506 = vadd.xlane.f32.xlu1 %v6487_v47 }
 0x75a   : > { %6630 = vperm.xlu1 %7373, %v6619_v52  }
 0x75d   : > { %v6499_v7 = vpop.xlane.xlu1 %6498 }
 0x75e   : > { %v6512_v49 = vmul.f32 0.0078125, %v6499_v7 }
 0x75f   : > { %v6501_v20 = vpop.xlane.xlu0 %6500 }
 0x760   : > { %v9945_v15 = vsub.f32 %v9904_v6, %v6512_v49  ;;  %v6513_v35 = vmul.f32 0.0078125, %v6501_v20 }
 0x762   : > { %v6530_v54 = vmul.f32 %v9945_v15, %v9945_v15  ;;  %v9950_v42 = vsub.f32 %v9908_v48, %v6513_v35 }
 0x764   : > { %6543 = vadd.xlane.f32.xlu0 %v6530_v54  ;;  %v6531_v63 = vmul.f32 %v9950_v42, %v9950_v42 }
 0x77e   : > { %6545 = vadd.xlane.f32.xlu1 %v6531_v63 }
 0x79d   : > { %v6503_v61 = vpop.xlane.xlu1 %6502 }
 0x79e   : > { %v6514_v11 = vmul.f32 0.0078125, %v6503_v61 }
 0x79f   : > { %v6505_v58 = vpop.xlane.xlu0 %6504 }
 0x7a0   : > { %v9954_v9 = vsub.f32 %v6485_v1, %v6514_v11  ;;  %v6515_v60 = vmul.f32 0.0078125, %v6505_v58 }
 0x7a2   : > { %v9956_v55 = vsub.f32 %v6486_v59, %v6515_v60  ;;  %v6532_v6 = vmul.f32 %v9954_v9, %v9954_v9  ;;  %v9980_v59 = vld [vmem:[%s10051_s19] ss:$0 sm:$0xff] }
 0x7a4   : > { %6547 = vadd.xlane.f32.xlu0 %v6532_v6  ;;  %v6533_v48 = vmul.f32 %v9956_v55, %v9956_v55 }
 0x7a6   : > { %6549 = vadd.xlane.f32.xlu1 %v6533_v48 }
 0x7b7   : > { %6640 = vperm.xlu1 %7373, %v6621_v56  }
 0x7bb   : > { %6645 = vperm.xlu1 %7373, %v6622_v26  }
 0x7bf   : > { %6650 = vperm.xlu1 %7373, %v6623_v38  }
 0x7c3   : > { %6655 = vperm.xlu1 %7373, %v6624_v32  }
 0x7c7   : > { %6660 = vperm.xlu1 %7373, %v6625_v43  }
 0x7c8   : > { %v6536_v39 = vpop.xlane.xlu0 %6535 }
 0x7c9   : > { %v6553_v45 = vmul.f32 0.0078125, %v6536_v39 }
 0x7ca   : > { %v9969_v5 = vpop.xlane.xlu1 %6537 }
 0x7cb   : > { %v6562_v10 = vadd.f32 1e-05, %v6553_v45  ;;  %6665 = vperm.xlu1 %7373, %v6626_v8  }
 0x7cd   : > { %7909 = vrsqrt.f32 %v6562_v10 }
 0x7cf   : > { %6670 = vperm.xlu1 %7373, %v6627_v27  }
 0x7d0   : > { %v6540_v50 = vpop.xlane.xlu0 %6539 }
 0x7d1   : > { %v6555_v31 = vmul.f32 0.0078125, %v6540_v50 }
 0x7d2   : > { %v6542_v13 = vpop.xlane.xlu1 %6541 }
 0x7d3   : > { %v6564_v51 = vadd.f32 1e-05, %v6555_v31  ;;  %v6556_v62 = vmul.f32 0.0078125, %v6542_v13 }
 0x7d5   : > { %7911 = vrsqrt.f32 %v6564_v51  ;;  %v6565_v53 = vadd.f32 1e-05, %v6556_v62 }
 0x7d6   : > { %v6507_v23 = vpop.xlane.xlu1 %6506 }
 0x7d7   : > { %v7910_v22 = vpop.eup %7909  ;;  %v6516_v28 = vmul.f32 0.0078125, %v6507_v23  ;;  %7913 = vrsqrt.f32 %v6565_v53 }
 0x7d8   : > { %v6580_v1 = vmul.f32 %v7910_v22, %v9917_v2 }
 0x7d9   : > { %v9982_v21 = vsub.f32 %v6487_v47, %v6516_v28 }
 0x7da   : > { %v6595_v37 = vmul.f32 %v9974_v46, %v6580_v1  ;;  %v6631_v57 = vpop.permute.xlu1 %6630 }
 0x7db   : > { %v6534_v41 = vmul.f32 %v9982_v21, %v9982_v21 }
 0x7dc   : > { %v6610_v40 = vadd.f32 %v9980_v59, %v6595_v37 }
 0x7dd   : > { %6551 = vadd.xlane.f32.xlu0 %v6534_v41 }
 0x7de   : > { %v6673_v24 = vmul.f32 %v6631_v57, %v6610_v40  ;;  %v6554_v57 = vmul.f32 0.0078125, %v9969_v5 }
 0x7df   : > { %v7912_v36 = vpop.eup %7911 }
 0x7e0   : > { %6682 = vst [vmem:[%s9992_s23] sm:$0xff] %v6673_v24  ;;  %v6582_v0 = vmul.f32 %v7912_v36, %v9927_v33  ;;  %v6563_v41 = vadd.f32 1e-05, %v6554_v57 }
 0x7e1   : > { %v7914_v30 = vpop.eup %7913 }
 0x7e2   : > { %v6597_v4 = vmul.f32 %v9974_v46, %v6582_v0  ;;  %v6583_v25 = vmul.f32 %v7914_v30, %v9930_v44 }
 0x7e4   : > { %v6612_v54 = vadd.f32 %v9980_v59, %v6597_v4  ;;  %v6598_v35 = vmul.f32 %v9974_v46, %v6583_v25 }
 0x7e6   : > { %v6613_v44 = vadd.f32 %v9980_v59, %v6598_v35 }
 0x7f1   : > { %v6544_v18 = vpop.xlane.xlu0 %6543 }
 0x7f2   : > { %v6557_v17 = vmul.f32 0.0078125, %v6544_v18 }
 0x7f3   : > { %6635 = vperm.xlu0 %7374, %v6620_v3  }
 0x7f4   : > { %v6566_v2 = vadd.f32 1e-05, %v6557_v17 }
 0x7f6   : > { %7915 = vrsqrt.f32 %v6566_v2 }
 0x800   : > { %v7916_v47 = vpop.eup %7915 }
 0x801   : > { %v6584_v33 = vmul.f32 %v7916_v47, %v9945_v15 }
 0x803   : > { %v6599_v58 = vmul.f32 %v9974_v46, %v6584_v33 }
 0x805   : > { %v6614_v56 = vadd.f32 %v9980_v59, %v6599_v58 }
 0x80b   : > { %v6546_v34 = vpop.xlane.xlu1 %6545 }
 0x80c   : > { %v6558_v16 = vmul.f32 0.0078125, %v6546_v34 }
 0x80e   : > { %v6567_v14 = vadd.f32 1e-05, %v6558_v16 }
 0x810   : > { %7917 = vrsqrt.f32 %v6567_v14 }
 0x81a   : > { %v7918_v63 = vpop.eup %7917 }
 0x81b   : > { %v6585_v60 = vmul.f32 %v7918_v63, %v9950_v42 }
 0x81d   : > { %v6600_v15 = vmul.f32 %v9974_v46, %v6585_v60 }
 0x81f   : > { %v6615_v8 = vadd.f32 %v9980_v59, %v6600_v15 }
 0x831   : > { %v6548_v19 = vpop.xlane.xlu0 %6547 }
 0x832   : > { %v6559_v12 = vmul.f32 0.0078125, %v6548_v19 }
 0x833   : > { %v6550_v52 = vpop.xlane.xlu1 %6549 }
 0x834   : > { %v6568_v7 = vadd.f32 1e-05, %v6559_v12  ;;  %v6560_v49 = vmul.f32 0.0078125, %v6550_v52 }
 0x836   : > { %7919 = vrsqrt.f32 %v6568_v7  ;;  %v6569_v20 = vadd.f32 1e-05, %v6560_v49 }
 0x837   : > { %v6641_v61 = vpop.permute.xlu1 %6640 }
 0x838   : > { %7921 = vrsqrt.f32 %v6569_v20  ;;  %v6675_v11 = vmul.f32 %v6641_v61, %v6612_v54 }
 0x839   : > { %7923 = vrsqrt.f32 %v6563_v41 }
 0x83a   : > { %6684 = vst [vmem:[%s9992_s23 + $0x10] sm:$0xff] %v6675_v11 }
 0x83b   : > { %v6646_v6 = vpop.permute.xlu1 %6645 }
 0x83c   : > { %v6676_v48 = vmul.f32 %v6646_v6, %v6613_v44 }
 0x83e   : > { %6685 = vst [vmem:[%s9992_s23 + $0x18] sm:$0xff] %v6676_v48 }
 0x83f   : > { %v6651_v26 = vpop.permute.xlu1 %6650 }
 0x840   : > { %v7920_v38 = vpop.eup %7919  ;;  %v6677_v32 = vmul.f32 %v6651_v26, %v6614_v56 }
 0x841   : > { %v6586_v43 = vmul.f32 %v7920_v38, %v9954_v9 }
 0x842   : > { %v7922_v39 = vpop.eup %7921  ;;  %6686 = vst [vmem:[%s9992_s23 + $0x20] sm:$0xff] %v6677_v32 }
 0x843   : > { %v6656_v42 = vpop.permute.xlu1 %6655  ;;  %v6601_v45 = vmul.f32 %v9974_v46, %v6586_v43  ;;  %v6587_v10 = vmul.f32 %v7922_v39, %v9956_v55  ;;  %v7924_v55 = vpop.eup %7923 }
 0x844   : > { %v6678_v27 = vmul.f32 %v6656_v42, %v6615_v8  ;;  %v6581_v40 = vmul.f32 %v7924_v55, %v9920_v29 }
 0x845   : > { %v6616_v13 = vadd.f32 %v9980_v59, %v6601_v45  ;;  %v6602_v22 = vmul.f32 %v9974_v46, %v6587_v10 }
 0x846   : > { %6687 = vst [vmem:[%s9992_s23 + $0x28] sm:$0xff] %v6678_v27  ;;  %v6596_v31 = vmul.f32 %v9974_v46, %v6581_v40 }
 0x847   : > { %v6661_v23 = vpop.permute.xlu1 %6660  ;;  %v6617_v9 = vadd.f32 %v9980_v59, %v6602_v22 }
 0x848   : > { %v6679_v28 = vmul.f32 %v6661_v23, %v6616_v13  ;;  %v6611_v51 = vadd.f32 %v9980_v59, %v6596_v31 }
 0x84a   : > { %6688 = vst [vmem:[%s9992_s23 + $0x30] sm:$0xff] %v6679_v28 }
 0x84b   : > { %v6666_v1 = vpop.permute.xlu1 %6665 }
 0x84c   : > { %v6680_v37 = vmul.f32 %v6666_v1, %v6617_v9 }
 0x84e   : > { %6689 = vst [vmem:[%s9992_s23 + $0x38] sm:$0xff] %v6680_v37 }
 0x84f   : > { %v6671_v29 = vpop.permute.xlu1 %6670 }
 0x86a   : > { %v6552_v24 = vpop.xlane.xlu0 %6551 }
 0x86b   : > { %v6561_v3 = vmul.f32 0.0078125, %v6552_v24 }
 0x86d   : > { %v6570_v50 = vadd.f32 1e-05, %v6561_v3 }
 0x86f   : > { %7925 = vrsqrt.f32 %v6570_v50 }
 0x872   : > { %v6636_v62 = vpop.permute.xlu0 %6635 }
 0x873   : > { %v6674_v18 = vmul.f32 %v6636_v62, %v6611_v51 }
 0x875   : > { %6683 = vst [vmem:[%s9992_s23 + $0x8] sm:$0xff] %v6674_v18 }
 0x879   : > { %v7926_v53 = vpop.eup %7925 }
 0x87a   : > { %v6588_v5 = vmul.f32 %v7926_v53, %v9982_v21 }
 0x87c   : > { %v6603_v17 = vmul.f32 %v9974_v46, %v6588_v5 }
 0x87e   : > { %v6618_v34 = vadd.f32 %v9980_v59, %v6603_v17 }
 0x880   : > { %v6681_v2 = vmul.f32 %v6671_v29, %v6618_v34 }
 0x882   : > { %6690 = vst [vmem:[%s9992_s23 + $0x40] sm:$0xff] %v6681_v2 }
 0x883 PF: > { %s30_s1 = sadd.s32 1, %s7946_s1  }
 0x884   : > { %p27_p5 = scmp.ge.s32.totalorder %s30_s1, 4  }
 0x886   :  { %29 = sbr.rel (!%p27_p5) target bundleno = 7 (0x7), region = 142 }

</bundles_post_ra>
